<compile_context>
chip_gen: v7x
topology: tpu7x:2x2x1
jax: 0.10.0
libtpu: 0.0.40
codegen_flags: <defaults>
</compile_context>

<pallas_src>
import functools

import jax
import jax.numpy as jnp
import numpy as np
from jax.experimental import pallas as pl
from jax.experimental.pallas import tpu as pltpu

EXPAND_RATIO = 6
BN_EPS = 1e-5


# ----------------------------- fused kernel ----------------------------------


def _fused_kernel(x_ref, w1s_ref, w3s_ref, dws_ref, b3s_ref, upk_ref,
                  feats_ref, up_ref, scr, *, H, W, pad, irb_cfg):
    # x_ref     : (1, Cin, HW)                       input image (flat spatial)
    # w1s_ref   : (sum mid, cin)        bf16         scale-folded 1x1 expand weights
    # w3s_ref   : (sum w3_rows, mid)    bf16         scale-folded 1x1 project weights
    # dws_ref   : (sum mid, 11)         f32          [9 scale-folded dw taps | b1 | b2]
    # b3s_ref   : (sum b3_rows, 1)      f32          project biases
    # upk_ref   : (C3, 16)              f32          up-unit parity tap weights
    # feats_ref : (1, C3, HW)                        output feats
    # up_ref    : (1, 4, C3, HW)                     output up (4 = pixel parity)
    # scr       : VMEM (cmax, pad + HW + pad) f32    zero-halo scratch
    HW = H * W

    # Column-boundary masks (flat index -> w coordinate), as f32 multipliers.
    # Row-boundary taps read zeros from the halo automatically; only the +/-1
    # column shifts can wrap into valid data and must be masked.
    w_idx = jax.lax.broadcasted_iota(jnp.int32, (1, HW), 1) % W
    col_ok = {-1: (w_idx > 0).astype(jnp.float32),
              0: None,
              1: (w_idx < W - 1).astype(jnp.float32)}

    # Zero ONLY the halo columns (the centre is fully overwritten before every
    # read, and centre stores never touch the halos).
    halo_zeros = jnp.zeros((scr.shape[0], pad), scr.dtype)
    scr[:, :pad] = halo_zeros
    scr[:, pad + HW:pad + HW + pad] = halo_zeros

    def shifted_tap(C, dh, dw_):
        off = pad + dh * W + dw_                 # pad >= W + 1 keeps off >= 0
        return scr[:C, off:off + HW]

    def irb(v, cfg):
        m_off, mid, w3_off, w3_rows, b3_off, cin, cout = cfg
        dwb = dws_ref[m_off:m_off + mid, :]      # (mid, 11): dw taps | b1 | b2
        # --- 1x1 expand (BN scale folded into weight rows) + bias + ReLU6 ----
        w1 = w1s_ref[m_off:m_off + mid, :]       # (mid, cin) bf16
        y = jnp.dot(w1, v.astype(jnp.bfloat16),
                    preferred_element_type=jnp.float32)
        y = jnp.clip(y + dwb[:, 9:10], 0.0, 6.0)
        # --- 3x3 depthwise (BN scale folded into taps) + bias + ReLU6 --------
        scr[:mid, pad:pad + HW] = y              # lane-aligned store into halo scratch
        acc = None
        for b, dw_ in enumerate((-1, 0, 1)):     # group by column shift so the
            part = None                          # (1,HW) mask is applied once
            for a, dh in enumerate((-1, 0, 1)):  # per group, not once per tap
                term = shifted_tap(mid, dh, dw_) * dwb[:, 3 * a + b:3 * a + b + 1]
                part = term if part is None else part + term
            if col_ok[dw_] is not None:
                part = part * col_ok[dw_]
            acc = part if acc is None else acc + part
        y = jnp.clip(acc + dwb[:, 10:11], 0.0, 6.0)
        # --- 1x1 project (BN scale folded) + bias (+ skip iff cin == cout) ---
        w3 = w3s_ref[w3_off:w3_off + w3_rows, :]  # (w3_rows, mid) bf16, zero-padded rows
        z = jnp.dot(w3, y.astype(jnp.bfloat16),
                    preferred_element_type=jnp.float32)
        z = z[:cout, :] + b3s_ref[b3_off:b3_off + cout, :]
        if cout == cin:
            z = z + v
        return z

    f = x_ref[0].astype(jnp.float32)             # (Cin, HW)
    for cfg in irb_cfg:
        f = irb(f, cfg)
    feats_ref[0] = f.astype(feats_ref.dtype)

    # LearnedUpUnit: nearest-2x upsample + 3x3 depthwise, decomposed into four
    # 2x2 depthwise convs on feats (one per output-pixel parity).  feats is
    # staged into the scratch ONCE; the 9 distinct shifted taps are loaded and
    # masked once and shared by all four parities.
    C3 = irb_cfg[-1][-1]
    upw = upk_ref[...]                           # (C3, 16)
    scr[:C3, pad:pad + HW] = f
    taps = {}
    for dh in (-1, 0, 1):
        for dw_ in (-1, 0, 1):
            t = shifted_tap(C3, dh, dw_)
            if col_ok[dw_] is not None:
                t = t * col_ok[dw_]
            taps[(dh, dw_)] = t
    offs = ((-1, 0), (0, 1))
    for py in range(2):
        for px in range(2):
            p = 2 * py + px
            acc = None
            for a in range(2):
                for b in range(2):
                    col = 4 * p + 2 * a + b
                    term = taps[(offs[py][a], offs[px][b])] * upw[:, col:col + 1]
                    acc = term if acc is None else acc + term
            up_ref[0, p] = acc.astype(up_ref.dtype)


# ----------------------------- parameter prep --------------------------------


def _up_parity_weights(up_wdw):
    # up_wdw: (3, 3, C). Returns (C, 16): column 4*(2*py+px) + 2*a + b is the
    # effective 2x2-conv weight for output parity (py, px) and tap (a, b),
    # where tap a/b reads feats at row offset ((-1,0),(0,1))[py][a] and column
    # offset ((-1,0),(0,1))[px][b].
    groups = (((0,), (1, 2)), ((0, 1), (2,)))
    C = up_wdw.shape[-1]
    cols = []
    for py in range(2):
        for px in range(2):
            for a in range(2):
                for b in range(2):
                    w = jnp.zeros((C,), up_wdw.dtype)
                    for i in groups[py][a]:
                        for j in groups[px][b]:
                            w = w + up_wdw[i, j]
                    cols.append(w)
    return jnp.stack(cols, axis=1)


def _prep_params(params):
    # Fold BN scales into the conv weights, pre-cast matmul weights to bf16,
    # and pack everything into a few sublane-aligned slabs (few DMAs).
    w1_blks, dw_blks, w3_blks, b3_blks, irb_cfg = [], [], [], [], []
    m_off = w3_off = b3_off = 0
    for k in ("irb1", "irb2", "irb3"):
        p = params[k]
        cin, mid = p["w1"].shape                 # mid = 6*cin (multiple of 16 here,
        cout = p["w3"].shape[1]                  # so bf16 row slices stay tile-aligned)
        s1 = p["s1"].reshape(mid, 1); b1 = p["b1"].reshape(mid, 1)
        s2 = p["s2"].reshape(mid, 1); b2 = p["b2"].reshape(mid, 1)
        s3 = p["s3"].reshape(cout, 1); b3 = p["b3"].reshape(cout, 1)
        w1_blks.append((p["w1"].T * s1).astype(jnp.bfloat16))            # (mid, cin)
        dw = p["wdw"].transpose(2, 0, 1).reshape(mid, 9) * s2            # (mid, 9)
        dw_blks.append(jnp.concatenate([dw, b1, b2], axis=1))            # (mid, 11)
        w3_rows = -(-cout // 16) * 16            # pad rows to the bf16 sublane tile
        b3_rows = -(-cout // 8) * 8              # pad rows to the f32 sublane tile
        w3_blks.append(jnp.pad((p["w3"].T * s3).astype(jnp.bfloat16),
                               ((0, w3_rows - cout), (0, 0))))           # (w3_rows, mid)
        b3_blks.append(jnp.pad(b3, ((0, b3_rows - cout), (0, 0))))       # (b3_rows, 1)
        irb_cfg.append((m_off, mid, w3_off, w3_rows, b3_off, cin, cout))
        m_off += mid
        w3_off += w3_rows
        b3_off += b3_rows
    return dict(
        w1s=jnp.concatenate(w1_blks, axis=0),
        w3s=jnp.concatenate(w3_blks, axis=0),
        dws=jnp.concatenate(dw_blks, axis=0),
        b3s=jnp.concatenate(b3_blks, axis=0),
        upk=_up_parity_weights(params["up_wdw"]),
        irb_cfg=tuple(irb_cfg),
    )


# ----------------------------- module forward --------------------------------


def irb_up_block(x_nchw, params):
    # x_nchw: (N, 2*in_feats, H, W) -> (up: (N, f, 2H, 2W), feats: (N, f, H, W))
    N, Cin, H, W = x_nchw.shape
    HW = H * W
    pad = max(128, ((W + 1 + 127) // 128) * 128)   # resolution-safe halo width

    prep = _prep_params(params)
    irb_cfg = prep["irb_cfg"]
    C3 = irb_cfg[-1][-1]
    cmax = max(max(cfg[1] for cfg in irb_cfg), C3)

    x = x_nchw.reshape(N, Cin, HW)                 # free reshape

    in_specs = [
        pl.BlockSpec((1, Cin, HW), lambda n: (n, 0, 0)),
        pl.BlockSpec(prep["w1s"].shape, lambda n: (0, 0)),
        pl.BlockSpec(prep["w3s"].shape, lambda n: (0, 0)),
        pl.BlockSpec(prep["dws"].shape, lambda n: (0, 0)),
        pl.BlockSpec(prep["b3s"].shape, lambda n: (0, 0)),
        pl.BlockSpec(prep["upk"].shape, lambda n: (0, 0)),
    ]
    out_shape = (jax.ShapeDtypeStruct((N, C3, HW), x_nchw.dtype),
                 jax.ShapeDtypeStruct((N, 4, C3, HW), x_nchw.dtype))
    out_specs = (pl.BlockSpec((1, C3, HW), lambda n: (n, 0, 0)),
                 pl.BlockSpec((1, 4, C3, HW), lambda n: (n, 0, 0, 0)))

    kern = functools.partial(_fused_kernel, H=H, W=W, pad=pad, irb_cfg=irb_cfg)
    feats_flat, up4 = pl.pallas_call(
        kern,
        out_shape=out_shape,
        grid=(N,),
        in_specs=in_specs,
        out_specs=out_specs,
        scratch_shapes=[pltpu.VMEM((cmax, pad + HW + pad), jnp.float32)],
        compiler_params=pltpu.CompilerParams(
            dimension_semantics=("parallel",),
            vmem_limit_bytes=32 * 1024 * 1024),
    )(x, prep["w1s"], prep["w3s"], prep["dws"], prep["b3s"], prep["upk"])

    feats = feats_flat.reshape(N, C3, H, W)        # free reshape
    # Parity interleave (2h+py, 2w+px).  This IS a materialized XLA transpose
    # of the up tensor (one extra HBM read+write of ~N*C3*4*HW*4 B).
    # TODO(synk): fold this into the kernel with stride-2 lane stores.
    up = (up4.reshape(N, 2, 2, C3, H, W)
              .transpose(0, 3, 4, 1, 5, 2)
              .reshape(N, C3, 2 * H, 2 * W))
    return up, feats


# ----------------------------- parameter init --------------------------------


def make_bn(key, c):
    kg, kb = jax.random.split(key)
    gamma = 1.0 + 0.1 * jax.random.normal(kg, (c,), jnp.float32)
    beta = 0.1 * jax.random.normal(kb, (c,), jnp.float32)
    mean = jnp.zeros((c,), jnp.float32)
    var = jnp.ones((c,), jnp.float32)
    scale = gamma / jnp.sqrt(var + BN_EPS)
    bias = beta - mean * scale
    return scale.reshape(1, c), bias.reshape(1, c)


def make_irb(key, cin, cout):
    mid = cin * EXPAND_RATIO
    ks = jax.random.split(key, 6)
    w1 = 0.1 * jax.random.normal(ks[0], (cin, mid), jnp.float32)
    s1, b1 = make_bn(ks[1], mid)
    wdw = 0.1 * jax.random.normal(ks[2], (3, 3, mid), jnp.float32)
    s2, b2 = make_bn(ks[3], mid)
    w3 = 0.1 * jax.random.normal(ks[4], (mid, cout), jnp.float32)
    s3, b3 = make_bn(ks[5], cout)
    return dict(w1=w1, s1=s1, b1=b1, wdw=wdw, s2=s2, b2=b2, w3=w3, s3=s3, b3=b3)


# ----------------------------- pure-JAX reference -----------------------------


def ref_pw(x, w, s, b, relu6):
    y = jnp.einsum("nhwc,cd->nhwd", x, w)
    y = y * s[0] + b[0]
    return jnp.clip(y, 0.0, 6.0) if relu6 else y


def ref_dw(x, wdw):
    N, H, W, C = x.shape
    xp = jnp.pad(x, ((0, 0), (1, 1), (1, 1), (0, 0)))
    acc = jnp.zeros_like(x)
    for dh in range(3):
        for dw in range(3):
            acc = acc + xp[:, dh:dh + H, dw:dw + W, :] * wdw[dh, dw]
    return acc


def ref_irb(x, p, use_res):
    y = ref_pw(x, p["w1"], p["s1"], p["b1"], True)
    y = ref_dw(y, p["wdw"])
    y = jnp.clip(y * p["s2"][0] + p["b2"][0], 0.0, 6.0)
    y = ref_pw(y, p["w3"], p["s3"], p["b3"], False)
    return x + y if use_res else y


# ----------------------------- main ------------------------------------------


if __name__ == "__main__":
    in_feats = 4
    N, H, W = 2, 16, 16
    C_in = 2 * in_feats

    key = jax.random.PRNGKey(0)
    k_x, k1, k2, k3, kup = jax.random.split(key, 5)
    params = dict(
        irb1=make_irb(k1, 2 * in_feats, 2 * in_feats),
        irb2=make_irb(k2, 2 * in_feats, 2 * in_feats),
        irb3=make_irb(k3, 2 * in_feats, in_feats),
        up_wdw=0.1 * jax.random.normal(kup, (3, 3, in_feats), jnp.float32),
    )

    x = jax.random.normal(k_x, (N, C_in, H, W), jnp.float32)  # NCHW, like PyTorch

    up, feats = jax.jit(lambda xx: irb_up_block(xx, params))(x)
    jax.block_until_ready((up, feats))

    assert up.shape == (N, in_feats, 2 * H, 2 * W)
    assert feats.shape == (N, in_feats, H, W)

    # Reference check: same math in plain f32 JAX (NHWC).  The kernel feeds the
    # MXU bf16 operands (f32 accumulation), so the tolerance is set accordingly.
    xn = jnp.transpose(x, (0, 2, 3, 1))
    fr = ref_irb(xn, params["irb1"], True)
    fr = ref_irb(fr, params["irb2"], True)
    fr = ref_irb(fr, params["irb3"], False)
    ur = jnp.repeat(jnp.repeat(fr, 2, axis=1), 2, axis=2)
    ur = ref_dw(ur, params["up_wdw"])

    np.testing.assert_allclose(np.asarray(feats),
                               np.asarray(jnp.transpose(fr, (0, 3, 1, 2))),
                               atol=5e-2, rtol=5e-2)
    np.testing.assert_allclose(np.asarray(up),
                               np.asarray(jnp.transpose(ur, (0, 3, 1, 2))),
                               atol=5e-2, rtol=5e-2)

    print("KERNEL_OK")
</pallas_src>

<mosaic_0001>
module attributes {stable_mosaic.version = 11 : i64} {
  func.func @_fused_kernel(%arg0: i32, %arg1: memref<1x8x256xf32, #tpu.memory_space<vmem>>, %arg2: memref<144x8xbf16, #tpu.memory_space<vmem>>, %arg3: memref<48x48xbf16, #tpu.memory_space<vmem>>, %arg4: memref<144x11xf32, #tpu.memory_space<vmem>>, %arg5: memref<24x1xf32, #tpu.memory_space<vmem>>, %arg6: memref<4x16xf32, #tpu.memory_space<vmem>>, %arg7: memref<1x4x256xf32, #tpu.memory_space<vmem>>, %arg8: memref<1x4x4x256xf32, #tpu.memory_space<vmem>>, %arg9: memref<48x512xf32, #tpu.memory_space<vmem>>) attributes {dimension_semantics = [#tpu.dimension_semantics<parallel>], iteration_bounds = array<i64: 2>, scalar_prefetch = 0 : i64, scratch_operands = 1 : i64, tpu.core_type = #tpu.core_type<tc>, window_params = [{transform_indices = @transform_0, window_bounds = array<i64: 1, 8, 256>}, {pipeline_mode = #tpu.pipeline_mode<synchronous>, transform_indices = @transform_1, window_bounds = array<i64: 144, 8>}, {pipeline_mode = #tpu.pipeline_mode<synchronous>, transform_indices = @transform_2, window_bounds = array<i64: 48, 48>}, {pipeline_mode = #tpu.pipeline_mode<synchronous>, transform_indices = @transform_3, window_bounds = array<i64: 144, 11>}, {pipeline_mode = #tpu.pipeline_mode<synchronous>, transform_indices = @transform_4, window_bounds = array<i64: 24, 1>}, {pipeline_mode = #tpu.pipeline_mode<synchronous>, transform_indices = @transform_5, window_bounds = array<i64: 4, 16>}, {transform_indices = @transform_6, window_bounds = array<i64: 1, 4, 256>}, {transform_indices = @transform_7, window_bounds = array<i64: 1, 4, 4, 256>}]} {
    %0 = tpu.iota {dimensions = array<i32: 1>} : vector<1x256xi32>
    %c16_i32 = arith.constant 16 : i32
    %c0_i32 = arith.constant 0 : i32
    %1 = arith.cmpi eq, %c16_i32, %c0_i32 : i32
    %c1_i32 = arith.constant 1 : i32
    %2 = arith.select %1, %c1_i32, %c16_i32 : i32
    %3 = vector.broadcast %2 : i32 to vector<1x256xi32>
    %4 = arith.remsi %0, %3 : vector<1x256xi32>
    %c0_i32_0 = arith.constant 0 : i32
    %5 = vector.broadcast %c0_i32_0 : i32 to vector<1x256xi32>
    %6 = arith.cmpi ne, %4, %5 : vector<1x256xi32>
    %c0_i32_1 = arith.constant 0 : i32
    %7 = vector.broadcast %c0_i32_1 : i32 to vector<1x256xi32>
    %8 = arith.cmpi slt, %4, %7 : vector<1x256xi32>
    %c0_i32_2 = arith.constant 0 : i32
    %9 = arith.cmpi slt, %2, %c0_i32_2 : i32
    %10 = vector.broadcast %9 : i1 to vector<1x256xi1>
    %11 = vector.broadcast %10 : vector<1x256xi1> to vector<1x256xi1>
    %12 = arith.xori %8, %11 : vector<1x256xi1>
    %13 = arith.andi %12, %6 : vector<1x256xi1>
    %14 = vector.broadcast %2 : i32 to vector<1x256xi32>
    %15 = arith.addi %4, %14 : vector<1x256xi32>
    %16 = arith.select %13, %15, %4 : vector<1x256xi1>, vector<1x256xi32>
    %c0_i32_3 = arith.constant 0 : i32
    %17 = vector.broadcast %c0_i32_3 : i32 to vector<1x256xi32>
    %18 = arith.cmpi sgt, %16, %17 : vector<1x256xi32>
    %19 = arith.extui %18 : vector<1x256xi1> to vector<1x256xi32>
    %20 = arith.sitofp %19 : vector<1x256xi32> to vector<1x256xf32>
    %c15_i32 = arith.constant 15 : i32
    %21 = vector.broadcast %c15_i32 : i32 to vector<1x256xi32>
    %22 = arith.cmpi slt, %16, %21 : vector<1x256xi32>
    %23 = arith.extui %22 : vector<1x256xi1> to vector<1x256xi32>
    %24 = arith.sitofp %23 : vector<1x256xi32> to vector<1x256xf32>
    %cst = arith.constant 0.000000e+00 : f32
    %25 = vector.broadcast %cst : f32 to vector<48x128xf32>
    %c0 = arith.constant 0 : index
    %c0_4 = arith.constant 0 : index
    %26 = vector.load %arg9[%c0, %c0_4] : memref<48x512xf32, #tpu.memory_space<vmem>>, vector<48x128xf32>
    tpu.vector_store %arg9[%c0, %c0_4], %25 {strides = array<i32>} : memref<48x512xf32, #tpu.memory_space<vmem>>, vector<48x128xf32>,
    %c0_5 = arith.constant 0 : index
    %c384 = arith.constant 384 : index
    %27 = vector.load %arg9[%c0_5, %c384] : memref<48x512xf32, #tpu.memory_space<vmem>>, vector<48x128xf32>
    tpu.vector_store %arg9[%c0_5, %c384], %25 {strides = array<i32>} : memref<48x512xf32, #tpu.memory_space<vmem>>, vector<48x128xf32>,
    %c0_6 = arith.constant 0 : index
    %c0_7 = arith.constant 0 : index
    %c0_8 = arith.constant 0 : index
    %28 = vector.load %arg1[%c0_6, %c0_7, %c0_8] : memref<1x8x256xf32, #tpu.memory_space<vmem>>, vector<1x8x256xf32>
    %29 = vector.shape_cast %28 : vector<1x8x256xf32> to vector<8x256xf32>
    %c0_9 = arith.constant 0 : index
    %c0_10 = arith.constant 0 : index
    %30 = vector.load %arg4[%c0_9, %c0_10] : memref<144x11xf32, #tpu.memory_space<vmem>>, vector<48x11xf32>
    %c0_11 = arith.constant 0 : index
    %c0_12 = arith.constant 0 : index
    %31 = vector.load %arg2[%c0_11, %c0_12] : memref<144x8xbf16, #tpu.memory_space<vmem>>, vector<48x8xbf16>
    %32 = arith.truncf %29 : vector<8x256xf32> to vector<8x256xbf16>
    %cst_13 = arith.constant dense<0.000000e+00> : vector<48x256xf32>
    %33 = tpu.matmul %31, %32, %cst_13 {dimension_numbers = #tpu.dot_dimension_numbers<[1], [0], [0], [1], [0, 0, 1, 1], [], []>} : vector<48x8xbf16>, vector<8x256xbf16>, vector<48x256xf32> -> vector<48x256xf32>
    %34 = vector.extract_strided_slice %30 {offsets = [0, 9], sizes = [48, 1], strides = [1, 1]} : vector<48x11xf32> to vector<48x1xf32>
    %35 = vector.broadcast %34 : vector<48x1xf32> to vector<48x256xf32>
    %36 = arith.addf %33, %35 : vector<48x256xf32>
    %cst_14 = arith.constant 0.000000e+00 : f32
    %cst_15 = arith.constant 6.000000e+00 : f32
    %37 = vector.broadcast %cst_14 : f32 to vector<48x256xf32>
    %38 = arith.maximumf %37, %36 : vector<48x256xf32>
    %39 = vector.broadcast %cst_15 : f32 to vector<48x256xf32>
    %40 = arith.minimumf %39, %38 : vector<48x256xf32>
    %c0_16 = arith.constant 0 : index
    %c128 = arith.constant 128 : index
    %41 = vector.load %arg9[%c0_16, %c128] : memref<48x512xf32, #tpu.memory_space<vmem>>, vector<48x256xf32>
    tpu.vector_store %arg9[%c0_16, %c128], %40 {strides = array<i32>} : memref<48x512xf32, #tpu.memory_space<vmem>>, vector<48x256xf32>,
    %c0_17 = arith.constant 0 : index
    %c111 = arith.constant 111 : index
    %42 = vector.load %arg9[%c0_17, %c111] : memref<48x512xf32, #tpu.memory_space<vmem>>, vector<48x256xf32>
    %43 = vector.extract_strided_slice %30 {offsets = [0, 0], sizes = [48, 1], strides = [1, 1]} : vector<48x11xf32> to vector<48x1xf32>
    %44 = vector.broadcast %43 : vector<48x1xf32> to vector<48x256xf32>
    %45 = arith.mulf %42, %44 : vector<48x256xf32>
    %c0_18 = arith.constant 0 : index
    %c127 = arith.constant 127 : index
    %46 = vector.load %arg9[%c0_18, %c127] : memref<48x512xf32, #tpu.memory_space<vmem>>, vector<48x256xf32>
    %47 = vector.extract_strided_slice %30 {offsets = [0, 3], sizes = [48, 1], strides = [1, 1]} : vector<48x11xf32> to vector<48x1xf32>
    %48 = vector.broadcast %47 : vector<48x1xf32> to vector<48x256xf32>
    %49 = arith.mulf %46, %48 : vector<48x256xf32>
    %50 = arith.addf %45, %49 : vector<48x256xf32>
    %c0_19 = arith.constant 0 : index
    %c143 = arith.constant 143 : index
    %51 = vector.load %arg9[%c0_19, %c143] : memref<48x512xf32, #tpu.memory_space<vmem>>, vector<48x256xf32>
    %52 = vector.extract_strided_slice %30 {offsets = [0, 6], sizes = [48, 1], strides = [1, 1]} : vector<48x11xf32> to vector<48x1xf32>
    %53 = vector.broadcast %52 : vector<48x1xf32> to vector<48x256xf32>
    %54 = arith.mulf %51, %53 : vector<48x256xf32>
    %55 = arith.addf %50, %54 : vector<48x256xf32>
    %56 = vector.broadcast %20 : vector<1x256xf32> to vector<48x256xf32>
    %57 = arith.mulf %55, %56 : vector<48x256xf32>
    %c0_20 = arith.constant 0 : index
    %c112 = arith.constant 112 : index
    %58 = vector.load %arg9[%c0_20, %c112] : memref<48x512xf32, #tpu.memory_space<vmem>>, vector<48x256xf32>
    %59 = vector.extract_strided_slice %30 {offsets = [0, 1], sizes = [48, 1], strides = [1, 1]} : vector<48x11xf32> to vector<48x1xf32>
    %60 = vector.broadcast %59 : vector<48x1xf32> to vector<48x256xf32>
    %61 = arith.mulf %58, %60 : vector<48x256xf32>
    %c0_21 = arith.constant 0 : index
    %c128_22 = arith.constant 128 : index
    %62 = vector.load %arg9[%c0_21, %c128_22] : memref<48x512xf32, #tpu.memory_space<vmem>>, vector<48x256xf32>
    %63 = vector.extract_strided_slice %30 {offsets = [0, 4], sizes = [48, 1], strides = [1, 1]} : vector<48x11xf32> to vector<48x1xf32>
    %64 = vector.broadcast %63 : vector<48x1xf32> to vector<48x256xf32>
    %65 = arith.mulf %62, %64 : vector<48x256xf32>
    %66 = arith.addf %61, %65 : vector<48x256xf32>
    %c0_23 = arith.constant 0 : index
    %c144 = arith.constant 144 : index
    %67 = vector.load %arg9[%c0_23, %c144] : memref<48x512xf32, #tpu.memory_space<vmem>>, vector<48x256xf32>
    %68 = vector.extract_strided_slice %30 {offsets = [0, 7], sizes = [48, 1], strides = [1, 1]} : vector<48x11xf32> to vector<48x1xf32>
    %69 = vector.broadcast %68 : vector<48x1xf32> to vector<48x256xf32>
    %70 = arith.mulf %67, %69 : vector<48x256xf32>
    %71 = arith.addf %66, %70 : vector<48x256xf32>
    %72 = arith.addf %57, %71 : vector<48x256xf32>
    %c0_24 = arith.constant 0 : index
    %c113 = arith.constant 113 : index
    %73 = vector.load %arg9[%c0_24, %c113] : memref<48x512xf32, #tpu.memory_space<vmem>>, vector<48x256xf32>
    %74 = vector.extract_strided_slice %30 {offsets = [0, 2], sizes = [48, 1], strides = [1, 1]} : vector<48x11xf32> to vector<48x1xf32>
    %75 = vector.broadcast %74 : vector<48x1xf32> to vector<48x256xf32>
    %76 = arith.mulf %73, %75 : vector<48x256xf32>
    %c0_25 = arith.constant 0 : index
    %c129 = arith.constant 129 : index
    %77 = vector.load %arg9[%c0_25, %c129] : memref<48x512xf32, #tpu.memory_space<vmem>>, vector<48x256xf32>
    %78 = vector.extract_strided_slice %30 {offsets = [0, 5], sizes = [48, 1], strides = [1, 1]} : vector<48x11xf32> to vector<48x1xf32>
    %79 = vector.broadcast %78 : vector<48x1xf32> to vector<48x256xf32>
    %80 = arith.mulf %77, %79 : vector<48x256xf32>
    %81 = arith.addf %76, %80 : vector<48x256xf32>
    %c0_26 = arith.constant 0 : index
    %c145 = arith.constant 145 : index
    %82 = vector.load %arg9[%c0_26, %c145] : memref<48x512xf32, #tpu.memory_space<vmem>>, vector<48x256xf32>
    %83 = vector.extract_strided_slice %30 {offsets = [0, 8], sizes = [48, 1], strides = [1, 1]} : vector<48x11xf32> to vector<48x1xf32>
    %84 = vector.broadcast %83 : vector<48x1xf32> to vector<48x256xf32>
    %85 = arith.mulf %82, %84 : vector<48x256xf32>
    %86 = arith.addf %81, %85 : vector<48x256xf32>
    %87 = vector.broadcast %24 : vector<1x256xf32> to vector<48x256xf32>
    %88 = arith.mulf %86, %87 : vector<48x256xf32>
    %89 = arith.addf %72, %88 : vector<48x256xf32>
    %90 = vector.extract_strided_slice %30 {offsets = [0, 10], sizes = [48, 1], strides = [1, 1]} : vector<48x11xf32> to vector<48x1xf32>
    %91 = vector.broadcast %90 : vector<48x1xf32> to vector<48x256xf32>
    %92 = arith.addf %89, %91 : vector<48x256xf32>
    %cst_27 = arith.constant 0.000000e+00 : f32
    %cst_28 = arith.constant 6.000000e+00 : f32
    %93 = vector.broadcast %cst_27 : f32 to vector<48x256xf32>
    %94 = arith.maximumf %93, %92 : vector<48x256xf32>
    %95 = vector.broadcast %cst_28 : f32 to vector<48x256xf32>
    %96 = arith.minimumf %95, %94 : vector<48x256xf32>
    %c0_29 = arith.constant 0 : index
    %c0_30 = arith.constant 0 : index
    %97 = vector.load %arg3[%c0_29, %c0_30] : memref<48x48xbf16, #tpu.memory_space<vmem>>, vector<16x48xbf16>
    %98 = arith.truncf %96 : vector<48x256xf32> to vector<48x256xbf16>
    %cst_31 = arith.constant dense<0.000000e+00> : vector<16x256xf32>
    %99 = tpu.matmul %97, %98, %cst_31 {dimension_numbers = #tpu.dot_dimension_numbers<[1], [0], [0], [1], [0, 0, 1, 1], [], []>} : vector<16x48xbf16>, vector<48x256xbf16>, vector<16x256xf32> -> vector<16x256xf32>
    %100 = vector.extract_strided_slice %99 {offsets = [0, 0], sizes = [8, 256], strides = [1, 1]} : vector<16x256xf32> to vector<8x256xf32>
    %c0_32 = arith.constant 0 : index
    %c0_33 = arith.constant 0 : index
    %101 = vector.load %arg5[%c0_32, %c0_33] : memref<24x1xf32, #tpu.memory_space<vmem>>, vector<8x1xf32>
    %102 = vector.broadcast %101 : vector<8x1xf32> to vector<8x256xf32>
    %103 = arith.addf %100, %102 : vector<8x256xf32>
    %104 = arith.addf %103, %29 : vector<8x256xf32>
    %c48 = arith.constant 48 : index
    %c0_34 = arith.constant 0 : index
    %105 = vector.load %arg4[%c48, %c0_34] : memref<144x11xf32, #tpu.memory_space<vmem>>, vector<48x11xf32>
    %c48_35 = arith.constant 48 : index
    %c0_36 = arith.constant 0 : index
    %106 = vector.load %arg2[%c48_35, %c0_36] : memref<144x8xbf16, #tpu.memory_space<vmem>>, vector<48x8xbf16>
    %107 = arith.truncf %104 : vector<8x256xf32> to vector<8x256xbf16>
    %cst_37 = arith.constant dense<0.000000e+00> : vector<48x256xf32>
    %108 = tpu.matmul %106, %107, %cst_37 {dimension_numbers = #tpu.dot_dimension_numbers<[1], [0], [0], [1], [0, 0, 1, 1], [], []>} : vector<48x8xbf16>, vector<8x256xbf16>, vector<48x256xf32> -> vector<48x256xf32>
    %109 = vector.extract_strided_slice %105 {offsets = [0, 9], sizes = [48, 1], strides = [1, 1]} : vector<48x11xf32> to vector<48x1xf32>
    %110 = vector.broadcast %109 : vector<48x1xf32> to vector<48x256xf32>
    %111 = arith.addf %108, %110 : vector<48x256xf32>
    %cst_38 = arith.constant 0.000000e+00 : f32
    %cst_39 = arith.constant 6.000000e+00 : f32
    %112 = vector.broadcast %cst_38 : f32 to vector<48x256xf32>
    %113 = arith.maximumf %112, %111 : vector<48x256xf32>
    %114 = vector.broadcast %cst_39 : f32 to vector<48x256xf32>
    %115 = arith.minimumf %114, %113 : vector<48x256xf32>
    %c0_40 = arith.constant 0 : index
    %c128_41 = arith.constant 128 : index
    %116 = vector.load %arg9[%c0_40, %c128_41] : memref<48x512xf32, #tpu.memory_space<vmem>>, vector<48x256xf32>
    tpu.vector_store %arg9[%c0_40, %c128_41], %115 {strides = array<i32>} : memref<48x512xf32, #tpu.memory_space<vmem>>, vector<48x256xf32>,
    %c0_42 = arith.constant 0 : index
    %c111_43 = arith.constant 111 : index
    %117 = vector.load %arg9[%c0_42, %c111_43] : memref<48x512xf32, #tpu.memory_space<vmem>>, vector<48x256xf32>
    %118 = vector.extract_strided_slice %105 {offsets = [0, 0], sizes = [48, 1], strides = [1, 1]} : vector<48x11xf32> to vector<48x1xf32>
    %119 = vector.broadcast %118 : vector<48x1xf32> to vector<48x256xf32>
    %120 = arith.mulf %117, %119 : vector<48x256xf32>
    %c0_44 = arith.constant 0 : index
    %c127_45 = arith.constant 127 : index
    %121 = vector.load %arg9[%c0_44, %c127_45] : memref<48x512xf32, #tpu.memory_space<vmem>>, vector<48x256xf32>
    %122 = vector.extract_strided_slice %105 {offsets = [0, 3], sizes = [48, 1], strides = [1, 1]} : vector<48x11xf32> to vector<48x1xf32>
    %123 = vector.broadcast %122 : vector<48x1xf32> to vector<48x256xf32>
    %124 = arith.mulf %121, %123 : vector<48x256xf32>
    %125 = arith.addf %120, %124 : vector<48x256xf32>
    %c0_46 = arith.constant 0 : index
    %c143_47 = arith.constant 143 : index
    %126 = vector.load %arg9[%c0_46, %c143_47] : memref<48x512xf32, #tpu.memory_space<vmem>>, vector<48x256xf32>
    %127 = vector.extract_strided_slice %105 {offsets = [0, 6], sizes = [48, 1], strides = [1, 1]} : vector<48x11xf32> to vector<48x1xf32>
    %128 = vector.broadcast %127 : vector<48x1xf32> to vector<48x256xf32>
    %129 = arith.mulf %126, %128 : vector<48x256xf32>
    %130 = arith.addf %125, %129 : vector<48x256xf32>
    %131 = vector.broadcast %20 : vector<1x256xf32> to vector<48x256xf32>
    %132 = arith.mulf %130, %131 : vector<48x256xf32>
    %c0_48 = arith.constant 0 : index
    %c112_49 = arith.constant 112 : index
    %133 = vector.load %arg9[%c0_48, %c112_49] : memref<48x512xf32, #tpu.memory_space<vmem>>, vector<48x256xf32>
    %134 = vector.extract_strided_slice %105 {offsets = [0, 1], sizes = [48, 1], strides = [1, 1]} : vector<48x11xf32> to vector<48x1xf32>
    %135 = vector.broadcast %134 : vector<48x1xf32> to vector<48x256xf32>
    %136 = arith.mulf %133, %135 : vector<48x256xf32>
    %c0_50 = arith.constant 0 : index
    %c128_51 = arith.constant 128 : index
    %137 = vector.load %arg9[%c0_50, %c128_51] : memref<48x512xf32, #tpu.memory_space<vmem>>, vector<48x256xf32>
    %138 = vector.extract_strided_slice %105 {offsets = [0, 4], sizes = [48, 1], strides = [1, 1]} : vector<48x11xf32> to vector<48x1xf32>
    %139 = vector.broadcast %138 : vector<48x1xf32> to vector<48x256xf32>
    %140 = arith.mulf %137, %139 : vector<48x256xf32>
    %141 = arith.addf %136, %140 : vector<48x256xf32>
    %c0_52 = arith.constant 0 : index
    %c144_53 = arith.constant 144 : index
    %142 = vector.load %arg9[%c0_52, %c144_53] : memref<48x512xf32, #tpu.memory_space<vmem>>, vector<48x256xf32>
    %143 = vector.extract_strided_slice %105 {offsets = [0, 7], sizes = [48, 1], strides = [1, 1]} : vector<48x11xf32> to vector<48x1xf32>
    %144 = vector.broadcast %143 : vector<48x1xf32> to vector<48x256xf32>
    %145 = arith.mulf %142, %144 : vector<48x256xf32>
    %146 = arith.addf %141, %145 : vector<48x256xf32>
    %147 = arith.addf %132, %146 : vector<48x256xf32>
    %c0_54 = arith.constant 0 : index
    %c113_55 = arith.constant 113 : index
    %148 = vector.load %arg9[%c0_54, %c113_55] : memref<48x512xf32, #tpu.memory_space<vmem>>, vector<48x256xf32>
    %149 = vector.extract_strided_slice %105 {offsets = [0, 2], sizes = [48, 1], strides = [1, 1]} : vector<48x11xf32> to vector<48x1xf32>
    %150 = vector.broadcast %149 : vector<48x1xf32> to vector<48x256xf32>
    %151 = arith.mulf %148, %150 : vector<48x256xf32>
    %c0_56 = arith.constant 0 : index
    %c129_57 = arith.constant 129 : index
    %152 = vector.load %arg9[%c0_56, %c129_57] : memref<48x512xf32, #tpu.memory_space<vmem>>, vector<48x256xf32>
    %153 = vector.extract_strided_slice %105 {offsets = [0, 5], sizes = [48, 1], strides = [1, 1]} : vector<48x11xf32> to vector<48x1xf32>
    %154 = vector.broadcast %153 : vector<48x1xf32> to vector<48x256xf32>
    %155 = arith.mulf %152, %154 : vector<48x256xf32>
    %156 = arith.addf %151, %155 : vector<48x256xf32>
    %c0_58 = arith.constant 0 : index
    %c145_59 = arith.constant 145 : index
    %157 = vector.load %arg9[%c0_58, %c145_59] : memref<48x512xf32, #tpu.memory_space<vmem>>, vector<48x256xf32>
    %158 = vector.extract_strided_slice %105 {offsets = [0, 8], sizes = [48, 1], strides = [1, 1]} : vector<48x11xf32> to vector<48x1xf32>
    %159 = vector.broadcast %158 : vector<48x1xf32> to vector<48x256xf32>
    %160 = arith.mulf %157, %159 : vector<48x256xf32>
    %161 = arith.addf %156, %160 : vector<48x256xf32>
    %162 = vector.broadcast %24 : vector<1x256xf32> to vector<48x256xf32>
    %163 = arith.mulf %161, %162 : vector<48x256xf32>
    %164 = arith.addf %147, %163 : vector<48x256xf32>
    %165 = vector.extract_strided_slice %105 {offsets = [0, 10], sizes = [48, 1], strides = [1, 1]} : vector<48x11xf32> to vector<48x1xf32>
    %166 = vector.broadcast %165 : vector<48x1xf32> to vector<48x256xf32>
    %167 = arith.addf %164, %166 : vector<48x256xf32>
    %cst_60 = arith.constant 0.000000e+00 : f32
    %cst_61 = arith.constant 6.000000e+00 : f32
    %168 = vector.broadcast %cst_60 : f32 to vector<48x256xf32>
    %169 = arith.maximumf %168, %167 : vector<48x256xf32>
    %170 = vector.broadcast %cst_61 : f32 to vector<48x256xf32>
    %171 = arith.minimumf %170, %169 : vector<48x256xf32>
    %c16 = arith.constant 16 : index
    %c0_62 = arith.constant 0 : index
    %172 = vector.load %arg3[%c16, %c0_62] : memref<48x48xbf16, #tpu.memory_space<vmem>>, vector<16x48xbf16>
    %173 = arith.truncf %171 : vector<48x256xf32> to vector<48x256xbf16>
    %cst_63 = arith.constant dense<0.000000e+00> : vector<16x256xf32>
    %174 = tpu.matmul %172, %173, %cst_63 {dimension_numbers = #tpu.dot_dimension_numbers<[1], [0], [0], [1], [0, 0, 1, 1], [], []>} : vector<16x48xbf16>, vector<48x256xbf16>, vector<16x256xf32> -> vector<16x256xf32>
    %175 = vector.extract_strided_slice %174 {offsets = [0, 0], sizes = [8, 256], strides = [1, 1]} : vector<16x256xf32> to vector<8x256xf32>
    %c8 = arith.constant 8 : index
    %c0_64 = arith.constant 0 : index
    %176 = vector.load %arg5[%c8, %c0_64] : memref<24x1xf32, #tpu.memory_space<vmem>>, vector<8x1xf32>
    %177 = vector.broadcast %176 : vector<8x1xf32> to vector<8x256xf32>
    %178 = arith.addf %175, %177 : vector<8x256xf32>
    %179 = arith.addf %178, %104 : vector<8x256xf32>
    %c96 = arith.constant 96 : index
    %c0_65 = arith.constant 0 : index
    %180 = vector.load %arg4[%c96, %c0_65] : memref<144x11xf32, #tpu.memory_space<vmem>>, vector<48x11xf32>
    %c96_66 = arith.constant 96 : index
    %c0_67 = arith.constant 0 : index
    %181 = vector.load %arg2[%c96_66, %c0_67] : memref<144x8xbf16, #tpu.memory_space<vmem>>, vector<48x8xbf16>
    %182 = arith.truncf %179 : vector<8x256xf32> to vector<8x256xbf16>
    %cst_68 = arith.constant dense<0.000000e+00> : vector<48x256xf32>
    %183 = tpu.matmul %181, %182, %cst_68 {dimension_numbers = #tpu.dot_dimension_numbers<[1], [0], [0], [1], [0, 0, 1, 1], [], []>} : vector<48x8xbf16>, vector<8x256xbf16>, vector<48x256xf32> -> vector<48x256xf32>
    %184 = vector.extract_strided_slice %180 {offsets = [0, 9], sizes = [48, 1], strides = [1, 1]} : vector<48x11xf32> to vector<48x1xf32>
    %185 = vector.broadcast %184 : vector<48x1xf32> to vector<48x256xf32>
    %186 = arith.addf %183, %185 : vector<48x256xf32>
    %cst_69 = arith.constant 0.000000e+00 : f32
    %cst_70 = arith.constant 6.000000e+00 : f32
    %187 = vector.broadcast %cst_69 : f32 to vector<48x256xf32>
    %188 = arith.maximumf %187, %186 : vector<48x256xf32>
    %189 = vector.broadcast %cst_70 : f32 to vector<48x256xf32>
    %190 = arith.minimumf %189, %188 : vector<48x256xf32>
    %c0_71 = arith.constant 0 : index
    %c128_72 = arith.constant 128 : index
    %191 = vector.load %arg9[%c0_71, %c128_72] : memref<48x512xf32, #tpu.memory_space<vmem>>, vector<48x256xf32>
    tpu.vector_store %arg9[%c0_71, %c128_72], %190 {strides = array<i32>} : memref<48x512xf32, #tpu.memory_space<vmem>>, vector<48x256xf32>,
    %c0_73 = arith.constant 0 : index
    %c111_74 = arith.constant 111 : index
    %192 = vector.load %arg9[%c0_73, %c111_74] : memref<48x512xf32, #tpu.memory_space<vmem>>, vector<48x256xf32>
    %193 = vector.extract_strided_slice %180 {offsets = [0, 0], sizes = [48, 1], strides = [1, 1]} : vector<48x11xf32> to vector<48x1xf32>
    %194 = vector.broadcast %193 : vector<48x1xf32> to vector<48x256xf32>
    %195 = arith.mulf %192, %194 : vector<48x256xf32>
    %c0_75 = arith.constant 0 : index
    %c127_76 = arith.constant 127 : index
    %196 = vector.load %arg9[%c0_75, %c127_76] : memref<48x512xf32, #tpu.memory_space<vmem>>, vector<48x256xf32>
    %197 = vector.extract_strided_slice %180 {offsets = [0, 3], sizes = [48, 1], strides = [1, 1]} : vector<48x11xf32> to vector<48x1xf32>
    %198 = vector.broadcast %197 : vector<48x1xf32> to vector<48x256xf32>
    %199 = arith.mulf %196, %198 : vector<48x256xf32>
    %200 = arith.addf %195, %199 : vector<48x256xf32>
    %c0_77 = arith.constant 0 : index
    %c143_78 = arith.constant 143 : index
    %201 = vector.load %arg9[%c0_77, %c143_78] : memref<48x512xf32, #tpu.memory_space<vmem>>, vector<48x256xf32>
    %202 = vector.extract_strided_slice %180 {offsets = [0, 6], sizes = [48, 1], strides = [1, 1]} : vector<48x11xf32> to vector<48x1xf32>
    %203 = vector.broadcast %202 : vector<48x1xf32> to vector<48x256xf32>
    %204 = arith.mulf %201, %203 : vector<48x256xf32>
    %205 = arith.addf %200, %204 : vector<48x256xf32>
    %206 = vector.broadcast %20 : vector<1x256xf32> to vector<48x256xf32>
    %207 = arith.mulf %205, %206 : vector<48x256xf32>
    %c0_79 = arith.constant 0 : index
    %c112_80 = arith.constant 112 : index
    %208 = vector.load %arg9[%c0_79, %c112_80] : memref<48x512xf32, #tpu.memory_space<vmem>>, vector<48x256xf32>
    %209 = vector.extract_strided_slice %180 {offsets = [0, 1], sizes = [48, 1], strides = [1, 1]} : vector<48x11xf32> to vector<48x1xf32>
    %210 = vector.broadcast %209 : vector<48x1xf32> to vector<48x256xf32>
    %211 = arith.mulf %208, %210 : vector<48x256xf32>
    %c0_81 = arith.constant 0 : index
    %c128_82 = arith.constant 128 : index
    %212 = vector.load %arg9[%c0_81, %c128_82] : memref<48x512xf32, #tpu.memory_space<vmem>>, vector<48x256xf32>
    %213 = vector.extract_strided_slice %180 {offsets = [0, 4], sizes = [48, 1], strides = [1, 1]} : vector<48x11xf32> to vector<48x1xf32>
    %214 = vector.broadcast %213 : vector<48x1xf32> to vector<48x256xf32>
    %215 = arith.mulf %212, %214 : vector<48x256xf32>
    %216 = arith.addf %211, %215 : vector<48x256xf32>
    %c0_83 = arith.constant 0 : index
    %c144_84 = arith.constant 144 : index
    %217 = vector.load %arg9[%c0_83, %c144_84] : memref<48x512xf32, #tpu.memory_space<vmem>>, vector<48x256xf32>
    %218 = vector.extract_strided_slice %180 {offsets = [0, 7], sizes = [48, 1], strides = [1, 1]} : vector<48x11xf32> to vector<48x1xf32>
    %219 = vector.broadcast %218 : vector<48x1xf32> to vector<48x256xf32>
    %220 = arith.mulf %217, %219 : vector<48x256xf32>
    %221 = arith.addf %216, %220 : vector<48x256xf32>
    %222 = arith.addf %207, %221 : vector<48x256xf32>
    %c0_85 = arith.constant 0 : index
    %c113_86 = arith.constant 113 : index
    %223 = vector.load %arg9[%c0_85, %c113_86] : memref<48x512xf32, #tpu.memory_space<vmem>>, vector<48x256xf32>
    %224 = vector.extract_strided_slice %180 {offsets = [0, 2], sizes = [48, 1], strides = [1, 1]} : vector<48x11xf32> to vector<48x1xf32>
    %225 = vector.broadcast %224 : vector<48x1xf32> to vector<48x256xf32>
    %226 = arith.mulf %223, %225 : vector<48x256xf32>
    %c0_87 = arith.constant 0 : index
    %c129_88 = arith.constant 129 : index
    %227 = vector.load %arg9[%c0_87, %c129_88] : memref<48x512xf32, #tpu.memory_space<vmem>>, vector<48x256xf32>
    %228 = vector.extract_strided_slice %180 {offsets = [0, 5], sizes = [48, 1], strides = [1, 1]} : vector<48x11xf32> to vector<48x1xf32>
    %229 = vector.broadcast %228 : vector<48x1xf32> to vector<48x256xf32>
    %230 = arith.mulf %227, %229 : vector<48x256xf32>
    %231 = arith.addf %226, %230 : vector<48x256xf32>
    %c0_89 = arith.constant 0 : index
    %c145_90 = arith.constant 145 : index
    %232 = vector.load %arg9[%c0_89, %c145_90] : memref<48x512xf32, #tpu.memory_space<vmem>>, vector<48x256xf32>
    %233 = vector.extract_strided_slice %180 {offsets = [0, 8], sizes = [48, 1], strides = [1, 1]} : vector<48x11xf32> to vector<48x1xf32>
    %234 = vector.broadcast %233 : vector<48x1xf32> to vector<48x256xf32>
    %235 = arith.mulf %232, %234 : vector<48x256xf32>
    %236 = arith.addf %231, %235 : vector<48x256xf32>
    %237 = vector.broadcast %24 : vector<1x256xf32> to vector<48x256xf32>
    %238 = arith.mulf %236, %237 : vector<48x256xf32>
    %239 = arith.addf %222, %238 : vector<48x256xf32>
    %240 = vector.extract_strided_slice %180 {offsets = [0, 10], sizes = [48, 1], strides = [1, 1]} : vector<48x11xf32> to vector<48x1xf32>
    %241 = vector.broadcast %240 : vector<48x1xf32> to vector<48x256xf32>
    %242 = arith.addf %239, %241 : vector<48x256xf32>
    %cst_91 = arith.constant 0.000000e+00 : f32
    %cst_92 = arith.constant 6.000000e+00 : f32
    %243 = vector.broadcast %cst_91 : f32 to vector<48x256xf32>
    %244 = arith.maximumf %243, %242 : vector<48x256xf32>
    %245 = vector.broadcast %cst_92 : f32 to vector<48x256xf32>
    %246 = arith.minimumf %245, %244 : vector<48x256xf32>
    %c32 = arith.constant 32 : index
    %c0_93 = arith.constant 0 : index
    %247 = vector.load %arg3[%c32, %c0_93] : memref<48x48xbf16, #tpu.memory_space<vmem>>, vector<16x48xbf16>
    %248 = arith.truncf %246 : vector<48x256xf32> to vector<48x256xbf16>
    %cst_94 = arith.constant dense<0.000000e+00> : vector<16x256xf32>
    %249 = tpu.matmul %247, %248, %cst_94 {dimension_numbers = #tpu.dot_dimension_numbers<[1], [0], [0], [1], [0, 0, 1, 1], [], []>} : vector<16x48xbf16>, vector<48x256xbf16>, vector<16x256xf32> -> vector<16x256xf32>
    %250 = vector.extract_strided_slice %249 {offsets = [0, 0], sizes = [4, 256], strides = [1, 1]} : vector<16x256xf32> to vector<4x256xf32>
    %c16_95 = arith.constant 16 : index
    %c0_96 = arith.constant 0 : index
    %251 = vector.load %arg5[%c16_95, %c0_96] : memref<24x1xf32, #tpu.memory_space<vmem>>, vector<4x1xf32>
    %252 = vector.broadcast %251 : vector<4x1xf32> to vector<4x256xf32>
    %253 = arith.addf %250, %252 : vector<4x256xf32>
    %c0_97 = arith.constant 0 : index
    %c0_98 = arith.constant 0 : index
    %c0_99 = arith.constant 0 : index
    %254 = vector.load %arg7[%c0_97, %c0_98, %c0_99] : memref<1x4x256xf32, #tpu.memory_space<vmem>>, vector<1x4x256xf32>
    %255 = vector.shape_cast %254 : vector<1x4x256xf32> to vector<4x256xf32>
    %256 = vector.shape_cast %253 : vector<4x256xf32> to vector<1x4x256xf32>
    tpu.vector_store %arg7[%c0_97, %c0_98, %c0_99], %256 {strides = array<i32>} : memref<1x4x256xf32, #tpu.memory_space<vmem>>, vector<1x4x256xf32>,
    %c0_100 = arith.constant 0 : index
    %c0_101 = arith.constant 0 : index
    %257 = vector.load %arg6[%c0_100, %c0_101] : memref<4x16xf32, #tpu.memory_space<vmem>>, vector<4x16xf32>
    %c0_102 = arith.constant 0 : index
    %c128_103 = arith.constant 128 : index
    %258 = vector.load %arg9[%c0_102, %c128_103] : memref<48x512xf32, #tpu.memory_space<vmem>>, vector<4x256xf32>
    tpu.vector_store %arg9[%c0_102, %c128_103], %253 {strides = array<i32>} : memref<48x512xf32, #tpu.memory_space<vmem>>, vector<4x256xf32>,
    %c0_104 = arith.constant 0 : index
    %c111_105 = arith.constant 111 : index
    %259 = vector.load %arg9[%c0_104, %c111_105] : memref<48x512xf32, #tpu.memory_space<vmem>>, vector<4x256xf32>
    %260 = vector.broadcast %20 : vector<1x256xf32> to vector<4x256xf32>
    %261 = arith.mulf %259, %260 : vector<4x256xf32>
    %c0_106 = arith.constant 0 : index
    %c112_107 = arith.constant 112 : index
    %262 = vector.load %arg9[%c0_106, %c112_107] : memref<48x512xf32, #tpu.memory_space<vmem>>, vector<4x256xf32>
    %c0_108 = arith.constant 0 : index
    %c113_109 = arith.constant 113 : index
    %263 = vector.load %arg9[%c0_108, %c113_109] : memref<48x512xf32, #tpu.memory_space<vmem>>, vector<4x256xf32>
    %264 = vector.broadcast %24 : vector<1x256xf32> to vector<4x256xf32>
    %265 = arith.mulf %263, %264 : vector<4x256xf32>
    %c0_110 = arith.constant 0 : index
    %c127_111 = arith.constant 127 : index
    %266 = vector.load %arg9[%c0_110, %c127_111] : memref<48x512xf32, #tpu.memory_space<vmem>>, vector<4x256xf32>
    %267 = vector.broadcast %20 : vector<1x256xf32> to vector<4x256xf32>
    %268 = arith.mulf %266, %267 : vector<4x256xf32>
    %c0_112 = arith.constant 0 : index
    %c128_113 = arith.constant 128 : index
    %269 = vector.load %arg9[%c0_112, %c128_113] : memref<48x512xf32, #tpu.memory_space<vmem>>, vector<4x256xf32>
    %c0_114 = arith.constant 0 : index
    %c129_115 = arith.constant 129 : index
    %270 = vector.load %arg9[%c0_114, %c129_115] : memref<48x512xf32, #tpu.memory_space<vmem>>, vector<4x256xf32>
    %271 = vector.broadcast %24 : vector<1x256xf32> to vector<4x256xf32>
    %272 = arith.mulf %270, %271 : vector<4x256xf32>
    %c0_116 = arith.constant 0 : index
    %c143_117 = arith.constant 143 : index
    %273 = vector.load %arg9[%c0_116, %c143_117] : memref<48x512xf32, #tpu.memory_space<vmem>>, vector<4x256xf32>
    %274 = vector.broadcast %20 : vector<1x256xf32> to vector<4x256xf32>
    %275 = arith.mulf %273, %274 : vector<4x256xf32>
    %c0_118 = arith.constant 0 : index
    %c144_119 = arith.constant 144 : index
    %276 = vector.load %arg9[%c0_118, %c144_119] : memref<48x512xf32, #tpu.memory_space<vmem>>, vector<4x256xf32>
    %c0_120 = arith.constant 0 : index
    %c145_121 = arith.constant 145 : index
    %277 = vector.load %arg9[%c0_120, %c145_121] : memref<48x512xf32, #tpu.memory_space<vmem>>, vector<4x256xf32>
    %278 = vector.broadcast %24 : vector<1x256xf32> to vector<4x256xf32>
    %279 = arith.mulf %277, %278 : vector<4x256xf32>
    %280 = vector.extract_strided_slice %257 {offsets = [0, 0], sizes = [4, 1], strides = [1, 1]} : vector<4x16xf32> to vector<4x1xf32>
    %281 = vector.broadcast %280 : vector<4x1xf32> to vector<4x256xf32>
    %282 = arith.mulf %261, %281 : vector<4x256xf32>
    %283 = vector.extract_strided_slice %257 {offsets = [0, 1], sizes = [4, 1], strides = [1, 1]} : vector<4x16xf32> to vector<4x1xf32>
    %284 = vector.broadcast %283 : vector<4x1xf32> to vector<4x256xf32>
    %285 = arith.mulf %262, %284 : vector<4x256xf32>
    %286 = arith.addf %282, %285 : vector<4x256xf32>
    %287 = vector.extract_strided_slice %257 {offsets = [0, 2], sizes = [4, 1], strides = [1, 1]} : vector<4x16xf32> to vector<4x1xf32>
    %288 = vector.broadcast %287 : vector<4x1xf32> to vector<4x256xf32>
    %289 = arith.mulf %268, %288 : vector<4x256xf32>
    %290 = arith.addf %286, %289 : vector<4x256xf32>
    %291 = vector.extract_strided_slice %257 {offsets = [0, 3], sizes = [4, 1], strides = [1, 1]} : vector<4x16xf32> to vector<4x1xf32>
    %292 = vector.broadcast %291 : vector<4x1xf32> to vector<4x256xf32>
    %293 = arith.mulf %269, %292 : vector<4x256xf32>
    %294 = arith.addf %290, %293 : vector<4x256xf32>
    %c0_122 = arith.constant 0 : index
    %c0_123 = arith.constant 0 : index
    %c0_124 = arith.constant 0 : index
    %c0_125 = arith.constant 0 : index
    %295 = vector.load %arg8[%c0_122, %c0_123, %c0_124, %c0_125] : memref<1x4x4x256xf32, #tpu.memory_space<vmem>>, vector<1x1x4x256xf32>
    %296 = vector.shape_cast %295 : vector<1x1x4x256xf32> to vector<4x256xf32>
    %297 = vector.shape_cast %294 : vector<4x256xf32> to vector<1x1x4x256xf32>
    tpu.vector_store %arg8[%c0_122, %c0_123, %c0_124, %c0_125], %297 {strides = array<i32>} : memref<1x4x4x256xf32, #tpu.memory_space<vmem>>, vector<1x1x4x256xf32>,
    %298 = vector.extract_strided_slice %257 {offsets = [0, 4], sizes = [4, 1], strides = [1, 1]} : vector<4x16xf32> to vector<4x1xf32>
    %299 = vector.broadcast %298 : vector<4x1xf32> to vector<4x256xf32>
    %300 = arith.mulf %262, %299 : vector<4x256xf32>
    %301 = vector.extract_strided_slice %257 {offsets = [0, 5], sizes = [4, 1], strides = [1, 1]} : vector<4x16xf32> to vector<4x1xf32>
    %302 = vector.broadcast %301 : vector<4x1xf32> to vector<4x256xf32>
    %303 = arith.mulf %265, %302 : vector<4x256xf32>
    %304 = arith.addf %300, %303 : vector<4x256xf32>
    %305 = vector.extract_strided_slice %257 {offsets = [0, 6], sizes = [4, 1], strides = [1, 1]} : vector<4x16xf32> to vector<4x1xf32>
    %306 = vector.broadcast %305 : vector<4x1xf32> to vector<4x256xf32>
    %307 = arith.mulf %269, %306 : vector<4x256xf32>
    %308 = arith.addf %304, %307 : vector<4x256xf32>
    %309 = vector.extract_strided_slice %257 {offsets = [0, 7], sizes = [4, 1], strides = [1, 1]} : vector<4x16xf32> to vector<4x1xf32>
    %310 = vector.broadcast %309 : vector<4x1xf32> to vector<4x256xf32>
    %311 = arith.mulf %272, %310 : vector<4x256xf32>
    %312 = arith.addf %308, %311 : vector<4x256xf32>
    %c0_126 = arith.constant 0 : index
    %c1 = arith.constant 1 : index
    %c0_127 = arith.constant 0 : index
    %c0_128 = arith.constant 0 : index
    %313 = vector.load %arg8[%c0_126, %c1, %c0_127, %c0_128] : memref<1x4x4x256xf32, #tpu.memory_space<vmem>>, vector<1x1x4x256xf32>
    %314 = vector.shape_cast %313 : vector<1x1x4x256xf32> to vector<4x256xf32>
    %315 = vector.shape_cast %312 : vector<4x256xf32> to vector<1x1x4x256xf32>
    tpu.vector_store %arg8[%c0_126, %c1, %c0_127, %c0_128], %315 {strides = array<i32>} : memref<1x4x4x256xf32, #tpu.memory_space<vmem>>, vector<1x1x4x256xf32>,
    %316 = vector.extract_strided_slice %257 {offsets = [0, 8], sizes = [4, 1], strides = [1, 1]} : vector<4x16xf32> to vector<4x1xf32>
    %317 = vector.broadcast %316 : vector<4x1xf32> to vector<4x256xf32>
    %318 = arith.mulf %268, %317 : vector<4x256xf32>
    %319 = vector.extract_strided_slice %257 {offsets = [0, 9], sizes = [4, 1], strides = [1, 1]} : vector<4x16xf32> to vector<4x1xf32>
    %320 = vector.broadcast %319 : vector<4x1xf32> to vector<4x256xf32>
    %321 = arith.mulf %269, %320 : vector<4x256xf32>
    %322 = arith.addf %318, %321 : vector<4x256xf32>
    %323 = vector.extract_strided_slice %257 {offsets = [0, 10], sizes = [4, 1], strides = [1, 1]} : vector<4x16xf32> to vector<4x1xf32>
    %324 = vector.broadcast %323 : vector<4x1xf32> to vector<4x256xf32>
    %325 = arith.mulf %275, %324 : vector<4x256xf32>
    %326 = arith.addf %322, %325 : vector<4x256xf32>
    %327 = vector.extract_strided_slice %257 {offsets = [0, 11], sizes = [4, 1], strides = [1, 1]} : vector<4x16xf32> to vector<4x1xf32>
    %328 = vector.broadcast %327 : vector<4x1xf32> to vector<4x256xf32>
    %329 = arith.mulf %276, %328 : vector<4x256xf32>
    %330 = arith.addf %326, %329 : vector<4x256xf32>
    %c0_129 = arith.constant 0 : index
    %c2 = arith.constant 2 : index
    %c0_130 = arith.constant 0 : index
    %c0_131 = arith.constant 0 : index
    %331 = vector.load %arg8[%c0_129, %c2, %c0_130, %c0_131] : memref<1x4x4x256xf32, #tpu.memory_space<vmem>>, vector<1x1x4x256xf32>
    %332 = vector.shape_cast %331 : vector<1x1x4x256xf32> to vector<4x256xf32>
    %333 = vector.shape_cast %330 : vector<4x256xf32> to vector<1x1x4x256xf32>
    tpu.vector_store %arg8[%c0_129, %c2, %c0_130, %c0_131], %333 {strides = array<i32>} : memref<1x4x4x256xf32, #tpu.memory_space<vmem>>, vector<1x1x4x256xf32>,
    %334 = vector.extract_strided_slice %257 {offsets = [0, 12], sizes = [4, 1], strides = [1, 1]} : vector<4x16xf32> to vector<4x1xf32>
    %335 = vector.broadcast %334 : vector<4x1xf32> to vector<4x256xf32>
    %336 = arith.mulf %269, %335 : vector<4x256xf32>
    %337 = vector.extract_strided_slice %257 {offsets = [0, 13], sizes = [4, 1], strides = [1, 1]} : vector<4x16xf32> to vector<4x1xf32>
    %338 = vector.broadcast %337 : vector<4x1xf32> to vector<4x256xf32>
    %339 = arith.mulf %272, %338 : vector<4x256xf32>
    %340 = arith.addf %336, %339 : vector<4x256xf32>
    %341 = vector.extract_strided_slice %257 {offsets = [0, 14], sizes = [4, 1], strides = [1, 1]} : vector<4x16xf32> to vector<4x1xf32>
    %342 = vector.broadcast %341 : vector<4x1xf32> to vector<4x256xf32>
    %343 = arith.mulf %276, %342 : vector<4x256xf32>
    %344 = arith.addf %340, %343 : vector<4x256xf32>
    %345 = vector.extract_strided_slice %257 {offsets = [0, 15], sizes = [4, 1], strides = [1, 1]} : vector<4x16xf32> to vector<4x1xf32>
    %346 = vector.broadcast %345 : vector<4x1xf32> to vector<4x256xf32>
    %347 = arith.mulf %279, %346 : vector<4x256xf32>
    %348 = arith.addf %344, %347 : vector<4x256xf32>
    %c0_132 = arith.constant 0 : index
    %c3 = arith.constant 3 : index
    %c0_133 = arith.constant 0 : index
    %c0_134 = arith.constant 0 : index
    %349 = vector.load %arg8[%c0_132, %c3, %c0_133, %c0_134] : memref<1x4x4x256xf32, #tpu.memory_space<vmem>>, vector<1x1x4x256xf32>
    %350 = vector.shape_cast %349 : vector<1x1x4x256xf32> to vector<4x256xf32>
    %351 = vector.shape_cast %348 : vector<4x256xf32> to vector<1x1x4x256xf32>
    tpu.vector_store %arg8[%c0_132, %c3, %c0_133, %c0_134], %351 {strides = array<i32>} : memref<1x4x4x256xf32, #tpu.memory_space<vmem>>, vector<1x1x4x256xf32>,
    return
  }
  func.func @transform_0(%arg0: i32) -> (i32, i32, i32) {
    %c0_i32 = arith.constant 0 : i32
    %c0_i32_0 = arith.constant 0 : i32
    %c0_i32_1 = arith.constant 0 : i32
    return %arg0, %c0_i32, %c0_i32_0 : i32, i32, i32
  }
  func.func @transform_1(%arg0: i32) -> (i32, i32) {
    %c0_i32 = arith.constant 0 : i32
    %c0_i32_0 = arith.constant 0 : i32
    %c0_i32_1 = arith.constant 0 : i32
    return %c0_i32, %c0_i32_0 : i32, i32
  }
  func.func @transform_2(%arg0: i32) -> (i32, i32) {
    %c0_i32 = arith.constant 0 : i32
    %c0_i32_0 = arith.constant 0 : i32
    %c0_i32_1 = arith.constant 0 : i32
    return %c0_i32, %c0_i32_0 : i32, i32
  }
  func.func @transform_3(%arg0: i32) -> (i32, i32) {
    %c0_i32 = arith.constant 0 : i32
    %c0_i32_0 = arith.constant 0 : i32
    %c0_i32_1 = arith.constant 0 : i32
    return %c0_i32, %c0_i32_0 : i32, i32
  }
  func.func @transform_4(%arg0: i32) -> (i32, i32) {
    %c0_i32 = arith.constant 0 : i32
    %c0_i32_0 = arith.constant 0 : i32
    %c0_i32_1 = arith.constant 0 : i32
    return %c0_i32, %c0_i32_0 : i32, i32
  }
  func.func @transform_5(%arg0: i32) -> (i32, i32) {
    %c0_i32 = arith.constant 0 : i32
    %c0_i32_0 = arith.constant 0 : i32
    %c0_i32_1 = arith.constant 0 : i32
    return %c0_i32, %c0_i32_0 : i32, i32
  }
  func.func @transform_6(%arg0: i32) -> (i32, i32, i32) {
    %c0_i32 = arith.constant 0 : i32
    %c0_i32_0 = arith.constant 0 : i32
    %c0_i32_1 = arith.constant 0 : i32
    return %arg0, %c0_i32, %c0_i32_0 : i32, i32, i32
  }
  func.func @transform_7(%arg0: i32) -> (i32, i32, i32, i32) {
    %c0_i32 = arith.constant 0 : i32
    %c0_i32_0 = arith.constant 0 : i32
    %c0_i32_1 = arith.constant 0 : i32
    %c0_i32_2 = arith.constant 0 : i32
    return %arg0, %c0_i32, %c0_i32_0, %c0_i32_1 : i32, i32, i32, i32
  }
}

</mosaic_0001>

<bundles_post_ra>
// kernel: _lambda_.1
= control target key start
LH: loop header
LB: loop body
LE: loop exit
PB: predicated region body
PF: predicated region fallthrough
CT: control target
= control target key end

     0   :  { %s6014_s24 = smov 0   ;;  %s10010_s0 = inlined_call_operand.vmem [shape: f32[2,8,256], index: 0, kind: input, shape index: {}]   ;;  %s10011_s1 = inlined_call_operand.vmem [shape: bf16[144,8], index: 1, kind: input, shape index: {}]   ;;  %s10012_s2 = inlined_call_operand.vmem [shape: bf16[48,48], index: 2, kind: input, shape index: {}]   ;;  %s10013_s3 = inlined_call_operand.vmem [shape: f32[144,11], index: 3, kind: input, shape index: {}]   ;;  %s10014_s4 = inlined_call_operand.vmem [shape: f32[24,1], index: 4, kind: input, shape index: {}]   ;;  %s10015_s5 = inlined_call_operand.vmem [shape: f32[4,16], index: 5, kind: input, shape index: {}]   ;;  %s10016_s6 = inlined_call_operand.vmem [shape: f32[2,4,256], index: 6, kind: output, shape index: {0}]   ;;  %s10017_s7 = inlined_call_operand.vmem [shape: f32[2,4,4,256], index: 7, kind: output, shape index: {1}]  }
   0x1 LB: > { %s5661_s25 = sadd.s32 4294967295, %s5945_s24   ;;  %p5665_p0 = scmp.ge.s32.totalorder %s5945_s24, 1  ;;  %s5945_s24 = sphi %s6014_s24, %s18_s24  }
   0x2   : > { %p240_p1 = scmp.lt.s32.totalorder %s5945_s24, 3 }
   0x4   : > { %p241_p2 = pnand %p5665_p0, %p240_p1 }
   0x6   : > { %244 = sbr.rel (%p241_p2) target bundleno = 3191 (0xc77), region = 44 }
   0xd   : > { %v6025_v0 = vld [vmem:[%s10013_s3 + $0x10] sm:$0xff]  ;;  %p277_p3 = scmp.lt.s32.totalorder %s5661_s25, 1  ;;  %v10034_v1 = vmov 9   ;;  %v10036_v2 = vmov 0   ;;  %v6036_v3 = vld [vmem:[%s10013_s3 + $0x18] sm:$0xff]  ;;  %v6042_v4 = vld [vmem:[%s10013_s3] sm:$0xff]  ;;  %v293_v36 = vlaneseq }
   0xe   : > { %5749 = vset.pattern.permute.xlu1 %v10034_v1  ;;  %5748 = vset.pattern.permute.xlu0 %v10034_v1  ;;  %vm415_vm0 = vcmask 1043456   ;;  %v6054_v5 = vld [vmem:[%s10013_s3 + $0x28] sm:$0xff]  ;;  %vm405_vm1 = vcmask 64512   ;;  %v5906_v11 = vld [vmem:[%s10011_s1] sm:$0xff]   ;;  %v5907_v12 = vld [vmem:[%s10011_s1 + $0x10] sm:$0xff]   ;;  %v10030_v15 = vmov 4  }
   0xf   : > { %372 = vperm.xlu1 %5749, %v6025_v0   ;;  %s10483_s25 = smov (!%p277_p3, %s5661_s25), 1  ;;  %454 = vmatprep.mubr.bf16.mxu0 %v10036_v2  ;;  %v6059_v6 = vld [vmem:[%s10013_s3 + $0x8] sm:$0xff]  ;;  %v6077_v14 = vld [vmem:[%s10013_s3 + $0x20] sm:$0xff]  ;;  %v10028_v17 = vmov 5   ;;  %v10032_v18 = vmov 7   ;;  %v10026_v19 = vmov 8  }
  0x10   : > { %474 = vmatprep.mubr.bf16.mxu1 %v10036_v2  ;;  %s5708_s9 = sshll.u32 %s10483_s25, 4  ;;  %362 = vperm.xlu0 %5748, %v6042_v4   ;;  %v5908_v16 = vld [vmem:[%s10011_s1 + $0x8] sm:$0xff]   ;;  %v10038_v20 = vmov 0.0   ;;  %v10022_v21 = vmov 3   ;;  %v10020_v22 = vmov 6   ;;  %v10024_v23 = vmov 1  }
  0x11   : > { %s6049_s12 = scalar_lea.vmem %s10010_s0, %s5708_s9  ;;  %338 = vst [vmem:[#allocation2 + $0x18] sm:$0xff] %v10038_v20  ;;  %332 = vst [vmem:[#allocation2] sm:$0xff] %v10038_v20  ;;  %v10018_v24 = vmov 2   ;;  %v6196_v39 = vand.u32 127, %v293_v36  ;;  %s5958_s27 = smov 112   ;;  %vm840_vm6 = vcmask 785408  }
  0x12   : > { %v345_v7 = vld [vmem:[%s6049_s12 + $0x8] sm:$0xff]  ;;  %v344_v8 = vld [vmem:[%s6049_s12] sm:$0xff]  ;;  %s5959_s28 = smov 96   ;;  %s5960_s29 = smov 113   ;;  %vm677_vm7 = vcmask 916480   ;;  %vm1657_vm8 = vcmask 924672  }
  0x13   : > { %377 = vperm.xlu1 %5749, %v6036_v3   ;;  %v359_v9 = vpack.c.bf16 %v345_v7, %v345_v7  ;;  %v358_v10 = vpack.c.bf16 %v344_v8, %v344_v8  ;;  %v6204_v42 = vadd.s32 128, %v6196_v39  ;;  %v10041_v47 = vand.u32 15, %v6196_v39  ;;  %s5962_s30 = smov 111   ;;  %s5963_s8 = smov 127  }
  0x14   : > { %367 = vperm.xlu0 %5748, %v6059_v6   ;;  %s5964_s9 = smov 126   ;;  %vm1272_vm9 = vcmask 1039360   ;;  %vm895_vm10 = vcmask 908288   ;;  %vm1734_vm11 = vcmask 1031168   ;;  %s5965_s21 = smov 17   ;;  %vm1904_vm12 = vcmask 138240  }
  0x15   : > { %5679 = vmatprep.subr.msk.bf16.mxu0 %vm415_vm0, %v359_v9  ;;  %5711 = vmatprep.subr.msk.bf16.mxu1 %vm415_vm0, %v359_v9  ;;  %v417_v13 = vsel %vm415_vm0, %v358_v10, 0  ;;  %v10040_v48 = vand.u32 15, %v6204_v42  ;;  %vm326_vm2 = vcmp.lt.s32.totalorder %v10041_v47, 15  ;;  %vm1917_vm13 = vcmask 392192   ;;  %s5966_s26 = smov 1   ;;  %s5709_s11 = sshll.u32 %s10483_s25, 3 }
  0x16   : > { %423 = vmatpush1.bf16.msra.mxu0 %v417_v13  ;;  %5712 = vmatpush1.bf16.msra.mxu1 %v417_v13  ;;  %v5674_v55 = vsel %vm326_vm2, 1.0, %v10038_v20  ;;  %vm5207_vm14 = vcmask 121856   ;;  %s286_s15 = scalar_lea.vmem %s10016_s6, %s5709_s11  ;;  %vm5195_vm15 = vcmask 7168  }
  0x17   : > { %387 = vperm.xlu1 %5749, %v6054_v5   ;;  %vm327_vm3 = vcmp.lt.s32.totalorder %v10040_v48, 15 }
  0x18   : > { %382 = vperm.xlu0 %5748, %v6077_v14   ;;  %v5675_v56 = vsel %vm327_vm3, 1.0, %v10038_v20 }
  0x19   : > { %5680 = vmatmul.mubr.msk.bf16.vlgmr.msra.gmra.mrb[0].mxu0 %vm405_vm1, %v5906_v11  ;;  %5682 = vmatmul.mubr.msk.bf16.vlgmr.msra.gmra.mrb[0].mxu1 %vm405_vm1, %v5907_v12  ;;  %v6238_v58 = vpack.i.bf16 %v5675_v56, %v5674_v55 }
  0x1a   : > { %464 = vmatprep.mubr.bf16.mxu0 %v10036_v2  ;;  %1953 = vmatprep.mubr.bf16.mxu1 %v10036_v2 }
  0x1b   : > { %5751 = vset.pattern.permute.xlu1 %v10030_v15  ;;  %10172 = vst [vmem:[#allocation3_spill] sm:$0xff] %v6238_v58 }
  0x1c   : > { %965 = vperm.xlu1 %5751, %v6059_v6   ;;  %5750 = vset.pattern.permute.xlu0 %v10030_v15 }
  0x1d   : > { %961 = vperm.xlu0 %5750, %v6042_v4  }
  0x20   : > { %5752 = vset.pattern.permute.xlu1 %v10028_v17 }
  0x21   : > { %1364 = vperm.xlu1 %5752, %v6042_v4   ;;  %5681 = vmatmul.mubr.msk.bf16.gmra.mrb[4].mxu0 %vm405_vm1, %v5908_v16 }
  0x22   : > { %973 = vperm.xlu0 %5750, %v6036_v3   ;;  %3549 = vmatprep.mubr.bf16.mxu0 %v10036_v2 }
  0x25   : > { %5753 = vset.pattern.permute.xlu1 %v10032_v18 }
  0x26   : > { %1075 = vperm.xlu1 %5753, %v6042_v4   ;;  %5756 = vset.pattern.permute.xlu0 %v10026_v19 }
  0x27   : > { %1508 = vperm.xlu0 %5756, %v6042_v4  }
  0x2a   : > { %1079 = vperm.xlu1 %5753, %v6059_v6  }
  0x2b   : > { %1520 = vperm.xlu0 %5756, %v6036_v3  }
  0x2e   : > { %5754 = vset.pattern.permute.xlu1 %v10026_v19 }
  0x2f   : > { %1512 = vperm.xlu1 %5754, %v6059_v6   ;;  %5760 = vset.pattern.permute.xlu0 %v10028_v17 }
  0x30   : > { %1368 = vperm.xlu0 %5760, %v6059_v6  }
  0x33   : > { %5755 = vset.pattern.permute.xlu1 %v10030_v15 }
  0x34   : > { %969 = vperm.xlu1 %5755, %v6025_v0   ;;  %1380 = vperm.xlu0 %5760, %v6077_v14  }
  0x38   : > { %5757 = vset.pattern.permute.xlu1 %v10028_v17  ;;  %5762 = vset.pattern.permute.xlu0 %v10032_v18 }
  0x39   : > { %1372 = vperm.xlu1 %5757, %v6025_v0   ;;  %1083 = vperm.xlu0 %5762, %v6025_v0  }
  0x3d   : > { %1376 = vperm.xlu1 %5757, %v6036_v3   ;;  %1095 = vperm.xlu0 %5762, %v6054_v5  }
  0x41   : > { %5758 = vset.pattern.permute.xlu1 %v10032_v18  ;;  %5766 = vset.pattern.permute.xlu0 %v10022_v21 }
  0x42   : > { %1087 = vperm.xlu1 %5758, %v6036_v3   ;;  %582 = vperm.xlu0 %5766, %v6042_v4  }
  0x46   : > { %5759 = vset.pattern.permute.xlu1 %v10026_v19  ;;  %594 = vperm.xlu0 %5766, %v6036_v3  }
  0x47   : > { %1516 = vperm.xlu1 %5759, %v6025_v0  }
  0x4a   : > { %5772 = vset.pattern.permute.xlu0 %v10020_v22 }
  0x4b   : > { %5761 = vset.pattern.permute.xlu1 %v10030_v15  ;;  %749 = vperm.xlu0 %5772, %v6059_v6  }
  0x4c   : > { %977 = vperm.xlu1 %5761, %v6077_v14  }
  0x4f   : > { %761 = vperm.xlu0 %5772, %v6077_v14  }
  0x50   : > { %981 = vperm.xlu1 %5761, %v6054_v5  }
  0x53   : > { %5777 = vset.pattern.permute.xlu0 %v10024_v23 }
  0x54   : > { %5763 = vset.pattern.permute.xlu1 %v10028_v17  ;;  %927 = vperm.xlu0 %5777, %v6025_v0  }
  0x55   : > { %1384 = vperm.xlu1 %5763, %v6054_v5  }
  0x58   : > { %939 = vperm.xlu0 %5777, %v6054_v5  }
  0x59   : > { %5764 = vset.pattern.permute.xlu1 %v10032_v18 }
  0x5a   : > { %1091 = vperm.xlu1 %5764, %v6077_v14  }
  0x5c   : > { %5780 = vset.pattern.permute.xlu0 %v10018_v24 }
  0x5d   : > { %1322 = vperm.xlu0 %5780, %v6042_v4  }
  0x5e   : > { %5765 = vset.pattern.permute.xlu1 %v10026_v19 }
  0x5f   : > { %1524 = vperm.xlu1 %5765, %v6077_v14  }
  0x61   : > { %1334 = vperm.xlu0 %5780, %v6036_v3  }
  0x63   : > { %1528 = vperm.xlu1 %5765, %v6054_v5  }
  0x65   : > { %1338 = vperm.xlu0 %5780, %v6077_v14  }
  0x67   : > { %5767 = vset.pattern.permute.xlu1 %v10022_v21 }
  0x68   : > { %586 = vperm.xlu1 %5767, %v6059_v6  }
  0x6c   : > { %5768 = vset.pattern.permute.xlu1 %v10020_v22 }
  0x6d   : > { %745 = vperm.xlu1 %5768, %v6042_v4  }
  0x71   : > { %5769 = vset.pattern.permute.xlu1 %v10024_v23 }
  0x72   : > { %919 = vperm.xlu1 %5769, %v6042_v4  }
  0x76   : > { %923 = vperm.xlu1 %5769, %v6059_v6  }
  0x7a   : > { %5770 = vset.pattern.permute.xlu1 %v10018_v24 }
  0x7b   : > { %1326 = vperm.xlu1 %5770, %v6059_v6  }
  0x7f   : > { %5771 = vset.pattern.permute.xlu1 %v10022_v21 }
  0x80   : > { %590 = vperm.xlu1 %5771, %v6025_v0  }
  0x84   : > { %5773 = vset.pattern.permute.xlu1 %v10020_v22 }
  0x85   : > { %753 = vperm.xlu1 %5773, %v6025_v0  }
  0x89   : > { %757 = vperm.xlu1 %5773, %v6036_v3  }
  0x8d   : > { %5774 = vset.pattern.permute.xlu1 %v10024_v23 }
  0x8e   : > { %931 = vperm.xlu1 %5774, %v6036_v3   ;;  %v6161_v25 = vpop.permute.xlu1 %372 }
  0x8f   : > { %v6163_v26 = vpop.permute.xlu0 %362 }
  0x92   : > { %5775 = vset.pattern.permute.xlu1 %v10018_v24  ;;  %v6166_v27 = vpop.permute.xlu1 %377 }
  0x93   : > { %1330 = vperm.xlu1 %5775, %v6025_v0   ;;  %v6169_v28 = vpop.permute.xlu0 %367 }
  0x96   : > { %v6171_v29 = vpop.permute.xlu1 %387 }
  0x97   : > { %5776 = vset.pattern.permute.xlu1 %v10022_v21  ;;  %v6175_v30 = vpop.permute.xlu0 %382 }
  0x98   : > { %598 = vperm.xlu1 %5776, %v6077_v14  }
  0x9b   : > { %v6177_v31 = vpop.permute.xlu1 %965 }
  0x9c   : > { %602 = vperm.xlu1 %5776, %v6054_v5   ;;  %v6180_v32 = vpop.permute.xlu0 %961 }
  0xa0   : > { %5778 = vset.pattern.permute.xlu1 %v10020_v22  ;;  %v6183_v33 = vpop.permute.xlu1 %1364 }
  0xa1   : > { %765 = vperm.xlu1 %5778, %v6054_v5   ;;  %v6186_v34 = vpop.permute.xlu0 %973  ;;  %v1389_v41 = vmul.f32 0.0, %v6183_v33 }
  0xa5   : > { %5779 = vset.pattern.permute.xlu1 %v10024_v23  ;;  %v6189_v35 = vpop.permute.xlu1 %1075 }
  0xa6   : > { %935 = vperm.xlu1 %5779, %v6077_v14   ;;  %v6192_v37 = vpop.permute.xlu0 %1508  ;;  %v1100_v45 = vmul.f32 0.0, %v6189_v35 }
  0xa7   : > { %v1533_v51 = vmul.f32 0.0, %v6192_v37 }
  0xa9   : > { %v6194_v38 = vpop.permute.xlu1 %1079 }
  0xaa   : > { %5781 = vset.pattern.permute.xlu1 %v10018_v24  ;;  %v6199_v40 = vpop.permute.xlu0 %1520  ;;  %v1103_v49 = vmul.f32 0.0, %v6194_v38 }
  0xab   : > { %1342 = vperm.xlu1 %5781, %v6054_v5   ;;  %v1542_v5 = vmul.f32 0.0, %v6199_v40 }
  0xae   : > { %v6206_v43 = vpop.permute.xlu1 %1512 }
  0xaf   : > { %v6208_v44 = vpop.permute.xlu0 %1368  ;;  %1427 = vrot.lane.b32.xlu1 %v1389_v41, %s5958_s27  ;;  %v1536_v52 = vmul.f32 0.0, %v6206_v43 }
  0xb0   : > { %v1392_v46 = vmul.f32 0.0, %v6208_v44  ;;  %5787 = vset.pattern.permute.xlu1 %v10036_v2 }
  0xb2   : > { %1433 = vrot.lane.b32.xlu0 %v1392_v46, %s5958_s27 }
  0xb3   : > { %v6218_v50 = vpop.permute.xlu1 %969  ;;  %1138 = vrot.lane.b32.xlu1 %v1100_v45, %s5959_s28  ;;  %v6231_v54 = vpop.permute.xlu0 %1380 }
  0xb4   : > { %v1401_v9 = vmul.f32 0.0, %v6231_v54 }
  0xb6   : > { %1144 = vrot.lane.b32.xlu0 %v1103_v49, %s5959_s28 }
  0xb7   : > { %1571 = vrot.lane.b32.xlu1 %v1533_v51, %s5959_s28 }
  0xb8   : > { %v6229_v53 = vpop.permute.xlu1 %1372  ;;  %v6243_v61 = vpop.permute.xlu0 %1083 }
  0xb9   : > { %v1395_v57 = vmul.f32 0.0, %v6229_v53  ;;  %v1106_v62 = vmul.f32 0.0, %v6243_v61 }
  0xba   : > { %1577 = vrot.lane.b32.xlu0 %v1536_v52, %s5959_s28 }
  0xbb   : > { %1439 = vrot.lane.b32.xlu1 %v1395_v57, %s5958_s27 }
  0xbc   : > { %v6240_v59 = vpop.permute.xlu1 %1376 }
  0xbd   : > { %v1398_v60 = vmul.f32 0.0, %v6240_v59 }
  0xbf   : > { %5783 = vrot.lane.b32.xlu1 %v6238_v58, %s5960_s29  ;;  %1445 = vrot.lane.b32.xlu0 %v1398_v60, %s5958_s27  ;;  %s5969_s29 = smov 15  }
  0xc1   : > { %v6248_v63 = vpop.permute.xlu1 %1087 }
  0xc2   : > { %v1109_v3 = vmul.f32 0.0, %v6248_v63 }
  0xc3   : > { %1150 = vrot.lane.b32.xlu0 %v1106_v62, %s5959_s28 }
  0xc4   : > { %1156 = vrot.lane.b32.xlu1 %v1109_v3, %s5959_s28 }
  0xc6   : > { %v6254_v7 = vpop.permute.xlu1 %1516 }
  0xc7   : > { %v1539_v8 = vmul.f32 0.0, %v6254_v7 }
  0xc8   : > { %1589 = vrot.lane.b32.xlu1 %v1542_v5, %s5959_s28 }
  0xc9   : > { %1583 = vrot.lane.b32.xlu0 %v1539_v8, %s5959_s28 }
  0xcb   : > { %v6260_v10 = vpop.permute.xlu1 %977 }
  0xcd   : > { %1451 = vrot.lane.b32.xlu0 %v1401_v9, %s5958_s27 }
  0xcf   : > { %v6263_v11 = vpop.permute.xlu1 %981 }
  0xd4   : > { %v6265_v12 = vpop.permute.xlu1 %1384 }
  0xd5   : > { %v1404_v13 = vmul.f32 0.0, %v6265_v12 }
  0xd7   : > { %1457 = vrot.lane.b32.xlu1 %v1404_v13, %s5958_s27 }
  0xd9   : > { %v6269_v16 = vpop.permute.xlu1 %1091 }
  0xde   : > { %v6271_v36 = vpop.permute.xlu1 %1524 }
  0xe2   : > { %v6273_v41 = vpop.permute.xlu1 %1528 }
  0xe7   : > { %v6275_v45 = vpop.permute.xlu1 %586 }
  0xe8   : > { %v608_v48 = vmul.f32 0.0, %v6275_v45 }
  0xec   : > { %v456_v46 = vpop.f32.mrb[0].mxu0  ;;  %v6277_v49 = vpop.permute.xlu1 %745 }
  0xed   : > { %v457_v51 = vadd.f32 %v456_v46, %v6163_v26  ;;  %v476_v52 = vpop.f32.mrb[0].mxu1  ;;  %v458_v55 = vpop.f32.mrb[1].mxu0 }
  0xee   : > { %v477_v56 = vadd.f32 %v476_v52, %v6175_v30  ;;  %v478_v57 = vpop.f32.mrb[1].mxu1  ;;  %v460_v60 = vpop.f32.mrb[2].mxu0  ;;  %v459_v52 = vadd.f32 %v458_v55, %v6163_v26 }
  0xef   : > { %v485_v62 = vmax.f32 %v457_v51, 0.0  ;;  %v480_v3 = vpop.f32.mrb[2].mxu1  ;;  %v462_v5 = vpop.f32.mrb[3].mxu0  ;;  %v479_v15 = vadd.f32 %v478_v57, %v6175_v30 }
  0xf0   : > { %v493_v8 = vmax.f32 %v477_v56, 0.0  ;;  %v6281_v9 = vpop.f32.mrb[3].mxu1  ;;  %v486_v19 = vmax.f32 %v459_v52, 0.0 }
  0xf1   : > { %v6283_v13 = vmin.f32 %v485_v62, 6.0  ;;  %v6287_v22 = vpop.permute.xlu1 %919 }
  0xf2   : > { %v6285_v24 = vmin.f32 %v493_v8, 6.0  ;;  %v6312_v55 = vmin.f32 %v486_v19, 6.0 }
  0xf3   : > { %v984_v62 = vmul.f32 %v6180_v32, %v6283_v13  ;;  %v1387_v26 = vmul.f32 %v6183_v33, %v6283_v13  ;;  %v1098_v52 = vmul.f32 %v6189_v35, %v6283_v13  ;;  %v1531_v30 = vmul.f32 %v6192_v37, %v6283_v13 }
  0xf4   : > { %10173 = vst [vmem:[#allocation4_spill] sm:$0xff] %v6285_v24  ;;  %v6289_v21 = vpop.f32.mrb[4].mxu0  ;;  %v992_v56 = vmul.f32 %v6260_v10, %v6285_v24  ;;  %v1399_v17 = vmul.f32 %v6231_v54, %v6285_v24  ;;  %10174 = vst [vmem:[#allocation5_spill] sm:$0xff] %v6312_v55  ;;  %v1388_v19 = vmul.f32 %v6183_v33, %v6312_v55 }
  0xf5   : > { %v6291_v46 = vpop.f32.mrb[5].mxu0  ;;  %v6302_v8 = vpop.permute.xlu1 %923  ;;  %1008 = vrot.lane.b32.xlu1 %v984_v62, %s5958_s27  ;;  %v494_v62 = vmax.f32 %v479_v15, 0.0  ;;  %v985_v33 = vmul.f32 %v6180_v32, %v6312_v55 }
  0xf6   : > { %v6293_v23 = vpop.f32.mrb[6].mxu0  ;;  %1024 = vrot.lane.b32.xlu0 %v992_v56, %s5958_s27  ;;  %v1110_v56 = vmul.f32 %v6269_v16, %v6285_v24  ;;  %v6352_v32 = vpop.permute.xlu0 %1095 }
  0xf7   : > { %v6296_v51 = vpop.f32.mrb[7].mxu0 }
  0xf9   : > { %1423 = vrot.lane.b32.xlu1 %v1387_v26, %s5958_s27  ;;  %v10042_v26 = vmov 10  }
  0xfa   : > { %1447 = vrot.lane.b32.xlu0 %v1399_v17, %s5958_s27  ;;  %v6315_v18 = vpop.permute.xlu1 %1326  ;;  %v461_v17 = vadd.f32 %v460_v60, %v6169_v28  ;;  %v1099_v60 = vmul.f32 %v6189_v35, %v6312_v55 }
  0xfb   : > { %5793 = vset.pattern.permute.xlu0 %v10042_v26 }
  0xfc   : > { %v487_v15 = vmax.f32 %v461_v17, 0.0 }
  0xfd   : > { %1134 = vrot.lane.b32.xlu1 %v1098_v52, %s5959_s28 }
  0xfe   : > { %1158 = vrot.lane.b32.xlu0 %v1110_v56, %s5959_s28  ;;  %v6333_v56 = vmin.f32 %v494_v62, 6.0  ;;  %v6341_v52 = vmin.f32 %v487_v15, 6.0  ;;  %v1532_v62 = vmul.f32 %v6192_v37, %v6312_v55  ;;  %v463_v15 = vadd.f32 %v462_v5, %v6169_v28  ;;  %v6369_v5 = vpop.permute.xlu0 %582 }
  0xff   : > { %v6328_v57 = vpop.permute.xlu1 %590 }
 0x100   : > { %v993_v17 = vmul.f32 %v6260_v10, %v6333_v56  ;;  %v488_v10 = vmax.f32 %v463_v15, 0.0  ;;  %v1111_v28 = vmul.f32 %v6269_v16, %v6333_v56 }
 0x101   : > { %1567 = vrot.lane.b32.xlu1 %v1531_v30, %s5959_s28 }
 0x102   : > { %1425 = vrot.lane.b32.xlu0 %v1388_v19, %s5958_s27  ;;  %v481_v19 = vadd.f32 %v480_v3, %v6171_v29  ;;  %v986_v3 = vmul.f32 %v6177_v31, %v6341_v52 }
 0x104   : > { %v6344_v30 = vpop.permute.xlu1 %753  ;;  %v495_v35 = vmax.f32 %v481_v19, 0.0  ;;  %v1390_v19 = vmul.f32 %v6208_v44, %v6341_v52 }
 0x105   : > { %1010 = vrot.lane.b32.xlu1 %v985_v33, %s5958_s27 }
 0x106   : > { %1136 = vrot.lane.b32.xlu0 %v1099_v60, %s5959_s28  ;;  %v1400_v60 = vmul.f32 %v6231_v54, %v6333_v56  ;;  %v6363_v37 = vmin.f32 %v495_v35, 6.0  ;;  %v6373_v54 = vmin.f32 %v488_v10, 6.0  ;;  %v1101_v35 = vmul.f32 %v6194_v38, %v6341_v52 }
 0x107   : > { %v467_v10 = vadd.f32 %v6289_v21, %v6161_v25 }
 0x108   : > { %v6359_v33 = vpop.permute.xlu1 %757  ;;  %10175 = vst [vmem:[#allocation6_spill] sm:$0xff] %v6363_v37  ;;  %10176 = vst [vmem:[#allocation7_spill] sm:$0xff] %v6373_v54  ;;  %v1402_v15 = vmul.f32 %v6265_v12, %v6363_v37  ;;  %v1391_v21 = vmul.f32 %v6208_v44, %v6373_v54 }
 0x109   : > { %1026 = vrot.lane.b32.xlu1 %v993_v17, %s5958_s27 }
 0x10a   : > { %1569 = vrot.lane.b32.xlu0 %v1532_v62, %s5959_s28  ;;  %v483_v62 = vadd.f32 %v6281_v9, %v6171_v29  ;;  %v1534_v29 = vmul.f32 %v6206_v43, %v6341_v52  ;;  %v987_v9 = vmul.f32 %v6177_v31, %v6373_v54 }
 0x10d   : > { %1449 = vrot.lane.b32.xlu1 %v1400_v60, %s5958_s27  ;;  %v6377_v17 = vpop.permute.xlu1 %931  ;;  %v496_v60 = vmax.f32 %v483_v62, 0.0  ;;  %v994_v62 = vmul.f32 %v6263_v11, %v6363_v37 }
 0x10e   : > { %1012 = vrot.lane.b32.xlu0 %v986_v3, %s5958_s27  ;;  %v6385_v3 = vpop.permute.xlu0 %594 }
 0x111   : > { %1160 = vrot.lane.b32.xlu1 %v1111_v28, %s5959_s28  ;;  %v6397_v28 = vmin.f32 %v496_v60, 6.0 }
 0x112   : > { %1429 = vrot.lane.b32.xlu0 %v1390_v19, %s5958_s27  ;;  %v6393_v19 = vpop.permute.xlu1 %1330 }
 0x113   : > { %10177 = vst [vmem:[#allocation8_spill] sm:$0xff] %v6397_v28  ;;  %v1547_v2 = vmul.f32 %v6273_v41, %v6397_v28 }
 0x115   : > { %1453 = vrot.lane.b32.xlu1 %v1402_v15, %s5958_s27  ;;  %v6403_v15 = vpop.permute.xlu0 %749 }
 0x116   : > { %1140 = vrot.lane.b32.xlu0 %v1101_v35, %s5959_s28  ;;  %v489_v35 = vmax.f32 %v467_v10, 0.0  ;;  %v1403_v10 = vmul.f32 %v6265_v12, %v6397_v28  ;;  %v471_v12 = vadd.f32 %v6293_v23, %v6166_v27  ;;  %v773_v47 = vmul.f32 0.0, %v6403_v15 }
 0x117   : > { %v6411_v60 = vpop.permute.xlu1 %598 }
 0x118   : > { %v6407_v31 = vmin.f32 %v489_v35, 6.0 }
 0x119   : > { %1014 = vrot.lane.b32.xlu1 %v987_v9, %s5958_s27  ;;  %v1102_v9 = vmul.f32 %v6194_v38, %v6373_v54  ;;  %v6419_v44 = vpop.permute.xlu0 %761 }
 0x11a   : > { %1573 = vrot.lane.b32.xlu0 %v1534_v29, %s5959_s28  ;;  %v469_v29 = vadd.f32 %v6291_v46, %v6161_v25  ;;  %v1104_v35 = vmul.f32 %v6243_v61, %v6407_v31  ;;  %v1535_v25 = vmul.f32 %v6206_v43, %v6373_v54  ;;  %v491_v43 = vmax.f32 %v471_v12, 0.0 }
 0x11b   : > { %v6425_v46 = vpop.permute.xlu1 %602 }
 0x11d   : > { %1431 = vrot.lane.b32.xlu1 %v1391_v21, %s5958_s27  ;;  %v1537_v21 = vmul.f32 %v6254_v7, %v6407_v31 }
 0x11e   : > { %1028 = vrot.lane.b32.xlu0 %v994_v62, %s5958_s27  ;;  %v490_v62 = vmax.f32 %v469_v29, 0.0  ;;  %v995_v29 = vmul.f32 %v6263_v11, %v6397_v28 }
 0x120   : > { %v6429_v38 = vmin.f32 %v490_v62, 6.0  ;;  %v6443_v62 = vpop.permute.xlu1 %765 }
 0x121   : > { %1142 = vrot.lane.b32.xlu1 %v1102_v9, %s5959_s28  ;;  %v473_v9 = vadd.f32 %v6296_v51, %v6166_v27  ;;  %v1393_v51 = vmul.f32 %v6229_v53, %v6407_v31 }
 0x122   : > { %1455 = vrot.lane.b32.xlu0 %v1403_v10, %s5958_s27  ;;  %v6437_v10 = vpop.permute.xlu0 %927  ;;  %v989_v23 = vmul.f32 %v6218_v50, %v6429_v38  ;;  %v1394_v27 = vmul.f32 %v6229_v53, %v6429_v38 }
 0x123   : > { %v492_v12 = vmax.f32 %v473_v9, 0.0 }
 0x125   : > { %1575 = vrot.lane.b32.xlu1 %v1535_v25, %s5959_s28  ;;  %v6453_v25 = vmin.f32 %v491_v43, 6.0  ;;  %v1105_v43 = vmul.f32 %v6243_v61, %v6429_v38 }
 0x126   : > { %1146 = vrot.lane.b32.xlu0 %v1104_v35, %s5959_s28  ;;  %v988_v35 = vmul.f32 %v6218_v50, %v6407_v31  ;;  %v6451_v11 = vpop.permute.xlu0 %939  ;;  %v6463_v50 = vmin.f32 %v492_v12, 6.0 }
 0x127   : > { %10178 = vst [vmem:[#allocation9_spill] sm:$0xff] %v6451_v11  ;;  %10179 = vst [vmem:[#allocation10_spill] sm:$0xff] %v6453_v25  ;;  %v10193_v11 = vand.u32 15, %v6196_v39  ;;  %v615_v39 = vmul.f32 %v6385_v3, %v6453_v25 }
 0x129   : > { %1030 = vrot.lane.b32.xlu1 %v995_v29, %s5958_s27  ;;  %v1396_v29 = vmul.f32 %v6240_v59, %v6453_v25  ;;  %vm320_vm4 = vcmp.gt.s32.totalorder %v10193_v11, 0  ;;  %v619_v11 = vmul.f32 %v6411_v60, %v6333_v56 }
 0x12a   : > { %1579 = vrot.lane.b32.xlu0 %v1537_v21, %s5959_s28  ;;  %v6459_v21 = vpop.permute.xlu1 %935  ;;  %v6469_v9 = vpop.permute.xlu0 %1322 }
 0x12b   : > { %10180 = vst [vmem:[#allocation11_spill] sm:$0xff] %v6459_v21 }
 0x12d   : > { %1016 = vrot.lane.b32.xlu1 %v988_v35, %s5958_s27  ;;  %v1538_v35 = vmul.f32 %v6254_v7, %v6429_v38  ;;  %v1541_v7 = vmul.f32 %v6199_v40, %v6463_v50 }
 0x12e   : > { %1018 = vrot.lane.b32.xlu0 %v989_v23, %s5958_s27  ;;  %v6473_v53 = vpop.permute.xlu1 %1342  ;;  %v991_v23 = vmul.f32 %v6186_v34, %v6463_v50  ;;  %v6481_v12 = vpop.permute.xlu0 %1334 }
 0x12f   : > { %10181 = vst [vmem:[#allocation12_spill] sm:$0xff] %v6473_v53 }
 0x131   : > { %1435 = vrot.lane.b32.xlu1 %v1393_v51, %s5958_s27  ;;  %v990_v51 = vmul.f32 %v6186_v34, %v6453_v25  ;;  %v1112_v34 = vmul.f32 0.0, %v6269_v16 }
 0x132   : > { %1437 = vrot.lane.b32.xlu0 %v1394_v27, %s5958_s27  ;;  %v6483_v61 = vpop.permute.xlu1 %1427  ;;  %v1108_v27 = vmul.f32 %v6248_v63, %v6463_v50 }
 0x135   : > { %1148 = vrot.lane.b32.xlu1 %v1105_v43, %s5959_s28  ;;  %v6495_v43 = vpop.permute.xlu0 %1338 }
 0x136   : > { %1441 = vrot.lane.b32.xlu0 %v1396_v29, %s5958_s27  ;;  %v1107_v29 = vmul.f32 %v6248_v63, %v6453_v25  ;;  %10182 = vst [vmem:[#allocation13_spill] sm:$0xff] %v6495_v43  ;;  %v1114_v63 = vmul.f32 %v6352_v32, %v6397_v28 }
 0x139   : > { %1581 = vrot.lane.b32.xlu1 %v1538_v35, %s5959_s28  ;;  %v1540_v35 = vmul.f32 %v6199_v40, %v6453_v25 }
 0x13a   : > { %1022 = vrot.lane.b32.xlu0 %v991_v23, %s5958_s27  ;;  %v6497_v23 = vpop.permute.xlu1 %1138 }
 0x13d   : > { %1020 = vrot.lane.b32.xlu1 %v990_v51, %s5958_s27 }
 0x13e   : > { %1154 = vrot.lane.b32.xlu0 %v1108_v27, %s5959_s28  ;;  %v6504_v27 = vpop.permute.xlu0 %1433  ;;  %v6506_v51 = vpop.permute.xlu1 %1571 }
 0x141   : > { %1152 = vrot.lane.b32.xlu1 %v1107_v29, %s5959_s28  ;;  %v1543_v29 = vmul.f32 %v6271_v36, %v6285_v24 }
 0x142   : > { %1587 = vrot.lane.b32.xlu0 %v1541_v7, %s5959_s28  ;;  %v1397_v7 = vmul.f32 %v6240_v59, %v6463_v50  ;;  %v6516_v16 = vpop.permute.xlu0 %1144  ;;  %v6518_v40 = vpop.permute.xlu1 %1439  ;;  %v1115_v59 = vmul.f32 0.0, %v6352_v32 }
 0x145   : > { %1585 = vrot.lane.b32.xlu1 %v1540_v35, %s5959_s28  ;;  %v1545_v35 = vmul.f32 0.0, %v6271_v36 }
 0x146   : > { %1162 = vrot.lane.b32.xlu0 %v1112_v34, %s5959_s28  ;;  %v1113_v34 = vmul.f32 %v6352_v32, %v6363_v37 }
 0x149   : > { %1443 = vrot.lane.b32.xlu1 %v1397_v7, %s5958_s27  ;;  %v6530_v7 = vpop.permute.xlu1 %5783 }
 0x14a   : > { %1166 = vrot.lane.b32.xlu0 %v1114_v63, %s5959_s28  ;;  %v6528_v63 = vpop.permute.xlu0 %1577 }
 0x14d   : > { %1164 = vrot.lane.b32.xlu1 %v1113_v34, %s5959_s28  ;;  %v6542_v32 = vpop.permute.xlu1 %1156 }
 0x14e   : > { %1591 = vrot.lane.b32.xlu0 %v1543_v29, %s5959_s28  ;;  %v6534_v1 = vpop.permute.xlu0 %1445  ;;  %v1544_v29 = vmul.f32 %v6271_v36, %v6333_v56  ;;  %v1548_v36 = vmul.f32 0.0, %v6273_v41 }
 0x151   : > { %1168 = vrot.lane.b32.xlu1 %v1115_v59, %s5959_s28  ;;  %v1546_v59 = vmul.f32 %v6273_v41, %v6363_v37  ;;  %v769_v41 = vmul.f32 %v6277_v49, %v6312_v55 }
 0x152   : > { %1595 = vrot.lane.b32.xlu0 %v1545_v35, %s5959_s28  ;;  %v6544_v34 = vpop.permute.xlu0 %1150  ;;  %v607_v35 = vmul.f32 %v6369_v5, %v6312_v55 }
 0x155   : > { %1593 = vrot.lane.b32.xlu1 %v1544_v29, %s5959_s28  ;;  %v6555_v29 = vpop.permute.xlu1 %1589 }
 0x156   : > { %1599 = vrot.lane.b32.xlu0 %v1547_v2, %s5959_s28  ;;  %v610_v2 = vmul.f32 %v6275_v45, %v6373_v54  ;;  %10183 = vst [vmem:[#allocation14_spill] sm:$0xff] %v6555_v29  ;;  %v6557_v20 = vpop.permute.xlu0 %1583 }
 0x159   : > { %1597 = vrot.lane.b32.xlu1 %v1546_v59, %s5959_s28 }
 0x15a   : > { %645 = vrot.lane.b32.xlu0 %v607_v35, %s5958_s27  ;;  %v6564_v35 = vpop.permute.xlu1 %1457  ;;  %v6568_v59 = vpop.permute.xlu0 %1451 }
 0x15b   : > { %10184 = vst [vmem:[#allocation15_spill] sm:$0xff] %v6564_v35  ;;  %10185 = vst [vmem:[#allocation16_spill] sm:$0xff] %v6568_v59 }
 0x15d   : > { %1601 = vrot.lane.b32.xlu1 %v1548_v36, %s5959_s28 }
 0x15e   : > { %651 = vrot.lane.b32.xlu0 %v610_v2, %s5958_s27 }
 0x161   : > { %544 = vperm.xlu1 %5787, %v6059_v6  }
 0x162   : > { %647 = vrot.lane.b32.xlu0 %v608_v48, %s5958_s27  ;;  %v771_v48 = vmul.f32 %v6403_v15, %v6341_v52 }
 0x165   : > { %548 = vperm.xlu1 %5787, %v6025_v0   ;;  %v606_v0 = vmul.f32 %v6369_v5, %v6283_v13 }
 0x166   : > { %806 = vrot.lane.b32.xlu0 %v769_v41, %s5959_s28  ;;  %v10188_v41 = vmov 10  }
 0x167   : > { %v6574_v36 = vpop.permute.xlu1 %1008 }
 0x168   : > { %v6572_v2 = vpop.permute.xlu0 %1024 }
 0x169   : > { %10186 = vst [vmem:[#allocation17_spill] sm:$0xff] %v6572_v2  ;;  %556 = vperm.xlu1 %5787, %v6077_v14  }
 0x16a   : > { %810 = vrot.lane.b32.xlu0 %v771_v48, %s5959_s28  ;;  %v613_v48 = vmul.f32 %v6328_v57, %v6429_v38 }
 0x16b   : > { %v6583_v58 = vpop.permute.xlu1 %1423 }
 0x16c   : > { %v6581_v26 = vpop.permute.xlu0 %1447 }
 0x16d   : > { %10187 = vst [vmem:[#allocation18_spill] sm:$0xff] %v6581_v26  ;;  %643 = vrot.lane.b32.xlu1 %v606_v0, %s5958_s27  ;;  %v609_v26 = vmul.f32 %v6275_v45, %v6341_v52  ;;  %v768_v45 = vmul.f32 %v6277_v49, %v6283_v13 }
 0x16e   : > { %814 = vrot.lane.b32.xlu0 %v773_v47, %s5959_s28  ;;  %5794 = vset.pattern.permute.xlu1 %v10188_v41  ;;  %v605_v47 = vmul.f32 0.0, %v6369_v5  ;;  %v616_v41 = vmul.f32 %v6385_v3, %v6463_v50  ;;  %v770_v5 = vmul.f32 0.0, %v6277_v49  ;;  %v612_v49 = vmul.f32 %v6328_v57, %v6407_v31 }
 0x16f   : > { %v6594_v14 = vpop.permute.xlu1 %1134 }
 0x170   : > { %v6592_v53 = vpop.permute.xlu0 %1158 }
 0x171   : > { %10189 = vst [vmem:[#allocation19_spill] sm:$0xff] %v6592_v53  ;;  %649 = vrot.lane.b32.xlu1 %v609_v26, %s5958_s27  ;;  %v614_v26 = vmul.f32 0.0, %v6385_v3  ;;  %v622_v3 = vmul.f32 %v6425_v46, %v6397_v28 }
 0x172   : > { %657 = vrot.lane.b32.xlu0 %v613_v48, %s5958_s27 }
 0x173   : > { %v6603_v0 = vpop.permute.xlu1 %1567 }
 0x174   : > { %v6601_v35 = vpop.permute.xlu0 %1425 }
 0x175   : > { %641 = vrot.lane.b32.xlu1 %v605_v47, %s5958_s27  ;;  %v775_v47 = vmul.f32 %v6344_v30, %v6429_v38 }
 0x176   : > { %663 = vrot.lane.b32.xlu0 %v616_v41, %s5958_s27 }
 0x177   : > { %v6613_v48 = vpop.permute.xlu1 %1010 }
 0x178   : > { %v6611_v53 = vpop.permute.xlu0 %1136 }
 0x179   : > { %804 = vrot.lane.b32.xlu1 %v768_v45, %s5959_s28  ;;  %v772_v45 = vmul.f32 %v6403_v15, %v6373_v54  ;;  %v10195_v15 = vmov 0.0  }
 0x17a   : > { %1784 = vperm.xlu0 %5793, %v6042_v4  }
 0x17b   : > { %v6621_v41 = vpop.permute.xlu1 %1026 }
 0x17c   : > { %v6619_v2 = vpop.permute.xlu0 %1569  ;;  %10190 = vst [vmem:[#allocation20_spill] sm:$0xff] %v6621_v41  ;;  %v779_v41 = vmul.f32 0.0, %v6359_v33 }
 0x17d   : > { %808 = vrot.lane.b32.xlu1 %v770_v5, %s5959_s28 }
 0x17e   : > { %659 = vrot.lane.b32.xlu0 %v614_v26, %s5958_s27  ;;  %v777_v26 = vmul.f32 %v6359_v33, %v6453_v25 }
 0x17f   : > { %v6629_v4 = vpop.permute.xlu1 %1449 }
 0x180   : > { %v6627_v43 = vpop.permute.xlu0 %1012  ;;  %10191 = vst [vmem:[#allocation21_spill] sm:$0xff] %v6629_v4  ;;  %v10194_v4 = vand.u32 15, %v6204_v42 }
 0x181   : > { %812 = vrot.lane.b32.xlu1 %v772_v45, %s5959_s28 }
 0x182   : > { %818 = vrot.lane.b32.xlu0 %v775_v47, %s5959_s28  ;;  %vm321_vm5 = vcmp.gt.s32.totalorder %v10194_v4, 0  ;;  %v5672_v47 = vsel %vm320_vm4, 1.0, %v10195_v15 }
 0x183   : > { %v6641_v59 = vpop.permute.xlu1 %1160  ;;  %v5673_v45 = vsel %vm321_vm5, 1.0, %v10195_v15 }
 0x184   : > { %v6639_v5 = vpop.permute.xlu0 %1429  ;;  %10192 = vst [vmem:[#allocation22_spill] sm:$0xff] %v6641_v59  ;;  %v6660_v42 = vpack.i.bf16 %v5673_v45, %v5672_v47  ;;  %v1171_v45 = vsel %vm840_vm6, %v6611_v53, %v6497_v23  ;;  %v1460_v23 = vsel %vm677_vm7, %v6601_v35, %v6483_v61  ;;  %v1604_v61 = vsel %vm840_vm6, %v6619_v2, %v6506_v51 }
 0x185   : > { %655 = vrot.lane.b32.xlu1 %v612_v49, %s5958_s27  ;;  %v6723_v51 = vunpack.i.h.bf16 %v6530_v7 }
 0x186   : > { %822 = vrot.lane.b32.xlu0 %v777_v26, %s5959_s28  ;;  %10197 = vst [vmem:[#allocation24_spill] sm:$0xff] %v6660_v42  ;;  %v944_v26 = vmul.f32 %v6287_v22, %v6312_v55 }
 0x187   : > { %v6654_v29 = vpop.permute.xlu1 %1453  ;;  %10202 = vst [vmem:[#allocation29_spill] sm:$0xff] %v6723_v51 }
 0x188   : > { %v6652_v21 = vpop.permute.xlu0 %1140  ;;  %10196 = vst [vmem:[#allocation23_spill] sm:$0xff] %v6654_v29 }
 0x189   : > { %661 = vrot.lane.b32.xlu1 %v615_v39, %s5958_s27 }
 0x18a   : > { %826 = vrot.lane.b32.xlu0 %v779_v41, %s5959_s28  ;;  %v1058_v41 = vadd.f32 %v6613_v48, %v944_v26  ;;  %v611_v26 = vmul.f32 0.0, %v6328_v57 }
 0x18b   : > { %v6666_v49 = vpop.permute.xlu1 %1014 }
 0x18c   : > { %v6664_v4 = vpop.permute.xlu0 %1573  ;;  %v1202_v39 = vadd.f32 %v1171_v45, %v1058_v41  ;;  %v947_v41 = vmul.f32 %v6302_v8, %v6373_v54 }
 0x18d   : > { %5789 = vrot.lane.b32.xlu1 %v6660_v42, %s5962_s30 }
 0x18e   : > { %669 = vrot.lane.b32.xlu0 %v619_v11, %s5958_s27  ;;  %v945_v11 = vmul.f32 0.0, %v6302_v8 }
 0x18f   : > { %v6678_v47 = vpop.permute.xlu1 %1431 }
 0x190   : > { %v6676_v15 = vpop.permute.xlu0 %1028 }
 0x191   : > { %10198 = vst [vmem:[#allocation25_spill] sm:$0xff] %v6676_v15  ;;  %1788 = vperm.xlu1 %5794, %v6059_v6   ;;  %v1059_v15 = vadd.f32 %v6627_v43, %v945_v11  ;;  %v1347_v6 = vmul.f32 %v6469_v9, %v6312_v55 }
 0x192   : > { %675 = vrot.lane.b32.xlu0 %v622_v3, %s5958_s27 }
 0x193   : > { %v6688_v29 = vpop.permute.xlu1 %1142  ;;  %v1203_v3 = vadd.f32 %v6652_v21, %v1059_v15  ;;  %v1061_v15 = vadd.f32 %v6666_v49, %v947_v41 }
 0x194   : > { %v6686_v42 = vpop.permute.xlu0 %1455  ;;  %v1173_v11 = vsel %vm840_vm6, %v6688_v29, %v6516_v16 }
 0x195   : > { %10199 = vst [vmem:[#allocation26_spill] sm:$0xff] %v6686_v42  ;;  %653 = vrot.lane.b32.xlu1 %v611_v26, %s5958_s27  ;;  %v1491_v26 = vadd.f32 %v1460_v23, %v1347_v6  ;;  %v1205_v42 = vadd.f32 %v1173_v11, %v1061_v15  ;;  %v1348_v11 = vmul.f32 0.0, %v6315_v18 }
 0x196   : > { %1240 = vrot.lane.b32.xlu0 %v1202_v39, %s5963_s8  ;;  %v774_v39 = vmul.f32 %v6344_v30, %v6407_v31 }
 0x197   : > { %v6704_v45 = vpop.permute.xlu1 %1575  ;;  %v1635_v55 = vadd.f32 %v1604_v61, %v1491_v26  ;;  %v620_v61 = vmul.f32 0.0, %v6425_v46 }
 0x198   : > { %v6702_v57 = vpop.permute.xlu0 %1146 }
 0x199   : > { %10200 = vst [vmem:[#allocation27_spill] sm:$0xff] %v6702_v57  ;;  %816 = vrot.lane.b32.xlu1 %v774_v39, %s5959_s28  ;;  %v776_v57 = vmul.f32 0.0, %v6344_v30  ;;  %v1664_v16 = vmul.f32 %v6723_v51, %v1635_v55  ;;  %v1462_v30 = vsel %vm677_vm7, %v6678_v47, %v6504_v27  ;;  %v6753_v27 = vld [vmem:[%s10013_s3 + $0x18] sm:$0xff] }
 0x19a   : > { %1242 = vrot.lane.b32.xlu0 %v1203_v3, %s5963_s8  ;;  %v778_v3 = vmul.f32 %v6359_v33, %v6463_v50  ;;  %v1606_v33 = vsel %vm840_vm6, %v6704_v45, %v6528_v63  ;;  %v621_v63 = vmul.f32 %v6425_v46, %v6363_v37 }
 0x19b   : > { %v6719_v25 = vpop.permute.xlu1 %1030 }
 0x19c   : > { %v6717_v59 = vpop.permute.xlu0 %1579  ;;  %10201 = vst [vmem:[#allocation28_spill] sm:$0xff] %v6719_v25 }
 0x19d   : > { %820 = vrot.lane.b32.xlu1 %v776_v57, %s5959_s28  ;;  %v618_v57 = vmul.f32 %v6411_v60, %v6285_v24 }
 0x19e   : > { %1246 = vrot.lane.b32.xlu0 %v1205_v42, %s5963_s8  ;;  %v1350_v42 = vmul.f32 %v6315_v18, %v6373_v54 }
 0x19f   : > { %v6730_v6 = vpop.permute.xlu1 %1016 }
 0x1a0   : > { %v6728_v23 = vpop.permute.xlu0 %1018  ;;  %v1494_v39 = vadd.f32 %v1462_v30, %v1350_v42  ;;  %v1032_v30 = vsel %vm677_vm7, %v6574_v36, %v6613_v48  ;;  %v1492_v42 = vadd.f32 %v6639_v5, %v1348_v11 }
 0x1a1   : > { %824 = vrot.lane.b32.xlu1 %v778_v3, %s5959_s28  ;;  %v942_v3 = vmul.f32 0.0, %v6287_v22 }
 0x1a2   : > { %1702 = vrot.lane.b32.xlu0 %v1664_v16, %s5964_s9  ;;  %v1638_v26 = vadd.f32 %v1606_v33, %v1494_v39  ;;  %v1636_v39 = vadd.f32 %v6664_v4, %v1492_v42 }
 0x1a3   : > { %v6743_v41 = vpop.permute.xlu1 %1435  ;;  %v1056_v33 = vadd.f32 %v6574_v36, %v942_v3  ;;  %v1170_v36 = vsel %vm840_vm6, %v6594_v14, %v6611_v53  ;;  %v1603_v53 = vsel %vm840_vm6, %v6603_v0, %v6619_v2  ;;  %v781_v2 = vmul.f32 %v6419_v44, %v6333_v56 }
 0x1a4   : > { %v6741_v55 = vpop.permute.xlu0 %1437  ;;  %v1667_v46 = vmul.f32 %v6723_v51, %v1638_v26 }
 0x1a5   : > { %667 = vrot.lane.b32.xlu1 %v618_v57, %s5958_s27  ;;  %v943_v57 = vmul.f32 %v6287_v22, %v6283_v13  ;;  %v1200_v48 = vadd.f32 %v6594_v14, %v1056_v33  ;;  %v1459_v22 = vsel %vm677_vm7, %v6583_v58, %v6601_v35  ;;  %v946_v35 = vmul.f32 %v6302_v8, %v6341_v52 }
 0x1a6   : > { %1796 = vperm.xlu0 %5793, %v6753_v27   ;;  %v1172_v14 = vsel %vm840_vm6, %v6652_v21, %v6688_v29  ;;  %v1349_v21 = vmul.f32 %v6315_v18, %v6341_v52 }
 0x1a7   : > { %v6761_v16 = vpop.permute.xlu1 %1148  ;;  %v1057_v11 = vadd.f32 %v1032_v30, %v943_v57  ;;  %v1346_v30 = vmul.f32 %v6469_v9, %v6283_v13  ;;  %v1461_v57 = vsel %vm677_vm7, %v6639_v5, %v6678_v47  ;;  %v783_v47 = vmul.f32 %v6443_v62, %v6363_v37 }
 0x1a8   : > { %v6759_v15 = vpop.permute.xlu0 %1441  ;;  %v1493_v5 = vadd.f32 %v1461_v57, %v1349_v21 }
 0x1a9   : > { %673 = vrot.lane.b32.xlu1 %v621_v63, %s5958_s27  ;;  %v1033_v63 = vsel %vm677_vm7, %v6627_v43, %v6666_v49  ;;  %v1201_v42 = vadd.f32 %v1170_v36, %v1057_v11  ;;  %v1490_v43 = vadd.f32 %v1459_v22, %v1346_v30 }
 0x1aa   : > { %671 = vrot.lane.b32.xlu0 %v620_v61, %s5958_s27  ;;  %v6783_v61 = vunpack.i.l.bf16 %v6530_v7  ;;  %v1060_v49 = vadd.f32 %v1033_v63, %v946_v35  ;;  %v1175_v35 = vsel %vm840_vm6, %v6761_v16, %v6544_v34 }
 0x1ab   : > { %v6779_v25 = vpop.permute.xlu1 %1581  ;;  %v1634_v29 = vadd.f32 %v1603_v53, %v1490_v43  ;;  %v953_v43 = vmul.f32 %v6377_v17, %v6463_v50 }
 0x1ac   : > { %v6777_v54 = vpop.permute.xlu0 %1022  ;;  %10203 = vst [vmem:[#allocation30_spill] sm:$0xff] %v6783_v61  ;;  %v1665_v26 = vmul.f32 %v6783_v61, %v1636_v39  ;;  %v1204_v39 = vadd.f32 %v1172_v14, %v1060_v49 }
 0x1ad   : > { %1236 = vrot.lane.b32.xlu1 %v1200_v48, %s5963_s8  ;;  %v6833_v48 = vsel %vm1657_vm8, %v6783_v61, %v6723_v51 }
 0x1ae   : > { %1708 = vrot.lane.b32.xlu0 %v1667_v46, %s5964_s9  ;;  %v1605_v46 = vsel %vm840_vm6, %v6664_v4, %v6704_v45  ;;  %10204 = vst [vmem:[#allocation31_spill] sm:$0xff] %v6833_v48  ;;  %v1663_v11 = vmul.f32 %v6833_v48, %v1634_v29  ;;  %v6842_v4 = vld [vmem:[#allocation2 + $0x18] sm:$0xff]  ;;  %v1464_v29 = vsel %vm677_vm7, %v6741_v55, %v6518_v40 }
 0x1af   : > { %v6799_v3 = vpop.permute.xlu1 %1020  ;;  %v1637_v22 = vadd.f32 %v1605_v46, %v1493_v5  ;;  %v785_v45 = vmul.f32 %v6842_v4, %v6443_v62  ;;  %v1345_v57 = vmul.f32 %v6842_v4, %v6469_v9  ;;  %v1353_v9 = vmul.f32 %v6393_v19, %v6429_v38 }
 0x1b0   : > { %v6797_v7 = vpop.permute.xlu0 %1154  ;;  %v1608_v40 = vsel %vm840_vm6, %v6779_v25, %v6557_v20 }
 0x1b1   : > { %1238 = vrot.lane.b32.xlu1 %v1201_v42, %s5963_s8  ;;  %v1666_v30 = vmul.f32 %v6833_v48, %v1637_v22  ;;  %v1177_v34 = vsel %vm840_vm6, %v6797_v7, %v6542_v32  ;;  %v1489_v21 = vadd.f32 %v6583_v58, %v1345_v57  ;;  %v951_v32 = vmul.f32 %v6842_v4, %v6377_v17 }
 0x1b2   : > { %1704 = vrot.lane.b32.xlu0 %v1665_v26, %s5964_s9  ;;  %v950_v26 = vmul.f32 %v6437_v10, %v6429_v38  ;;  %v617_v58 = vmul.f32 %v6842_v4, %v6411_v60 }
 0x1b3   : > { %v6818_v33 = vpop.permute.xlu1 %1152 }
 0x1b4   : > { %v6816_v8 = vpop.permute.xlu0 %1587  ;;  %v1064_v42 = vadd.f32 %v6728_v23, %v950_v26  ;;  %v1065_v26 = vadd.f32 %v6799_v3, %v951_v32  ;;  %v1034_v32 = vsel %vm677_vm7, %v6730_v6, %v6728_v23  ;;  %v10207_v23 = vld [vmem:[#allocation10_spill] sm:$0xff] }
 0x1b5   : > { %1244 = vrot.lane.b32.xlu1 %v1204_v39, %s5963_s8  ;;  %v5920_v39 = vld [vmem:[%s10013_s3 + $0x10] sm:$0xff] }
 0x1b6   : > { %830 = vrot.lane.b32.xlu0 %v781_v2, %s5959_s28  ;;  %v1208_v14 = vadd.f32 %v1175_v35, %v1064_v42  ;;  %v1067_v2 = vadd.f32 %v6777_v54, %v953_v43  ;;  %v10205_v42 = vld [vmem:[#allocation14_spill] sm:$0xff] }
 0x1b7   : > { %v6838_v36 = vpop.permute.xlu1 %1585 }
 0x1b8   : > { %v6835_v18 = vpop.permute.xlu0 %1162  ;;  %v1211_v46 = vadd.f32 %v1177_v34, %v1067_v2 }
 0x1b9   : > { %1700 = vrot.lane.b32.xlu1 %v1663_v11, %s5964_s9 }
 0x1ba   : > { %834 = vrot.lane.b32.xlu0 %v783_v47, %s5959_s28  ;;  %v1633_v47 = vadd.f32 %v6603_v0, %v1489_v21  ;;  %v1209_v0 = vadd.f32 %v6818_v33, %v1065_v26  ;;  %v780_v21 = vmul.f32 %v6419_v44, %v6285_v24 }
 0x1bb   : > { %v6856_v53 = vpop.permute.xlu1 %1443 }
 0x1bc   : > { %v6848_v63 = vpop.permute.xlu0 %1166  ;;  %v1466_v11 = vsel %vm677_vm7, %v6856_v53, %v6534_v1  ;;  %v1662_v1 = vmul.f32 %v6783_v61, %v1633_v47  ;;  %v949_v47 = vmul.f32 %v6437_v10, %v6407_v31 }
 0x1bd   : > { %1706 = vrot.lane.b32.xlu1 %v1666_v30, %s5964_s9  ;;  %v1356_v30 = vmul.f32 %v6481_v12, %v6463_v50 }
 0x1be   : > { %838 = vrot.lane.b32.xlu0 %v785_v45, %s5959_s28  ;;  %v1497_v45 = vadd.f32 %v1464_v29, %v1353_v9 }
 0x1bf   : > { %v6892_v22 = vpop.permute.xlu1 %1164  ;;  %v1500_v20 = vadd.f32 %v1466_v11, %v1356_v30  ;;  %v5921_v11 = vld [vmem:[%s10013_s3 + $0x28] sm:$0xff] }
 0x1c0   : > { %v6861_v49 = vpop.permute.xlu0 %1591  ;;  %v1641_v60 = vadd.f32 %v1608_v40, %v1497_v45  ;;  %v1063_v45 = vadd.f32 %v1034_v32, %v949_v47 }
 0x1c1   : > { %1792 = vperm.xlu1 %5794, %v5920_v39   ;;  %v782_v39 = vmul.f32 %v6842_v4, %v6419_v44  ;;  %v10206_v44 = vld [vmem:[#allocation27_spill] sm:$0xff] }
 0x1c2   : > { %1252 = vrot.lane.b32.xlu0 %v1208_v14, %s5963_s8  ;;  %v1610_v14 = vsel %vm840_vm6, %v6816_v8, %v10205_v42  ;;  %v1670_v57 = vmul.f32 %v6723_v51, %v1641_v60  ;;  %v1174_v40 = vsel %vm840_vm6, %v10206_v44, %v6761_v16  ;;  %v952_v60 = vmul.f32 %v6377_v17, %v10207_v23 }
 0x1c3   : > { %v6907_v43 = vpop.permute.xlu1 %1168  ;;  %v1644_v34 = vadd.f32 %v1610_v14, %v1500_v20  ;;  %v1207_v16 = vadd.f32 %v1174_v40, %v1063_v45  ;;  %v10208_v20 = vmov 0   ;;  %v1463_v17 = vsel %vm677_vm7, %v6743_v41, %v6741_v55 }
 0x1c4   : > { %v6881_v5 = vpop.permute.xlu0 %1595  ;;  %v1465_v55 = vsel %vm677_vm7, %v6759_v15, %v6856_v53 }
 0x1c5   : > { %665 = vrot.lane.b32.xlu1 %v617_v58, %s5958_s27  ;;  %v1673_v29 = vmul.f32 %v6723_v51, %v1644_v34  ;;  %v784_v58 = vmul.f32 %v6443_v62, %v6397_v28  ;;  %v1035_v62 = vsel %vm677_vm7, %v6799_v3, %v6777_v54  ;;  %v5922_v54 = vld [vmem:[%s10013_s3] sm:$0xff]  ;;  %v1607_v34 = vsel %vm840_vm6, %v6717_v59, %v6779_v25 }
 0x1c6   : > { %1258 = vrot.lane.b32.xlu0 %v1211_v46, %s5963_s8  ;;  %v1066_v42 = vadd.f32 %v1035_v62, %v952_v60  ;;  %v10210_v60 = vld [vmem:[#allocation22_spill] sm:$0xff] }
 0x1c7   : > { %v6920_v9 = vpop.permute.xlu1 %1593 }
 0x1c8   : > { %v6900_v35 = vpop.permute.xlu0 %1599 }
 0x1c9   : > { %1698 = vrot.lane.b32.xlu1 %v1662_v1, %s5964_s9  ;;  %v948_v1 = vmul.f32 %v6842_v4, %v6437_v10  ;;  %v1354_v10 = vmul.f32 %v6842_v4, %v6481_v12 }
 0x1ca   : > { %1254 = vrot.lane.b32.xlu0 %v1209_v0, %s5963_s8  ;;  %v1176_v0 = vsel %vm840_vm6, %v6818_v33, %v6797_v7  ;;  %v1352_v7 = vmul.f32 %v6393_v19, %v6407_v31 }
 0x1cb   : > { %v6939_v26 = vpop.permute.xlu1 %1597  ;;  %v1062_v3 = vadd.f32 %v6730_v6, %v948_v1  ;;  %v1210_v33 = vadd.f32 %v1176_v0, %v1066_v42  ;;  %v1355_v6 = vmul.f32 %v6481_v12, %v10207_v23  ;;  %v1609_v12 = vsel %vm840_vm6, %v6838_v36, %v6816_v8  ;;  %v10211_v0 = vld [vmem:[#allocation20_spill] sm:$0xff]  ;;  %v10212_v8 = vld [vmem:[#allocation9_spill] sm:$0xff] }
 0x1cc   : > { %v6911_v2 = vpop.permute.xlu0 %645  ;;  %v1351_v1 = vmul.f32 %v6842_v4, %v6393_v19  ;;  %v1181_v19 = vsel %vm840_vm6, %v6848_v63, %v6907_v43 }
 0x1cd   : > { %828 = vrot.lane.b32.xlu1 %v780_v21, %s5959_s28  ;;  %v1496_v21 = vadd.f32 %v1463_v17, %v1352_v7  ;;  %v1499_v25 = vadd.f32 %v1465_v55, %v1355_v6  ;;  %v10217_v55 = vld [vmem:[#allocation13_spill] sm:$0xff] }
 0x1ce   : > { %1714 = vrot.lane.b32.xlu0 %v1670_v57, %s5964_s9  ;;  %v1495_v42 = vadd.f32 %v6743_v41, %v1351_v1  ;;  %v10222_v1 = vld [vmem:[#allocation12_spill] sm:$0xff] }
 0x1cf   : > { %v1602_v14 = vpop.permute.xlu1 %1601  ;;  %v1640_v32 = vadd.f32 %v1607_v34, %v1496_v21  ;;  %v1643_v45 = vadd.f32 %v1609_v12, %v1499_v25  ;;  %v10216_v34 = vld [vmem:[#allocation21_spill] sm:$0xff]  ;;  %v1359_v21 = vmul.f32 %v10217_v55, %v6333_v56 }
 0x1d0   : > { %v6922_v46 = vpop.permute.xlu0 %651  ;;  %v1639_v6 = vadd.f32 %v6717_v59, %v1495_v42  ;;  %v10218_v25 = vld [vmem:[#allocation25_spill] sm:$0xff] }
 0x1d1   : > { %832 = vrot.lane.b32.xlu1 %v782_v39, %s5959_s28  ;;  %v1206_v39 = vadd.f32 %v10206_v44, %v1062_v3  ;;  %v1669_v53 = vmul.f32 %v6833_v48, %v1640_v32  ;;  %v10214_v3 = vld [vmem:[#allocation28_spill] sm:$0xff]  ;;  %v1612_v32 = vsel %vm840_vm6, %v6920_v9, %v6881_v5  ;;  %v10220_v5 = vld [vmem:[#allocation15_spill] sm:$0xff] }
 0x1d2   : > { %1720 = vrot.lane.b32.xlu0 %v1673_v29, %s5964_s9  ;;  %v1498_v29 = vadd.f32 %v6759_v15, %v1354_v10  ;;  %v10209_v15 = vld [vmem:[#allocation11_spill] sm:$0xff] }
 0x1d3   : > { %v955_v59 = vmul.f32 %v10209_v15, %v6285_v24 }
 0x1d4   : > { %v6941_v30 = vpop.permute.xlu0 %647 }
 0x1d5   : > { %836 = vrot.lane.b32.xlu1 %v784_v58, %s5959_s28  ;;  %v1642_v58 = vadd.f32 %v6838_v36, %v1498_v29  ;;  %v959_v36 = vmul.f32 %v10212_v8, %v6397_v28  ;;  %v957_v29 = vmul.f32 %v6842_v4, %v10212_v8 }
 0x1d6   : > { %1804 = vperm.xlu0 %5793, %v5921_v11  }
 0x1d7   : > { %v1671_v44 = vmul.f32 %v6783_v61, %v1642_v58  ;;  %v1073_v10 = vadd.f32 %v10214_v3, %v959_v36  ;;  %v1071_v12 = vadd.f32 %v10218_v25, %v957_v29  ;;  %v1362_v36 = vmul.f32 %v10222_v1, %v6397_v28 }
 0x1d8   : > { %v6967_v57 = vpop.permute.xlu0 %806  ;;  %v958_v29 = vmul.f32 %v10212_v8, %v6363_v37  ;;  %v1180_v8 = vsel %vm840_vm6, %v6892_v22, %v6848_v63 }
 0x1d9   : > { %1250 = vrot.lane.b32.xlu1 %v1207_v16, %s5963_s8  ;;  %v1179_v16 = vsel %vm840_vm6, %v10210_v60, %v6835_v18  ;;  %v1672_v18 = vmul.f32 %v6833_v48, %v1643_v45  ;;  %v1215_v42 = vadd.f32 %v6892_v22, %v1071_v12 }
 0x1da   : > { %5795 = vset.pattern.permute.xlu0 %v10208_v20 }
 0x1db   : > { %540 = vperm.xlu0 %5795, %v5922_v54  }
 0x1dc   : > { %v6984_v40 = vpop.permute.xlu0 %810 }
 0x1dd   : > { %1256 = vrot.lane.b32.xlu1 %v1210_v33, %s5963_s8  ;;  %v10215_v33 = vld [vmem:[#allocation16_spill] sm:$0xff] }
 0x1de   : > { %v1468_v41 = vsel %vm677_vm7, %v10216_v34, %v10215_v33 }
 0x1df   : > { %552 = vperm.xlu0 %5795, %v6753_v27   ;;  %v956_v27 = vmul.f32 %v10209_v15, %v6333_v56  ;;  %v1503_v58 = vadd.f32 %v1468_v41, %v1359_v21 }
 0x1e0   : > { %v6982_v47 = vpop.permute.xlu1 %544  ;;  %v7007_v17 = vpop.permute.xlu0 %814 }
 0x1e1   : > { %1248 = vrot.lane.b32.xlu1 %v1206_v39, %s5963_s8  ;;  %v1217_v39 = vadd.f32 %v1181_v19, %v1073_v10  ;;  %v1668_v19 = vmul.f32 %v6783_v61, %v1639_v6  ;;  %v10223_v10 = vld [vmem:[#allocation19_spill] sm:$0xff]  ;;  %v1037_v6 = vsel %vm677_vm7, %v10218_v25, %v10214_v3  ;;  %v1358_v25 = vmul.f32 %v10217_v55, %v6285_v24 }
 0x1e2   : > { %v1178_v33 = vsel %vm840_vm6, %v10223_v10, %v10210_v60  ;;  %v1360_v60 = vmul.f32 %v6842_v4, %v10222_v1  ;;  %v1072_v3 = vadd.f32 %v1037_v6, %v958_v29 }
 0x1e3   : > { %560 = vperm.xlu0 %5795, %v5921_v11   ;;  %v1070_v11 = vadd.f32 %v10211_v0, %v956_v27 }
 0x1e4   : > { %v6994_v62 = vpop.permute.xlu1 %548  ;;  %v7032_v27 = vpop.permute.xlu0 %657 }
 0x1e5   : > { %1712 = vrot.lane.b32.xlu1 %v1669_v53, %s5964_s9  ;;  %v1214_v54 = vadd.f32 %v1179_v16, %v1070_v11  ;;  %v5923_v53 = vld [vmem:[%s10013_s3 + $0x20] sm:$0xff]  ;;  %v10221_v16 = vld [vmem:[#allocation26_spill] sm:$0xff] }
 0x1e6   : > { %v1470_v11 = vsel %vm677_vm7, %v10221_v16, %v10220_v5  ;;  %v10226_v5 = vld [vmem:[#allocation18_spill] sm:$0xff] }
 0x1e7   : > { %1716 = vrot.lane.b32.xlu0 %v1671_v44, %s5964_s9  ;;  %v10219_v44 = vld [vmem:[#allocation17_spill] sm:$0xff]  ;;  %v1506_v21 = vadd.f32 %v1470_v11, %v1362_v36  ;;  %v1467_v11 = vsel %vm677_vm7, %v10226_v5, %v10216_v34  ;;  %v954_v36 = vmul.f32 %v6842_v4, %v10209_v15  ;;  %v1361_v34 = vmul.f32 %v10222_v1, %v6363_v37  ;;  %v10238_v37 = vld [vmem:[#allocation7_spill] sm:$0xff] }
 0x1e8   : > { %v7009_v7 = vpop.permute.xlu1 %556  ;;  %v1036_v45 = vsel %vm677_vm7, %v10219_v44, %v10211_v0  ;;  %v1614_v0 = vsel %vm840_vm6, %v6900_v35, %v1602_v14  ;;  %v7068_v12 = vpop.permute.xlu0 %663  ;;  %v568_v24 = vmul.f32 %v6982_v47, %v10238_v37 }
 0x1e9   : > { %10213 = vst [vmem:[#allocation14_spill] sm:$0xff] %v7009_v7  ;;  %1718 = vrot.lane.b32.xlu1 %v1672_v18, %s5964_s9  ;;  %v1069_v41 = vadd.f32 %v1036_v45, %v955_v59  ;;  %v10225_v59 = vld [vmem:[#allocation23_spill] sm:$0xff] }
 0x1ea   : > { %v1504_v45 = vadd.f32 %v10225_v59, %v1360_v60  ;;  %v1469_v15 = vsel %vm677_vm7, %v10225_v59, %v10221_v16  ;;  %v1357_v16 = vmul.f32 %v6842_v4, %v10217_v55 }
 0x1eb   : > { %1264 = vrot.lane.b32.xlu0 %v1214_v54, %s5963_s8  ;;  %v1647_v54 = vadd.f32 %v1612_v32, %v1503_v58  ;;  %v1213_v32 = vadd.f32 %v1178_v33, %v1069_v41  ;;  %v1650_v58 = vadd.f32 %v1614_v0, %v1506_v21  ;;  %v1611_v33 = vsel %vm840_vm6, %v6861_v49, %v6920_v9 }
 0x1ec   : > { %v7026_v43 = vpop.permute.xlu1 %643  ;;  %v1648_v63 = vadd.f32 %v6939_v26, %v1504_v45  ;;  %v1068_v0 = vadd.f32 %v10219_v44, %v954_v36  ;;  %v1502_v41 = vadd.f32 %v1467_v11, %v1358_v25  ;;  %v1505_v60 = vadd.f32 %v1469_v15, %v1361_v34 }
 0x1ed   : > { %1800 = vperm.xlu1 %5794, %v5923_v53   ;;  %v1676_v14 = vmul.f32 %v6723_v51, %v1647_v54  ;;  %v1679_v22 = vmul.f32 %v6723_v51, %v1650_v58 }
 0x1ee   : > { %v1212_v21 = vadd.f32 %v10223_v10, %v1068_v0  ;;  %v1646_v29 = vadd.f32 %v1611_v33, %v1502_v41  ;;  %v1677_v6 = vmul.f32 %v6783_v61, %v1648_v63 }
 0x1ef   : > { %1270 = vrot.lane.b32.xlu0 %v1217_v39, %s5963_s8  ;;  %v10224_v39 = vmov 9  }
 0x1f0   : > { %v7049_v18 = vpop.permute.xlu1 %649  ;;  %v1675_v1 = vmul.f32 %v6833_v48, %v1646_v29 }
 0x1f1   : > { %1710 = vrot.lane.b32.xlu1 %v1668_v19, %s5964_s9  ;;  %v680_v37 = vsel %vm677_vm7, %v6941_v30, %v7049_v18  ;;  %v570_v30 = vmul.f32 %v6994_v62, %v6407_v31  ;;  %v577_v31 = vmul.f32 %v7009_v7, %v6333_v56 }
 0x1f2   : > { %5796 = vset.pattern.permute.xlu1 %v10224_v39 }
 0x1f3   : > { %1266 = vrot.lane.b32.xlu0 %v1215_v42, %s5963_s8  ;;  %v1216_v42 = vadd.f32 %v1180_v8, %v1072_v3  ;;  %v1501_v8 = vadd.f32 %v10226_v5, %v1357_v16 }
 0x1f4   : > { %v7070_v53 = vpop.permute.xlu1 %641 }
 0x1f5   : > { %1262 = vrot.lane.b32.xlu1 %v1213_v32, %s5963_s8  ;;  %v1613_v32 = vsel %vm840_vm6, %v6939_v26, %v6900_v35  ;;  %v1645_v35 = vadd.f32 %v6861_v49, %v1501_v8 }
 0x1f6   : > { %v1649_v10 = vadd.f32 %v1613_v32, %v1505_v60 }
 0x1f7   : > { %1726 = vrot.lane.b32.xlu0 %v1676_v14, %s5964_s9  ;;  %v1674_v55 = vmul.f32 %v6783_v61, %v1645_v35 }
 0x1f8   : > { %v7089_v19 = vpop.permute.xlu1 %804  ;;  %v1678_v26 = vmul.f32 %v6833_v48, %v1649_v10 }
 0x1f9   : > { %v7087_v54 = vpop.permute.xlu0 %1784  ;;  %1268 = vrot.lane.b32.xlu1 %v1216_v42, %s5963_s8 }
 0x1fb   : > { %1732 = vrot.lane.b32.xlu0 %v1679_v22, %s5964_s9 }
 0x1fc   : > { %v7106_v44 = vpop.permute.xlu1 %808 }
 0x1fd   : > { %v7104_v9 = vpop.permute.xlu0 %659  ;;  %1260 = vrot.lane.b32.xlu1 %v1212_v21, %s5963_s8 }
 0x1ff   : > { %1728 = vrot.lane.b32.xlu0 %v1677_v6, %s5964_s9 }
 0x200   : > { %v813_v58 = vpop.permute.xlu1 %812 }
 0x201   : > { %v7116_v14 = vpop.permute.xlu0 %818  ;;  %1724 = vrot.lane.b32.xlu1 %v1675_v1, %s5964_s9 }
 0x204   : > { %v7124_v45 = vpop.permute.xlu1 %655 }
 0x205   : > { %v7122_v59 = vpop.permute.xlu0 %822  ;;  %1730 = vrot.lane.b32.xlu1 %v1678_v26, %s5964_s9 }
 0x208   : > { %v7130_v25 = vpop.permute.xlu1 %661 }
 0x209   : > { %v7128_v3 = vpop.permute.xlu0 %826  ;;  %1722 = vrot.lane.b32.xlu1 %v1674_v55, %s5964_s9 }
 0x20c   : > { %v5790_v11 = vpop.permute.xlu1 %5789 }
 0x20d   : > { %v7133_v5 = vpop.permute.xlu0 %669 }
 0x210   : > { %v7137_v36 = vpop.permute.xlu1 %1788 }
 0x211   : > { %v7135_v49 = vpop.permute.xlu0 %675 }
 0x212   : > { %10227 = vst [vmem:[#allocation27_spill] sm:$0xff] %v7135_v49  ;;  %v713_v49 = vadd.f32 %v6922_v46, %v568_v24  ;;  %v566_v24 = vmul.f32 %v6842_v4, %v6982_v47 }
 0x214   : > { %v654_v63 = vpop.permute.xlu1 %653 }
 0x215   : > { %v7139_v42 = vpop.permute.xlu0 %1240 }
 0x218   : > { %v7143_v33 = vpop.permute.xlu1 %816 }
 0x219   : > { %v7141_v22 = vpop.permute.xlu0 %1242  ;;  %v845_v56 = vsel %vm840_vm6, %v7143_v33, %v7116_v14 }
 0x21c   : > { %v821_v41 = vpop.permute.xlu1 %820 }
 0x21d   : > { %v1247_v0 = vpop.permute.xlu0 %1246 }
 0x220   : > { %v7147_v34 = vpop.permute.xlu1 %824 }
 0x221   : > { %v7145_v15 = vpop.permute.xlu0 %1702 }
 0x224   : > { %v7151_v29 = vpop.permute.xlu1 %667 }
 0x225   : > { %v7149_v21 = vpop.permute.xlu0 %1796  ;;  %10229 = vst [vmem:[#allocation11_spill] sm:$0xff] %v7151_v29 }
 0x226   : > { %10228 = vst [vmem:[#allocation10_spill] sm:$0xff] %v7149_v21  ;;  %v7192_v21 = vunpack.i.h.bf16 %v5790_v11 }
 0x228   : > { %v7155_v32 = vpop.permute.xlu1 %673  ;;  %10239 = vst [vmem:[#allocation17_spill] sm:$0xff] %v7192_v21 }
 0x229   : > { %v7153_v6 = vpop.permute.xlu0 %671  ;;  %10231 = vst [vmem:[#allocation20_spill] sm:$0xff] %v7155_v32 }
 0x22a   : > { %10230 = vst [vmem:[#allocation22_spill] sm:$0xff] %v7153_v6 }
 0x22c   : > { %v7159_v16 = vpop.permute.xlu1 %1236 }
 0x22d   : > { %v7157_v60 = vpop.permute.xlu0 %1708 }
 0x230   : > { %v7163_v10 = vpop.permute.xlu1 %1238 }
 0x231   : > { %v7161_v1 = vpop.permute.xlu0 %1704 }
 0x234   : > { %v1245_v35 = vpop.permute.xlu1 %1244 }
 0x235   : > { %v7165_v8 = vpop.permute.xlu0 %830 }
 0x236   : > { %10232 = vst [vmem:[#allocation9_spill] sm:$0xff] %v7165_v8  ;;  %v843_v8 = vsel %vm840_vm6, %v6984_v40, %v813_v58 }
 0x238   : > { %v7169_v55 = vpop.permute.xlu1 %1700 }
 0x239   : > { %v7167_v26 = vpop.permute.xlu0 %834 }
 0x23a   : > { %10233 = vst [vmem:[#allocation28_spill] sm:$0xff] %v7167_v26  ;;  %v844_v26 = vsel %vm840_vm6, %v813_v58, %v7007_v17 }
 0x23b   : > { %v876_v17 = vadd.f32 %v844_v26, %v713_v49 }
 0x23c   : > { %v1707_v51 = vpop.permute.xlu1 %1706 }
 0x23d   : > { %v7171_v48 = vpop.permute.xlu0 %838 }
 0x23e   : > { %10234 = vst [vmem:[#allocation16_spill] sm:$0xff] %v7171_v48 }
 0x240   : > { %v7175_v39 = vpop.permute.xlu1 %1792 }
 0x241   : > { %v7173_v61 = vpop.permute.xlu0 %1252  ;;  %10235 = vst [vmem:[#allocation21_spill] sm:$0xff] %v7175_v39  ;;  %v7204_v39 = vunpack.i.l.bf16 %v5790_v11  ;;  %v711_v11 = vadd.f32 %v680_v37, %v566_v24  ;;  %v682_v37 = vsel %vm677_vm7, %v654_v63, %v7124_v45  ;;  %v841_v63 = vsel %vm840_vm6, %v7089_v19, %v6967_v57 }
 0x243   : > { %10241 = vst [vmem:[#allocation26_spill] sm:$0xff] %v7204_v39 }
 0x244   : > { %v7179_v6 = vpop.permute.xlu1 %665 }
 0x245   : > { %v7177_v20 = vpop.permute.xlu0 %1258  ;;  %10236 = vst [vmem:[#allocation13_spill] sm:$0xff] %v7179_v6  ;;  %v571_v6 = vmul.f32 %v6994_v62, %v6429_v38 }
 0x247   : > { %v716_v58 = vadd.f32 %v7032_v27, %v571_v6  ;;  %v846_v6 = vsel %vm840_vm6, %v7116_v14, %v821_v41  ;;  %v842_v14 = vsel %vm840_vm6, %v6967_v57, %v7106_v44 }
 0x248   : > { %v7185_v29 = vpop.permute.xlu1 %1698 }
 0x249   : > { %v7181_v32 = vpop.permute.xlu0 %1254 }
 0x24a   : > { %10237 = vst [vmem:[#allocation25_spill] sm:$0xff] %v7181_v32  ;;  %v681_v32 = vsel %vm677_vm7, %v7049_v18, %v6922_v46  ;;  %v905_v46 = vmul.f32 %v7192_v21, %v876_v17  ;;  %v7230_v17 = vsel %vm895_vm10, %v7204_v39, %v7192_v21 }
 0x24b   : > { %10242 = vst [vmem:[#allocation12_spill] sm:$0xff] %v7230_v17 }
 0x24c   : > { %v7194_v28 = vpop.permute.xlu1 %828  ;;  %v1308_v26 = vadd.f32 %v1247_v0, %v905_v46  ;;  %v1276_v46 = vsel %vm1272_vm9, %v1245_v35, %v1247_v0 }
 0x24d   : > { %v7189_v48 = vpop.permute.xlu0 %1714  ;;  %10240 = vst [vmem:[#allocation15_spill] sm:$0xff] %v7194_v28  ;;  %v567_v28 = vmul.f32 %v6982_v47, %v6341_v52  ;;  %v683_v52 = vsel %vm677_vm7, %v7124_v45, %v7032_v27  ;;  %v569_v47 = vmul.f32 %v6842_v4, %v6994_v62  ;;  %v678_v45 = vsel %vm677_vm7, %v7070_v53, %v7026_v43 }
 0x24e   : > { %v715_v27 = vadd.f32 %v683_v52, %v570_v30  ;;  %v1770_v24 = vadd.f32 %v7157_v60, %v1308_v26  ;;  %v1275_v53 = vsel %vm1272_vm9, %v7141_v22, %v1245_v35  ;;  %v685_v52 = vsel %vm677_vm7, %v7130_v25, %v7068_v12  ;;  %v10243_v35 = vld [vmem:[#allocation5_spill] sm:$0xff] }
 0x24f   : > { %v712_v49 = vadd.f32 %v681_v32, %v567_v28  ;;  %v679_v28 = vsel %vm677_vm7, %v7026_v43, %v6911_v2  ;;  %v714_v41 = vadd.f32 %v682_v37, %v569_v47  ;;  %v879_v43 = vadd.f32 %v846_v6, %v716_v58 }
 0x250   : > { %v7217_v18 = vpop.permute.xlu1 %832  ;;  %v878_v0 = vadd.f32 %v845_v56, %v715_v27  ;;  %v1812_v57 = vadd.f32 %v7137_v36, %v1770_v24  ;;  %v7279_v37 = vadd.f32 %v7133_v5, %v577_v31  ;;  %v848_v31 = vsel %vm840_vm6, %v7147_v34, %v7128_v3 }
 0x251   : > { %v7210_v38 = vpop.permute.xlu0 %1720  ;;  %v875_v32 = vadd.f32 %v843_v8, %v712_v49  ;;  %v874_v8 = vadd.f32 %v6984_v40, %v711_v11  ;;  %v1738_v49 = vsel %vm1734_vm11, %v1707_v51, %v7157_v60  ;;  %v684_v40 = vsel %vm677_vm7, %v7104_v9, %v7130_v25 }
 0x252   : > { %v1737_v60 = vsel %vm1734_vm11, %v7161_v1, %v1707_v51  ;;  %v7282_v25 = vadd.f32 %v7143_v33, %v714_v41  ;;  %v907_v27 = vmul.f32 %v7230_v17, %v878_v0  ;;  %v908_v51 = vmul.f32 %v7192_v21, %v879_v43 }
 0x253   : > { %v904_v30 = vmul.f32 %v7230_v17, %v875_v32  ;;  %v903_v44 = vmul.f32 %v7204_v39, %v874_v8 }
 0x254   : > { %v7246_v7 = vpop.permute.xlu1 %836 }
 0x255   : > { %v7240_v62 = vpop.permute.xlu0 %1804  ;;  %v1307_v11 = vadd.f32 %v1276_v46, %v904_v30  ;;  %v1306_v56 = vadd.f32 %v1275_v53, %v903_v44  ;;  %v1830_v46 = vmax.f32 %v1812_v57, 0.0 }
 0x257   : > { %v1769_v9 = vadd.f32 %v1738_v49, %v1307_v11  ;;  %v1768_v33 = vadd.f32 %v1737_v60, %v1306_v56 }
 0x258   : > { %v7273_v47 = vpop.permute.xlu1 %1250 }
 0x259   : > { %v1811_v41 = vadd.f32 %v7137_v36, %v1769_v9  ;;  %v7317_v9 = vmin.f32 %v1830_v46, 6.0 }
 0x25a   : > { %v541_v26 = vpop.permute.xlu0 %540 }
 0x25b   : > { %v563_v58 = vmul.f32 %v6842_v4, %v541_v26  ;;  %v564_v22 = vmul.f32 %v541_v26, %v6283_v13  ;;  %v565_v32 = vmul.f32 %v541_v26, %v10243_v35  ;;  %v847_v13 = vsel %vm840_vm6, %v7122_v59, %v7147_v34 }
 0x25c   : > { %v1257_v8 = vpop.permute.xlu1 %1256  ;;  %v1274_v34 = vsel %vm1272_vm9, %v7163_v10, %v7139_v42 }
 0x25d   : > { %v708_v1 = vadd.f32 %v678_v45, %v563_v58  ;;  %v709_v6 = vadd.f32 %v679_v28, %v564_v22  ;;  %v710_v24 = vadd.f32 %v6911_v2, %v565_v32  ;;  %v1273_v2 = vsel %vm1272_vm9, %v7159_v16, %v7163_v10 }
 0x25e   : > { %v553_v30 = vpop.permute.xlu0 %552  ;;  %v1278_v10 = vsel %vm1272_vm9, %v7273_v47, %v7173_v61 }
 0x25f   : > { %v871_v0 = vadd.f32 %v7089_v19, %v708_v1  ;;  %v872_v45 = vadd.f32 %v841_v63, %v709_v6  ;;  %v873_v28 = vadd.f32 %v842_v14, %v710_v24  ;;  %v572_v49 = vmul.f32 %v6842_v4, %v553_v30 }
 0x260   : > { %v573_v43 = vmul.f32 %v553_v30, %v10207_v23  ;;  %v574_v3 = vmul.f32 %v553_v30, %v6463_v50  ;;  %v7308_v14 = vadd.f32 %v7137_v36, %v1768_v33  ;;  %v1249_v23 = vpop.permute.xlu1 %1248  ;;  %v1829_v50 = vmax.f32 %v1811_v41, 0.0 }
 0x261   : > { %v900_v53 = vmul.f32 %v7204_v39, %v871_v0  ;;  %v901_v19 = vmul.f32 %v7230_v17, %v872_v45  ;;  %v902_v63 = vmul.f32 %v7192_v21, %v873_v28  ;;  %v717_v16 = vadd.f32 %v684_v40, %v572_v49  ;;  %v10245_v45 = vld [vmem:[#allocation21_spill] sm:$0xff] }
 0x262   : > { %v718_v11 = vadd.f32 %v685_v52, %v573_v43  ;;  %v719_v57 = vadd.f32 %v7068_v12, %v574_v3  ;;  %v7311_v44 = vpop.permute.xlu0 %560  ;;  %v1736_v12 = vsel %vm1734_vm11, %v7169_v55, %v7145_v15  ;;  %v1311_v52 = vadd.f32 %v7173_v61, %v908_v51  ;;  %v10246_v3 = vld [vmem:[#allocation25_spill] sm:$0xff] }
 0x263   : > { %v1304_v60 = vadd.f32 %v1274_v34, %v901_v19  ;;  %v1305_v26 = vadd.f32 %v7139_v42, %v902_v63  ;;  %v880_v36 = vadd.f32 %v7122_v59, %v717_v16  ;;  %v1303_v22 = vadd.f32 %v1273_v2, %v900_v53  ;;  %v10247_v34 = vld [vmem:[#allocation8_spill] sm:$0xff] }
 0x264   : > { %v881_v58 = vadd.f32 %v847_v13, %v718_v11  ;;  %v882_v40 = vadd.f32 %v848_v31, %v719_v57  ;;  %v1310_v32 = vadd.f32 %v1278_v10, %v907_v27  ;;  %v7326_v1 = vpop.permute.xlu1 %1712  ;;  %v1828_v24 = vmax.f32 %v7308_v14, 0.0 }
 0x265   : > { %v1767_v35 = vadd.f32 %v7145_v15, %v1305_v26  ;;  %v1766_v59 = vadd.f32 %v1736_v12, %v1304_v60  ;;  %v1847_v13 = vmin.f32 %v1829_v50, 6.0  ;;  %v1735_v31 = vsel %vm1734_vm11, %v7185_v29, %v7169_v55  ;;  %v10244_v29 = vld [vmem:[#allocation9_spill] sm:$0xff]  ;;  %v10248_v60 = vld [vmem:[#allocation10_spill] sm:$0xff] }
 0x266   : > { %v911_v56 = vmul.f32 %v7192_v21, %v882_v40  ;;  %v1717_v42 = vpop.permute.xlu0 %1716  ;;  %v910_v6 = vmul.f32 %v7230_v17, %v881_v58  ;;  %v1740_v61 = vsel %vm1734_vm11, %v7326_v1, %v7189_v48  ;;  %v1773_v15 = vadd.f32 %v7189_v48, %v1311_v52 }
 0x267   : > { %v1772_v51 = vadd.f32 %v1740_v61, %v1310_v32  ;;  %v909_v46 = vmul.f32 %v7204_v39, %v880_v36  ;;  %v1280_v33 = vsel %vm1272_vm9, %v1257_v8, %v7177_v20  ;;  %v1809_v30 = vadd.f32 %v7087_v54, %v1767_v35 }
 0x268   : > { %v1314_v27 = vadd.f32 %v7177_v20, %v911_v56  ;;  %v1808_v41 = vadd.f32 %v7087_v54, %v1766_v59  ;;  %v1765_v0 = vadd.f32 %v1735_v31, %v1303_v22  ;;  %v850_v55 = vsel %vm840_vm6, %v10244_v29, %v7217_v18  ;;  %v1719_v48 = vpop.permute.xlu1 %1718  ;;  %v10249_v22 = vld [vmem:[#allocation27_spill] sm:$0xff]  ;;  %v10250_v59 = vld [vmem:[#allocation16_spill] sm:$0xff] }
 0x269   : > { %v1814_v28 = vadd.f32 %v10245_v45, %v1772_v51  ;;  %v1313_v2 = vadd.f32 %v1280_v33, %v910_v6  ;;  %v1279_v20 = vsel %vm1272_vm9, %v10246_v3, %v1257_v8  ;;  %v580_v53 = vmul.f32 %v7311_v44, %v10247_v34  ;;  %v10251_v34 = vld [vmem:[#allocation11_spill] sm:$0xff] }
 0x26a   : > { %v7347_v49 = vpop.permute.xlu0 %1264  ;;  %v1776_v43 = vadd.f32 %v7210_v38, %v1314_v27  ;;  %v1741_v19 = vsel %vm1734_vm11, %v1717_v42, %v1719_v48  ;;  %v1742_v63 = vsel %vm1734_vm11, %v1719_v48, %v7210_v38  ;;  %v1815_v18 = vadd.f32 %v10245_v45, %v1773_v15 }
 0x26b   : > { %v1312_v14 = vadd.f32 %v1279_v20, %v909_v46  ;;  %v1775_v16 = vadd.f32 %v1742_v63, %v1313_v2  ;;  %v1827_v11 = vmax.f32 %v1809_v30, 0.0  ;;  %v885_v57 = vadd.f32 %v850_v55, %v7279_v37 }
 0x26c   : > { %v1826_v50 = vmax.f32 %v1808_v41, 0.0  ;;  %v1807_v10 = vadd.f32 %v7087_v54, %v1765_v0  ;;  %v1818_v8 = vadd.f32 %v10248_v60, %v1776_v43  ;;  %v1832_v26 = vmax.f32 %v1814_v28, 0.0  ;;  %v7362_v40 = vpop.permute.xlu1 %1800 }
 0x26d   : > { %v1774_v36 = vadd.f32 %v1741_v19, %v1312_v14  ;;  %v1817_v58 = vadd.f32 %v10248_v60, %v1775_v16  ;;  %v1845_v38 = vmin.f32 %v1827_v11, 6.0  ;;  %v1277_v52 = vsel %vm1272_vm9, %v1249_v23, %v7273_v47  ;;  %v10253_v14 = vld [vmem:[#allocation14_spill] sm:$0xff] }
 0x26e   : > { %v7364_v12 = vpop.permute.xlu0 %1270  ;;  %v725_v35 = vadd.f32 %v10249_v22, %v580_v53  ;;  %v1844_v37 = vmin.f32 %v1826_v50, 6.0  ;;  %v1825_v32 = vmax.f32 %v1807_v10, 0.0  ;;  %v1846_v56 = vmin.f32 %v1828_v24, 6.0  ;;  %v10254_v11 = vld [vmem:[#allocation6_spill] sm:$0xff]  ;;  %v10255_v10 = vld [vmem:[#allocation15_spill] sm:$0xff] }
 0x26f   : > { %v906_v54 = vmul.f32 %v7204_v39, %v7282_v25  ;;  %v1835_v42 = vmax.f32 %v1817_v58, 0.0  ;;  %v1865_v6 = vpack.c.bf16 %v7317_v9, %v1845_v38  ;;  %v852_v31 = vsel %vm840_vm6, %v7246_v7, %v10250_v59 }
 0x270   : > { %v1864_v61 = vpack.c.bf16 %v1847_v13, %v1844_v37  ;;  %v1843_v15 = vmin.f32 %v1825_v32, 6.0  ;;  %v1836_v27 = vmax.f32 %v1818_v8, 0.0  ;;  %v1850_v47 = vmin.f32 %v1832_v26, 6.0  ;;  %v1711_v24 = vpop.permute.xlu1 %1710  ;;  %v10256_v37 = vld [vmem:[#allocation20_spill] sm:$0xff]  ;;  %v10257_v32 = vld [vmem:[#allocation22_spill] sm:$0xff] }
 0x271   : > { %v1309_v51 = vadd.f32 %v1277_v52, %v906_v54  ;;  %v1816_v23 = vadd.f32 %v10248_v60, %v1774_v36  ;;  %v1853_v46 = vmin.f32 %v1835_v42, 6.0  ;;  %1890 = vrot.lane.b32.xlu0 %v1865_v6, %s5965_s21  ;;  %v1833_v33 = vmax.f32 %v1815_v18, 0.0  ;;  %v10252_v18 = vld [vmem:[#allocation4_spill] sm:$0xff] }
 0x272   : > { %v1267_v25 = vpop.permute.xlu0 %1266  ;;  %v914_v9 = vmul.f32 %v7192_v21, %v885_v57  ;;  %v888_v30 = vadd.f32 %v852_v31, %v725_v35  ;;  %1888 = vrot.lane.b32.xlu1 %v1864_v61, %s5965_s21  ;;  %v1739_v13 = vsel %vm1734_vm11, %v1711_v24, %v7326_v1  ;;  %v1863_v28 = vpack.c.bf16 %v1846_v56, %v1843_v15 }
 0x273   : > { %v1771_v41 = vadd.f32 %v1739_v13, %v1309_v51  ;;  %v1867_v0 = vpack.c.bf16 %v1853_v46, %v1850_v47  ;;  %v1854_v48 = vmin.f32 %v1836_v27, 6.0  ;;  %v1834_v2 = vmax.f32 %v1816_v23, 0.0  ;;  %v10258_v27 = vld [vmem:[#allocation13_spill] sm:$0xff]  ;;  %v10259_v47 = vld [vmem:[#allocation28_spill] sm:$0xff] }
 0x274   : > { %v1317_v55 = vadd.f32 %v7347_v49, %v914_v9  ;;  %v1263_v3 = vpop.permute.xlu1 %1262  ;;  %v687_v53 = vsel %vm677_vm7, %v10251_v34, %v7133_v5  ;;  %v1851_v19 = vmin.f32 %v1833_v33, 6.0  ;;  %v917_v1 = vmul.f32 %v7192_v21, %v888_v30 }
 0x275   : > { %v1813_v43 = vadd.f32 %v10245_v45, %v1771_v41  ;;  %1894 = vrot.lane.b32.xlu0 %v1867_v0, %s5965_s21  ;;  %v576_v16 = vmul.f32 %v10253_v14, %v10252_v18  ;;  %v578_v45 = vmul.f32 %v6842_v4, %v7311_v44  ;;  %v579_v57 = vmul.f32 %v7311_v44, %v10254_v11 }
 0x276   : > { %v1727_v20 = vpop.permute.xlu0 %1726  ;;  %1886 = vrot.lane.b32.xlu1 %v1863_v28, %s5965_s21  ;;  %v849_v5 = vsel %vm840_vm6, %v10255_v10, %v10244_v29  ;;  %v1320_v60 = vadd.f32 %v7364_v12, %v917_v1  ;;  %v1868_v26 = vpack.c.bf16 %v1854_v48, %v1851_v19  ;;  %v1852_v58 = vmin.f32 %v1834_v2, 6.0 }
 0x277   : > { %v1779_v63 = vadd.f32 %v1727_v20, %v1317_v55  ;;  %v1831_v50 = vmax.f32 %v1813_v43, 0.0  ;;  %v721_v36 = vadd.f32 %v687_v53, %v576_v16  ;;  %v688_v56 = vsel %vm677_vm7, %v10257_v32, %v10256_v37 }
 0x278   : > { %v1269_v52 = vpop.permute.xlu1 %1268  ;;  %v689_v44 = vsel %vm677_vm7, %v10256_v37, %v10249_v22  ;;  %v723_v42 = vadd.f32 %v688_v56, %v578_v45  ;;  %v686_v51 = vsel %vm677_vm7, %v10258_v27, %v10251_v34  ;;  %v851_v22 = vsel %vm840_vm6, %v10259_v47, %v7246_v7 }
 0x279   : > { %v1821_v8 = vadd.f32 %v7362_v40, %v1779_v63  ;;  %v1849_v38 = vmin.f32 %v1831_v50, 6.0  ;;  %v884_v54 = vadd.f32 %v849_v5, %v721_v36  ;;  %v724_v6 = vadd.f32 %v689_v44, %v579_v57  ;;  %v7451_v44 = vld [vmem:[%s10013_s3 + $0x48] sm:$0xff] }
 0x27a   : > { %v1733_v35 = vpop.permute.xlu0 %1732  ;;  %1896 = vrot.lane.b32.xlu1 %v1868_v26, %s5965_s21  ;;  %v1282_v23 = vsel %vm1272_vm9, %v1263_v3, %v7347_v49  ;;  %v575_v24 = vmul.f32 %v6842_v4, %v10253_v14  ;;  %v886_v9 = vadd.f32 %v10259_v47, %v723_v42  ;;  %v1283_v48 = vsel %vm1272_vm9, %v1267_v25, %v1269_v52 }
 0x27b   : > { %v1782_v29 = vadd.f32 %v1733_v35, %v1320_v60  ;;  %v1866_v59 = vpack.c.bf16 %v1852_v58, %v1849_v38  ;;  %v1839_v31 = vmax.f32 %v1821_v8, 0.0  ;;  %v913_v33 = vmul.f32 %v7230_v17, %v884_v54  ;;  %v7443_v58 = vld [vmem:[%s10013_s3 + $0x30] sm:$0xff] }
 0x27c   : > { %v1261_v15 = vpop.permute.xlu1 %1260  ;;  %v887_v30 = vadd.f32 %v851_v22, %v724_v6  ;;  %v720_v0 = vadd.f32 %v686_v51, %v575_v24  ;;  %v1284_v7 = vsel %vm1272_vm9, %v1269_v52, %v7364_v12  ;;  %v915_v43 = vmul.f32 %v7204_v39, %v886_v9  ;;  %v1962_v12 = vld [vmem:[%s10014_s4] sm:$0xff] }
 0x27d   : > { %v1824_v61 = vadd.f32 %v7240_v62, %v1782_v29  ;;  %1892 = vrot.lane.b32.xlu0 %v1866_v59, %s5965_s21  ;;  %v1857_v13 = vmin.f32 %v1839_v31, 6.0  ;;  %v1316_v55 = vadd.f32 %v1282_v23, %v913_v33  ;;  %v10260_v38 = vmov 7   ;;  %v7467_v59 = vld [vmem:[%s10013_s3 + $0x50] sm:$0xff]  ;;  %v7474_v31 = vld [vmem:[%s10013_s3 + $0x40] sm:$0xff] }
 0x27e   : > { %v883_v4 = vadd.f32 %v10255_v10, %v720_v0  ;;  %v916_v34 = vmul.f32 %v7230_v17, %v887_v30  ;;  %v1318_v19 = vadd.f32 %v1283_v48, %v915_v43  ;;  %v1729_v63 = vpop.permute.xlu0 %1728  ;;  %v10261_v6 = vmov 4  }
 0x27f   : > { %v1842_v46 = vmax.f32 %v1824_v61, 0.0  ;;  %v10262_v61 = vmov 5   ;;  %v10263_v27 = vmov 8   ;;  %v10264_v51 = vmov 1  }
 0x280   : > { %v1725_v28 = vpop.permute.xlu1 %1724  ;;  %v1319_v1 = vadd.f32 %v1284_v7, %v916_v34  ;;  %v912_v45 = vmul.f32 %v7204_v39, %v883_v4  ;;  %v10265_v47 = vmov 3   ;;  %v10266_v22 = vmov 6   ;;  %v5909_v34 = vld [vmem:[%s10012_s2] sm:$0xff]  }
 0x281   : > { %v1860_v41 = vmin.f32 %v1842_v46, 6.0  ;;  %v1744_v49 = vsel %vm1734_vm11, %v1725_v28, %v1727_v20  ;;  %v1281_v20 = vsel %vm1272_vm9, %v1261_v15, %v1263_v3  ;;  %v7482_v15 = vld [vmem:[%s10013_s3 + $0x58] sm:$0xff]  ;;  %v10267_v23 = vmov 2  }
 0x282   : > { %v1778_v53 = vadd.f32 %v1744_v49, %v1316_v55  ;;  %v1315_v50 = vadd.f32 %v1281_v20, %v912_v45  ;;  %v10268_v46 = vmov 0   ;;  %v7579_v20 = vld [vmem:[#allocation2 + $0x18] sm:$0xff] }
 0x283   : > { %v1871_v2 = vpack.c.bf16 %v1860_v41, %v1857_v13 }
 0x284   : > { %v1820_v25 = vadd.f32 %v7362_v40, %v1778_v53  ;;  %v1731_v18 = vpop.permute.xlu1 %1730 }
 0x285   : > { %1902 = vrot.lane.b32.xlu0 %v1871_v2, %s5965_s21  ;;  %v1745_v14 = vsel %vm1734_vm11, %v1729_v63, %v1731_v18  ;;  %v1746_v16 = vsel %vm1734_vm11, %v1731_v18, %v1733_v35 }
 0x286   : > { %v1780_v11 = vadd.f32 %v1745_v14, %v1318_v19  ;;  %v1781_v57 = vadd.f32 %v1746_v16, %v1319_v1  ;;  %v1838_v10 = vmax.f32 %v1820_v25, 0.0 }
 0x288   : > { %v1822_v5 = vadd.f32 %v7240_v62, %v1780_v11  ;;  %v1823_v60 = vadd.f32 %v7240_v62, %v1781_v57  ;;  %v1723_v8 = vpop.permute.xlu1 %1722  ;;  %v1856_v52 = vmin.f32 %v1838_v10, 6.0 }
 0x289   : > { %1965 = vperm.xlu0 %5795, %v1962_v12   ;;  %v1743_v26 = vsel %vm1734_vm11, %v1723_v8, %v1725_v28 }
 0x28a   : > { %v1841_v36 = vmax.f32 %v1823_v60, 0.0  ;;  %v1777_v3 = vadd.f32 %v1743_v26, %v1315_v50  ;;  %v1840_v35 = vmax.f32 %v1822_v5, 0.0 }
 0x28c   : > { %v1859_v37 = vmin.f32 %v1841_v36, 6.0  ;;  %v1819_v32 = vadd.f32 %v7362_v40, %v1777_v3  ;;  %v1858_v29 = vmin.f32 %v1840_v35, 6.0  ;;  %v7459_v40 = vld [vmem:[%s10013_s3 + $0x38] sm:$0xff] }
 0x28d   : > { %5799 = vset.pattern.permute.xlu0 %v10260_v38 }
 0x28e   : > { %2686 = vperm.xlu0 %5799, %v7443_v58   ;;  %v1837_v62 = vmax.f32 %v1819_v32, 0.0  ;;  %v1870_v56 = vpack.c.bf16 %v1859_v37, %v1856_v52 }
 0x290   : > { %v1855_v54 = vmin.f32 %v1837_v62, 6.0  ;;  %1900 = vrot.lane.b32.xlu1 %v1870_v56, %s5965_s21 }
 0x292   : > { %2698 = vperm.xlu0 %5799, %v7451_v44   ;;  %v1869_v42 = vpack.c.bf16 %v1858_v29, %v1855_v54 }
 0x294   : > { %1898 = vrot.lane.b32.xlu1 %v1869_v42, %s5965_s21 }
 0x296   : > { %5805 = vset.pattern.permute.xlu0 %v10261_v6 }
 0x297   : > { %2576 = vperm.xlu0 %5805, %v7459_v40  }
 0x298   : > { %1988 = vperm.xlu1 %5796, %v7443_v58  }
 0x29b   : > { %2588 = vperm.xlu0 %5805, %v7467_v59  }
 0x29c   : > { %1993 = vperm.xlu1 %5796, %v7459_v40  }
 0x29f   : > { %5807 = vset.pattern.permute.xlu0 %v10262_v61 }
 0x2a0   : > { %2982 = vperm.xlu0 %5807, %v7474_v31   ;;  %2003 = vperm.xlu1 %5796, %v7451_v44  }
 0x2a4   : > { %2994 = vperm.xlu0 %5807, %v7482_v15   ;;  %2008 = vperm.xlu1 %5796, %v7467_v59  }
 0x2a8   : > { %5810 = vset.pattern.permute.xlu0 %v10263_v27  ;;  %5797 = vset.pattern.permute.xlu1 %v10261_v6 }
 0x2a9   : > { %3122 = vperm.xlu0 %5810, %v7459_v40   ;;  %2572 = vperm.xlu1 %5797, %v7443_v58  }
 0x2ad   : > { %3134 = vperm.xlu0 %5810, %v7467_v59   ;;  %5798 = vset.pattern.permute.xlu1 %v10262_v61 }
 0x2ae   : > { %2974 = vperm.xlu1 %5798, %v7443_v58  }
 0x2b1   : > { %5815 = vset.pattern.permute.xlu0 %v10264_v51 }
 0x2b2   : > { %2530 = vperm.xlu0 %5815, %v7443_v58   ;;  %2978 = vperm.xlu1 %5798, %v7459_v40  }
 0x2b6   : > { %2542 = vperm.xlu0 %5815, %v7451_v44   ;;  %5800 = vset.pattern.permute.xlu1 %v10260_v38 }
 0x2b7   : > { %2690 = vperm.xlu1 %5800, %v7459_v40  }
 0x2ba   : > { %5821 = vset.pattern.permute.xlu0 %v10265_v47 }
 0x2bb   : > { %2210 = vperm.xlu0 %5821, %v7459_v40   ;;  %5801 = vset.pattern.permute.xlu1 %v10263_v27 }
 0x2bc   : > { %3118 = vperm.xlu1 %5801, %v7443_v58  }
 0x2bf   : > { %2222 = vperm.xlu0 %5821, %v7467_v59  }
 0x2c0   : > { %5802 = vset.pattern.permute.xlu1 %v10261_v6 }
 0x2c1   : > { %2580 = vperm.xlu1 %5802, %v7474_v31  }
 0x2c3   : > { %5823 = vset.pattern.permute.xlu0 %v10266_v22 }
 0x2c4   : > { %2376 = vperm.xlu0 %5823, %v7474_v31  }
 0x2c5   : > { %2584 = vperm.xlu1 %5802, %v7451_v44  }
 0x2c8   : > { %2388 = vperm.xlu0 %5823, %v7482_v15  }
 0x2c9   : > { %5803 = vset.pattern.permute.xlu1 %v10262_v61 }
 0x2ca   : > { %2986 = vperm.xlu1 %5803, %v7451_v44  }
 0x2cc   : > { %5826 = vset.pattern.permute.xlu0 %v10267_v23 }
 0x2cd   : > { %2936 = vperm.xlu0 %5826, %v7459_v40  }
 0x2ce   : > { %5804 = vset.pattern.permute.xlu1 %v10260_v38 }
 0x2cf   : > { %2694 = vperm.xlu1 %5804, %v7474_v31  }
 0x2d1   : > { %2948 = vperm.xlu0 %5826, %v7467_v59  }
 0x2d3   : > { %5806 = vset.pattern.permute.xlu1 %v10263_v27 }
 0x2d4   : > { %3126 = vperm.xlu1 %5806, %v7474_v31  }
 0x2d5   : > { %5830 = vset.pattern.permute.xlu0 %v10268_v46 }
 0x2d8   : > { %3130 = vperm.xlu1 %5806, %v7451_v44  }
 0x2dc   : > { %5808 = vset.pattern.permute.xlu1 %v10261_v6 }
 0x2dd   : > { %2592 = vperm.xlu1 %5808, %v7482_v15  }
 0x2e1   : > { %5809 = vset.pattern.permute.xlu1 %v10262_v61 }
 0x2e2   : > { %2990 = vperm.xlu1 %5809, %v7467_v59  }
 0x2e3   : > { %v1891_v24 = vpop.permute.xlu0 %1890 }
 0x2e4   : > { %v1889_v33 = vpop.permute.xlu1 %1888 }
 0x2e5   : > { %v1906_v9 = vsel %vm1904_vm12, %v1889_v33, %v1891_v24 }
 0x2e6   : > { %1921 = vmatprep.subr.bf16.mxu1 %v1906_v9  ;;  %5811 = vset.pattern.permute.xlu1 %v10260_v38 }
 0x2e7   : > { %2702 = vperm.xlu1 %5811, %v7467_v59   ;;  %v1895_v41 = vpop.permute.xlu0 %1894 }
 0x2e8   : > { %v1887_v30 = vpop.permute.xlu1 %1886 }
 0x2e9   : > { %v1905_v13 = vsel %vm1904_vm12, %v1887_v30, %v1889_v33 }
 0x2ea   : > { %1922 = vmatpush1.bf16.msra.mxu1 %v1905_v13 }
 0x2eb   : > { %2706 = vperm.xlu1 %5811, %v7482_v15  }
 0x2ec   : > { %v1897_v0 = vpop.permute.xlu1 %1896 }
 0x2ed   : > { %v1908_v55 = vsel %vm1904_vm12, %v1895_v41, %v1897_v0 }
 0x2ee   : > { %1923 = vmatprep.subr.bf16.mxu1 %v1908_v55 }
 0x2ef   : > { %v1893_v28 = vpop.permute.xlu0 %1892  ;;  %5812 = vset.pattern.permute.xlu1 %v10263_v27 }
 0x2f0   : > { %v1907_v48 = vsel %vm1904_vm12, %v1893_v28, %v1895_v41  ;;  %3138 = vperm.xlu1 %5812, %v7482_v15  }
 0x2f1   : > { %1924 = vmatpush1.bf16.msra.mxu1 %v1907_v48 }
 0x2f4   : > { %5813 = vset.pattern.permute.xlu1 %v10265_v47 }
 0x2f5   : > { %2206 = vperm.xlu1 %5813, %v7443_v58  }
 0x2f7   : > { %v1903_v7 = vpop.permute.xlu0 %1902 }
 0x2f9   : > { %5814 = vset.pattern.permute.xlu1 %v10266_v22 }
 0x2fa   : > { %2368 = vperm.xlu1 %5814, %v7443_v58  }
 0x2fe   : > { %2372 = vperm.xlu1 %5814, %v7459_v40  }
 0x302   : > { %v1901_v49 = vpop.permute.xlu1 %1900  ;;  %5816 = vset.pattern.permute.xlu1 %v10264_v51 }
 0x303   : > { %v1910_v2 = vsel %vm1904_vm12, %v1901_v49, %v1903_v7  ;;  %2534 = vperm.xlu1 %5816, %v7459_v40  }
 0x304   : > { %1925 = vmatprep.subr.bf16.mxu1 %v1910_v2 }
 0x306   : > { %v1899_v4 = vpop.permute.xlu1 %1898 }
 0x307   : > { %v1909_v43 = vsel %vm1904_vm12, %v1899_v4, %v1901_v49  ;;  %5817 = vset.pattern.permute.xlu1 %v10267_v23 }
 0x308   : > { %1926 = vmatpush1.bf16.msra.mxu1 %v1909_v43  ;;  %2932 = vperm.xlu1 %5817, %v7443_v58   ;;  %v7599_v50 = vpop.permute.xlu0 %1965 }
 0x30b   : > { %5684 = vmatmul.mubr.msk.bf16.vlgmr.msra.gmra.mrb[4].mxu1 %vm1917_vm13, %v5909_v34 }
 0x30c   : > { %5818 = vset.pattern.permute.xlu1 %v10265_v47  ;;  %2078 = vmatprep.mubr.bf16.mxu1 %v10268_v46 }
 0x30d   : > { %2214 = vperm.xlu1 %5818, %v7474_v31   ;;  %v7603_v5 = vpop.permute.xlu0 %2686 }
 0x30e   : > { %v2711_v60 = vmul.f32 %v7579_v20, %v7603_v5 }
 0x311   : > { %2218 = vperm.xlu1 %5818, %v7451_v44   ;;  %v7612_v36 = vpop.permute.xlu0 %2698 }
 0x312   : > { %v2720_v55 = vmul.f32 %v7579_v20, %v7612_v36 }
 0x315   : > { %5819 = vset.pattern.permute.xlu1 %v10266_v22 }
 0x316   : > { %2380 = vperm.xlu1 %5819, %v7451_v44   ;;  %v7617_v52 = vpop.permute.xlu0 %2576 }
 0x317   : > { %v7555_v53 = vpop.permute.xlu1 %1988 }
 0x31a   : > { %5820 = vset.pattern.permute.xlu1 %v10264_v51  ;;  %v7621_v37 = vpop.permute.xlu0 %2588 }
 0x31b   : > { %2538 = vperm.xlu1 %5820, %v7474_v31   ;;  %v7559_v19 = vpop.permute.xlu1 %1993 }
 0x31f   : > { %5822 = vset.pattern.permute.xlu1 %v10267_v23  ;;  %v7562_v1 = vpop.permute.xlu1 %2003  ;;  %v7625_v62 = vpop.permute.xlu0 %2982 }
 0x320   : > { %2940 = vperm.xlu1 %5822, %v7474_v31   ;;  %v3005_v56 = vmul.f32 %v7579_v20, %v7625_v62 }
 0x323   : > { %v7565_v63 = vpop.permute.xlu1 %2008  ;;  %v7634_v42 = vpop.permute.xlu0 %2994 }
 0x324   : > { %2944 = vperm.xlu1 %5822, %v7451_v44   ;;  %v3014_v43 = vmul.f32 %v7579_v20, %v7634_v42 }
 0x328   : > { %5824 = vset.pattern.permute.xlu1 %v10265_v47  ;;  %v7569_v25 = vpop.permute.xlu1 %2572  ;;  %v7641_v9 = vpop.permute.xlu0 %3122 }
 0x329   : > { %2226 = vperm.xlu1 %5824, %v7482_v15   ;;  %v3146_v30 = vmul.f32 %v7579_v20, %v7641_v9 }
 0x32c   : > { %v7661_v7 = vpop.permute.xlu0 %3134 }
 0x32d   : > { %5825 = vset.pattern.permute.xlu1 %v10266_v22  ;;  %v7573_v18 = vpop.permute.xlu1 %2974  ;;  %v3155_v4 = vmul.f32 %v7579_v20, %v7661_v7 }
 0x32e   : > { %2384 = vperm.xlu1 %5825, %v7467_v59   ;;  %v2999_v11 = vmul.f32 %v7579_v20, %v7573_v18 }
 0x331   : > { %v7576_v12 = vpop.permute.xlu1 %2978 }
 0x332   : > { %5827 = vset.pattern.permute.xlu1 %v10264_v51  ;;  %v3002_v14 = vmul.f32 %v7579_v20, %v7576_v12 }
 0x333   : > { %2546 = vperm.xlu1 %5827, %v7467_v59  }
 0x334   : > { %3043 = vrot.lane.b32.xlu0 %v3002_v14, %s5958_s27  ;;  %v7677_v14 = vpop.permute.xlu0 %2530 }
 0x336   : > { %v7585_v16 = vpop.permute.xlu1 %2690 }
 0x337   : > { %2550 = vperm.xlu1 %5827, %v7482_v15   ;;  %v2714_v45 = vmul.f32 %v7579_v20, %v7585_v16 }
 0x339   : > { %2755 = vrot.lane.b32.xlu0 %v2714_v45, %s5959_s28 }
 0x33b   : > { %5828 = vset.pattern.permute.xlu1 %v10267_v23  ;;  %v7597_v57 = vpop.permute.xlu1 %3118 }
 0x33c   : > { %2952 = vperm.xlu1 %5828, %v7482_v15   ;;  %v3143_v8 = vmul.f32 %v7579_v20, %v7597_v57 }
 0x33d   : > { %3187 = vrot.lane.b32.xlu0 %v3146_v30, %s5959_s28 }
 0x340   : > { %3037 = vrot.lane.b32.xlu1 %v2999_v11, %s5958_s27  ;;  %v7601_v10 = vpop.permute.xlu1 %2580 }
 0x341   : > { %5829 = vset.pattern.permute.xlu1 %v10268_v46 }
 0x344   : > { %v7609_v26 = vpop.permute.xlu1 %2584  ;;  %2749 = vrot.lane.b32.xlu1 %v2711_v60, %s5959_s28  ;;  %v7685_v60 = vpop.permute.xlu0 %2542 }
 0x345   : > { %10269 = vst [vmem:[#allocation19_spill] sm:$0xff] %v7685_v60 }
 0x348   : > { %3181 = vrot.lane.b32.xlu1 %v3143_v8, %s5959_s28 }
 0x349   : > { %v7614_v3 = vpop.permute.xlu1 %2986 }
 0x34a   : > { %v3008_v13 = vmul.f32 %v7579_v20, %v7614_v3 }
 0x34c   : > { %3049 = vrot.lane.b32.xlu1 %v3005_v56, %s5958_s27  ;;  %3055 = vrot.lane.b32.xlu0 %v3008_v13, %s5958_s27 }
 0x34e   : > { %v7619_v35 = vpop.permute.xlu1 %2694 }
 0x34f   : > { %v2717_v29 = vmul.f32 %v7579_v20, %v7619_v35 }
 0x350   : > { %2767 = vrot.lane.b32.xlu0 %v2720_v55, %s5959_s28 }
 0x351   : > { %2761 = vrot.lane.b32.xlu1 %v2717_v29, %s5959_s28 }
 0x353   : > { %v7623_v32 = vpop.permute.xlu1 %3126 }
 0x354   : > { %v3149_v24 = vmul.f32 %v7579_v20, %v7623_v32 }
 0x356   : > { %3193 = vrot.lane.b32.xlu1 %v3149_v24, %s5959_s28  ;;  %v7697_v24 = vpop.permute.xlu0 %2210 }
 0x357   : > { %v7631_v54 = vpop.permute.xlu1 %3130  ;;  %v2232_v13 = vmul.f32 %v7579_v20, %v7697_v24 }
 0x358   : > { %v3152_v49 = vmul.f32 %v7579_v20, %v7631_v54 }
 0x35a   : > { %3199 = vrot.lane.b32.xlu0 %v3152_v49, %s5959_s28  ;;  %v10270_v49 = vmov 10  }
 0x35c   : > { %v7638_v33 = vpop.permute.xlu1 %2592 }
 0x35e   : > { %3067 = vrot.lane.b32.xlu0 %v3014_v43, %s5958_s27 }
 0x361   : > { %v7647_v41 = vpop.permute.xlu1 %2990 }
 0x362   : > { %v3011_v0 = vmul.f32 %v7579_v20, %v7647_v41 }
 0x364   : > { %3061 = vrot.lane.b32.xlu1 %v3011_v0, %s5958_s27 }
 0x366   : > { %v7655_v28 = vpop.permute.xlu1 %2702 }
 0x367   : > { %v2723_v48 = vmul.f32 %v7579_v20, %v7655_v28 }
 0x369   : > { %2773 = vrot.lane.b32.xlu1 %v2723_v48, %s5959_s28 }
 0x36a   : > { %v7665_v2 = vpop.permute.xlu1 %2706 }
 0x36b   : > { %v2726_v45 = vmul.f32 %v7579_v20, %v7665_v2 }
 0x36d   : > { %3205 = vrot.lane.b32.xlu1 %v3155_v4, %s5959_s28  ;;  %2779 = vrot.lane.b32.xlu0 %v2726_v45, %s5959_s28  ;;  %v7721_v45 = vpop.permute.xlu0 %2222 }
 0x36f   : > { %v7673_v34 = vpop.permute.xlu1 %3138 }
 0x370   : > { %v3158_v8 = vmul.f32 %v7579_v20, %v7673_v34 }
 0x371   : > { %2164 = vperm.xlu1 %5829, %v7443_v58  }
 0x372   : > { %3211 = vrot.lane.b32.xlu0 %v3158_v8, %s5959_s28 }
 0x374   : > { %v7681_v11 = vpop.permute.xlu1 %2206 }
 0x375   : > { %2172 = vperm.xlu1 %5829, %v7474_v31   ;;  %v2229_v0 = vmul.f32 %v7579_v20, %v7681_v11 }
 0x376   : > { %2168 = vperm.xlu0 %5830, %v7459_v40  }
 0x379   : > { %v7689_v56 = vpop.permute.xlu1 %2368  ;;  %2176 = vperm.xlu1 %5829, %v7451_v44  }
 0x37a   : > { %2180 = vperm.xlu0 %5830, %v7467_v59   ;;  %v2393_v4 = vmul.f32 %v7579_v20, %v7689_v56 }
 0x37d   : > { %v7693_v29 = vpop.permute.xlu1 %2372  ;;  %2184 = vperm.xlu1 %5829, %v7482_v15  }
 0x37e   : > { %v2396_v55 = vmul.f32 %v7579_v20, %v7693_v29  ;;  %2265 = vrot.lane.b32.xlu0 %v2229_v0, %s5958_s27 }
 0x37f   : > { %5831 = vset.pattern.permute.xlu0 %v10270_v49 }
 0x381   : > { %2271 = vrot.lane.b32.xlu1 %v2232_v13, %s5958_s27  ;;  %v7729_v13 = vpop.permute.xlu0 %2376 }
 0x382   : > { %v7699_v30 = vpop.permute.xlu1 %2534  ;;  %5832 = vset.pattern.permute.xlu1 %v10270_v49  ;;  %2431 = vrot.lane.b32.xlu0 %v2393_v4, %s5959_s28 }
 0x385   : > { %2437 = vrot.lane.b32.xlu1 %v2396_v55, %s5959_s28  ;;  %v2399_v55 = vmul.f32 %v7579_v20, %v7729_v13 }
 0x386   : > { %3382 = vperm.xlu0 %5831, %v7443_v58   ;;  %v2241_v58 = vmul.f32 %v7579_v20, %v7721_v45 }
 0x387   : > { %v7709_v48 = vpop.permute.xlu1 %2932 }
 0x389   : > { %3386 = vperm.xlu1 %5832, %v7459_v40  }
 0x38c   : > { %v7716_v43 = vpop.permute.xlu1 %2214 }
 0x38d   : > { %v2235_v8 = vmul.f32 %v7579_v20, %v7716_v43 }
 0x38f   : > { %2277 = vrot.lane.b32.xlu1 %v2235_v8, %s5958_s27 }
 0x390   : > { %v7725_v51 = vpop.permute.xlu1 %2218 }
 0x391   : > { %v2238_v0 = vmul.f32 %v7579_v20, %v7725_v51 }
 0x393   : > { %2283 = vrot.lane.b32.xlu0 %v2238_v0, %s5958_s27  ;;  %2443 = vrot.lane.b32.xlu1 %v2399_v55, %s5959_s28  ;;  %v7757_v0 = vpop.permute.xlu0 %2388 }
 0x395   : > { %v7733_v23 = vpop.permute.xlu1 %2380 }
 0x396   : > { %v2402_v49 = vmul.f32 %v7579_v20, %v7733_v23 }
 0x397   : > { %3390 = vperm.xlu1 %5832, %v7474_v31  }
 0x398   : > { %2449 = vrot.lane.b32.xlu0 %v2402_v49, %s5959_s28  ;;  %v2408_v49 = vmul.f32 %v7579_v20, %v7757_v0 }
 0x39a   : > { %v7741_v4 = vpop.permute.xlu1 %2538 }
 0x39b   : > { %10271 = vst [vmem:[#allocation23_spill] sm:$0xff] %v7741_v4  ;;  %2289 = vrot.lane.b32.xlu1 %v2241_v58, %s5958_s27  ;;  %v10274_v58 = vmov 9  }
 0x39c   : > { %3394 = vperm.xlu0 %5831, %v7451_v44  }
 0x39f   : > { %v7745_v40 = vpop.permute.xlu1 %2940 }
 0x3a0   : > { %10272 = vst [vmem:[#allocation18_spill] sm:$0xff] %v7745_v40 }
 0x3a3   : > { %v7751_v22 = vpop.permute.xlu1 %2944 }
 0x3a4   : > { %10273 = vst [vmem:[#allocation7_spill] sm:$0xff] %v7751_v22 }
 0x3a8   : > { %v7755_v8 = vpop.permute.xlu1 %2226 }
 0x3a9   : > { %v2244_v55 = vmul.f32 %v7579_v20, %v7755_v8 }
 0x3ab   : > { %2295 = vrot.lane.b32.xlu0 %v2244_v55, %s5958_s27 }
 0x3ad   : > { %v7764_v27 = vpop.permute.xlu1 %2384 }
 0x3ae   : > { %v2405_v44 = vmul.f32 %v7579_v20, %v7764_v27 }
 0x3af   : > { %2461 = vrot.lane.b32.xlu0 %v2408_v49, %s5959_s28 }
 0x3b0   : > { %2455 = vrot.lane.b32.xlu1 %v2405_v44, %s5959_s28  ;;  %v5925_v44 = vld [vmem:[%s6049_s12] sm:$0xff] }
 0x3b3   : > { %3402 = vperm.xlu0 %5831, %v7482_v15  }
 0x3b4   : > { %3398 = vperm.xlu1 %5832, %v7467_v59   ;;  %v5926_v59 = vld [vmem:[%s6049_s12 + $0x8] sm:$0xff] }
 0x3b7   : > { %5833 = vset.pattern.permute.xlu0 %v10274_v58 }
 0x3b8   : > { %5834 = vset.pattern.permute.xlu1 %v10274_v58  ;;  %1998 = vperm.xlu0 %5833, %v7474_v31  }
 0x3bc   : > { %2013 = vperm.xlu0 %5833, %v7482_v15  }
 0x3de   : > { %v1955_v55 = vpop.f32.mrb[4].mxu1 }
 0x3df   : > { %v1968_v61 = vadd.f32 %v7599_v50, %v1955_v55  ;;  %v1957_v6 = vpop.f32.mrb[5].mxu1 }
 0x3e0   : > { %v1969_v49 = vadd.f32 %v7599_v50, %v1957_v6  ;;  %v1959_v38 = vpop.f32.mrb[6].mxu1  ;;  %v5912_v6 = vld [vmem:[%s10011_s1 + $0x28] sm:$0xff]  }
 0x3e1   : > { %v7779_v47 = vadd.f32 %v5925_v44, %v1968_v61  ;;  %v1960_v39 = vpop.f32.mrb[7].mxu1  ;;  %v5910_v38 = vld [vmem:[%s10011_s1 + $0x18] sm:$0xff]   ;;  %v7805_v61 = vpop.permute.xlu0 %2936 }
 0x3e2   : > { %v7782_v17 = vadd.f32 %v5926_v59, %v1969_v49  ;;  %v5911_v39 = vld [vmem:[%s10011_s1 + $0x20] sm:$0xff]   ;;  %10277 = vst [vmem:[#allocation21_spill] sm:$0xff] %v7805_v61 }
 0x3e3   : > { %10275 = vst [vmem:[#allocation5_spill] sm:$0xff] %v7779_v47  ;;  %v1984_v58 = vpack.c.bf16 %v7779_v47, %v7779_v47 }
 0x3e4   : > { %10276 = vst [vmem:[#allocation9_spill] sm:$0xff] %v7782_v17  ;;  %v1985_v31 = vpack.c.bf16 %v7782_v17, %v7782_v17 }
 0x3e5   : > { %v2041_v15 = vsel %vm415_vm0, %v1984_v58, 0  ;;  %v7807_v50 = vpop.permute.xlu0 %2948 }
 0x3e6   : > { %5688 = vmatprep.subr.msk.bf16.mxu1 %vm415_vm0, %v1985_v31  ;;  %10278 = vst [vmem:[#allocation25_spill] sm:$0xff] %v7807_v50 }
 0x3e7   : > { %2047 = vmatpush1.bf16.msra.mxu1 %v2041_v15 }
 0x3e9   : > { %v7809_v58 = vpop.permute.xlu0 %3043 }
 0x3ea   : > { %5689 = vmatmul.mubr.msk.bf16.vlgmr.msra.gmra.mrb[8].mxu1 %vm405_vm1, %v5910_v38  ;;  %10279 = vst [vmem:[#allocation8_spill] sm:$0xff] %v7809_v58 }
 0x3eb   : > { %2088 = vmatprep.mubr.bf16.mxu1 %v10268_v46 }
 0x3ed   : > { %v7811_v55 = vpop.permute.xlu0 %2755 }
 0x3ee   : > { %10280 = vst [vmem:[#allocation10_spill] sm:$0xff] %v7811_v55 }
 0x3f1   : > { %v7813_v49 = vpop.permute.xlu0 %3187 }
 0x3f2   : > { %5690 = vmatmul.mubr.msk.bf16.gmra.mrb[12].mxu1 %vm405_vm1, %v5911_v39  ;;  %10281 = vst [vmem:[#allocation27_spill] sm:$0xff] %v7813_v49 }
 0x3f3   : > { %2098 = vmatprep.mubr.bf16.mxu1 %v10268_v46 }
 0x3f5   : > { %v7815_v44 = vpop.permute.xlu0 %3055 }
 0x3f6   : > { %10282 = vst [vmem:[#allocation16_spill] sm:$0xff] %v7815_v44 }
 0x3f9   : > { %v7817_v59 = vpop.permute.xlu0 %2767 }
 0x3fa   : > { %5691 = vmatmul.mubr.msk.bf16.gmra.mrb[16].mxu1 %vm405_vm1, %v5912_v6  ;;  %10283 = vst [vmem:[#allocation11_spill] sm:$0xff] %v7817_v59 }
 0x3fb   : > { %5145 = vmatprep.mubr.bf16.mxu1 %v10268_v46  ;;  %v7833_v46 = vpop.permute.xlu1 %2546 }
 0x3fc   : > { %10291 = vst [vmem:[#allocation28_spill] sm:$0xff] %v7833_v46 }
 0x3fd   : > { %v7819_v31 = vpop.permute.xlu0 %3199 }
 0x3fe   : > { %10284 = vst [vmem:[#allocation4_spill] sm:$0xff] %v7819_v31 }
 0x3ff   : > { %v7837_v50 = vpop.permute.xlu1 %2550 }
 0x400   : > { %10293 = vst [vmem:[#allocation33_spill] sm:$0xff] %v7837_v50 }
 0x401   : > { %v7821_v15 = vpop.permute.xlu0 %3067 }
 0x402   : > { %10285 = vst [vmem:[#allocation14_spill] sm:$0xff] %v7821_v15 }
 0x403   : > { %v7841_v31 = vpop.permute.xlu1 %2952 }
 0x404   : > { %10295 = vst [vmem:[#allocation35_spill] sm:$0xff] %v7841_v31 }
 0x405   : > { %v7823_v38 = vpop.permute.xlu0 %2779 }
 0x406   : > { %10286 = vst [vmem:[#allocation6_spill] sm:$0xff] %v7823_v38 }
 0x409   : > { %v7825_v39 = vpop.permute.xlu0 %3211 }
 0x40a   : > { %10287 = vst [vmem:[#allocation15_spill] sm:$0xff] %v7825_v39 }
 0x40d   : > { %v7827_v6 = vpop.permute.xlu0 %2168 }
 0x40e   : > { %10288 = vst [vmem:[#allocation20_spill] sm:$0xff] %v7827_v6 }
 0x411   : > { %v7829_v17 = vpop.permute.xlu0 %2180 }
 0x412   : > { %10289 = vst [vmem:[#allocation22_spill] sm:$0xff] %v7829_v17 }
 0x415   : > { %v7831_v47 = vpop.permute.xlu0 %2265 }
 0x416   : > { %10290 = vst [vmem:[#allocation13_spill] sm:$0xff] %v7831_v47  ;;  %v7846_v47 = vpop.permute.xlu1 %3037 }
 0x417   : > { %10297 = vst [vmem:[#allocation37_spill] sm:$0xff] %v7846_v47 }
 0x419   : > { %v7835_v21 = vpop.permute.xlu0 %2431 }
 0x41a   : > { %10292 = vst [vmem:[#allocation32_spill] sm:$0xff] %v7835_v21 }
 0x41d   : > { %v7839_v44 = vpop.permute.xlu0 %3382 }
 0x41e   : > { %10294 = vst [vmem:[#allocation34_spill] sm:$0xff] %v7839_v44 }
 0x421   : > { %v7844_v17 = vpop.permute.xlu0 %2283 }
 0x422   : > { %10296 = vst [vmem:[#allocation36_spill] sm:$0xff] %v7844_v17 }
 0x4bd   : > { %v2080_v15 = vpop.f32.mrb[8].mxu1 }
 0x4be   : > { %v2081_v38 = vadd.f32 %v2080_v15, %v7555_v53  ;;  %v2082_v39 = vpop.f32.mrb[9].mxu1  ;;  %v7857_v15 = vpop.permute.xlu1 %2749 }
 0x4bf   : > { %v2084_v59 = vpop.f32.mrb[10].mxu1  ;;  %v2083_v21 = vadd.f32 %v2082_v39, %v7555_v53 }
 0x4c0   : > { %v2109_v6 = vmax.f32 %v2081_v38, 0.0  ;;  %v2086_v22 = vpop.f32.mrb[11].mxu1 }
 0x4c1   : > { %v2110_v53 = vmax.f32 %v2083_v21, 0.0 }
 0x4c2   : > { %v7848_v46 = vmin.f32 %v2109_v6, 6.0  ;;  %v7863_v6 = vpop.permute.xlu0 %2449 }
 0x4c3   : > { %10298 = vst [vmem:[#allocation38_spill] sm:$0xff] %v7863_v6 }
 0x4c4   : > { %v2595_v44 = vmul.f32 %v7569_v25, %v7848_v46  ;;  %v2997_v31 = vmul.f32 %v7573_v18, %v7848_v46  ;;  %v2230_v60 = vmul.f32 %v7681_v11, %v7848_v46  ;;  %v2709_v40 = vmul.f32 %v7603_v5, %v7848_v46 }
 0x4c5   : > { %v7855_v50 = vpop.f32.mrb[12].mxu1  ;;  %v2391_v6 = vmul.f32 %v7689_v56, %v7848_v46  ;;  %v3141_v21 = vmul.f32 %v7597_v57, %v7848_v46 }
 0x4c6   : > { %v7859_v38 = vpop.f32.mrb[13].mxu1  ;;  %2619 = vrot.lane.b32.xlu0 %v2595_v44, %s5958_s27  ;;  %3033 = vrot.lane.b32.xlu1 %v2997_v31, %s5958_s27  ;;  %v7875_v44 = vpop.permute.xlu1 %3181  ;;  %v7877_v31 = vmin.f32 %v2110_v53, 6.0  ;;  %v2085_v53 = vadd.f32 %v2084_v59, %v7559_v19 }
 0x4c7   : > { %v7865_v17 = vpop.f32.mrb[14].mxu1  ;;  %10299 = vst [vmem:[#allocation39_spill] sm:$0xff] %v7875_v44  ;;  %v7883_v4 = vpop.permute.xlu0 %3394  ;;  %v2087_v44 = vadd.f32 %v2086_v22, %v7559_v19 }
 0x4c8   : > { %v7867_v39 = vpop.f32.mrb[15].mxu1  ;;  %10300 = vst [vmem:[#allocation40_spill] sm:$0xff] %v7883_v4  ;;  %v2998_v61 = vmul.f32 %v7573_v18, %v7877_v31  ;;  %v2596_v4 = vmul.f32 %v7569_v25, %v7877_v31  ;;  %v2710_v59 = vmul.f32 %v7603_v5, %v7877_v31  ;;  %v2392_v22 = vmul.f32 %v7689_v56, %v7877_v31 }
 0x4c9   : > { %v2112_v18 = vmax.f32 %v2087_v44, 0.0 }
 0x4ca   : > { %2267 = vrot.lane.b32.xlu0 %v2230_v60, %s5958_s27  ;;  %2745 = vrot.lane.b32.xlu1 %v2709_v40, %s5959_s28  ;;  %v7893_v40 = vpop.permute.xlu1 %3049 }
 0x4cb   : > { %10301 = vst [vmem:[#allocation41_spill] sm:$0xff] %v7893_v40  ;;  %v2231_v40 = vmul.f32 %v7681_v11, %v7877_v31  ;;  %v7927_v11 = vmin.f32 %v2112_v18, 6.0 }
 0x4cd   : > { %v7885_v49 = vpop.f32.mrb[16].mxu1 }
 0x4ce   : > { %v7887_v58 = vpop.f32.mrb[17].mxu1  ;;  %2427 = vrot.lane.b32.xlu0 %v2391_v6, %s5959_s28  ;;  %3177 = vrot.lane.b32.xlu1 %v3141_v21, %s5959_s28  ;;  %v7904_v6 = vpop.permute.xlu0 %2295  ;;  %v2111_v21 = vmax.f32 %v2085_v53, 0.0  ;;  %v2598_v53 = vmul.f32 %v7617_v52, %v7927_v11 }
 0x4cf   : > { %v7891_v60 = vpop.f32.mrb[18].mxu1  ;;  %10302 = vst [vmem:[#allocation42_spill] sm:$0xff] %v7904_v6  ;;  %v7911_v47 = vpop.permute.xlu1 %2761 }
 0x4d0   : > { %v7896_v55 = vpop.f32.mrb[19].mxu1  ;;  %v7915_v25 = vmin.f32 %v2111_v21, 6.0 }
 0x4d2   : > { %3035 = vrot.lane.b32.xlu0 %v2998_v61, %s5958_s27  ;;  %2621 = vrot.lane.b32.xlu1 %v2596_v4, %s5958_s27  ;;  %v3142_v4 = vmul.f32 %v7597_v57, %v7877_v31  ;;  %v7921_v19 = vpop.permute.xlu0 %2461  ;;  %v2597_v61 = vmul.f32 %v7617_v52, %v7915_v25  ;;  %v2394_v44 = vmul.f32 %v7693_v29, %v7915_v25 }
 0x4d3   : > { %10303 = vst [vmem:[#allocation43_spill] sm:$0xff] %v7921_v19  ;;  %v7925_v5 = vpop.permute.xlu1 %3193  ;;  %v2712_v21 = vmul.f32 %v7585_v16, %v7915_v25  ;;  %v3144_v52 = vmul.f32 %v7641_v9, %v7915_v25  ;;  %v2557_v19 = vmul.f32 %v7699_v30, %v7915_v25 }
 0x4d6   : > { %2747 = vrot.lane.b32.xlu0 %v2710_v59, %s5959_s28  ;;  %2269 = vrot.lane.b32.xlu1 %v2231_v40, %s5958_s27  ;;  %v7935_v57 = vpop.permute.xlu0 %3402  ;;  %v3000_v40 = vmul.f32 %v7576_v12, %v7915_v25  ;;  %v3001_v59 = vmul.f32 %v7576_v12, %v7927_v11 }
 0x4d7   : > { %10304 = vst [vmem:[#allocation44_spill] sm:$0xff] %v7935_v57  ;;  %v7937_v56 = vpop.permute.xlu1 %3061  ;;  %v2955_v57 = vmul.f32 %v7579_v20, %v7709_v48 }
 0x4da   : > { %3179 = vrot.lane.b32.xlu0 %v3142_v4, %s5959_s28  ;;  %2429 = vrot.lane.b32.xlu1 %v2392_v22, %s5959_s28  ;;  %v1999_v18 = vpop.permute.xlu0 %1998 }
 0x4db   : > { %v7949_v4 = vpop.permute.xlu1 %2773  ;;  %v2091_v22 = vadd.f32 %v7855_v50, %v1999_v18  ;;  %v3145_v50 = vmul.f32 %v7641_v9, %v7927_v11 }
 0x4de   : > { %2623 = vrot.lane.b32.xlu0 %v2597_v61, %s5958_s27  ;;  %2433 = vrot.lane.b32.xlu1 %v2394_v44, %s5959_s28  ;;  %v2713_v61 = vmul.f32 %v7585_v16, %v7927_v11  ;;  %v2113_v44 = vmax.f32 %v2091_v22, 0.0  ;;  %v2234_v22 = vmul.f32 %v7697_v24, %v7927_v11 }
 0x4df   : > { %v7960_v12 = vpop.permute.xlu1 %3205 }
 0x4e0   : > { %v7969_v16 = vmin.f32 %v2113_v44, 6.0 }
 0x4e2   : > { %3039 = vrot.lane.b32.xlu0 %v3000_v40, %s5958_s27  ;;  %2625 = vrot.lane.b32.xlu1 %v2598_v53, %s5958_s27  ;;  %v2093_v40 = vadd.f32 %v7859_v38, %v1999_v18  ;;  %v2233_v53 = vmul.f32 %v7697_v24, %v7915_v25  ;;  %10305 = vst [vmem:[#allocation45_spill] sm:$0xff] %v7969_v16 }
 0x4e3   : > { %v7975_v38 = vpop.permute.xlu1 %2164  ;;  %v2236_v18 = vmul.f32 %v7716_v43, %v7969_v16 }
 0x4e6   : > { %2751 = vrot.lane.b32.xlu0 %v2712_v21, %s5959_s28  ;;  %3041 = vrot.lane.b32.xlu1 %v3001_v59, %s5958_s27  ;;  %v2114_v21 = vmax.f32 %v2093_v40, 0.0  ;;  %v2395_v59 = vmul.f32 %v7693_v29, %v7927_v11  ;;  %v2715_v40 = vmul.f32 %v7619_v35, %v7969_v16 }
 0x4e7   : > { %v7987_v29 = vpop.permute.xlu1 %2172 }
 0x4e8   : > { %v7979_v9 = vmin.f32 %v2114_v21, 6.0  ;;  %v3147_v21 = vmul.f32 %v7623_v32, %v7969_v16 }
 0x4ea   : > { %3183 = vrot.lane.b32.xlu0 %v3144_v52, %s5959_s28  ;;  %2753 = vrot.lane.b32.xlu1 %v2713_v61, %s5959_s28  ;;  %v2599_v52 = vmul.f32 %v7601_v10, %v7969_v16  ;;  %v2600_v24 = vmul.f32 %v7601_v10, %v7979_v9  ;;  %v3003_v61 = vmul.f32 %v7625_v62, %v7969_v16 }
 0x4eb   : > { %v3004_v44 = vmul.f32 %v7625_v62, %v7979_v9  ;;  %v2095_v10 = vadd.f32 %v7865_v17, %v7562_v1  ;;  %v2397_v17 = vmul.f32 %v7729_v13, %v7969_v16 }
 0x4ee   : > { %2273 = vrot.lane.b32.xlu0 %v2233_v53, %s5958_s27  ;;  %3185 = vrot.lane.b32.xlu1 %v3145_v50, %s5959_s28  ;;  %v7999_v53 = vpop.permute.xlu1 %2176  ;;  %v2716_v50 = vmul.f32 %v7619_v35, %v7979_v9 }
 0x4ef   : > { %10306 = vst [vmem:[#allocation46_spill] sm:$0xff] %v7999_v53  ;;  %v10335_v53 = vld [vmem:[#allocation7_spill] sm:$0xff] }
 0x4f2   : > { %2435 = vrot.lane.b32.xlu0 %v2395_v59, %s5959_s28  ;;  %2275 = vrot.lane.b32.xlu1 %v2234_v22, %s5958_s27  ;;  %v8011_v62 = vpop.permute.xlu1 %2184  ;;  %v2115_v59 = vmax.f32 %v2095_v10, 0.0  ;;  %v2097_v22 = vadd.f32 %v7867_v39, %v7562_v1 }
 0x4f3   : > { %10307 = vst [vmem:[#allocation47_spill] sm:$0xff] %v8011_v62 }
 0x4f4   : > { %v8021_v35 = vmin.f32 %v2115_v59, 6.0  ;;  %v2101_v59 = vadd.f32 %v7885_v49, %v7565_v63 }
 0x4f6   : > { %2279 = vrot.lane.b32.xlu0 %v2236_v18, %s5958_s27  ;;  %2627 = vrot.lane.b32.xlu1 %v2599_v52, %s5958_s27  ;;  %v3148_v18 = vmul.f32 %v7623_v32, %v7979_v9  ;;  %v2116_v52 = vmax.f32 %v2097_v22, 0.0  ;;  %v8027_v1 = vpop.permute.xlu1 %2271  ;;  %v3006_v39 = vmul.f32 %v7614_v3, %v8021_v35  ;;  %v2239_v22 = vmul.f32 %v7725_v51, %v8021_v35 }
 0x4f7   : > { %v2400_v49 = vmul.f32 %v7733_v23, %v8021_v35 }
 0x4f8   : > { %v8031_v32 = vmin.f32 %v2116_v52, 6.0 }
 0x4fa   : > { %2629 = vrot.lane.b32.xlu0 %v2600_v24, %s5958_s27  ;;  %3045 = vrot.lane.b32.xlu1 %v3003_v61, %s5958_s27  ;;  %v2398_v24 = vmul.f32 %v7729_v13, %v7979_v9  ;;  %v2237_v61 = vmul.f32 %v7716_v43, %v7979_v9  ;;  %v8039_v13 = vpop.permute.xlu1 %2437  ;;  %v2718_v43 = vmul.f32 %v7612_v36, %v8021_v35 }
 0x4fe   : > { %3047 = vrot.lane.b32.xlu0 %v3004_v44, %s5958_s27  ;;  %2757 = vrot.lane.b32.xlu1 %v2715_v40, %s5959_s28  ;;  %v2601_v44 = vmul.f32 %v7609_v26, %v8021_v35  ;;  %v3007_v40 = vmul.f32 %v7614_v3, %v8031_v32  ;;  %v8047_v10 = vpop.permute.xlu1 %3386  ;;  %v2103_v3 = vadd.f32 %v7887_v58, %v7565_v63 }
 0x4ff   : > { %v2240_v63 = vmul.f32 %v7725_v51, %v8031_v32 }
 0x500   : > { %v2118_v52 = vmax.f32 %v2103_v3, 0.0 }
 0x502   : > { %2759 = vrot.lane.b32.xlu0 %v2716_v50, %s5959_s28  ;;  %3189 = vrot.lane.b32.xlu1 %v3147_v21, %s5959_s28  ;;  %v3150_v50 = vmul.f32 %v7631_v54, %v8021_v35  ;;  %v2719_v21 = vmul.f32 %v7612_v36, %v8031_v32  ;;  %v2117_v36 = vmax.f32 %v2101_v59, 0.0 }
 0x506   : > { %3191 = vrot.lane.b32.xlu0 %v3148_v18, %s5959_s28  ;;  %2439 = vrot.lane.b32.xlu1 %v2397_v17, %s5959_s28  ;;  %v3151_v18 = vmul.f32 %v7631_v54, %v8031_v32  ;;  %v8063_v17 = vpop.permute.xlu1 %2277  ;;  %v8075_v54 = vmin.f32 %v2117_v36, 6.0 }
 0x507   : > { %10308 = vst [vmem:[#allocation48_spill] sm:$0xff] %v8063_v17 }
 0x508   : > { %10310 = vst [vmem:[#allocation50_spill] sm:$0xff] %v8075_v54 }
 0x50a   : > { %2441 = vrot.lane.b32.xlu0 %v2398_v24, %s5959_s28  ;;  %2281 = vrot.lane.b32.xlu1 %v2237_v61, %s5958_s27  ;;  %v8071_v58 = vpop.permute.xlu1 %2443  ;;  %v8077_v24 = vmin.f32 %v2118_v52, 6.0  ;;  %v2602_v61 = vmul.f32 %v7609_v26, %v8031_v32  ;;  %v2242_v52 = vmul.f32 %v7721_v45, %v8075_v54 }
 0x50b   : > { %10309 = vst [vmem:[#allocation49_spill] sm:$0xff] %v8071_v58 }
 0x50c   : > { %v3010_v26 = vmul.f32 %v7647_v41, %v8077_v24  ;;  %v3154_v3 = vmul.f32 %v7661_v7, %v8077_v24  ;;  %v2243_v36 = vmul.f32 %v7721_v45, %v8077_v24 }
 0x50e   : > { %3051 = vrot.lane.b32.xlu0 %v3006_v39, %s5958_s27  ;;  %2631 = vrot.lane.b32.xlu1 %v2601_v44, %s5958_s27  ;;  %v2401_v39 = vmul.f32 %v7733_v23, %v8031_v32  ;;  %v8085_v51 = vpop.permute.xlu1 %3390  ;;  %v2604_v44 = vmul.f32 %v7621_v37, %v8077_v24  ;;  %v3009_v23 = vmul.f32 %v7647_v41, %v8075_v54 }
 0x50f   : > { %10311 = vst [vmem:[#allocation51_spill] sm:$0xff] %v8085_v51 }
 0x512   : > { %2763 = vrot.lane.b32.xlu0 %v2718_v43, %s5959_s28  ;;  %3053 = vrot.lane.b32.xlu1 %v3007_v40, %s5958_s27  ;;  %v2603_v43 = vmul.f32 %v7621_v37, %v8075_v54  ;;  %v8097_v40 = vpop.permute.xlu1 %2289  ;;  %v2721_v37 = vmul.f32 %v7655_v28, %v8075_v54 }
 0x513   : > { %10312 = vst [vmem:[#allocation52_spill] sm:$0xff] %v8097_v40 }
 0x516   : > { %3195 = vrot.lane.b32.xlu0 %v3150_v50, %s5959_s28  ;;  %2765 = vrot.lane.b32.xlu1 %v2719_v21, %s5959_s28  ;;  %v2722_v50 = vmul.f32 %v7655_v28, %v8077_v24  ;;  %v2014_v21 = vpop.permute.xlu0 %2013  ;;  %v8105_v59 = vpop.permute.xlu1 %2455 }
 0x517   : > { %10313 = vst [vmem:[#allocation53_spill] sm:$0xff] %v8105_v59  ;;  %v2105_v41 = vadd.f32 %v7891_v60, %v2014_v21 }
 0x519   : > { %v2119_v28 = vmax.f32 %v2105_v41, 0.0 }
 0x51a   : > { %2285 = vrot.lane.b32.xlu0 %v2239_v22, %s5958_s27  ;;  %3197 = vrot.lane.b32.xlu1 %v3151_v18, %s5959_s28  ;;  %v3153_v22 = vmul.f32 %v7661_v7, %v8075_v54  ;;  %v8116_v18 = vpop.permute.xlu1 %3398  ;;  %v2107_v7 = vadd.f32 %v7896_v55, %v2014_v21 }
 0x51b   : > { %10314 = vst [vmem:[#allocation54_spill] sm:$0xff] %v8116_v18  ;;  %v8124_v60 = vmin.f32 %v2119_v28, 6.0 }
 0x51c   : > { %v2120_v45 = vmax.f32 %v2107_v7, 0.0 }
 0x51d   : > { %v3012_v55 = vmul.f32 %v7634_v42, %v8124_v60  ;;  %v2245_v21 = vmul.f32 %v7755_v8, %v8124_v60  ;;  %v2406_v7 = vmul.f32 %v7757_v0, %v8124_v60 }
 0x51e   : > { %2445 = vrot.lane.b32.xlu0 %v2400_v49, %s5959_s28  ;;  %2287 = vrot.lane.b32.xlu1 %v2240_v63, %s5958_s27 }
 0x522   : > { %2633 = vrot.lane.b32.xlu0 %v2602_v61, %s5958_s27  ;;  %2447 = vrot.lane.b32.xlu1 %v2401_v39, %s5959_s28  ;;  %v2404_v61 = vmul.f32 %v7764_v27, %v8077_v24  ;;  %v2403_v39 = vmul.f32 %v7764_v27, %v8075_v54 }
 0x526   : > { %2637 = vrot.lane.b32.xlu0 %v2604_v44, %s5958_s27  ;;  %2635 = vrot.lane.b32.xlu1 %v2603_v43, %s5958_s27 }
 0x52a   : > { %3059 = vrot.lane.b32.xlu0 %v3010_v26, %s5958_s27  ;;  %3057 = vrot.lane.b32.xlu1 %v3009_v23, %s5958_s27  ;;  %v2605_v26 = vmul.f32 %v7638_v33, %v8124_v60  ;;  %v8143_v23 = vmin.f32 %v2120_v45, 6.0 }
 0x52c   : > { %10315 = vst [vmem:[#allocation55_spill] sm:$0xff] %v8143_v23  ;;  %v3013_v28 = vmul.f32 %v7634_v42, %v8143_v23  ;;  %v2606_v42 = vmul.f32 %v7638_v33, %v8143_v23 }
 0x52e   : > { %2771 = vrot.lane.b32.xlu0 %v2722_v50, %s5959_s28  ;;  %2769 = vrot.lane.b32.xlu1 %v2721_v37, %s5959_s28  ;;  %v2724_v37 = vmul.f32 %v7665_v2, %v8124_v60 }
 0x532   : > { %3203 = vrot.lane.b32.xlu0 %v3154_v3, %s5959_s28  ;;  %3201 = vrot.lane.b32.xlu1 %v3153_v22, %s5959_s28  ;;  %v3156_v22 = vmul.f32 %v7673_v34, %v8124_v60 }
 0x536   : > { %2293 = vrot.lane.b32.xlu0 %v2243_v36, %s5958_s27  ;;  %2291 = vrot.lane.b32.xlu1 %v2242_v52, %s5958_s27 }
 0x538   : > { %v2620_v49 = vpop.permute.xlu0 %2619  ;;  %v8127_v63 = vpop.permute.xlu1 %3033 }
 0x53a   : > { %2453 = vrot.lane.b32.xlu0 %v2404_v61, %s5959_s28  ;;  %2451 = vrot.lane.b32.xlu1 %v2403_v39, %s5959_s28  ;;  %v2725_v61 = vmul.f32 %v7665_v2, %v8143_v23  ;;  %v2555_v2 = vmul.f32 %v7677_v14, %v7877_v31 }
 0x53c   : > { %v8135_v44 = vpop.permute.xlu0 %2267  ;;  %v2746_v43 = vpop.permute.xlu1 %2745 }
 0x53e   : > { %3063 = vrot.lane.b32.xlu0 %v3012_v55, %s5958_s27  ;;  %2639 = vrot.lane.b32.xlu1 %v2605_v26, %s5958_s27  ;;  %v3157_v55 = vmul.f32 %v7673_v34, %v8143_v23  ;;  %v2407_v34 = vmul.f32 %v7757_v0, %v8143_v23  ;;  %v2556_v0 = vmul.f32 %v7579_v20, %v7699_v30 }
 0x540   : > { %v8145_v27 = vpop.permute.xlu0 %2427  ;;  %v8147_v50 = vpop.permute.xlu1 %3177 }
 0x542   : > { %2775 = vrot.lane.b32.xlu0 %v2724_v37, %s5959_s28  ;;  %2297 = vrot.lane.b32.xlu1 %v2245_v21, %s5958_s27  ;;  %v2246_v21 = vmul.f32 %v7755_v8, %v8143_v23 }
 0x544   : > { %v3036_v41 = vpop.permute.xlu0 %3035  ;;  %v2622_v3 = vpop.permute.xlu1 %2621 }
 0x546   : > { %3207 = vrot.lane.b32.xlu0 %v3156_v22, %s5959_s28  ;;  %3065 = vrot.lane.b32.xlu1 %v3013_v28, %s5958_s27  ;;  %v2553_v22 = vmul.f32 %v7579_v20, %v7677_v14  ;;  %v2669_v28 = vadd.f32 %v2622_v3, %v2555_v2 }
 0x548   : > { %v2748_v36 = vpop.permute.xlu0 %2747  ;;  %v8161_v52 = vpop.permute.xlu1 %2269 }
 0x549   : > { %v2782_v33 = vsel %vm840_vm6, %v2748_v36, %v7857_v15  ;;  %v2554_v15 = vmul.f32 %v7677_v14, %v7848_v46  ;;  %v2781_v2 = vsel %vm840_vm6, %v2746_v43, %v2748_v36  ;;  %v2558_v36 = vmul.f32 %v7699_v30, %v7927_v11 }
 0x54a   : > { %2457 = vrot.lane.b32.xlu0 %v2406_v7, %s5959_s28  ;;  %2777 = vrot.lane.b32.xlu1 %v2725_v61, %s5959_s28  ;;  %v2667_v7 = vadd.f32 %v2620_v49, %v2553_v22  ;;  %v2643_v61 = vsel %vm677_vm7, %v2620_v49, %v2622_v3 }
 0x54b   : > { %v2668_v49 = vadd.f32 %v2643_v61, %v2554_v15  ;;  %v3069_v15 = vsel %vm677_vm7, %v8127_v63, %v3036_v41 }
 0x54c   : > { %v3180_v39 = vpop.permute.xlu0 %3179  ;;  %v8169_v45 = vpop.permute.xlu1 %2429  ;;  %v2811_v18 = vadd.f32 %v2746_v43, %v2667_v7  ;;  %v2957_v43 = vmul.f32 %v7709_v48, %v7877_v31 }
 0x54d   : > { %v2812_v7 = vadd.f32 %v2781_v2, %v2668_v49 }
 0x54e   : > { %2641 = vrot.lane.b32.xlu0 %v2606_v42, %s5958_s27  ;;  %3209 = vrot.lane.b32.xlu1 %v3157_v55, %s5959_s28  ;;  %v2813_v42 = vadd.f32 %v2782_v33, %v2669_v28  ;;  %v10316_v28 = vld [vmem:[#allocation37_spill] sm:$0xff] }
 0x54f   : > { %v3070_v14 = vsel %vm677_vm7, %v3036_v41, %v10316_v28  ;;  %v10319_v28 = vld [vmem:[#allocation30_spill] sm:$0xff] }
 0x550   : > { %v2624_v26 = vpop.permute.xlu0 %2623  ;;  %v8179_v37 = vpop.permute.xlu1 %2433 }
 0x551   : > { %v2670_v3 = vadd.f32 %v2624_v26, %v2556_v0  ;;  %v3101_v0 = vadd.f32 %v3070_v14, %v2957_v43 }
 0x552   : > { %2299 = vrot.lane.b32.xlu0 %v2246_v21, %s5958_s27  ;;  %2459 = vrot.lane.b32.xlu1 %v2407_v34, %s5959_s28  ;;  %v3099_v21 = vadd.f32 %v8127_v63, %v2955_v57  ;;  %v10317_v57 = vld [vmem:[#allocation39_spill] sm:$0xff]  ;;  %v3213_v63 = vsel %vm840_vm6, %v8147_v50, %v3180_v39 }
 0x553   : > { %v3214_v61 = vsel %vm840_vm6, %v3180_v39, %v10317_v57  ;;  %v2956_v57 = vmul.f32 %v7709_v48, %v7848_v46  ;;  %v10321_v39 = vld [vmem:[#allocation8_spill] sm:$0xff] }
 0x554   : > { %v3040_v55 = vpop.permute.xlu0 %3039  ;;  %v2626_v8 = vpop.permute.xlu1 %2625  ;;  %v3243_v34 = vadd.f32 %v8147_v50, %v3099_v21  ;;  %v3245_v41 = vadd.f32 %v3214_v61, %v3101_v0 }
 0x555   : > { %v2644_v2 = vsel %vm677_vm7, %v2624_v26, %v2626_v8  ;;  %v2672_v21 = vadd.f32 %v2626_v8, %v2558_v36  ;;  %v3100_v14 = vadd.f32 %v3069_v15, %v2956_v57  ;;  %v10322_v15 = vld [vmem:[#allocation29_spill] sm:$0xff] }
 0x556   : > { %2851 = vrot.lane.b32.xlu0 %v2813_v42, %s5963_s8  ;;  %2847 = vrot.lane.b32.xlu1 %v2811_v18, %s5963_s8  ;;  %v10318_v42 = vld [vmem:[#allocation21_spill] sm:$0xff]  ;;  %v3261_v40 = vmul.f32 %v10319_v28, %v3243_v34  ;;  %v2671_v43 = vadd.f32 %v2644_v2, %v2557_v19  ;;  %v3263_v19 = vmul.f32 %v10322_v15, %v3245_v41  ;;  %v10323_v2 = vld [vmem:[#allocation27_spill] sm:$0xff] }
 0x557   : > { %v2958_v18 = vmul.f32 %v7579_v20, %v10318_v42  ;;  %v2959_v50 = vmul.f32 %v10318_v42, %v7915_v25 }
 0x558   : > { %v2752_v22 = vpop.permute.xlu0 %2751  ;;  %v3042_v33 = vpop.permute.xlu1 %3041 }
 0x559   : > { %v2814_v6 = vadd.f32 %v2752_v22, %v2670_v3  ;;  %v3102_v34 = vadd.f32 %v3040_v55, %v2958_v18  ;;  %v3071_v48 = vsel %vm677_vm7, %v3040_v55, %v3042_v33 }
 0x55a   : > { %2849 = vrot.lane.b32.xlu1 %v2812_v7, %s5963_s8  ;;  %v10320_v7 = vld [vmem:[#allocation10_spill] sm:$0xff]  ;;  %v3103_v0 = vadd.f32 %v3071_v48, %v2959_v50 }
 0x55b   : > { %2853 = vrot.lane.b32.xlu0 %v2814_v6, %s5963_s8 }
 0x55c   : > { %v3184_v49 = vpop.permute.xlu0 %3183  ;;  %v2754_v3 = vpop.permute.xlu1 %2753 }
 0x55d   : > { %v2784_v6 = vsel %vm840_vm6, %v2754_v3, %v10320_v7  ;;  %v2783_v26 = vsel %vm840_vm6, %v2752_v22, %v2754_v3  ;;  %v3244_v7 = vadd.f32 %v3213_v63, %v3100_v14  ;;  %v3072_v22 = vsel %vm677_vm7, %v3042_v33, %v10321_v39 }
 0x55e   : > { %v2816_v8 = vadd.f32 %v2784_v6, %v2672_v21  ;;  %3297 = vrot.lane.b32.xlu1 %v3261_v40, %s5964_s9  ;;  %v2815_v61 = vadd.f32 %v2783_v26, %v2671_v43  ;;  %v2960_v40 = vmul.f32 %v10318_v42, %v7927_v11  ;;  %v3246_v18 = vadd.f32 %v3184_v49, %v3102_v34  ;;  %v10324_v6 = vld [vmem:[#allocation31_spill] sm:$0xff] }
 0x55f   : > { %v3262_v63 = vmul.f32 %v3244_v7, %v10324_v6 }
 0x560   : > { %v8230_v36 = vpop.permute.xlu0 %2273  ;;  %2857 = vrot.lane.b32.xlu0 %v2816_v8, %s5963_s8  ;;  %v3186_v30 = vpop.permute.xlu1 %3185  ;;  %v3104_v3 = vadd.f32 %v3072_v22, %v2960_v40  ;;  %v3264_v42 = vmul.f32 %v10319_v28, %v3246_v18 }
 0x561   : > { %v3215_v55 = vsel %vm840_vm6, %v3184_v49, %v3186_v30  ;;  %v3216_v21 = vsel %vm840_vm6, %v3186_v30, %v10323_v2  ;;  %v10325_v30 = vld [vmem:[#allocation23_spill] sm:$0xff] }
 0x562   : > { %2855 = vrot.lane.b32.xlu1 %v2815_v61, %s5963_s8  ;;  %v3247_v41 = vadd.f32 %v3215_v55, %v3103_v0  ;;  %v3248_v26 = vadd.f32 %v3216_v21, %v3104_v3  ;;  %v2559_v7 = vmul.f32 %v7579_v20, %v10325_v30  ;;  %v2560_v40 = vmul.f32 %v10325_v30, %v7969_v16  ;;  %v10326_v55 = vld [vmem:[#allocation18_spill] sm:$0xff] }
 0x563   : > { %v2561_v18 = vmul.f32 %v10325_v30, %v7979_v9  ;;  %v2961_v0 = vmul.f32 %v7579_v20, %v10326_v55 }
 0x564   : > { %v8244_v57 = vpop.permute.xlu0 %2435  ;;  %3301 = vrot.lane.b32.xlu0 %v3263_v19, %s5964_s9  ;;  %v8247_v33 = vpop.permute.xlu1 %2275  ;;  %v3265_v14 = vmul.f32 %v3247_v41, %v10324_v6  ;;  %v3266_v43 = vmul.f32 %v10322_v15, %v3248_v26 }
 0x566   : > { %3299 = vrot.lane.b32.xlu1 %v3262_v63, %s5964_s9 }
 0x568   : > { %v8252_v49 = vpop.permute.xlu0 %2279  ;;  %3303 = vrot.lane.b32.xlu0 %v3264_v42, %s5964_s9  ;;  %v2628_v8 = vpop.permute.xlu1 %2627 }
 0x569   : > { %v2673_v50 = vadd.f32 %v2628_v8, %v2559_v7 }
 0x56a   : > { %3305 = vrot.lane.b32.xlu1 %v3265_v14, %s5964_s9 }
 0x56c   : > { %v2630_v34 = vpop.permute.xlu0 %2629  ;;  %3307 = vrot.lane.b32.xlu0 %v3266_v43, %s5964_s9  ;;  %v3046_v48 = vpop.permute.xlu1 %3045 }
 0x56d   : > { %v2645_v61 = vsel %vm677_vm7, %v2628_v8, %v2630_v34  ;;  %v2675_v21 = vadd.f32 %v2630_v34, %v2561_v18  ;;  %v3105_v3 = vadd.f32 %v3046_v48, %v2961_v0 }
 0x56e   : > { %v2674_v2 = vadd.f32 %v2645_v61, %v2560_v40  ;;  %v8282_v61 = vld [vmem:[#allocation2 + $0x18] sm:$0xff] }
 0x570   : > { %v3048_v39 = vpop.permute.xlu0 %3047  ;;  %v2758_v22 = vpop.permute.xlu1 %2757 }
 0x571   : > { %v2817_v19 = vadd.f32 %v2758_v22, %v2673_v50  ;;  %v3073_v62 = vsel %vm677_vm7, %v3046_v48, %v3048_v39 }
 0x573   : > { %2859 = vrot.lane.b32.xlu1 %v2817_v19, %s5963_s8  ;;  %v10329_v19 = vld [vmem:[#allocation19_spill] sm:$0xff] }
 0x574   : > { %v2760_v63 = vpop.permute.xlu0 %2759  ;;  %v3190_v41 = vpop.permute.xlu1 %3189  ;;  %v2562_v40 = vmul.f32 %v8282_v61, %v10329_v19  ;;  %v2563_v51 = vmul.f32 %v10329_v19, %v8021_v35 }
 0x575   : > { %v2785_v42 = vsel %vm840_vm6, %v2758_v22, %v2760_v63  ;;  %v2786_v26 = vsel %vm840_vm6, %v2760_v63, %v7911_v47  ;;  %v3249_v43 = vadd.f32 %v3190_v41, %v3105_v3 }
 0x576   : > { %v2818_v8 = vadd.f32 %v2785_v42, %v2674_v2  ;;  %v2819_v14 = vadd.f32 %v2786_v26, %v2675_v21 }
 0x577   : > { %v3267_v34 = vmul.f32 %v10319_v28, %v3249_v43  ;;  %v10333_v43 = vld [vmem:[#allocation41_spill] sm:$0xff] }
 0x578   : > { %v3192_v7 = vpop.permute.xlu0 %3191  ;;  %2863 = vrot.lane.b32.xlu0 %v2819_v14, %s5963_s8  ;;  %2861 = vrot.lane.b32.xlu1 %v2818_v8, %s5963_s8  ;;  %v8274_v20 = vpop.permute.xlu1 %2439 }
 0x579   : > { %10327 = vst [vmem:[#allocation37_spill] sm:$0xff] %v8274_v20  ;;  %v3218_v59 = vsel %vm840_vm6, %v3192_v7, %v7925_v5  ;;  %v3217_v20 = vsel %vm840_vm6, %v3190_v41, %v3192_v7  ;;  %v2965_v41 = vmul.f32 %v10335_v53, %v8021_v35 }
 0x57c   : > { %v8277_v30 = vpop.permute.xlu0 %2441  ;;  %3309 = vrot.lane.b32.xlu1 %v3267_v34, %s5964_s9  ;;  %v8280_v50 = vpop.permute.xlu1 %2281  ;;  %v3074_v34 = vsel %vm677_vm7, %v3048_v39, %v10333_v43 }
 0x57d   : > { %10328 = vst [vmem:[#allocation39_spill] sm:$0xff] %v8277_v30 }
 0x580   : > { %v3052_v22 = vpop.permute.xlu0 %3051  ;;  %v2632_v47 = vpop.permute.xlu1 %2631 }
 0x581   : > { %v2676_v18 = vadd.f32 %v2632_v47, %v2562_v40  ;;  %v2963_v40 = vmul.f32 %v10326_v55, %v7979_v9 }
 0x583   : > { %v3107_v43 = vadd.f32 %v3074_v34, %v2963_v40 }
 0x584   : > { %v2764_v0 = vpop.permute.xlu0 %2763  ;;  %v3054_v2 = vpop.permute.xlu1 %3053 }
 0x585   : > { %v2820_v21 = vadd.f32 %v2764_v0, %v2676_v18  ;;  %v2564_v18 = vmul.f32 %v10329_v19, %v8031_v32  ;;  %v3251_v58 = vadd.f32 %v3218_v59, %v3107_v43  ;;  %v3075_v19 = vsel %vm677_vm7, %v3052_v22, %v3054_v2 }
 0x586   : > { %v3109_v59 = vadd.f32 %v3075_v19, %v2965_v41 }
 0x587   : > { %2865 = vrot.lane.b32.xlu0 %v2820_v21, %s5963_s8  ;;  %v2962_v21 = vmul.f32 %v10326_v55, %v7969_v16  ;;  %v10336_v55 = vld [vmem:[#allocation11_spill] sm:$0xff] }
 0x588   : > { %v3196_v3 = vpop.permute.xlu0 %3195  ;;  %v2766_v63 = vpop.permute.xlu1 %2765 }
 0x589   : > { %v3106_v17 = vadd.f32 %v3073_v62, %v2962_v21  ;;  %v2788_v30 = vsel %vm840_vm6, %v2766_v63, %v10336_v55  ;;  %v2787_v16 = vsel %vm840_vm6, %v2764_v0, %v2766_v63  ;;  %v10338_v0 = vld [vmem:[#allocation4_spill] sm:$0xff] }
 0x58b   : > { %v3250_v34 = vadd.f32 %v3217_v20, %v3106_v17  ;;  %v2966_v17 = vmul.f32 %v10335_v53, %v8031_v32 }
 0x58c   : > { %v8287_v42 = vpop.permute.xlu0 %2285  ;;  %v3198_v26 = vpop.permute.xlu1 %3197 }
 0x58d   : > { %10330 = vst [vmem:[#allocation21_spill] sm:$0xff] %v8287_v42  ;;  %v2964_v42 = vmul.f32 %v8282_v61, %v10335_v53  ;;  %v3219_v40 = vsel %vm840_vm6, %v3196_v3, %v3198_v26 }
 0x58e   : > { %v3253_v63 = vadd.f32 %v3219_v40, %v3109_v59 }
 0x590   : > { %v8289_v8 = vpop.permute.xlu0 %2445  ;;  %v8291_v14 = vpop.permute.xlu1 %2287  ;;  %v3271_v53 = vmul.f32 %v3253_v63, %v10324_v6 }
 0x591   : > { %10331 = vst [vmem:[#allocation30_spill] sm:$0xff] %v8289_v8  ;;  %10332 = vst [vmem:[#allocation10_spill] sm:$0xff] %v8291_v14 }
 0x594   : > { %v2634_v8 = vpop.permute.xlu0 %2633  ;;  %v8306_v14 = vpop.permute.xlu1 %2447 }
 0x595   : > { %10334 = vst [vmem:[#allocation8_spill] sm:$0xff] %v8306_v14  ;;  %v2646_v48 = vsel %vm677_vm7, %v2632_v47, %v2634_v8  ;;  %v2678_v39 = vadd.f32 %v2634_v8, %v2564_v18  ;;  %v3108_v8 = vadd.f32 %v3052_v22, %v2964_v42  ;;  %v10337_v18 = vld [vmem:[#allocation16_spill] sm:$0xff]  ;;  %v3220_v22 = vsel %vm840_vm6, %v3198_v26, %v10338_v0 }
 0x596   : > { %v2677_v5 = vadd.f32 %v2646_v48, %v2563_v51  ;;  %v3076_v51 = vsel %vm677_vm7, %v3054_v2, %v10337_v18 }
 0x597   : > { %v2822_v14 = vadd.f32 %v2788_v30, %v2678_v39  ;;  %v3269_v30 = vmul.f32 %v10322_v15, %v3251_v58  ;;  %v3252_v20 = vadd.f32 %v3196_v3, %v3108_v8  ;;  %v3110_v21 = vadd.f32 %v3076_v51, %v2966_v17  ;;  %v10339_v3 = vld [vmem:[#allocation28_spill] sm:$0xff] }
 0x598   : > { %v2821_v7 = vadd.f32 %v2787_v16, %v2677_v5  ;;  %v2638_v47 = vpop.permute.xlu0 %2637  ;;  %v2636_v62 = vpop.permute.xlu1 %2635  ;;  %v3268_v16 = vmul.f32 %v3250_v34, %v10324_v6  ;;  %v2565_v43 = vmul.f32 %v8282_v61, %v10339_v3  ;;  %v2567_v5 = vmul.f32 %v10339_v3, %v8077_v24 }
 0x599   : > { %2869 = vrot.lane.b32.xlu0 %v2822_v14, %s5963_s8  ;;  %v3270_v58 = vmul.f32 %v10319_v28, %v3252_v20  ;;  %v3254_v2 = vadd.f32 %v3220_v22, %v3110_v21  ;;  %v2647_v19 = vsel %vm677_vm7, %v2636_v62, %v2638_v47  ;;  %v2566_v34 = vmul.f32 %v10339_v3, %v8075_v54  ;;  %v10342_v22 = vld [vmem:[#allocation33_spill] sm:$0xff] }
 0x59a   : > { %2867 = vrot.lane.b32.xlu1 %v2821_v7, %s5963_s8  ;;  %v2679_v26 = vadd.f32 %v2636_v62, %v2565_v43  ;;  %v2681_v18 = vadd.f32 %v2638_v47, %v2567_v5  ;;  %v2568_v63 = vmul.f32 %v8282_v61, %v10342_v22 }
 0x59b   : > { %v3272_v55 = vmul.f32 %v10322_v15, %v3254_v2  ;;  %v2680_v59 = vadd.f32 %v2647_v19, %v2566_v34  ;;  %v2570_v34 = vmul.f32 %v10342_v22, %v8143_v23 }
 0x59c   : > { %v3060_v42 = vpop.permute.xlu0 %3059  ;;  %v8329_v14 = vpop.permute.xlu1 %3057 }
 0x59d   : > { %3313 = vrot.lane.b32.xlu0 %v3269_v30, %s5964_s9  ;;  %v3077_v19 = vsel %vm677_vm7, %v8329_v14, %v3060_v42 }
 0x59e   : > { %3311 = vrot.lane.b32.xlu1 %v3268_v16, %s5964_s9 }
 0x5a0   : > { %v2772_v48 = vpop.permute.xlu0 %2771  ;;  %v2770_v39 = vpop.permute.xlu1 %2769 }
 0x5a1   : > { %3315 = vrot.lane.b32.xlu0 %v3270_v58, %s5964_s9  ;;  %v2790_v41 = vsel %vm840_vm6, %v2772_v48, %v7949_v4  ;;  %v2823_v7 = vadd.f32 %v2770_v39, %v2679_v26  ;;  %v2789_v51 = vsel %vm840_vm6, %v2770_v39, %v2772_v48  ;;  %v3078_v26 = vsel %vm677_vm7, %v3060_v42, %v7937_v56 }
 0x5a2   : > { %3317 = vrot.lane.b32.xlu1 %v3271_v53, %s5964_s9  ;;  %v2825_v30 = vadd.f32 %v2790_v41, %v2681_v18  ;;  %v2824_v62 = vadd.f32 %v2789_v51, %v2680_v59  ;;  %v10346_v18 = vld [vmem:[#allocation35_spill] sm:$0xff]  ;;  %v2569_v56 = vmul.f32 %v10342_v22, %v8124_v60 }
 0x5a3   : > { %v2972_v51 = vmul.f32 %v10346_v18, %v8143_v23 }
 0x5a4   : > { %v3204_v8 = vpop.permute.xlu0 %3203  ;;  %v8347_v40 = vpop.permute.xlu1 %3201 }
 0x5a5   : > { %3319 = vrot.lane.b32.xlu0 %v3272_v55, %s5964_s9  ;;  %v10345_v55 = vld [vmem:[#allocation25_spill] sm:$0xff]  ;;  %v3221_v42 = vsel %vm840_vm6, %v8347_v40, %v3204_v8 }
 0x5a6   : > { %2871 = vrot.lane.b32.xlu1 %v2823_v7, %s5963_s8  ;;  %v2969_v5 = vmul.f32 %v10345_v55, %v8077_v24  ;;  %v2968_v41 = vmul.f32 %v10345_v55, %v8075_v54  ;;  %v3222_v7 = vsel %vm840_vm6, %v3204_v8, %v7960_v12  ;;  %v10348_v12 = vld [vmem:[#allocation6_spill] sm:$0xff]  ;;  %v2971_v8 = vmul.f32 %v10346_v18, %v8124_v60 }
 0x5a8   : > { %v8352_v17 = vpop.permute.xlu0 %2293  ;;  %v8354_v20 = vpop.permute.xlu1 %2291 }
 0x5a9   : > { %2875 = vrot.lane.b32.xlu0 %v2825_v30, %s5963_s8  ;;  %v3113_v30 = vadd.f32 %v3078_v26, %v2969_v5 }
 0x5aa   : > { %2873 = vrot.lane.b32.xlu1 %v2824_v62, %s5963_s8 }
 0x5ab   : > { %v3257_v54 = vadd.f32 %v3222_v7, %v3113_v30 }
 0x5ac   : > { %v8358_v4 = vpop.permute.xlu0 %2453  ;;  %v8360_v47 = vpop.permute.xlu1 %2451 }
 0x5ad   : > { %10340 = vst [vmem:[#allocation27_spill] sm:$0xff] %v8358_v4  ;;  %10341 = vst [vmem:[#allocation23_spill] sm:$0xff] %v8360_v47 }
 0x5b0   : > { %v3064_v16 = vpop.permute.xlu0 %3063  ;;  %v2640_v0 = vpop.permute.xlu1 %2639 }
 0x5b1   : > { %v2682_v21 = vadd.f32 %v2640_v0, %v2568_v63 }
 0x5b4   : > { %v2776_v58 = vpop.permute.xlu0 %2775  ;;  %v8364_v2 = vpop.permute.xlu1 %2297 }
 0x5b5   : > { %10343 = vst [vmem:[#allocation18_spill] sm:$0xff] %v8364_v2  ;;  %v2826_v53 = vadd.f32 %v2776_v58, %v2682_v21 }
 0x5b7   : > { %2877 = vrot.lane.b32.xlu0 %v2826_v53, %s5963_s8  ;;  %v3112_v53 = vadd.f32 %v3077_v19, %v2968_v41 }
 0x5b8   : > { %v3208_v3 = vpop.permute.xlu0 %3207  ;;  %v3066_v43 = vpop.permute.xlu1 %3065 }
 0x5b9   : > { %v3079_v4 = vsel %vm677_vm7, %v3064_v16, %v3066_v43  ;;  %v3256_v5 = vadd.f32 %v3221_v42, %v3112_v53 }
 0x5bc   : > { %v8367_v48 = vpop.permute.xlu0 %2457  ;;  %v2778_v39 = vpop.permute.xlu1 %2777 }
 0x5bd   : > { %10344 = vst [vmem:[#allocation19_spill] sm:$0xff] %v8367_v48  ;;  %v10347_v48 = vld [vmem:[#allocation14_spill] sm:$0xff]  ;;  %v2792_v47 = vsel %vm840_vm6, %v2778_v39, %v10348_v12  ;;  %v2791_v22 = vsel %vm840_vm6, %v2776_v58, %v2778_v39  ;;  %v2967_v39 = vmul.f32 %v8282_v61, %v10345_v55  ;;  %v2189_v55 = vmul.f32 %v7975_v38, %v7877_v31  ;;  %v10351_v12 = vld [vmem:[#allocation13_spill] sm:$0xff] }
 0x5be   : > { %v3080_v2 = vsel %vm677_vm7, %v3066_v43, %v10347_v48  ;;  %v3115_v43 = vadd.f32 %v3079_v4, %v2971_v8  ;;  %v2301_v31 = vsel %vm677_vm7, %v10351_v12, %v8135_v44  ;;  %v10352_v8 = vld [vmem:[#allocation20_spill] sm:$0xff] }
 0x5bf   : > { %v3116_v48 = vadd.f32 %v3080_v2, %v2972_v51  ;;  %v3274_v2 = vmul.f32 %v3256_v5, %v10324_v6  ;;  %v3111_v4 = vadd.f32 %v8329_v14, %v2967_v39  ;;  %v2302_v14 = vsel %vm677_vm7, %v8135_v44, %v8161_v52 }
 0x5c0   : > { %v2642_v59 = vpop.permute.xlu0 %2641  ;;  %v3210_v21 = vpop.permute.xlu1 %3209  ;;  %v2187_v5 = vmul.f32 %v8282_v61, %v7975_v38 }
 0x5c1   : > { %v2648_v62 = vsel %vm677_vm7, %v2640_v0, %v2642_v59  ;;  %v2684_v63 = vadd.f32 %v2642_v59, %v2570_v34  ;;  %v10349_v34 = vld [vmem:[#allocation15_spill] sm:$0xff]  ;;  %v3223_v59 = vsel %vm840_vm6, %v3208_v3, %v3210_v21 }
 0x5c2   : > { %v2683_v23 = vadd.f32 %v2648_v62, %v2569_v56  ;;  %v3224_v19 = vsel %vm840_vm6, %v3210_v21, %v10349_v34  ;;  %v3259_v7 = vadd.f32 %v3223_v59, %v3115_v43  ;;  %v2463_v34 = vsel %vm840_vm6, %v8145_v27, %v8169_v45 }
 0x5c3   : > { %v2828_v26 = vadd.f32 %v2792_v47, %v2684_v63  ;;  %v3275_v47 = vmul.f32 %v10322_v15, %v3257_v54  ;;  %v3260_v58 = vadd.f32 %v3224_v19, %v3116_v48  ;;  %v2192_v48 = vmul.f32 %v10352_v8, %v7927_v11 }
 0x5c4   : > { %v2827_v0 = vadd.f32 %v2791_v22, %v2683_v23  ;;  %v8398_v41 = vpop.permute.xlu0 %2299  ;;  %v8401_v56 = vpop.permute.xlu1 %2459  ;;  %v2970_v23 = vmul.f32 %v8282_v61, %v10346_v18  ;;  %v3255_v18 = vadd.f32 %v8347_v40, %v3111_v4  ;;  %v3277_v63 = vmul.f32 %v3259_v7, %v10324_v6 }
 0x5c5   : > { %2881 = vrot.lane.b32.xlu0 %v2828_v26, %s5963_s8  ;;  %v3278_v62 = vmul.f32 %v10322_v15, %v3260_v58  ;;  %v2333_v22 = vadd.f32 %v8161_v52, %v2189_v55  ;;  %v2336_v58 = vadd.f32 %v8247_v33, %v2192_v48  ;;  %v2466_v11 = vsel %vm840_vm6, %v8244_v57, %v8039_v13 }
 0x5c6   : > { %2879 = vrot.lane.b32.xlu1 %v2827_v0, %s5963_s8  ;;  %v3114_v30 = vadd.f32 %v3064_v16, %v2970_v23  ;;  %v2188_v16 = vmul.f32 %v7975_v38, %v7848_v46  ;;  %v2303_v46 = vsel %vm677_vm7, %v8027_v1, %v8230_v36  ;;  %v2190_v0 = vmul.f32 %v8282_v61, %v10352_v8 }
 0x5c7   : > { %v3273_v44 = vmul.f32 %v10319_v28, %v3255_v18  ;;  %v2304_v1 = vsel %vm677_vm7, %v8230_v36, %v8247_v33  ;;  %v2331_v38 = vadd.f32 %v2301_v31, %v2187_v5  ;;  %v10353_v36 = vld [vmem:[#allocation17_spill] sm:$0xff]  ;;  %v2498_v33 = vadd.f32 %v2466_v11, %v2336_v58 }
 0x5c8   : > { %v2852_v51 = vpop.permute.xlu0 %2851  ;;  %v2848_v42 = vpop.permute.xlu1 %2847  ;;  %v3258_v54 = vadd.f32 %v3208_v3, %v3114_v30  ;;  %v10350_v3 = vld [vmem:[#allocation32_spill] sm:$0xff]  ;;  %v2332_v19 = vadd.f32 %v2302_v14, %v2188_v16  ;;  %v2334_v43 = vadd.f32 %v2303_v46, %v2190_v0 }
 0x5c9   : > { %3325 = vrot.lane.b32.xlu0 %v3275_v47, %s5964_s9  ;;  %v2464_v40 = vsel %vm840_vm6, %v8169_v45, %v10350_v3  ;;  %v2191_v47 = vmul.f32 %v10352_v8, %v7915_v25  ;;  %v2493_v30 = vadd.f32 %v8145_v27, %v2331_v38  ;;  %v10355_v27 = vld [vmem:[#allocation26_spill] sm:$0xff] }
 0x5ca   : > { %3323 = vrot.lane.b32.xlu1 %v3274_v2, %s5964_s9  ;;  %v3276_v26 = vmul.f32 %v10319_v28, %v3258_v54  ;;  %v2495_v52 = vadd.f32 %v2464_v40, %v2333_v22  ;;  %v2494_v23 = vadd.f32 %v2463_v34, %v2332_v19  ;;  %v2496_v4 = vadd.f32 %v8179_v37, %v2334_v43  ;;  %v10356_v34 = vld [vmem:[#allocation34_spill] sm:$0xff] }
 0x5cb   : > { %v2335_v39 = vadd.f32 %v2304_v1, %v2191_v47  ;;  %v2511_v12 = vmul.f32 %v10355_v27, %v2493_v30 }
 0x5cc   : > { %v2850_v21 = vpop.permute.xlu1 %2849  ;;  %v2513_v2 = vmul.f32 %v10353_v36, %v2495_v52  ;;  %v2514_v31 = vmul.f32 %v10355_v27, %v2496_v4 }
 0x5cd   : > { %v2854_v53 = vpop.permute.xlu0 %2853  ;;  %3331 = vrot.lane.b32.xlu0 %v3278_v62, %s5964_s9  ;;  %v2884_v25 = vsel %vm1272_vm9, %v2850_v21, %v2852_v51  ;;  %v2465_v62 = vsel %vm840_vm6, %v8179_v37, %v8244_v57  ;;  %v2883_v16 = vsel %vm1272_vm9, %v2848_v42, %v2850_v21  ;;  %v2516_v37 = vmul.f32 %v10353_v36, %v2498_v33 }
 0x5ce   : > { %3329 = vrot.lane.b32.xlu1 %v3277_v63, %s5964_s9  ;;  %v2915_v18 = vadd.f32 %v2852_v51, %v2513_v2  ;;  %v10354_v63 = vld [vmem:[#allocation12_spill] sm:$0xff]  ;;  %v2497_v13 = vadd.f32 %v2465_v62, %v2335_v39  ;;  %v2913_v42 = vadd.f32 %v2883_v16, %v2511_v12 }
 0x5cf   : > { %v2512_v55 = vmul.f32 %v2494_v23, %v10354_v63 }
 0x5d0   : > { %v3298_v59 = vpop.permute.xlu1 %3297  ;;  %v2515_v21 = vmul.f32 %v2497_v13, %v10354_v63 }
 0x5d1   : > { %3327 = vrot.lane.b32.xlu0 %v3276_v26, %s5964_s9  ;;  %v2914_v14 = vadd.f32 %v2884_v25, %v2512_v55 }
 0x5d2   : > { %v2858_v45 = vpop.permute.xlu0 %2857  ;;  %3321 = vrot.lane.b32.xlu1 %v3273_v44, %s5964_s9 }
 0x5d3   : > { %v2918_v8 = vadd.f32 %v2858_v45, %v2516_v37 }
 0x5d4   : > { %v2856_v7 = vpop.permute.xlu1 %2855 }
 0x5d5   : > { %v2885_v22 = vsel %vm1272_vm9, %v2854_v53, %v2856_v7  ;;  %v2886_v57 = vsel %vm1272_vm9, %v2856_v7, %v2858_v45 }
 0x5d6   : > { %v3302_v54 = vpop.permute.xlu0 %3301  ;;  %v2916_v0 = vadd.f32 %v2885_v22, %v2514_v31  ;;  %v2917_v52 = vadd.f32 %v2886_v57, %v2515_v21  ;;  %v2195_v31 = vmul.f32 %v7987_v29, %v7979_v9 }
 0x5d7   : > { %v3365_v3 = vadd.f32 %v3302_v54, %v2915_v18 }
 0x5d8   : > { %v3300_v40 = vpop.permute.xlu1 %3299  ;;  %v2339_v57 = vadd.f32 %v8280_v50, %v2195_v31 }
 0x5d9   : > { %v3334_v46 = vsel %vm1734_vm11, %v3300_v40, %v3302_v54  ;;  %v3333_v51 = vsel %vm1734_vm11, %v3298_v59, %v3300_v40  ;;  %v3407_v44 = vadd.f32 %v10356_v34, %v3365_v3 }
 0x5da   : > { %v3304_v26 = vpop.permute.xlu0 %3303  ;;  %v3364_v5 = vadd.f32 %v3334_v46, %v2914_v14  ;;  %v3363_v53 = vadd.f32 %v3333_v51, %v2913_v42  ;;  %v2306_v46 = vsel %vm677_vm7, %v8252_v49, %v8280_v50  ;;  %v10358_v51 = vld [vmem:[#allocation49_spill] sm:$0xff] }
 0x5db   : > { %v3425_v58 = vmax.f32 %v3407_v44, 0.0  ;;  %v10362_v44 = vld [vmem:[#allocation46_spill] sm:$0xff]  ;;  %v10364_v50 = vld [vmem:[#allocation37_spill] sm:$0xff] }
 0x5dc   : > { %v3306_v19 = vpop.permute.xlu1 %3305  ;;  %v3406_v48 = vadd.f32 %v10356_v34, %v3364_v5  ;;  %v3405_v45 = vadd.f32 %v10356_v34, %v3363_v53  ;;  %v10359_v5 = vld [vmem:[#allocation39_spill] sm:$0xff] }
 0x5dd   : > { %v3335_v1 = vsel %vm1734_vm11, %v3304_v26, %v3306_v19  ;;  %v3443_v54 = vmin.f32 %v3425_v58, 6.0  ;;  %v10357_v26 = vld [vmem:[#allocation45_spill] sm:$0xff]  ;;  %v2468_v42 = vsel %vm840_vm6, %v10359_v5, %v10358_v51 }
 0x5de   : > { %v3308_v38 = vpop.permute.xlu0 %3307  ;;  %v3366_v43 = vadd.f32 %v3335_v1, %v2916_v0  ;;  %v3424_v39 = vmax.f32 %v3406_v48, 0.0  ;;  %v3423_v62 = vmax.f32 %v3405_v45, 0.0  ;;  %v2194_v37 = vmul.f32 %v7987_v29, %v10357_v26  ;;  %v10361_v0 = vld [vmem:[#allocation36_spill] sm:$0xff] }
 0x5df   : > { %v3336_v47 = vsel %vm1734_vm11, %v3306_v19, %v3308_v38  ;;  %v3368_v23 = vadd.f32 %v3308_v38, %v2918_v8  ;;  %v10360_v8 = vld [vmem:[#allocation21_spill] sm:$0xff]  ;;  %v2196_v19 = vmul.f32 %v8282_v61, %v10362_v44  ;;  %v2501_v53 = vadd.f32 %v2468_v42, %v2339_v57  ;;  %v10363_v48 = vld [vmem:[#allocation48_spill] sm:$0xff] }
 0x5e0   : > { %v3367_v59 = vadd.f32 %v3336_v47, %v2917_v52  ;;  %v3408_v11 = vadd.f32 %v8047_v10, %v3366_v43  ;;  %v3442_v33 = vmin.f32 %v3424_v39, 6.0  ;;  %v3441_v3 = vmin.f32 %v3423_v62, 6.0  ;;  %v10368_v62 = vld [vmem:[#allocation38_spill] sm:$0xff] }
 0x5e1   : > { %v3410_v7 = vadd.f32 %v8047_v10, %v3368_v23  ;;  %v2338_v21 = vadd.f32 %v2306_v46, %v2194_v37  ;;  %v2307_v34 = vsel %vm677_vm7, %v10361_v0, %v10360_v8  ;;  %v2305_v1 = vsel %vm677_vm7, %v10363_v48, %v8252_v49  ;;  %v10365_v23 = vld [vmem:[#allocation10_spill] sm:$0xff]  ;;  %v10369_v48 = vld [vmem:[#allocation51_spill] sm:$0xff] }
 0x5e2   : > { %v3409_v2 = vadd.f32 %v8047_v10, %v3367_v59  ;;  %v3426_v30 = vmax.f32 %v3408_v11, 0.0  ;;  %v2467_v38 = vsel %vm840_vm6, %v10364_v50, %v10359_v5  ;;  %v2340_v43 = vadd.f32 %v2307_v34, %v2196_v19 }
 0x5e3   : > { %v3428_v25 = vmax.f32 %v3410_v7, 0.0  ;;  %v2193_v47 = vmul.f32 %v8282_v61, %v7987_v29  ;;  %v2500_v59 = vadd.f32 %v2467_v38, %v2338_v21  ;;  %v2308_v58 = vsel %vm677_vm7, %v10360_v8, %v10365_v23  ;;  %v10366_v7 = vld [vmem:[#allocation8_spill] sm:$0xff] }
 0x5e4   : > { %v3427_v4 = vmax.f32 %v3409_v2, 0.0  ;;  %v3444_v13 = vmin.f32 %v3426_v30, 6.0  ;;  %v2197_v45 = vmul.f32 %v10362_v44, %v8021_v35  ;;  %v2198_v49 = vmul.f32 %v10362_v44, %v8031_v32  ;;  %v10367_v30 = vld [vmem:[#allocation30_spill] sm:$0xff] }
 0x5e5   : > { %v3446_v55 = vmin.f32 %v3428_v25, 6.0  ;;  %v2860_v10 = vpop.permute.xlu1 %2859  ;;  %v2337_v2 = vadd.f32 %v2305_v1, %v2193_v47  ;;  %v2519_v29 = vmul.f32 %v10353_v36, %v2501_v53  ;;  %v2502_v25 = vadd.f32 %v10367_v30, %v2340_v43 }
 0x5e6   : > { %v3445_v18 = vmin.f32 %v3427_v4, 6.0  ;;  %v3461_v40 = vpack.c.bf16 %v3444_v13, %v3441_v3  ;;  %v2469_v4 = vsel %vm840_vm6, %v10367_v30, %v10366_v7  ;;  %v2518_v32 = vmul.f32 %v2500_v59, %v10354_v63 }
 0x5e7   : > { %v3463_v16 = vpack.c.bf16 %v3446_v55, %v3443_v54  ;;  %v2341_v54 = vadd.f32 %v2308_v58, %v2197_v45  ;;  %v2342_v55 = vadd.f32 %v10365_v23, %v2198_v49  ;;  %v2520_v37 = vmul.f32 %v10355_v27, %v2502_v25 }
 0x5e8   : > { %v3462_v14 = vpack.c.bf16 %v3445_v18, %v3442_v33  ;;  %v2470_v33 = vsel %vm840_vm6, %v10366_v7, %v10368_v62  ;;  %v2499_v18 = vadd.f32 %v10364_v50, %v2337_v2 }
 0x5e9   : > { %3488 = vrot.lane.b32.xlu0 %v3463_v16, %s5965_s21  ;;  %v2503_v16 = vadd.f32 %v2469_v4, %v2341_v54 }
 0x5ea   : > { %3486 = vrot.lane.b32.xlu1 %v3462_v14, %s5965_s21  ;;  %v2862_v12 = vpop.permute.xlu1 %2861  ;;  %v2864_v22 = vpop.permute.xlu0 %2863  ;;  %v2517_v5 = vmul.f32 %v10355_v27, %v2499_v18 }
 0x5eb   : > { %v2888_v35 = vsel %vm1272_vm9, %v2862_v12, %v2864_v22  ;;  %v2921_v14 = vadd.f32 %v2864_v22, %v2519_v29  ;;  %v2887_v57 = vsel %vm1272_vm9, %v2860_v10, %v2862_v12  ;;  %v2521_v19 = vmul.f32 %v2503_v16, %v10354_v63 }
 0x5ec   : > { %v2920_v31 = vadd.f32 %v2888_v35, %v2518_v32  ;;  %v2919_v44 = vadd.f32 %v2887_v57, %v2517_v5  ;;  %v10374_v5 = vld [vmem:[#allocation50_spill] sm:$0xff] }
 0x5ee   : > { %3484 = vrot.lane.b32.xlu1 %v3461_v40, %s5965_s21  ;;  %v3310_v52 = vpop.permute.xlu1 %3309  ;;  %v2504_v40 = vadd.f32 %v2470_v33, %v2342_v55 }
 0x5f9   : > { %v2866_v9 = vpop.permute.xlu0 %2865 }
 0x60b   : > { %v2870_v11 = vpop.permute.xlu0 %2869 }
 0x60c   : > { %v2868_v39 = vpop.permute.xlu1 %2867 }
 0x60d   : > { %v2889_v46 = vsel %vm1272_vm9, %v2866_v9, %v2868_v39  ;;  %v2890_v8 = vsel %vm1272_vm9, %v2868_v39, %v2870_v11  ;;  %v2522_v9 = vmul.f32 %v10353_v36, %v2504_v40  ;;  %v10371_v40 = vld [vmem:[#allocation22_spill] sm:$0xff] }
 0x60e   : > { %v2922_v0 = vadd.f32 %v2889_v46, %v2520_v37  ;;  %v2923_v50 = vadd.f32 %v2890_v8, %v2521_v19  ;;  %v2310_v46 = vsel %vm677_vm7, %v8354_v20, %v8352_v17  ;;  %v10373_v37 = vld [vmem:[#allocation27_spill] sm:$0xff] }
 0x60f   : > { %v3314_v13 = vpop.permute.xlu0 %3313  ;;  %v2924_v1 = vadd.f32 %v2870_v11, %v2522_v9  ;;  %v10376_v8 = vld [vmem:[#allocation47_spill] sm:$0xff] }
 0x610   : > { %v3312_v3 = vpop.permute.xlu1 %3311  ;;  %v3371_v51 = vadd.f32 %v3314_v13, %v2921_v14 }
 0x611   : > { %v3338_v26 = vsel %vm1734_vm11, %v3312_v3, %v3314_v13  ;;  %v3337_v22 = vsel %vm1734_vm11, %v3310_v52, %v3312_v3  ;;  %v10370_v52 = vld [vmem:[#allocation40_spill] sm:$0xff] }
 0x612   : > { %v3370_v42 = vadd.f32 %v3338_v26, %v2920_v31  ;;  %v3413_v10 = vadd.f32 %v10369_v48, %v3371_v51  ;;  %v3369_v38 = vadd.f32 %v3337_v22, %v2919_v44  ;;  %v2201_v31 = vmul.f32 %v10371_v40, %v8077_v24  ;;  %v10372_v26 = vld [vmem:[#allocation53_spill] sm:$0xff]  ;;  %v10377_v22 = vld [vmem:[#allocation23_spill] sm:$0xff] }
 0x613   : > { %v3316_v21 = vpop.permute.xlu0 %3315  ;;  %v2472_v57 = vsel %vm840_vm6, %v10373_v37, %v10372_v26  ;;  %v2471_v24 = vsel %vm840_vm6, %v10377_v22, %v10373_v37 }
 0x614   : > { %v3318_v34 = vpop.permute.xlu1 %3317  ;;  %v3412_v43 = vadd.f32 %v10369_v48, %v3370_v42  ;;  %v3431_v39 = vmax.f32 %v3413_v10, 0.0  ;;  %v3411_v2 = vadd.f32 %v10369_v48, %v3369_v38  ;;  %v2345_v51 = vadd.f32 %v8352_v17, %v2201_v31 }
 0x615   : > { %v3339_v53 = vsel %vm1734_vm11, %v3316_v21, %v3318_v34  ;;  %v2200_v42 = vmul.f32 %v10371_v40, %v10374_v5  ;;  %v10375_v21 = vld [vmem:[#allocation55_spill] sm:$0xff]  ;;  %v2203_v17 = vmul.f32 %v10376_v8, %v8124_v60 }
 0x616   : > { %v3372_v12 = vadd.f32 %v3339_v53, %v2922_v0  ;;  %v3430_v49 = vmax.f32 %v3412_v43, 0.0  ;;  %v3449_v25 = vmin.f32 %v3431_v39, 6.0  ;;  %v3429_v54 = vmax.f32 %v3411_v2, 0.0 }
 0x617   : > { %v3320_v47 = vpop.permute.xlu0 %3319  ;;  %v2204_v0 = vmul.f32 %v10376_v8, %v10375_v21  ;;  %v2344_v19 = vadd.f32 %v2310_v46, %v2200_v42  ;;  %v2507_v53 = vadd.f32 %v2472_v57, %v2345_v51  ;;  %v2202_v39 = vmul.f32 %v8282_v61, %v10376_v8 }
 0x618   : > { %v3340_v59 = vsel %vm1734_vm11, %v3318_v34, %v3320_v47  ;;  %v3414_v23 = vadd.f32 %v10370_v52, %v3372_v12  ;;  %v3374_v45 = vadd.f32 %v3320_v47, %v2924_v1  ;;  %v3448_v62 = vmin.f32 %v3430_v49, 6.0  ;;  %v2872_v14 = vpop.permute.xlu1 %2871  ;;  %v10378_v34 = vld [vmem:[#allocation18_spill] sm:$0xff]  ;;  %v10379_v12 = vld [vmem:[#allocation43_spill] sm:$0xff] }
 0x619   : > { %v3373_v58 = vadd.f32 %v3340_v59, %v2923_v50  ;;  %v3447_v13 = vmin.f32 %v3429_v54, 6.0  ;;  %v2312_v44 = vsel %vm677_vm7, %v10378_v34, %v8398_v41  ;;  %v2348_v48 = vadd.f32 %v8398_v41, %v2204_v0  ;;  %v10380_v50 = vld [vmem:[#allocation52_spill] sm:$0xff] }
 0x61a   : > { %v3416_v30 = vadd.f32 %v10370_v52, %v3374_v45  ;;  %v3432_v11 = vmax.f32 %v3414_v23, 0.0  ;;  %v2474_v1 = vsel %vm840_vm6, %v8401_v56, %v10379_v12  ;;  %v2309_v38 = vsel %vm677_vm7, %v10380_v50, %v8354_v20  ;;  %v10381_v23 = vld [vmem:[#allocation42_spill] sm:$0xff]  ;;  %v10382_v20 = vld [vmem:[#allocation19_spill] sm:$0xff] }
 0x61b   : > { %v3415_v7 = vadd.f32 %v10370_v52, %v3373_v58  ;;  %v2876_v3 = vpop.permute.xlu0 %2875  ;;  %v2506_v43 = vadd.f32 %v2471_v24, %v2344_v19  ;;  %v2347_v47 = vadd.f32 %v2312_v44, %v2203_v17  ;;  %v2199_v59 = vmul.f32 %v8282_v61, %v10371_v40  ;;  %v10384_v24 = vld [vmem:[#allocation44_spill] sm:$0xff] }
 0x61c   : > { %v3434_v29 = vmax.f32 %v3416_v30, 0.0  ;;  %v3450_v18 = vmin.f32 %v3432_v11, 6.0  ;;  %v2874_v10 = vpop.permute.xlu1 %2873  ;;  %v2311_v60 = vsel %vm677_vm7, %v10381_v23, %v10378_v34  ;;  %v2510_v41 = vadd.f32 %v2474_v1, %v2348_v48 }
 0x61d   : > { %v3433_v4 = vmax.f32 %v3415_v7, 0.0  ;;  %v2525_v58 = vmul.f32 %v10353_v36, %v2507_v53  ;;  %v2343_v2 = vadd.f32 %v2309_v38, %v2199_v59  ;;  %v2473_v49 = vsel %vm840_vm6, %v10382_v20, %v8401_v56 }
 0x61e   : > { %v3452_v35 = vmin.f32 %v3434_v29, 6.0  ;;  %v3464_v16 = vpack.c.bf16 %v3450_v18, %v3447_v13  ;;  %v2892_v7 = vsel %vm1272_vm9, %v2874_v10, %v2876_v3  ;;  %v2509_v30 = vadd.f32 %v2473_v49, %v2347_v47  ;;  %v8613_v49 = vld [vmem:[%s10013_s3 + $0x70] sm:$0xff] }
 0x61f   : > { %v3451_v33 = vmin.f32 %v3433_v4, 6.0  ;;  %v2927_v11 = vadd.f32 %v2876_v3, %v2525_v58  ;;  %v2524_v4 = vmul.f32 %v2506_v43, %v10354_v63  ;;  %v2346_v29 = vadd.f32 %v2311_v60, %v2202_v39  ;;  %v10383_v3 = vld [vmem:[#allocation54_spill] sm:$0xff] }
 0x620   : > { %v3466_v55 = vpack.c.bf16 %v3452_v35, %v3449_v25  ;;  %v2505_v18 = vadd.f32 %v10377_v22, %v2343_v2  ;;  %v2891_v46 = vsel %vm1272_vm9, %v2872_v14, %v2874_v10 }
 0x621   : > { %v3465_v32 = vpack.c.bf16 %v3451_v33, %v3448_v62  ;;  %v2926_v54 = vadd.f32 %v2892_v7, %v2524_v4  ;;  %v2528_v62 = vmul.f32 %v10353_v36, %v2510_v41  ;;  %v8626_v4 = vld [vmem:[%s10013_s3 + $0x60] sm:$0xff] }
 0x622   : > { %3494 = vrot.lane.b32.xlu1 %v3466_v55, %s5965_s21  ;;  %v2508_v55 = vadd.f32 %v10382_v20, %v2346_v29  ;;  %v2523_v21 = vmul.f32 %v10355_v27, %v2505_v18  ;;  %v3558_v29 = vld [vmem:[%s10014_s4 + $0x8] sm:$0xff] }
 0x623   : > { %3492 = vrot.lane.b32.xlu0 %v3465_v32, %s5965_s21 }
 0x624   : > { %v2526_v8 = vmul.f32 %v10355_v27, %v2508_v55  ;;  %v2925_v19 = vadd.f32 %v2891_v46, %v2523_v21  ;;  %v8651_v55 = vld [vmem:[%s10013_s3 + $0x80] sm:$0xff] }
 0x627   : > { %3490 = vrot.lane.b32.xlu0 %v3464_v16, %s5965_s21  ;;  %v2527_v16 = vmul.f32 %v2509_v30, %v10354_v63 }
 0x629   : > { %v2878_v9 = vpop.permute.xlu0 %2877 }
 0x637   : > { %v2882_v52 = vpop.permute.xlu0 %2881 }
 0x638   : > { %v2880_v45 = vpop.permute.xlu1 %2879  ;;  %v2930_v13 = vadd.f32 %v2882_v52, %v2528_v62  ;;  %v8643_v62 = vld [vmem:[%s10013_s3 + $0x78] sm:$0xff] }
 0x639   : > { %v2894_v32 = vsel %vm1272_vm9, %v2880_v45, %v2882_v52  ;;  %v2893_v37 = vsel %vm1272_vm9, %v2878_v9, %v2880_v45 }
 0x63a   : > { %v2929_v57 = vadd.f32 %v2894_v32, %v2527_v16  ;;  %v2928_v14 = vadd.f32 %v2893_v37, %v2526_v8  ;;  %v10387_v16 = vmov 7   ;;  %v5913_v8 = vld [vmem:[%s10012_s2 + $0x8] sm:$0xff]  }
 0x63b   : > { %v3326_v25 = vpop.permute.xlu0 %3325 }
 0x63c   : > { %v3377_v33 = vadd.f32 %v3326_v25, %v2927_v11  ;;  %v3324_v35 = vpop.permute.xlu1 %3323  ;;  %v8620_v11 = vld [vmem:[%s10013_s3 + $0x88] sm:$0xff] }
 0x63d   : > { %v3342_v56 = vsel %vm1734_vm11, %v3324_v35, %v3326_v25  ;;  %v8636_v25 = vld [vmem:[%s10013_s3 + $0x68] sm:$0xff] }
 0x63e   : > { %v3419_v40 = vadd.f32 %v10383_v3, %v3377_v33  ;;  %v3376_v31 = vadd.f32 %v3342_v56, %v2926_v54  ;;  %v10385_v54 = vmov 0  }
 0x63f   : > { %v3332_v26 = vpop.permute.xlu0 %3331 }
 0x640   : > { %v3418_v51 = vadd.f32 %v10383_v3, %v3376_v31  ;;  %v3380_v5 = vadd.f32 %v3332_v26, %v2930_v13  ;;  %v3330_v42 = vpop.permute.xlu1 %3329  ;;  %v3437_v22 = vmax.f32 %v3419_v40, 0.0  ;;  %v10386_v13 = vmov 3  }
 0x641   : > { %v3344_v0 = vsel %vm1734_vm11, %v3330_v42, %v3332_v26 }
 0x642   : > { %v3422_v34 = vadd.f32 %v10384_v24, %v3380_v5  ;;  %v3379_v44 = vadd.f32 %v3344_v0, %v2929_v57  ;;  %v3436_v17 = vmax.f32 %v3418_v51, 0.0  ;;  %v3455_v38 = vmin.f32 %v3437_v22, 6.0 }
 0x643   : > { %v3328_v53 = vpop.permute.xlu0 %3327 }
 0x644   : > { %v3440_v9 = vmax.f32 %v3422_v34, 0.0  ;;  %v3421_v48 = vadd.f32 %v10384_v24, %v3379_v44  ;;  %v3343_v10 = vsel %vm1734_vm11, %v3328_v53, %v3330_v42  ;;  %v3322_v12 = vpop.permute.xlu1 %3321  ;;  %v3454_v23 = vmin.f32 %v3436_v17, 6.0 }
 0x645   : > { %v3378_v1 = vadd.f32 %v3343_v10, %v2928_v14  ;;  %v3341_v50 = vsel %vm1734_vm11, %v3322_v12, %v3324_v35 }
 0x646   : > { %v3458_v43 = vmin.f32 %v3440_v9, 6.0  ;;  %v3439_v47 = vmax.f32 %v3421_v48, 0.0  ;;  %v3375_v59 = vadd.f32 %v3341_v50, %v2925_v19 }
 0x647   : > { %v3420_v52 = vadd.f32 %v10384_v24, %v3378_v1 }
 0x648   : > { %v3457_v60 = vmin.f32 %v3439_v47, 6.0  ;;  %v3417_v41 = vadd.f32 %v10383_v3, %v3375_v59  ;;  %v3469_v58 = vpack.c.bf16 %v3458_v43, %v3455_v38  ;;  %v10388_v3 = vmov 4  }
 0x649   : > { %v3438_v45 = vmax.f32 %v3420_v52, 0.0 }
 0x64a   : > { %v3435_v39 = vmax.f32 %v3417_v41, 0.0  ;;  %3500 = vrot.lane.b32.xlu0 %v3469_v58, %s5965_s21  ;;  %v3468_v2 = vpack.c.bf16 %v3457_v60, %v3454_v23  ;;  %v10395_v60 = vmov 5   ;;  %v10397_v41 = vmov 6  }
 0x64b   : > { %v3456_v20 = vmin.f32 %v3438_v45, 6.0  ;;  %v10398_v58 = vmov 2   ;;  %v10399_v45 = vmov 10  }
 0x64c   : > { %v3453_v7 = vmin.f32 %v3435_v39, 6.0  ;;  %3498 = vrot.lane.b32.xlu1 %v3468_v2, %s5965_s21  ;;  %v10400_v39 = vmov 1  }
 0x64e   : > { %3594 = vperm.xlu0 %5833, %v8613_v49   ;;  %v3467_v30 = vpack.c.bf16 %v3456_v20, %v3453_v7 }
 0x650   : > { %3496 = vrot.lane.b32.xlu1 %v3467_v30, %s5965_s21 }
 0x652   : > { %3609 = vperm.xlu0 %5833, %v8620_v11  }
 0x654   : > { %3584 = vperm.xlu1 %5834, %v8626_v4  }
 0x656   : > { %5835 = vset.pattern.permute.xlu0 %v10385_v54 }
 0x657   : > { %3561 = vperm.xlu0 %5835, %v3558_v29  }
 0x658   : > { %3589 = vperm.xlu1 %5834, %v8636_v25  }
 0x65b   : > { %3764 = vperm.xlu0 %5835, %v8636_v25   ;;  %v3489_v33 = vpop.permute.xlu0 %3488 }
 0x65c   : > { %3599 = vperm.xlu1 %5834, %v8643_v62   ;;  %v3487_v35 = vpop.permute.xlu1 %3486 }
 0x65d   : > { %v3503_v18 = vsel %vm1904_vm12, %v3487_v35, %v3489_v33 }
 0x65e   : > { %3517 = vmatprep.subr.bf16.mxu0 %v3503_v18 }
 0x65f   : > { %3776 = vperm.xlu0 %5835, %v8651_v55  }
 0x660   : > { %3604 = vperm.xlu1 %5834, %v8651_v55   ;;  %v3485_v32 = vpop.permute.xlu1 %3484 }
 0x661   : > { %v3502_v56 = vsel %vm1904_vm12, %v3485_v32, %v3487_v35 }
 0x662   : > { %3518 = vmatpush1.bf16.msra.mxu0 %v3502_v56 }
 0x663   : > { %5837 = vset.pattern.permute.xlu0 %v10386_v13 }
 0x664   : > { %5836 = vset.pattern.permute.xlu1 %v10385_v54  ;;  %3802 = vperm.xlu0 %5837, %v8626_v4  }
 0x665   : > { %3760 = vperm.xlu1 %5836, %v8626_v4  }
 0x668   : > { %3814 = vperm.xlu0 %5837, %v8643_v62  }
 0x669   : > { %3768 = vperm.xlu1 %5836, %v8613_v49  }
 0x66c   : > { %3822 = vperm.xlu0 %5837, %v8620_v11  }
 0x66d   : > { %3772 = vperm.xlu1 %5836, %v8643_v62  }
 0x670   : > { %5841 = vset.pattern.permute.xlu0 %v10387_v16 }
 0x671   : > { %3780 = vperm.xlu1 %5836, %v8620_v11  }
 0x675   : > { %5838 = vset.pattern.permute.xlu1 %v10386_v13 }
 0x676   : > { %3806 = vperm.xlu1 %5838, %v8636_v25  }
 0x67a   : > { %3810 = vperm.xlu1 %5838, %v8613_v49  }
 0x67e   : > { %3818 = vperm.xlu1 %5838, %v8651_v55  }
 0x682   : > { %5839 = vset.pattern.permute.xlu1 %v10388_v3 }
 0x694   : > { %v3495_v40 = vpop.permute.xlu1 %3494 }
 0x695   : > { %v3493_v31 = vpop.permute.xlu0 %3492 }
 0x696   : > { %v3505_v46 = vsel %vm1904_vm12, %v3493_v31, %v3495_v40  ;;  %v8815_v40 = vld [vmem:[#allocation2 + $0x18] sm:$0xff] }
 0x697   : > { %3519 = vmatprep.subr.bf16.mxu0 %v3505_v46 }
 0x699   : > { %v3491_v26 = vpop.permute.xlu0 %3490 }
 0x69a   : > { %v3504_v37 = vsel %vm1904_vm12, %v3491_v26, %v3493_v31 }
 0x69b   : > { %3520 = vmatpush1.bf16.msra.mxu0 %v3504_v37 }
 0x6bc   : > { %v3501_v57 = vpop.permute.xlu0 %3500 }
 0x6be   : > { %v3499_v51 = vpop.permute.xlu1 %3498 }
 0x6bf   : > { %v3507_v5 = vsel %vm1904_vm12, %v3499_v51, %v3501_v57 }
 0x6c0   : > { %3521 = vmatprep.subr.bf16.mxu0 %v3507_v5 }
 0x6c2   : > { %v3497_v42 = vpop.permute.xlu1 %3496 }
 0x6c3   : > { %v3506_v21 = vsel %vm1904_vm12, %v3497_v42, %v3499_v51 }
 0x6c4   : > { %3522 = vmatpush1.bf16.msra.mxu0 %v3506_v21 }
 0x6c7   : > { %5693 = vmatmul.mubr.msk.bf16.vlgmr.msra.gmra.mrb[8].mxu0 %vm1917_vm13, %v5913_v8 }
 0x6c8   : > { %3674 = vmatprep.mubr.bf16.mxu0 %v10385_v54 }
 0x6cd   : > { %v8680_v0 = vpop.permute.xlu0 %3594 }
 0x6d1   : > { %v8682_v22 = vpop.permute.xlu0 %3609 }
 0x6d3   : > { %v8684_v24 = vpop.permute.xlu1 %3584 }
 0x6d6   : > { %v8686_v34 = vpop.permute.xlu0 %3561 }
 0x6d7   : > { %v8688_v44 = vpop.permute.xlu1 %3589 }
 0x6da   : > { %v8690_v19 = vpop.permute.xlu0 %3764 }
 0x6db   : > { %10389 = vst [vmem:[#allocation41_spill] sm:$0xff] %v8690_v19  ;;  %v8692_v14 = vpop.permute.xlu1 %3599 }
 0x6de   : > { %v8694_v53 = vpop.permute.xlu0 %3776 }
 0x6df   : > { %10390 = vst [vmem:[#allocation7_spill] sm:$0xff] %v8694_v53  ;;  %v8696_v17 = vpop.permute.xlu1 %3604 }
 0x6e3   : > { %v8698_v9 = vpop.permute.xlu0 %3802 }
 0x6e4   : > { %v8700_v48 = vpop.permute.xlu1 %3760  ;;  %v3825_v10 = vmul.f32 %v8282_v61, %v8698_v9 }
 0x6e5   : > { %10391 = vst [vmem:[#allocation11_spill] sm:$0xff] %v8700_v48 }
 0x6e6   : > { %3861 = vrot.lane.b32.xlu1 %v3825_v10, %s5958_s27 }
 0x6e7   : > { %v8713_v43 = vpop.permute.xlu0 %3814 }
 0x6e8   : > { %v8705_v12 = vpop.permute.xlu1 %3768  ;;  %v3834_v59 = vmul.f32 %v8282_v61, %v8713_v43 }
 0x6e9   : > { %10392 = vst [vmem:[#allocation16_spill] sm:$0xff] %v8705_v12 }
 0x6eb   : > { %v8787_v2 = vpop.permute.xlu0 %3822 }
 0x6ec   : > { %v8707_v1 = vpop.permute.xlu1 %3772 }
 0x6ed   : > { %10393 = vst [vmem:[#allocation4_spill] sm:$0xff] %v8707_v1 }
 0x6f0   : > { %v8709_v50 = vpop.permute.xlu1 %3780 }
 0x6f1   : > { %10394 = vst [vmem:[#allocation28_spill] sm:$0xff] %v8709_v50 }
 0x6f5   : > { %v8711_v38 = vpop.permute.xlu1 %3806 }
 0x6f6   : > { %v3828_v47 = vmul.f32 %v8282_v61, %v8711_v38 }
 0x6f8   : > { %3867 = vrot.lane.b32.xlu0 %v3828_v47, %s5958_s27 }
 0x6f9   : > { %v8720_v52 = vpop.permute.xlu1 %3810 }
 0x6fa   : > { %v3831_v23 = vmul.f32 %v8282_v61, %v8720_v52  ;;  %v10396_v61 = vmov 8  }
 0x6fc   : > { %3873 = vrot.lane.b32.xlu1 %v3831_v23, %s5958_s27  ;;  %3879 = vrot.lane.b32.xlu0 %v3834_v59, %s5958_s27 }
 0x6fd   : > { %v8789_v20 = vpop.permute.xlu1 %3818 }
 0x700   : > { %4168 = vperm.xlu1 %5839, %v8626_v4   ;;  %4282 = vperm.xlu0 %5841, %v8626_v4  }
 0x704   : > { %5840 = vset.pattern.permute.xlu1 %v10395_v60  ;;  %4294 = vperm.xlu0 %5841, %v8643_v62  }
 0x705   : > { %4570 = vperm.xlu1 %5840, %v8626_v4  }
 0x708   : > { %5847 = vset.pattern.permute.xlu0 %v10388_v3 }
 0x709   : > { %4574 = vperm.xlu1 %5840, %v8636_v25   ;;  %4172 = vperm.xlu0 %5847, %v8636_v25  }
 0x70d   : > { %5842 = vset.pattern.permute.xlu1 %v10387_v16  ;;  %4184 = vperm.xlu0 %5847, %v8651_v55  }
 0x70e   : > { %4286 = vperm.xlu1 %5842, %v8636_v25  }
 0x711   : > { %5849 = vset.pattern.permute.xlu0 %v10395_v60 }
 0x712   : > { %5843 = vset.pattern.permute.xlu1 %v10396_v61  ;;  %4578 = vperm.xlu0 %5849, %v8613_v49  }
 0x713   : > { %4714 = vperm.xlu1 %5843, %v8626_v4  }
 0x716   : > { %4590 = vperm.xlu0 %5849, %v8620_v11  }
 0x717   : > { %5844 = vset.pattern.permute.xlu1 %v10388_v3 }
 0x718   : > { %4176 = vperm.xlu1 %5844, %v8613_v49  }
 0x71a   : > { %5852 = vset.pattern.permute.xlu0 %v10396_v61 }
 0x71b   : > { %4718 = vperm.xlu0 %5852, %v8636_v25  }
 0x71c   : > { %4180 = vperm.xlu1 %5844, %v8643_v62  }
 0x71f   : > { %4730 = vperm.xlu0 %5852, %v8651_v55  }
 0x720   : > { %5845 = vset.pattern.permute.xlu1 %v10395_v60 }
 0x721   : > { %4582 = vperm.xlu1 %5845, %v8643_v62  }
 0x723   : > { %5856 = vset.pattern.permute.xlu0 %v10397_v41 }
 0x724   : > { %3968 = vperm.xlu0 %5856, %v8636_v25  }
 0x725   : > { %5846 = vset.pattern.permute.xlu1 %v10387_v16 }
 0x726   : > { %4290 = vperm.xlu1 %5846, %v8613_v49  }
 0x728   : > { %3976 = vperm.xlu0 %5856, %v8643_v62  }
 0x72a   : > { %5848 = vset.pattern.permute.xlu1 %v10396_v61 }
 0x72b   : > { %4722 = vperm.xlu1 %5848, %v8613_v49  }
 0x72c   : > { %3984 = vperm.xlu0 %5856, %v8620_v11  }
 0x72f   : > { %4726 = vperm.xlu1 %5848, %v8643_v62  }
 0x730   : > { %5863 = vset.pattern.permute.xlu0 %v10398_v58 }
 0x731   : > { %4528 = vperm.xlu0 %5863, %v8626_v4  }
 0x733   : > { %5850 = vset.pattern.permute.xlu1 %v10388_v3 }
 0x734   : > { %4188 = vperm.xlu1 %5850, %v8620_v11  }
 0x735   : > { %4536 = vperm.xlu0 %5863, %v8613_v49  }
 0x738   : > { %5851 = vset.pattern.permute.xlu1 %v10395_v60 }
 0x739   : > { %4586 = vperm.xlu1 %5851, %v8651_v55   ;;  %4544 = vperm.xlu0 %5863, %v8651_v55  }
 0x73d   : > { %5853 = vset.pattern.permute.xlu1 %v10387_v16  ;;  %5867 = vset.pattern.permute.xlu0 %v10399_v45 }
 0x73e   : > { %4298 = vperm.xlu1 %5853, %v8651_v55  }
 0x742   : > { %4302 = vperm.xlu1 %5853, %v8620_v11  }
 0x746   : > { %5854 = vset.pattern.permute.xlu1 %v10396_v61 }
 0x747   : > { %4734 = vperm.xlu1 %5854, %v8620_v11  }
 0x74b   : > { %5855 = vset.pattern.permute.xlu1 %v10397_v41 }
 0x74c   : > { %3964 = vperm.xlu1 %5855, %v8626_v4  }
 0x750   : > { %5857 = vset.pattern.permute.xlu1 %v10400_v39 }
 0x751   : > { %4126 = vperm.xlu1 %5857, %v8626_v4  }
 0x755   : > { %4130 = vperm.xlu1 %5857, %v8636_v25  }
 0x758   : > { %v8793_v7 = vpop.permute.xlu1 %3861 }
 0x759   : > { %5858 = vset.pattern.permute.xlu1 %v10398_v58  ;;  %10401 = vst [vmem:[#allocation33_spill] sm:$0xff] %v8793_v7 }
 0x75a   : > { %4532 = vperm.xlu1 %5858, %v8636_v25  }
 0x75e   : > { %5859 = vset.pattern.permute.xlu1 %v10397_v41 }
 0x75f   : > { %3972 = vperm.xlu1 %5859, %v8613_v49  }
 0x763   : > { %5860 = vset.pattern.permute.xlu1 %v10400_v39 }
 0x764   : > { %4134 = vperm.xlu1 %5860, %v8613_v49  }
 0x768   : > { %4138 = vperm.xlu1 %5860, %v8643_v62  }
 0x76a   : > { %v8795_v30 = vpop.permute.xlu0 %3867 }
 0x76b   : > { %10402 = vst [vmem:[#allocation25_spill] sm:$0xff] %v8795_v30 }
 0x76c   : > { %5861 = vset.pattern.permute.xlu1 %v10398_v58 }
 0x76d   : > { %4540 = vperm.xlu1 %5861, %v8643_v62  }
 0x76e   : > { %v8799_v29 = vpop.permute.xlu1 %3873  ;;  %v8801_v33 = vpop.permute.xlu0 %3879 }
 0x76f   : > { %10403 = vst [vmem:[#allocation35_spill] sm:$0xff] %v8799_v29  ;;  %10404 = vst [vmem:[#allocation14_spill] sm:$0xff] %v8801_v33 }
 0x771   : > { %5862 = vset.pattern.permute.xlu1 %v10397_v41 }
 0x772   : > { %3980 = vperm.xlu1 %5862, %v8651_v55  }
 0x776   : > { %5864 = vset.pattern.permute.xlu1 %v10400_v39 }
 0x777   : > { %4142 = vperm.xlu1 %5864, %v8651_v55  }
 0x77b   : > { %4146 = vperm.xlu1 %5864, %v8620_v11  }
 0x77f   : > { %v8804_v35 = vpop.permute.xlu1 %4168  ;;  %v8806_v18 = vpop.permute.xlu0 %4282  ;;  %5865 = vset.pattern.permute.xlu1 %v10398_v58 }
 0x780   : > { %4548 = vperm.xlu1 %5865, %v8620_v11   ;;  %v4307_v46 = vmul.f32 %v8815_v40, %v8806_v18 }
 0x783   : > { %v8810_v32 = vpop.permute.xlu0 %4294 }
 0x784   : > { %v8812_v56 = vpop.permute.xlu1 %4570  ;;  %5866 = vset.pattern.permute.xlu1 %v10399_v45  ;;  %v10405_v45 = vld [vmem:[#allocation5_spill] sm:$0xff] }
 0x785   : > { %v4595_v31 = vmul.f32 %v8815_v40, %v8812_v56 }
 0x787   : > { %4633 = vrot.lane.b32.xlu1 %v4595_v31, %s5958_s27 }
 0x788   : > { %v8822_v26 = vpop.permute.xlu1 %4574  ;;  %v8824_v37 = vpop.permute.xlu0 %4172 }
 0x789   : > { %v4598_v57 = vmul.f32 %v8815_v40, %v8822_v26 }
 0x78b   : > { %4345 = vrot.lane.b32.xlu1 %v4307_v46, %s5959_s28  ;;  %4639 = vrot.lane.b32.xlu0 %v4598_v57, %s5958_s27 }
 0x78c   : > { %v8830_v51 = vpop.permute.xlu0 %4184 }
 0x78d   : > { %v8832_v5 = vpop.permute.xlu1 %4286 }
 0x78e   : > { %v4310_v42 = vmul.f32 %v8815_v40, %v8832_v5 }
 0x790   : > { %4351 = vrot.lane.b32.xlu0 %v4310_v42, %s5959_s28 }
 0x791   : > { %v8837_v21 = vpop.permute.xlu0 %4578 }
 0x792   : > { %v8839_v8 = vpop.permute.xlu1 %4714  ;;  %v4601_v47 = vmul.f32 %v8815_v40, %v8837_v21 }
 0x793   : > { %v4739_v10 = vmul.f32 %v8815_v40, %v8839_v8 }
 0x795   : > { %4777 = vrot.lane.b32.xlu1 %v4739_v10, %s5959_s28  ;;  %v8846_v59 = vpop.permute.xlu0 %4590 }
 0x797   : > { %v8848_v23 = vpop.permute.xlu1 %4176 }
 0x799   : > { %4645 = vrot.lane.b32.xlu1 %v4601_v47, %s5958_s27  ;;  %v10406_v47 = vld [vmem:[#allocation9_spill] sm:$0xff] }
 0x79a   : > { %v3551_v31 = vpop.f32.mrb[8].mxu0  ;;  %v8851_v46 = vpop.permute.xlu0 %4718 }
 0x79b   : > { %v3564_v57 = vadd.f32 %v8686_v34, %v3551_v31  ;;  %v3553_v42 = vpop.f32.mrb[9].mxu0  ;;  %v8854_v61 = vpop.permute.xlu1 %4180  ;;  %v4742_v16 = vmul.f32 %v8815_v40, %v8851_v46 }
 0x79c   : > { %v3565_v3 = vadd.f32 %v8686_v34, %v3553_v42  ;;  %v3555_v10 = vpop.f32.mrb[10].mxu0  ;;  %v5914_v34 = vld [vmem:[%s10011_s1 + $0x30] sm:$0xff]  }
 0x79d   : > { %v3566_v13 = vadd.f32 %v3564_v57, %v10405_v45  ;;  %v3556_v41 = vpop.f32.mrb[11].mxu0  ;;  %4783 = vrot.lane.b32.xlu0 %v4742_v16, %s5959_s28  ;;  %v4316_v16 = vmul.f32 %v8815_v40, %v8810_v32  ;;  %v5916_v57 = vld [vmem:[%s10011_s1 + $0x40] sm:$0xff]  }
 0x79e   : > { %v3567_v58 = vadd.f32 %v3565_v3, %v10406_v47 }
 0x79f   : > { %v3580_v60 = vpack.c.bf16 %v3566_v13, %v3566_v13 }
 0x7a0   : > { %v3581_v50 = vpack.c.bf16 %v3567_v58, %v3567_v58  ;;  %v8862_v53 = vpop.permute.xlu1 %4582 }
 0x7a1   : > { %v3637_v31 = vsel %vm415_vm0, %v3580_v60, 0  ;;  %v4604_v29 = vmul.f32 %v8815_v40, %v8862_v53 }
 0x7a2   : > { %5697 = vmatprep.subr.msk.bf16.mxu0 %vm415_vm0, %v3581_v50  ;;  %v5915_v50 = vld [vmem:[%s10011_s1 + $0x38] sm:$0xff]  }
 0x7a3   : > { %3643 = vmatpush1.bf16.msra.mxu0 %v3637_v31  ;;  %4651 = vrot.lane.b32.xlu0 %v4604_v29, %s5958_s27  ;;  %v4610_v29 = vmul.f32 %v8815_v40, %v8846_v59 }
 0x7a5   : > { %v8874_v13 = vpop.permute.xlu1 %4290 }
 0x7a6   : > { %5698 = vmatmul.mubr.msk.bf16.vlgmr.msra.gmra.mrb[12].mxu0 %vm405_vm1, %v5914_v34  ;;  %v4313_v3 = vmul.f32 %v8815_v40, %v8874_v13  ;;  %v8913_v34 = vpop.permute.xlu0 %4730 }
 0x7a7   : > { %3684 = vmatprep.mubr.bf16.mxu0 %v10385_v54  ;;  %4363 = vrot.lane.b32.xlu0 %v4316_v16, %s5959_s28 }
 0x7a8   : > { %4357 = vrot.lane.b32.xlu1 %v4313_v3, %s5959_s28  ;;  %v4751_v3 = vmul.f32 %v8815_v40, %v8913_v34 }
 0x7aa   : > { %v8885_v60 = vpop.permute.xlu1 %4722 }
 0x7ab   : > { %v4745_v41 = vmul.f32 %v8815_v40, %v8885_v60 }
 0x7ad   : > { %4789 = vrot.lane.b32.xlu1 %v4745_v41, %s5959_s28 }
 0x7ae   : > { %5699 = vmatmul.mubr.msk.bf16.gmra.mrb[16].mxu0 %vm405_vm1, %v5915_v50  ;;  %v8891_v58 = vpop.permute.xlu1 %4726 }
 0x7af   : > { %v4748_v45 = vmul.f32 %v8815_v40, %v8891_v58  ;;  %3694 = vmatprep.mubr.bf16.mxu0 %v10385_v54 }
 0x7b1   : > { %4795 = vrot.lane.b32.xlu0 %v4748_v45, %s5959_s28 }
 0x7b3   : > { %v8902_v42 = vpop.permute.xlu1 %4188 }
 0x7b5   : > { %4663 = vrot.lane.b32.xlu0 %v4610_v29, %s5958_s27 }
 0x7b6   : > { %5700 = vmatmul.mubr.msk.bf16.gmra.mrb[20].mxu0 %vm405_vm1, %v5916_v57  ;;  %v8930_v57 = vpop.permute.xlu0 %3968  ;;  %vm5401_vm1 = vcmask 130048  }
 0x7b8   : > { %v8906_v10 = vpop.permute.xlu1 %4586 }
 0x7b9   : > { %v4607_v47 = vmul.f32 %v8815_v40, %v8906_v10 }
 0x7bb   : > { %4657 = vrot.lane.b32.xlu1 %v4607_v47, %s5958_s27  ;;  %v3992_v47 = vmul.f32 %v8815_v40, %v8930_v57 }
 0x7bd   : > { %v8911_v31 = vpop.permute.xlu1 %4298 }
 0x7be   : > { %v4319_v16 = vmul.f32 %v8815_v40, %v8911_v31 }
 0x7c0   : > { %4369 = vrot.lane.b32.xlu1 %v4319_v16, %s5959_s28 }
 0x7c1   : > { %v8920_v50 = vpop.permute.xlu1 %4302 }
 0x7c2   : > { %v4322_v41 = vmul.f32 %v8815_v40, %v8920_v50 }
 0x7c4   : > { %4801 = vrot.lane.b32.xlu1 %v4751_v3, %s5959_s28  ;;  %4375 = vrot.lane.b32.xlu0 %v4322_v41, %s5959_s28  ;;  %v8941_v3 = vpop.permute.xlu0 %3976 }
 0x7c6   : > { %v8926_v45 = vpop.permute.xlu1 %4734 }
 0x7c7   : > { %v4754_v29 = vmul.f32 %v8815_v40, %v8926_v45 }
 0x7c9   : > { %4807 = vrot.lane.b32.xlu0 %v4754_v29, %s5959_s28  ;;  %v3998_v29 = vmul.f32 %v8815_v40, %v8941_v3 }
 0x7cb   : > { %v8935_v16 = vpop.permute.xlu1 %3964 }
 0x7cc   : > { %v3989_v1 = vmul.f32 %v8815_v40, %v8935_v16 }
 0x7cd   : > { %4033 = vrot.lane.b32.xlu0 %v3992_v47, %s5959_s28  ;;  %v8957_v47 = vpop.permute.xlu0 %3984 }
 0x7ce   : > { %4027 = vrot.lane.b32.xlu1 %v3989_v1, %s5959_s28  ;;  %v3840_v1 = vmul.f32 %v8815_v40, %v8787_v2 }
 0x7d0   : > { %v8943_v41 = vpop.permute.xlu1 %4126 }
 0x7d1   : > { %4982 = vperm.xlu0 %5867, %v8636_v25   ;;  %v9016_v15 = vpop.permute.xlu0 %4528 }
 0x7d2   : > { %4978 = vperm.xlu1 %5866, %v8626_v4   ;;  %v4004_v4 = vmul.f32 %v8815_v40, %v8957_v47 }
 0x7d4   : > { %v8949_v33 = vpop.permute.xlu1 %4130 }
 0x7d6   : > { %4045 = vrot.lane.b32.xlu1 %v3998_v29, %s5959_s28  ;;  %v3837_v29 = vmul.f32 %v8815_v40, %v8789_v20 }
 0x7d9   : > { %v8952_v12 = vpop.permute.xlu1 %4532 }
 0x7da   : > { %10407 = vst [vmem:[#allocation6_spill] sm:$0xff] %v8952_v12  ;;  %4990 = vperm.xlu1 %5866, %v8643_v62  }
 0x7de   : > { %3891 = vrot.lane.b32.xlu1 %v3840_v1, %s5958_s27  ;;  %v8960_v25 = vpop.permute.xlu1 %3972 }
 0x7df   : > { %v3995_v27 = vmul.f32 %v8815_v40, %v8960_v25 }
 0x7e1   : > { %4039 = vrot.lane.b32.xlu0 %v3995_v27, %s5959_s28 }
 0x7e2   : > { %4057 = vrot.lane.b32.xlu1 %v4004_v4, %s5959_s28 }
 0x7e3   : > { %v8968_v62 = vpop.permute.xlu1 %4134 }
 0x7e4   : > { %10408 = vst [vmem:[#allocation15_spill] sm:$0xff] %v8968_v62 }
 0x7e5   : > { %4986 = vperm.xlu0 %5867, %v8613_v49  }
 0x7e6   : > { %4998 = vperm.xlu1 %5866, %v8620_v11  }
 0x7e7   : > { %v8974_v1 = vpop.permute.xlu1 %4138 }
 0x7e8   : > { %10409 = vst [vmem:[#allocation32_spill] sm:$0xff] %v8974_v1 }
 0x7e9   : > { %3885 = vrot.lane.b32.xlu0 %v3837_v29, %s5958_s27 }
 0x7ea   : > { %5868 = vset.pattern.permute.xlu1 %v10385_v54 }
 0x7ec   : > { %v8978_v63 = vpop.permute.xlu1 %4540 }
 0x7ed   : > { %10410 = vst [vmem:[#allocation13_spill] sm:$0xff] %v8978_v63 }
 0x7f1   : > { %v8980_v27 = vpop.permute.xlu1 %3980 }
 0x7f2   : > { %v4001_v4 = vmul.f32 %v8815_v40, %v8980_v27 }
 0x7f4   : > { %4051 = vrot.lane.b32.xlu0 %v4001_v4, %s5959_s28 }
 0x7f8   : > { %4994 = vperm.xlu0 %5867, %v8651_v55  }
 0x7fc   : > { %5869 = vset.pattern.permute.xlu0 %v10400_v39 }
 0x879   : > { %v3676_v49 = vpop.f32.mrb[12].mxu0 }
 0x87a   : > { %v3677_v11 = vadd.f32 %v3676_v49, %v8684_v24  ;;  %v3678_v36 = vpop.f32.mrb[13].mxu0 }
 0x87b   : > { %v3679_v29 = vadd.f32 %v3678_v36, %v8684_v24  ;;  %v3680_v54 = vpop.f32.mrb[14].mxu0 }
 0x87c   : > { %v3705_v7 = vmax.f32 %v3677_v11, 0.0  ;;  %v3681_v19 = vadd.f32 %v3680_v54, %v8688_v44  ;;  %v3682_v30 = vpop.f32.mrb[15].mxu0 }
 0x87d   : > { %v3706_v48 = vmax.f32 %v3679_v29, 0.0  ;;  %v3683_v63 = vadd.f32 %v3682_v30, %v8688_v44 }
 0x87e   : > { %v8991_v1 = vmin.f32 %v3705_v7, 6.0  ;;  %v3707_v4 = vmax.f32 %v3681_v19, 0.0 }
 0x87f   : > { %v8993_v55 = vmin.f32 %v3706_v48, 6.0  ;;  %v3708_v39 = vmax.f32 %v3683_v63, 0.0 }
 0x880   : > { %3729 = vst [vmem:[#allocation2 + $0x8] sm:$0xff] %v8991_v1  ;;  %v8996_v49 = vmin.f32 %v3707_v4, 6.0  ;;  %v4593_v36 = vmul.f32 %v8812_v56, %v8991_v1  ;;  %v3826_v54 = vmul.f32 %v8698_v9, %v8991_v1  ;;  %v4305_v4 = vmul.f32 %v8806_v18, %v8991_v1 }
 0x881   : > { %3730 = vst [vmem:[#allocation2 + $0x10] sm:$0xff] %v8993_v55  ;;  %v9003_v24 = vmin.f32 %v3708_v39, 6.0  ;;  %v3686_v44 = vpop.f32.mrb[16].mxu0  ;;  %v4191_v39 = vmul.f32 %v8804_v35, %v8991_v1 }
 0x882   : > { %3731 = vst [vmem:[#allocation2 + $0x28] sm:$0xff] %v8996_v49  ;;  %v3687_v19 = vadd.f32 %v3686_v44, %v8680_v0  ;;  %v3688_v63 = vpop.f32.mrb[17].mxu0  ;;  %4629 = vrot.lane.b32.xlu1 %v4593_v36, %s5958_s27  ;;  %3863 = vrot.lane.b32.xlu0 %v3826_v54, %s5958_s27 }
 0x883   : > { %v3689_v48 = vadd.f32 %v3688_v63, %v8680_v0  ;;  %v3690_v7 = vpop.f32.mrb[18].mxu0  ;;  %v9024_v63 = vpop.permute.xlu1 %4142 }
 0x884   : > { %v3709_v30 = vmax.f32 %v3687_v19, 0.0  ;;  %v3691_v11 = vadd.f32 %v3690_v7, %v8692_v14  ;;  %v3692_v29 = vpop.f32.mrb[19].mxu0  ;;  %10411 = vst [vmem:[#allocation20_spill] sm:$0xff] %v9024_v63  ;;  %v3987_v63 = vmul.f32 %v8935_v16, %v8991_v1 }
 0x885   : > { %v3710_v62 = vmax.f32 %v3689_v48, 0.0  ;;  %v3693_v44 = vadd.f32 %v3692_v29, %v8692_v14  ;;  %v4737_v14 = vmul.f32 %v8839_v8, %v8991_v1  ;;  %v4594_v48 = vmul.f32 %v8812_v56, %v8993_v55  ;;  %v9042_v56 = vpop.permute.xlu0 %4536 }
 0x886   : > { %v9018_v36 = vmin.f32 %v3709_v30, 6.0  ;;  %v3711_v54 = vmax.f32 %v3691_v11, 0.0  ;;  %4341 = vrot.lane.b32.xlu1 %v4305_v4, %s5959_s28  ;;  %4215 = vrot.lane.b32.xlu0 %v4191_v39, %s5958_s27 }
 0x887   : > { %v9022_v0 = vmin.f32 %v3710_v62, 6.0  ;;  %v3712_v19 = vmax.f32 %v3693_v44, 0.0  ;;  %v9050_v6 = vpop.permute.xlu1 %4146 }
 0x888   : > { %3733 = vst [vmem:[#allocation2 + $0x48] sm:$0xff] %v9018_v36  ;;  %v9027_v7 = vmin.f32 %v3711_v54, 6.0 }
 0x889   : > { %3734 = vst [vmem:[#allocation2 + $0x50] sm:$0xff] %v9022_v0  ;;  %v9034_v30 = vmin.f32 %v3712_v19, 6.0  ;;  %v3696_v11 = vpop.f32.mrb[20].mxu0 }
 0x88a   : > { %3735 = vst [vmem:[#allocation2 + $0x68] sm:$0xff] %v9027_v7  ;;  %v3697_v62 = vadd.f32 %v3696_v11, %v8696_v17  ;;  %v3698_v29 = vpop.f32.mrb[21].mxu0  ;;  %4773 = vrot.lane.b32.xlu1 %v4737_v14, %s5959_s28  ;;  %4631 = vrot.lane.b32.xlu0 %v4594_v48, %s5958_s27  ;;  %v4306_v11 = vmul.f32 %v8806_v18, %v8993_v55 }
 0x88b   : > { %3736 = vst [vmem:[#allocation2 + $0x70] sm:$0xff] %v9034_v30  ;;  %v3699_v4 = vadd.f32 %v3698_v29, %v8696_v17  ;;  %v3700_v39 = vpop.f32.mrb[22].mxu0  ;;  %v3827_v18 = vmul.f32 %v8698_v9, %v8993_v55  ;;  %v4192_v9 = vmul.f32 %v8804_v35, %v8993_v55  ;;  %v4194_v35 = vmul.f32 %v8824_v37, %v9003_v24 }
 0x88c   : > { %v3713_v44 = vmax.f32 %v3697_v62, 0.0  ;;  %v3701_v54 = vadd.f32 %v3700_v39, %v8682_v22  ;;  %v3702_v19 = vpop.f32.mrb[23].mxu0 }
 0x88d   : > { %v3714_v14 = vmax.f32 %v3699_v4, 0.0  ;;  %v3703_v48 = vadd.f32 %v3702_v19, %v8682_v22  ;;  %v4738_v22 = vmul.f32 %v8839_v8, %v8993_v55  ;;  %v3988_v8 = vmul.f32 %v8935_v16, %v8993_v55 }
 0x88e   : > { %v9052_v12 = vmin.f32 %v3713_v44, 6.0  ;;  %v3715_v17 = vmax.f32 %v3701_v54, 0.0  ;;  %4023 = vrot.lane.b32.xlu1 %v3987_v63, %s5959_s28  ;;  %4343 = vrot.lane.b32.xlu0 %v4306_v11, %s5959_s28  ;;  %v9068_v63 = vpop.permute.xlu0 %4544  ;;  %v9074_v44 = vpop.permute.xlu1 %4548  ;;  %v3829_v19 = vmul.f32 %v8711_v38, %v8996_v49  ;;  %v4193_v11 = vmul.f32 %v8824_v37, %v8996_v49 }
 0x88f   : > { %v9056_v62 = vmin.f32 %v3714_v14, 6.0  ;;  %v3716_v29 = vmax.f32 %v3703_v48, 0.0  ;;  %v4596_v16 = vmul.f32 %v8822_v26, %v8996_v49 }
 0x890   : > { %3737 = vst [vmem:[#allocation2 + $0x88] sm:$0xff] %v9052_v12  ;;  %v9059_v39 = vmin.f32 %v3715_v17, 6.0 }
 0x891   : > { %3738 = vst [vmem:[#allocation2 + $0x90] sm:$0xff] %v9056_v62  ;;  %v9066_v4 = vmin.f32 %v3716_v29, 6.0  ;;  %v4597_v29 = vmul.f32 %v8822_v26, %v9003_v24  ;;  %v4741_v26 = vmul.f32 %v8851_v46, %v9003_v24 }
 0x892   : > { %3739 = vst [vmem:[#allocation2 + $0xa8] sm:$0xff] %v9059_v39  ;;  %3865 = vrot.lane.b32.xlu1 %v3827_v18, %s5958_s27  ;;  %4775 = vrot.lane.b32.xlu0 %v4738_v22, %s5959_s28  ;;  %v9082_v54 = vpop.permute.xlu0 %4639  ;;  %v9088_v14 = vpop.permute.xlu1 %4633  ;;  %v4308_v18 = vmul.f32 %v8832_v5, %v8996_v49  ;;  %v4309_v22 = vmul.f32 %v8832_v5, %v9003_v24 }
 0x893   : > { %3740 = vst [vmem:[#allocation2 + $0xb0] sm:$0xff] %v9066_v4 }
 0x896   : > { %4217 = vrot.lane.b32.xlu1 %v4192_v9, %s5958_s27  ;;  %4025 = vrot.lane.b32.xlu0 %v3988_v8, %s5959_s28  ;;  %v9096_v48 = vpop.permute.xlu0 %4351  ;;  %v9100_v17 = vpop.permute.xlu1 %4345  ;;  %v4740_v9 = vmul.f32 %v8851_v46, %v8996_v49 }
 0x89a   : > { %3869 = vrot.lane.b32.xlu1 %v3829_v19, %s5958_s27  ;;  %4219 = vrot.lane.b32.xlu0 %v4193_v11, %s5958_s27  ;;  %v9108_v37 = vpop.permute.xlu0 %4783  ;;  %v9114_v8 = vpop.permute.xlu1 %4777  ;;  %v3990_v19 = vmul.f32 %v8930_v57, %v8996_v49 }
 0x89e   : > { %4221 = vrot.lane.b32.xlu1 %v4194_v35, %s5958_s27  ;;  %4635 = vrot.lane.b32.xlu0 %v4596_v16, %s5958_s27  ;;  %v9122_v11 = vpop.permute.xlu0 %4651  ;;  %v9126_v5 = vpop.permute.xlu1 %4645  ;;  %v3991_v35 = vmul.f32 %v8930_v57, %v9003_v24  ;;  %v3830_v16 = vmul.f32 %v8711_v38, %v9003_v24  ;;  %v4599_v38 = vmul.f32 %v8837_v21, %v9018_v36 }
 0x89f   : > { %v4196_v57 = vmul.f32 %v8848_v23, %v9022_v0 }
 0x8a2   : > { %4637 = vrot.lane.b32.xlu1 %v4597_v29, %s5958_s27  ;;  %4347 = vrot.lane.b32.xlu0 %v4308_v18, %s5959_s28  ;;  %v9134_v46 = vpop.permute.xlu0 %4363  ;;  %v4195_v29 = vmul.f32 %v8848_v23, %v9018_v36  ;;  %v3832_v18 = vmul.f32 %v8720_v52, %v9018_v36  ;;  %v4743_v23 = vmul.f32 %v8885_v60, %v9018_v36 }
 0x8a6   : > { %4349 = vrot.lane.b32.xlu1 %v4309_v22, %s5959_s28  ;;  %4779 = vrot.lane.b32.xlu0 %v4740_v9, %s5959_s28  ;;  %v9140_v22 = vpop.permute.xlu1 %4357  ;;  %v9148_v9 = vpop.permute.xlu0 %4795 }
 0x8aa   : > { %4781 = vrot.lane.b32.xlu1 %v4741_v26, %s5959_s28  ;;  %4029 = vrot.lane.b32.xlu0 %v3990_v19, %s5959_s28  ;;  %v9152_v26 = vpop.permute.xlu1 %4789  ;;  %v4311_v19 = vmul.f32 %v8874_v13, %v9018_v36 }
 0x8ae   : > { %4031 = vrot.lane.b32.xlu1 %v3991_v35, %s5959_s28  ;;  %3871 = vrot.lane.b32.xlu0 %v3830_v16, %s5958_s27  ;;  %v4600_v35 = vmul.f32 %v8837_v21, %v9022_v0  ;;  %v9160_v16 = vpop.permute.xlu0 %4663  ;;  %v3993_v21 = vmul.f32 %v8960_v25, %v9018_v36 }
 0x8b2   : > { %4223 = vrot.lane.b32.xlu1 %v4195_v29, %s5958_s27  ;;  %3875 = vrot.lane.b32.xlu0 %v3832_v18, %s5958_s27  ;;  %v4312_v29 = vmul.f32 %v8874_v13, %v9022_v0  ;;  %v9166_v18 = vpop.permute.xlu1 %4657  ;;  %v3833_v13 = vmul.f32 %v8720_v52, %v9022_v0  ;;  %v4197_v52 = vmul.f32 %v8854_v61, %v9027_v7 }
 0x8b6   : > { %4641 = vrot.lane.b32.xlu1 %v4599_v38, %s5958_s27  ;;  %4225 = vrot.lane.b32.xlu0 %v4196_v57, %s5958_s27  ;;  %v4744_v38 = vmul.f32 %v8885_v60, %v9022_v0  ;;  %v9174_v57 = vpop.permute.xlu0 %4375  ;;  %v3994_v60 = vmul.f32 %v8960_v25, %v9022_v0 }
 0x8ba   : > { %4353 = vrot.lane.b32.xlu1 %v4311_v19, %s5959_s28  ;;  %4643 = vrot.lane.b32.xlu0 %v4600_v35, %s5958_s27  ;;  %v9178_v19 = vpop.permute.xlu1 %4369  ;;  %v4602_v35 = vmul.f32 %v8862_v53, %v9027_v7 }
 0x8be   : > { %4785 = vrot.lane.b32.xlu1 %v4743_v23, %s5959_s28  ;;  %4355 = vrot.lane.b32.xlu0 %v4312_v29, %s5959_s28  ;;  %v9186_v23 = vpop.permute.xlu0 %4807  ;;  %v4314_v29 = vmul.f32 %v8810_v32, %v9027_v7 }
 0x8c2   : > { %4035 = vrot.lane.b32.xlu1 %v3993_v21, %s5959_s28  ;;  %4787 = vrot.lane.b32.xlu0 %v4744_v38, %s5959_s28  ;;  %v9192_v21 = vpop.permute.xlu1 %4801  ;;  %v4746_v38 = vmul.f32 %v8891_v58, %v9027_v7 }
 0x8c6   : > { %3877 = vrot.lane.b32.xlu1 %v3833_v13, %s5958_s27  ;;  %4647 = vrot.lane.b32.xlu0 %v4602_v35, %s5958_s27  ;;  %v9200_v13 = vpop.permute.xlu0 %4033  ;;  %v9204_v25 = vpop.permute.xlu1 %4027  ;;  %v3835_v35 = vmul.f32 %v8713_v43, %v9027_v7 }
 0x8c7   : > { %10412 = vst [vmem:[#allocation34_spill] sm:$0xff] %v9200_v13  ;;  %10413 = vst [vmem:[#allocation45_spill] sm:$0xff] %v9204_v25  ;;  %v3996_v13 = vmul.f32 %v8941_v3, %v9027_v7 }
 0x8ca   : > { %4037 = vrot.lane.b32.xlu1 %v3994_v60, %s5959_s28  ;;  %4359 = vrot.lane.b32.xlu0 %v4314_v29, %s5959_s28  ;;  %v4198_v60 = vmul.f32 %v8854_v61, %v9034_v30  ;;  %v9212_v29 = vpop.permute.xlu0 %4982  ;;  %v4603_v61 = vmul.f32 %v8862_v53, %v9034_v30 }
 0x8cb   : > { %10414 = vst [vmem:[#allocation49_spill] sm:$0xff] %v9212_v29 }
 0x8ce   : > { %4227 = vrot.lane.b32.xlu1 %v4197_v52, %s5958_s27  ;;  %4791 = vrot.lane.b32.xlu0 %v4746_v38, %s5959_s28  ;;  %v3836_v52 = vmul.f32 %v8713_v43, %v9034_v30  ;;  %v9218_v38 = vpop.permute.xlu1 %4978  ;;  %v4315_v43 = vmul.f32 %v8810_v32, %v9034_v30  ;;  %v4199_v32 = vmul.f32 %v8830_v51, %v9052_v12 }
 0x8cf   : > { %10415 = vst [vmem:[#allocation39_spill] sm:$0xff] %v9218_v38 }
 0x8d2   : > { %3881 = vrot.lane.b32.xlu1 %v3835_v35, %s5958_s27  ;;  %4229 = vrot.lane.b32.xlu0 %v4198_v60, %s5958_s27  ;;  %v3997_v35 = vmul.f32 %v8941_v3, %v9034_v30  ;;  %v9226_v60 = vpop.permute.xlu0 %4039  ;;  %v9230_v29 = vpop.permute.xlu1 %4045  ;;  %v4747_v3 = vmul.f32 %v8891_v58, %v9034_v30 }
 0x8d3   : > { %10416 = vst [vmem:[#allocation21_spill] sm:$0xff] %v9226_v60  ;;  %10417 = vst [vmem:[#allocation36_spill] sm:$0xff] %v9230_v29  ;;  %v4003_v60 = vmul.f32 %v8957_v47, %v9066_v4 }
 0x8d6   : > { %4041 = vrot.lane.b32.xlu1 %v3996_v13, %s5959_s28  ;;  %3883 = vrot.lane.b32.xlu0 %v3836_v52, %s5958_s27  ;;  %v3838_v13 = vmul.f32 %v8789_v20, %v9052_v12  ;;  %v9238_v53 = vpop.permute.xlu0 %4986  ;;  %v3999_v52 = vmul.f32 %v8980_v27, %v9052_v12 }
 0x8d7   : > { %10418 = vst [vmem:[#allocation46_spill] sm:$0xff] %v9238_v53  ;;  %v4149_v53 = vmul.f32 %v8815_v40, %v8943_v41 }
 0x8da   : > { %4649 = vrot.lane.b32.xlu1 %v4603_v61, %s5958_s27  ;;  %4043 = vrot.lane.b32.xlu0 %v3997_v35, %s5959_s28  ;;  %v9244_v61 = vpop.permute.xlu1 %4990  ;;  %v4200_v35 = vmul.f32 %v8830_v51, %v9056_v62 }
 0x8db   : > { %10419 = vst [vmem:[#allocation48_spill] sm:$0xff] %v9244_v61 }
 0x8de   : > { %4361 = vrot.lane.b32.xlu1 %v4315_v43, %s5959_s28  ;;  %3887 = vrot.lane.b32.xlu0 %v3838_v13, %s5958_s27  ;;  %v9252_v43 = vpop.permute.xlu0 %3885  ;;  %v9256_v58 = vpop.permute.xlu1 %3891  ;;  %v4605_v13 = vmul.f32 %v8906_v10, %v9052_v12 }
 0x8df   : > { %10420 = vst [vmem:[#allocation37_spill] sm:$0xff] %v9252_v43  ;;  %10421 = vst [vmem:[#allocation10_spill] sm:$0xff] %v9256_v58 }
 0x8e2   : > { %4793 = vrot.lane.b32.xlu1 %v4747_v3, %s5959_s28  ;;  %4047 = vrot.lane.b32.xlu0 %v3999_v52, %s5959_s28  ;;  %v4606_v3 = vmul.f32 %v8906_v10, %v9056_v62  ;;  %v9262_v52 = vpop.permute.xlu0 %4051  ;;  %v9266_v51 = vpop.permute.xlu1 %4057 }
 0x8e3   : > { %10422 = vst [vmem:[#allocation8_spill] sm:$0xff] %v9262_v52  ;;  %10423 = vst [vmem:[#allocation30_spill] sm:$0xff] %v9266_v51 }
 0x8e6   : > { %4231 = vrot.lane.b32.xlu1 %v4199_v32, %s5958_s27  ;;  %4233 = vrot.lane.b32.xlu0 %v4200_v35, %s5958_s27  ;;  %v4317_v32 = vmul.f32 %v8911_v31, %v9052_v12  ;;  %v4318_v35 = vmul.f32 %v8911_v31, %v9056_v62  ;;  %v9274_v58 = vpop.permute.xlu1 %4998  ;;  %v9276_v10 = vpop.permute.xlu0 %4994 }
 0x8e7   : > { %10424 = vst [vmem:[#allocation38_spill] sm:$0xff] %v9274_v58  ;;  %10425 = vst [vmem:[#allocation51_spill] sm:$0xff] %v9276_v10 }
 0x8ea   : > { %4653 = vrot.lane.b32.xlu1 %v4605_v13, %s5958_s27  ;;  %4655 = vrot.lane.b32.xlu0 %v4606_v3, %s5958_s27  ;;  %v4749_v13 = vmul.f32 %v8913_v34, %v9052_v12  ;;  %v4750_v3 = vmul.f32 %v8913_v34, %v9056_v62 }
 0x8ee   : > { %4365 = vrot.lane.b32.xlu1 %v4317_v32, %s5959_s28  ;;  %4367 = vrot.lane.b32.xlu0 %v4318_v35, %s5959_s28  ;;  %v4608_v32 = vmul.f32 %v8846_v59, %v9059_v39  ;;  %v3839_v35 = vmul.f32 %v8789_v20, %v9056_v62  ;;  %v4752_v20 = vmul.f32 %v8926_v45, %v9059_v39 }
 0x8f2   : > { %4797 = vrot.lane.b32.xlu1 %v4749_v13, %s5959_s28  ;;  %4799 = vrot.lane.b32.xlu0 %v4750_v3, %s5959_s28  ;;  %v4320_v13 = vmul.f32 %v8920_v50, %v9059_v39  ;;  %v4000_v3 = vmul.f32 %v8980_v27, %v9056_v62  ;;  %v3841_v27 = vmul.f32 %v8787_v2, %v9059_v39 }
 0x8f4   : > { %v9284_v51 = vpop.permute.xlu0 %3863  ;;  %v9286_v31 = vpop.permute.xlu1 %4629 }
 0x8f6   : > { %4659 = vrot.lane.b32.xlu0 %v4608_v32, %s5958_s27  ;;  %3889 = vrot.lane.b32.xlu1 %v3839_v35, %s5958_s27  ;;  %v4201_v32 = vmul.f32 %v8902_v42, %v9059_v39 }
 0x8f8   : > { %v4216_v58 = vpop.permute.xlu0 %4215  ;;  %v4342_v34 = vpop.permute.xlu1 %4341 }
 0x8f9   : > { %v4263_v29 = vadd.f32 %v4216_v58, %v4149_v53  ;;  %v4551_v53 = vmul.f32 %v8815_v40, %v9016_v15 }
 0x8fa   : > { %4371 = vrot.lane.b32.xlu0 %v4320_v13, %s5959_s28  ;;  %4049 = vrot.lane.b32.xlu1 %v4000_v3, %s5959_s28  ;;  %v4002_v13 = vmul.f32 %v8957_v47, %v9059_v39 }
 0x8fb   : > { %v4695_v47 = vadd.f32 %v9286_v31, %v4551_v53 }
 0x8fc   : > { %v4632_v10 = vpop.permute.xlu0 %4631  ;;  %v4774_v43 = vpop.permute.xlu1 %4773 }
 0x8fe   : > { %4803 = vrot.lane.b32.xlu0 %v4752_v20, %s5959_s28  ;;  %4235 = vrot.lane.b32.xlu1 %v4201_v32, %s5958_s27  ;;  %v4202_v20 = vmul.f32 %v8902_v42, %v9066_v4  ;;  %v4609_v32 = vmul.f32 %v8846_v59, %v9066_v4  ;;  %v4321_v42 = vmul.f32 %v8920_v50, %v9066_v4 }
 0x8ff   : > { %v4150_v59 = vmul.f32 %v8943_v41, %v8991_v1  ;;  %v4753_v50 = vmul.f32 %v8926_v45, %v9066_v4 }
 0x900   : > { %v4344_v35 = vpop.permute.xlu0 %4343  ;;  %v9306_v52 = vpop.permute.xlu1 %4023 }
 0x901   : > { %10426 = vst [vmem:[#allocation40_spill] sm:$0xff] %v9306_v52  ;;  %v4378_v45 = vsel %vm840_vm6, %v4344_v35, %v9100_v17  ;;  %v4153_v17 = vmul.f32 %v8949_v33, %v8996_v49 }
 0x902   : > { %3893 = vrot.lane.b32.xlu0 %v3841_v27, %s5958_s27  ;;  %4053 = vrot.lane.b32.xlu1 %v4002_v13, %s5959_s28 }
 0x904   : > { %v4776_v3 = vpop.permute.xlu0 %4775  ;;  %v9314_v61 = vpop.permute.xlu1 %3865 }
 0x906   : > { %4237 = vrot.lane.b32.xlu0 %v4202_v20, %s5958_s27  ;;  %4661 = vrot.lane.b32.xlu1 %v4609_v32, %s5958_s27  ;;  %v4407_v20 = vadd.f32 %v4342_v34, %v4263_v29 }
 0x908   : > { %v9324_v27 = vpop.permute.xlu0 %4025  ;;  %v4218_v13 = vpop.permute.xlu1 %4217 }
 0x909   : > { %10427 = vst [vmem:[#allocation22_spill] sm:$0xff] %v9324_v27  ;;  %v4239_v38 = vsel %vm677_vm7, %v4216_v58, %v4218_v13  ;;  %v4151_v58 = vmul.f32 %v8943_v41, %v8993_v55 }
 0x90a   : > { %4055 = vrot.lane.b32.xlu0 %v4003_v60, %s5959_s28  ;;  %4373 = vrot.lane.b32.xlu1 %v4321_v42, %s5959_s28  ;;  %v4264_v32 = vadd.f32 %v4239_v38, %v4150_v59  ;;  %v4377_v60 = vsel %vm840_vm6, %v4342_v34, %v4344_v35  ;;  %v4839_v42 = vadd.f32 %v4774_v43, %v4695_v47 }
 0x90b   : > { %v4265_v29 = vadd.f32 %v4218_v13, %v4151_v58  ;;  %v4152_v34 = vmul.f32 %v8815_v40, %v8949_v33  ;;  %v4553_v35 = vmul.f32 %v9016_v15, %v8993_v55  ;;  %v4666_v47 = vsel %vm677_vm7, %v4632_v10, %v9088_v14 }
 0x90c   : > { %v4220_v52 = vpop.permute.xlu0 %4219  ;;  %v9337_v27 = vpop.permute.xlu1 %3869  ;;  %v4408_v38 = vadd.f32 %v4377_v60, %v4264_v32  ;;  %v4857_v41 = vmul.f32 %v10319_v28, %v4839_v42  ;;  %v4665_v32 = vsel %vm677_vm7, %v9286_v31, %v4632_v10  ;;  %v4809_v31 = vsel %vm840_vm6, %v4774_v43, %v4776_v3 }
 0x90d   : > { %10428 = vst [vmem:[#allocation53_spill] sm:$0xff] %v9337_v27  ;;  %v3842_v27 = vmul.f32 %v8787_v2, %v9066_v4  ;;  %v4409_v53 = vadd.f32 %v4378_v45, %v4265_v29  ;;  %v4154_v58 = vmul.f32 %v8949_v33, %v9003_v24  ;;  %v10429_v29 = vld [vmem:[#allocation6_spill] sm:$0xff]  ;;  %v4697_v10 = vadd.f32 %v4666_v47, %v4553_v35 }
 0x90e   : > { %4805 = vrot.lane.b32.xlu1 %v4753_v50, %s5959_s28  ;;  %4443 = vrot.lane.b32.xlu0 %v4407_v20, %s5963_s8  ;;  %v4266_v50 = vadd.f32 %v4220_v52, %v4152_v34 }
 0x910   : > { %v4636_v59 = vpop.permute.xlu0 %4635  ;;  %v4222_v25 = vpop.permute.xlu1 %4221 }
 0x911   : > { %v4240_v2 = vsel %vm677_vm7, %v4220_v52, %v4222_v25  ;;  %v4268_v34 = vadd.f32 %v4222_v25, %v4154_v58 }
 0x912   : > { %3895 = vrot.lane.b32.xlu1 %v3842_v27, %s5958_s27  ;;  %4445 = vrot.lane.b32.xlu0 %v4408_v38, %s5963_s8  ;;  %v4552_v27 = vmul.f32 %v9016_v15, %v8991_v1  ;;  %v4267_v52 = vadd.f32 %v4240_v2, %v4153_v17  ;;  %v4555_v38 = vmul.f32 %v10429_v29, %v8996_v49 }
 0x913   : > { %v4554_v49 = vmul.f32 %v8815_v40, %v10429_v29 }
 0x914   : > { %v4348_v13 = vpop.permute.xlu0 %4347  ;;  %v4638_v20 = vpop.permute.xlu1 %4637  ;;  %v4696_v60 = vadd.f32 %v4665_v32, %v4552_v27 }
 0x915   : > { %v4410_v42 = vadd.f32 %v4348_v13, %v4266_v50  ;;  %v4667_v15 = vsel %vm677_vm7, %v4636_v59, %v4638_v20  ;;  %v4698_v35 = vadd.f32 %v4636_v59, %v4554_v49  ;;  %v4668_v47 = vsel %vm677_vm7, %v4638_v20, %v9082_v54 }
 0x916   : > { %4447 = vrot.lane.b32.xlu1 %v4409_v53, %s5963_s8  ;;  %4893 = vrot.lane.b32.xlu0 %v4857_v41, %s5964_s9  ;;  %v4810_v41 = vsel %vm840_vm6, %v4776_v3, %v9114_v8  ;;  %v4840_v33 = vadd.f32 %v4809_v31, %v4696_v60  ;;  %v4699_v27 = vadd.f32 %v4667_v15, %v4555_v38  ;;  %v10431_v31 = vld [vmem:[#allocation29_spill] sm:$0xff] }
 0x917   : > { %v4841_v2 = vadd.f32 %v4810_v41, %v4697_v10  ;;  %v4556_v60 = vmul.f32 %v10429_v29, %v9003_v24 }
 0x918   : > { %v4780_v45 = vpop.permute.xlu0 %4779  ;;  %v4350_v53 = vpop.permute.xlu1 %4349 }
 0x919   : > { %v4379_v14 = vsel %vm840_vm6, %v4348_v13, %v4350_v53  ;;  %v4380_v43 = vsel %vm840_vm6, %v4350_v53, %v9096_v48  ;;  %v10430_v48 = vld [vmem:[#allocation31_spill] sm:$0xff]  ;;  %v4859_v58 = vmul.f32 %v10431_v31, %v4841_v2  ;;  %v4700_v53 = vadd.f32 %v4668_v47, %v4556_v60 }
 0x91a   : > { %v4411_v32 = vadd.f32 %v4379_v14, %v4267_v52  ;;  %4449 = vrot.lane.b32.xlu1 %v4410_v42, %s5963_s8  ;;  %v4412_v50 = vadd.f32 %v4380_v43, %v4268_v34  ;;  %v4858_v17 = vmul.f32 %v4840_v33, %v10430_v48  ;;  %v4842_v52 = vadd.f32 %v4780_v45, %v4698_v35 }
 0x91c   : > { %v9383_v8 = vpop.permute.xlu0 %4029  ;;  %4451 = vrot.lane.b32.xlu0 %v4411_v32, %s5963_s8  ;;  %v4782_v3 = vpop.permute.xlu1 %4781  ;;  %v4860_v54 = vmul.f32 %v10319_v28, %v4842_v52 }
 0x91d   : > { %v4811_v13 = vsel %vm840_vm6, %v4780_v45, %v4782_v3  ;;  %v4812_v59 = vsel %vm840_vm6, %v4782_v3, %v9108_v37  ;;  %v10432_v37 = vld [vmem:[#allocation15_spill] sm:$0xff]  ;;  %v4557_v3 = vmul.f32 %v8815_v40, %v9042_v56 }
 0x91e   : > { %v4843_v25 = vadd.f32 %v4811_v13, %v4699_v27  ;;  %4453 = vrot.lane.b32.xlu1 %v4412_v50, %s5963_s8  ;;  %v4844_v20 = vadd.f32 %v4812_v59, %v4700_v53  ;;  %v4155_v10 = vmul.f32 %v8815_v40, %v10432_v37  ;;  %v4156_v27 = vmul.f32 %v10432_v37, %v9018_v36 }
 0x91f   : > { %v4157_v50 = vmul.f32 %v10432_v37, %v9022_v0 }
 0x920   : > { %v9394_v42 = vpop.permute.xlu0 %3871  ;;  %4895 = vrot.lane.b32.xlu0 %v4858_v17, %s5964_s9  ;;  %v9397_v38 = vpop.permute.xlu1 %4031  ;;  %v4861_v41 = vmul.f32 %v4843_v25, %v10430_v48  ;;  %v4862_v45 = vmul.f32 %v10431_v31, %v4844_v20 }
 0x922   : > { %4897 = vrot.lane.b32.xlu1 %v4859_v58, %s5964_s9 }
 0x924   : > { %v9404_v15 = vpop.permute.xlu0 %3875  ;;  %4901 = vrot.lane.b32.xlu0 %v4861_v41, %s5964_s9  ;;  %v4224_v29 = vpop.permute.xlu1 %4223 }
 0x925   : > { %v4269_v33 = vadd.f32 %v4224_v29, %v4155_v10 }
 0x926   : > { %4899 = vrot.lane.b32.xlu1 %v4860_v54, %s5964_s9 }
 0x928   : > { %v4226_v14 = vpop.permute.xlu0 %4225  ;;  %v4642_v43 = vpop.permute.xlu1 %4641 }
 0x929   : > { %v4241_v2 = vsel %vm677_vm7, %v4224_v29, %v4226_v14  ;;  %v4271_v17 = vadd.f32 %v4226_v14, %v4157_v50  ;;  %v4701_v35 = vadd.f32 %v4642_v43, %v4557_v3 }
 0x92a   : > { %4903 = vrot.lane.b32.xlu1 %v4862_v45, %s5964_s9  ;;  %v4270_v13 = vadd.f32 %v4241_v2, %v4156_v27 }
 0x92c   : > { %v4644_v34 = vpop.permute.xlu0 %4643  ;;  %v4354_v32 = vpop.permute.xlu1 %4353 }
 0x92d   : > { %v4413_v49 = vadd.f32 %v4354_v32, %v4269_v33 }
 0x92f   : > { %4455 = vrot.lane.b32.xlu0 %v4413_v49, %s5963_s8 }
 0x930   : > { %v4356_v25 = vpop.permute.xlu0 %4355  ;;  %v4786_v47 = vpop.permute.xlu1 %4785 }
 0x931   : > { %v4381_v58 = vsel %vm840_vm6, %v4354_v32, %v4356_v25  ;;  %v4382_v60 = vsel %vm840_vm6, %v4356_v25, %v9140_v22  ;;  %v4845_v53 = vadd.f32 %v4786_v47, %v4701_v35  ;;  %v10433_v22 = vld [vmem:[#allocation32_spill] sm:$0xff]  ;;  %v4669_v25 = vsel %vm677_vm7, %v4642_v43, %v4644_v34 }
 0x932   : > { %v4414_v52 = vadd.f32 %v4381_v58, %v4270_v13  ;;  %v4415_v59 = vadd.f32 %v4382_v60, %v4271_v17  ;;  %v4158_v10 = vmul.f32 %v8815_v40, %v10433_v22  ;;  %v4670_v58 = vsel %vm677_vm7, %v4644_v34, %v9126_v5  ;;  %v10436_v5 = vld [vmem:[#allocation13_spill] sm:$0xff] }
 0x933   : > { %v4863_v20 = vmul.f32 %v10319_v28, %v4845_v53  ;;  %v4159_v53 = vmul.f32 %v10433_v22, %v9027_v7  ;;  %v4560_v34 = vmul.f32 %v8815_v40, %v10436_v5 }
 0x934   : > { %v4788_v41 = vpop.permute.xlu0 %4787  ;;  %4459 = vrot.lane.b32.xlu1 %v4415_v59, %s5963_s8  ;;  %4457 = vrot.lane.b32.xlu0 %v4414_v52, %s5963_s8  ;;  %v9425_v54 = vpop.permute.xlu1 %4035  ;;  %v4558_v52 = vmul.f32 %v9042_v56, %v9018_v36  ;;  %v4559_v59 = vmul.f32 %v9042_v56, %v9022_v0  ;;  %v4561_v56 = vmul.f32 %v10436_v5, %v9027_v7 }
 0x935   : > { %v4814_v43 = vsel %vm840_vm6, %v4788_v41, %v9152_v26 }
 0x938   : > { %v4648_v29 = vpop.permute.xlu0 %4647  ;;  %4905 = vrot.lane.b32.xlu0 %v4863_v20, %s5964_s9  ;;  %v9429_v45 = vpop.permute.xlu1 %3877  ;;  %v4160_v20 = vmul.f32 %v10433_v22, %v9034_v30 }
 0x93c   : > { %v4360_v14 = vpop.permute.xlu0 %4359  ;;  %v9431_v37 = vpop.permute.xlu1 %4037 }
 0x940   : > { %v4792_v33 = vpop.permute.xlu0 %4791  ;;  %v4228_v32 = vpop.permute.xlu1 %4227 }
 0x941   : > { %v4272_v2 = vadd.f32 %v4228_v32, %v4158_v10  ;;  %v4813_v10 = vsel %vm840_vm6, %v4786_v47, %v4788_v41 }
 0x943   : > { %v4416_v49 = vadd.f32 %v4360_v14, %v4272_v2  ;;  %v4703_v2 = vadd.f32 %v4670_v58, %v4559_v59  ;;  %v4704_v58 = vadd.f32 %v4648_v29, %v4560_v34 }
 0x944   : > { %v4230_v27 = vpop.permute.xlu0 %4229  ;;  %v9435_v50 = vpop.permute.xlu1 %3881 }
 0x945   : > { %4461 = vrot.lane.b32.xlu1 %v4416_v49, %s5963_s8  ;;  %v4242_v60 = vsel %vm677_vm7, %v4228_v32, %v4230_v27  ;;  %v4702_v32 = vadd.f32 %v4669_v25, %v4558_v52  ;;  %v4274_v49 = vadd.f32 %v4230_v27, %v4160_v20  ;;  %v4562_v52 = vmul.f32 %v10436_v5, %v9034_v30 }
 0x946   : > { %v4273_v36 = vadd.f32 %v4242_v60, %v4159_v53  ;;  %v4848_v53 = vadd.f32 %v4792_v33, %v4704_v58 }
 0x947   : > { %v4846_v41 = vadd.f32 %v4813_v10, %v4702_v32 }
 0x948   : > { %v9438_v3 = vpop.permute.xlu0 %3883  ;;  %v9440_v13 = vpop.permute.xlu1 %4041 }
 0x949   : > { %10434 = vst [vmem:[#allocation27_spill] sm:$0xff] %v9440_v13  ;;  %v4847_v13 = vadd.f32 %v4814_v43, %v4703_v2  ;;  %v4864_v59 = vmul.f32 %v4846_v41, %v10430_v48 }
 0x94c   : > { %v9442_v17 = vpop.permute.xlu0 %4043  ;;  %v4650_v35 = vpop.permute.xlu1 %4649 }
 0x94d   : > { %10435 = vst [vmem:[#allocation50_spill] sm:$0xff] %v9442_v17  ;;  %v4671_v22 = vsel %vm677_vm7, %v4648_v29, %v4650_v35  ;;  %v4865_v29 = vmul.f32 %v10431_v31, %v4847_v13  ;;  %v10437_v13 = vld [vmem:[#allocation20_spill] sm:$0xff] }
 0x94e   : > { %v4705_v60 = vadd.f32 %v4671_v22, %v4561_v56  ;;  %v4162_v41 = vmul.f32 %v10437_v13, %v9052_v12 }
 0x950   : > { %v9461_v17 = vpop.permute.xlu0 %3887  ;;  %v4362_v0 = vpop.permute.xlu1 %4361 }
 0x951   : > { %v4383_v47 = vsel %vm840_vm6, %v4360_v14, %v4362_v0  ;;  %v4384_v26 = vsel %vm840_vm6, %v4362_v0, %v9134_v46  ;;  %v4672_v14 = vsel %vm677_vm7, %v4650_v35, %v9122_v11  ;;  %v4866_v11 = vmul.f32 %v10319_v28, %v4848_v53 }
 0x952   : > { %v4417_v40 = vadd.f32 %v4383_v47, %v4273_v36  ;;  %v4418_v25 = vadd.f32 %v4384_v26, %v4274_v49  ;;  %v4706_v43 = vadd.f32 %v4672_v14, %v4562_v52  ;;  %v4163_v49 = vmul.f32 %v10437_v13, %v9056_v62 }
 0x954   : > { %v9469_v27 = vpop.permute.xlu0 %4047  ;;  %4465 = vrot.lane.b32.xlu1 %v4418_v25, %s5963_s8  ;;  %4463 = vrot.lane.b32.xlu0 %v4417_v40, %s5963_s8  ;;  %v4794_v7 = vpop.permute.xlu1 %4793 }
 0x955   : > { %v4815_v46 = vsel %vm840_vm6, %v4792_v33, %v4794_v7  ;;  %v4816_v10 = vsel %vm840_vm6, %v4794_v7, %v9148_v9  ;;  %v9490_v9 = vld [vmem:[#allocation2 + $0x18] sm:$0xff] }
 0x956   : > { %v4849_v20 = vadd.f32 %v4815_v46, %v4705_v60  ;;  %v4850_v35 = vadd.f32 %v4816_v10, %v4706_v43  ;;  %v4161_v2 = vmul.f32 %v9490_v9, %v10437_v13 }
 0x958   : > { %v4234_v34 = vpop.permute.xlu0 %4233  ;;  %4909 = vrot.lane.b32.xlu1 %v4865_v29, %s5964_s9  ;;  %4907 = vrot.lane.b32.xlu0 %v4864_v59, %s5964_s9  ;;  %v4232_v30 = vpop.permute.xlu1 %4231  ;;  %v4867_v5 = vmul.f32 %v4849_v20, %v10430_v48  ;;  %v4868_v36 = vmul.f32 %v10431_v31, %v4850_v35 }
 0x959   : > { %v4275_v0 = vadd.f32 %v4232_v30, %v4161_v2  ;;  %v4277_v56 = vadd.f32 %v4234_v34, %v4163_v49  ;;  %v4243_v22 = vsel %vm677_vm7, %v4232_v30, %v4234_v34 }
 0x95a   : > { %v4276_v7 = vadd.f32 %v4243_v22, %v4162_v41  ;;  %v4165_v22 = vmul.f32 %v9050_v6, %v9059_v39 }
 0x95c   : > { %v4656_v32 = vpop.permute.xlu0 %4655  ;;  %4911 = vrot.lane.b32.xlu1 %v4866_v11, %s5964_s9  ;;  %4913 = vrot.lane.b32.xlu0 %v4867_v5, %s5964_s9  ;;  %v9488_v33 = vpop.permute.xlu1 %4653 }
 0x95d   : > { %v4674_v2 = vsel %vm677_vm7, %v4656_v32, %v9166_v18 }
 0x960   : > { %v4368_v47 = vpop.permute.xlu0 %4367  ;;  %4915 = vrot.lane.b32.xlu1 %v4868_v36, %s5964_s9  ;;  %v4366_v26 = vpop.permute.xlu1 %4365  ;;  %v4673_v36 = vsel %vm677_vm7, %v9488_v33, %v4656_v32  ;;  %v4567_v32 = vmul.f32 %v9074_v44, %v9059_v39 }
 0x961   : > { %v4386_v40 = vsel %vm840_vm6, %v4368_v47, %v9178_v19  ;;  %v4419_v25 = vadd.f32 %v4366_v26, %v4275_v0  ;;  %v4385_v60 = vsel %vm840_vm6, %v4366_v26, %v4368_v47  ;;  %v4164_v19 = vmul.f32 %v9490_v9, %v9050_v6 }
 0x962   : > { %v4421_v58 = vadd.f32 %v4386_v40, %v4277_v56  ;;  %v4420_v46 = vadd.f32 %v4385_v60, %v4276_v7  ;;  %v4565_v0 = vmul.f32 %v9068_v63, %v9056_v62  ;;  %v4564_v56 = vmul.f32 %v9068_v63, %v9052_v12 }
 0x963   : > { %4467 = vrot.lane.b32.xlu0 %v4419_v25, %s5963_s8  ;;  %v4166_v47 = vmul.f32 %v9050_v6, %v9066_v4  ;;  %v4568_v62 = vmul.f32 %v9074_v44, %v9066_v4 }
 0x964   : > { %v4800_v52 = vpop.permute.xlu0 %4799  ;;  %4471 = vrot.lane.b32.xlu1 %v4421_v58, %s5963_s8  ;;  %v4798_v14 = vpop.permute.xlu1 %4797  ;;  %v4709_v41 = vadd.f32 %v4674_v2, %v4565_v0  ;;  %v4708_v40 = vadd.f32 %v4673_v36, %v4564_v56 }
 0x965   : > { %v4818_v18 = vsel %vm840_vm6, %v4800_v52, %v9192_v21  ;;  %v4817_v26 = vsel %vm840_vm6, %v4798_v14, %v4800_v52 }
 0x966   : > { %v4853_v52 = vadd.f32 %v4818_v18, %v4709_v41  ;;  %v10438_v41 = vld [vmem:[#allocation11_spill] sm:$0xff] }
 0x967   : > { %4469 = vrot.lane.b32.xlu0 %v4420_v46, %s5963_s8  ;;  %v4852_v46 = vadd.f32 %v4817_v26, %v4708_v40  ;;  %v3785_v40 = vmul.f32 %v10438_v41, %v8993_v55  ;;  %v10441_v55 = vld [vmem:[#allocation40_spill] sm:$0xff] }
 0x968   : > { %v4660_v59 = vpop.permute.xlu0 %4659  ;;  %v9507_v29 = vpop.permute.xlu1 %3889  ;;  %v4871_v2 = vmul.f32 %v10431_v31, %v4853_v52  ;;  %v10443_v52 = vld [vmem:[#allocation25_spill] sm:$0xff] }
 0x969   : > { %v4870_v36 = vmul.f32 %v4852_v46, %v10430_v48 }
 0x96c   : > { %v4372_v53 = vpop.permute.xlu0 %4371  ;;  %v9509_v20 = vpop.permute.xlu1 %4049 }
 0x970   : > { %v4804_v10 = vpop.permute.xlu0 %4803  ;;  %v4236_v43 = vpop.permute.xlu1 %4235 }
 0x971   : > { %v4278_v34 = vadd.f32 %v4236_v43, %v4164_v19 }
 0x973   : > { %v4422_v30 = vadd.f32 %v4372_v53, %v4278_v34 }
 0x974   : > { %v9513_v11 = vpop.permute.xlu0 %3893  ;;  %v9515_v35 = vpop.permute.xlu1 %4053 }
 0x975   : > { %4473 = vrot.lane.b32.xlu1 %v4422_v30, %s5963_s8 }
 0x978   : > { %v4238_v5 = vpop.permute.xlu0 %4237  ;;  %v4662_v13 = vpop.permute.xlu1 %4661 }
 0x979   : > { %v4244_v49 = vsel %vm677_vm7, %v4236_v43, %v4238_v5  ;;  %v4280_v25 = vadd.f32 %v4238_v5, %v4166_v47  ;;  %v4675_v6 = vsel %vm677_vm7, %v4660_v59, %v4662_v13  ;;  %v4676_v21 = vsel %vm677_vm7, %v4662_v13, %v9160_v16 }
 0x97a   : > { %v4279_v12 = vadd.f32 %v4244_v49, %v4165_v22  ;;  %v4711_v43 = vadd.f32 %v4675_v6, %v4567_v32  ;;  %v4712_v34 = vadd.f32 %v4676_v21, %v4568_v62  ;;  %v4563_v16 = vmul.f32 %v9490_v9, %v9068_v63 }
 0x97b   : > { %v3929_v21 = vadd.f32 %v9314_v61, %v3785_v40  ;;  %v4061_v40 = vsel %vm840_vm6, %v9383_v8, %v9397_v38 }
 0x97c   : > { %v9538_v58 = vpop.permute.xlu0 %4055  ;;  %v4374_v60 = vpop.permute.xlu1 %4373  ;;  %v4707_v56 = vadd.f32 %v9488_v33, %v4563_v16 }
 0x97d   : > { %v4387_v7 = vsel %vm840_vm6, %v4372_v53, %v4374_v60  ;;  %v4388_v39 = vsel %vm840_vm6, %v4374_v60, %v9174_v57  ;;  %v4566_v53 = vmul.f32 %v9490_v9, %v9074_v44 }
 0x97e   : > { %v4423_v4 = vadd.f32 %v4387_v7, %v4279_v12  ;;  %v4424_v19 = vadd.f32 %v4388_v39, %v4280_v25  ;;  %v4851_v44 = vadd.f32 %v4798_v14, %v4707_v56  ;;  %v3898_v14 = vsel %vm677_vm7, %v9284_v51, %v9314_v61  ;;  %v10439_v12 = vld [vmem:[#allocation45_spill] sm:$0xff]  ;;  %v10440_v25 = vld [vmem:[#allocation22_spill] sm:$0xff] }
 0x97f   : > { %v4710_v22 = vadd.f32 %v4660_v59, %v4566_v53  ;;  %v4060_v60 = vsel %vm840_vm6, %v10440_v25, %v10439_v12  ;;  %v4059_v7 = vsel %vm840_vm6, %v10441_v55, %v10440_v25  ;;  %v10442_v39 = vld [vmem:[#allocation53_spill] sm:$0xff] }
 0x980   : > { %v9546_v30 = vpop.permute.xlu0 %4443  ;;  %4477 = vrot.lane.b32.xlu1 %v4424_v19, %s5963_s8  ;;  %4475 = vrot.lane.b32.xlu0 %v4423_v4, %s5963_s8  ;;  %v4806_v5 = vpop.permute.xlu1 %4805  ;;  %v4869_v33 = vmul.f32 %v10319_v28, %v4851_v44  ;;  %v3899_v46 = vsel %vm677_vm7, %v10443_v52, %v10442_v39  ;;  %v4091_v16 = vadd.f32 %v4060_v60, %v3929_v21  ;;  %v10449_v52 = vld [vmem:[#allocation26_spill] sm:$0xff] }
 0x981   : > { %v4819_v57 = vsel %vm840_vm6, %v4804_v10, %v4806_v5  ;;  %v4820_v13 = vsel %vm840_vm6, %v4806_v5, %v9186_v23  ;;  %v4854_v18 = vadd.f32 %v4804_v10, %v4710_v22  ;;  %v3784_v10 = vmul.f32 %v10438_v41, %v8991_v1  ;;  %v10444_v1 = vld [vmem:[#allocation41_spill] sm:$0xff] }
 0x982   : > { %v4855_v49 = vadd.f32 %v4819_v57, %v4711_v43  ;;  %v4856_v0 = vadd.f32 %v4820_v13, %v4712_v34  ;;  %v3786_v4 = vmul.f32 %v9490_v9, %v10444_v1  ;;  %v10445_v34 = vld [vmem:[#allocation33_spill] sm:$0xff]  ;;  %v3788_v61 = vmul.f32 %v10444_v1, %v9003_v24  ;;  %v10446_v24 = vld [vmem:[#allocation34_spill] sm:$0xff] }
 0x983   : > { %v4872_v59 = vmul.f32 %v10319_v28, %v4854_v18  ;;  %v3928_v19 = vadd.f32 %v3898_v14, %v3784_v10  ;;  %v3897_v5 = vsel %vm677_vm7, %v10445_v34, %v9284_v51  ;;  %v3900_v53 = vsel %vm677_vm7, %v10442_v39, %v9394_v42 }
 0x984   : > { %v4446_v47 = vpop.permute.xlu0 %4445  ;;  %4921 = vrot.lane.b32.xlu1 %v4871_v2, %s5964_s9  ;;  %4919 = vrot.lane.b32.xlu0 %v4870_v36, %s5964_s9  ;;  %v9562_v63 = vpop.permute.xlu1 %3895  ;;  %v4873_v23 = vmul.f32 %v4855_v49, %v10430_v48  ;;  %v4874_v26 = vmul.f32 %v10431_v31, %v4856_v0  ;;  %v3783_v57 = vmul.f32 %v9490_v9, %v10438_v41  ;;  %v5930_v36 = vld [vmem:[#allocation2 + $0x28] sm:$0xff] }
 0x985   : > { %v4090_v13 = vadd.f32 %v4059_v7, %v3928_v19  ;;  %v3930_v2 = vadd.f32 %v3899_v46, %v3786_v4  ;;  %v3787_v49 = vmul.f32 %v5930_v36, %v10444_v1  ;;  %v3932_v56 = vadd.f32 %v9394_v42, %v3788_v61  ;;  %v10448_v42 = vld [vmem:[#allocation12_spill] sm:$0xff] }
 0x986   : > { %v3927_v51 = vadd.f32 %v3897_v5, %v3783_v57  ;;  %v4062_v18 = vsel %vm840_vm6, %v9397_v38, %v10446_v24 }
 0x987   : > { %v4092_v22 = vadd.f32 %v9383_v8, %v3930_v2  ;;  %v3931_v44 = vadd.f32 %v3900_v53, %v3787_v49  ;;  %v4108_v14 = vmul.f32 %v4090_v13, %v10448_v42  ;;  %v4094_v12 = vadd.f32 %v4062_v18, %v3932_v56 }
 0x988   : > { %4927 = vrot.lane.b32.xlu1 %v4874_v26, %s5964_s9  ;;  %4925 = vrot.lane.b32.xlu0 %v4873_v23, %s5964_s9  ;;  %v4448_v32 = vpop.permute.xlu1 %4447  ;;  %v4894_v62 = vpop.permute.xlu0 %4893  ;;  %v10447_v26 = vld [vmem:[#allocation17_spill] sm:$0xff]  ;;  %v4089_v41 = vadd.f32 %v10441_v55, %v3927_v51  ;;  %v4479_v55 = vsel %vm1272_vm9, %v9546_v30, %v4446_v47 }
 0x989   : > { %v4093_v7 = vadd.f32 %v4061_v40, %v3931_v44  ;;  %v4110_v46 = vmul.f32 %v10449_v52, %v4092_v22 }
 0x98a   : > { %v4107_v4 = vmul.f32 %v10449_v52, %v4089_v41 }
 0x98b   : > { %v4111_v53 = vmul.f32 %v4093_v7, %v10448_v42 }
 0x98c   : > { %4923 = vrot.lane.b32.xlu1 %v4872_v59, %s5964_s9  ;;  %4917 = vrot.lane.b32.xlu0 %v4869_v33, %s5964_s9  ;;  %v4450_v6 = vpop.permute.xlu1 %4449  ;;  %v4109_v33 = vmul.f32 %v10447_v26, %v4091_v16  ;;  %v4480_v59 = vsel %vm1272_vm9, %v4446_v47, %v4448_v32  ;;  %v4509_v61 = vadd.f32 %v4479_v55, %v4107_v4  ;;  %v10450_v47 = vld [vmem:[#allocation39_spill] sm:$0xff] }
 0x98d   : > { %v4510_v39 = vadd.f32 %v4480_v59, %v4108_v14 }
 0x98e   : > { %v4452_v43 = vpop.permute.xlu0 %4451  ;;  %v4511_v25 = vadd.f32 %v4448_v32, %v4109_v33  ;;  %v4112_v32 = vmul.f32 %v10447_v26, %v4094_v12 }
 0x98f   : > { %v4481_v60 = vsel %vm1272_vm9, %v4450_v6, %v4452_v43 }
 0x990   : > { %v4454_v0 = vpop.permute.xlu1 %4453  ;;  %v4512_v8 = vadd.f32 %v4481_v60, %v4110_v46 }
 0x991   : > { %v4482_v6 = vsel %vm1272_vm9, %v4452_v43, %v4454_v0  ;;  %v4514_v30 = vadd.f32 %v4454_v0, %v4112_v32  ;;  %v10451_v43 = vld [vmem:[#allocation49_spill] sm:$0xff]  ;;  %v3902_v32 = vsel %vm677_vm7, %v9404_v15, %v9429_v45 }
 0x992   : > { %v4896_v23 = vpop.permute.xlu0 %4895  ;;  %v4513_v2 = vadd.f32 %v4482_v6, %v4111_v53  ;;  %v10453_v6 = vld [vmem:[#allocation14_spill] sm:$0xff]  ;;  %v5932_v53 = vld [vmem:[#allocation2 + $0x48] sm:$0xff] }
 0x993   : > { %v4929_v5 = vsel %vm1734_vm11, %v4894_v62, %v4896_v23 }
 0x994   : > { %v4898_v10 = vpop.permute.xlu1 %4897  ;;  %v4959_v36 = vadd.f32 %v4929_v5, %v4509_v61  ;;  %v3903_v5 = vsel %vm677_vm7, %v10453_v6, %v9435_v50 }
 0x995   : > { %v4930_v21 = vsel %vm1734_vm11, %v4896_v23, %v4898_v10  ;;  %v4961_v1 = vadd.f32 %v4898_v10, %v4511_v25 }
 0x996   : > { %v4960_v38 = vadd.f32 %v4930_v21, %v4510_v39  ;;  %v4902_v19 = vpop.permute.xlu0 %4901  ;;  %v5001_v23 = vadd.f32 %v10450_v47, %v4959_v36 }
 0x997   : > { %v5003_v13 = vadd.f32 %v10450_v47, %v4961_v1 }
 0x998   : > { %v4900_v34 = vpop.permute.xlu1 %4899  ;;  %v5002_v49 = vadd.f32 %v10450_v47, %v4960_v38  ;;  %v5019_v12 = vmax.f32 %v5001_v23, 0.0  ;;  %v5931_v38 = vld [vmem:[#allocation2 + $0x50] sm:$0xff] }
 0x999   : > { %v4931_v16 = vsel %vm1734_vm11, %v4900_v34, %v4902_v19  ;;  %v5021_v24 = vmax.f32 %v5003_v13, 0.0 }
 0x99a   : > { %v4962_v57 = vadd.f32 %v4931_v16, %v4512_v8  ;;  %v5020_v33 = vmax.f32 %v5002_v49, 0.0  ;;  %v5037_v46 = vmin.f32 %v5019_v12, 6.0  ;;  %v10454_v16 = vld [vmem:[#allocation4_spill] sm:$0xff]  ;;  %v4063_v49 = vsel %vm840_vm6, %v9425_v54, %v9431_v37 }
 0x99b   : > { %v5039_v14 = vmin.f32 %v5021_v24, 6.0  ;;  %v3792_v61 = vmul.f32 %v9490_v9, %v10454_v16 }
 0x99c   : > { %v4904_v56 = vpop.permute.xlu1 %4903  ;;  %v5004_v44 = vadd.f32 %v10451_v43, %v4962_v57  ;;  %v5038_v25 = vmin.f32 %v5020_v33, 6.0  ;;  %v5933_v33 = vld [vmem:[#allocation2 + $0x70] sm:$0xff] }
 0x99d   : > { %v4932_v51 = vsel %vm1734_vm11, %v4902_v19, %v4904_v56  ;;  %v4964_v22 = vadd.f32 %v4904_v56, %v4514_v30  ;;  %v10452_v19 = vld [vmem:[#allocation16_spill] sm:$0xff]  ;;  %v10455_v30 = vld [vmem:[#allocation21_spill] sm:$0xff] }
 0x99e   : > { %v4963_v62 = vadd.f32 %v4932_v51, %v4513_v2  ;;  %v5022_v41 = vmax.f32 %v5004_v44, 0.0  ;;  %v3791_v34 = vmul.f32 %v5931_v38, %v10452_v19  ;;  %v3790_v57 = vmul.f32 %v5932_v53, %v10452_v19 }
 0x99f   : > { %v5006_v18 = vadd.f32 %v10451_v43, %v4964_v22  ;;  %v4064_v47 = vsel %vm840_vm6, %v9431_v37, %v10455_v30  ;;  %v3936_v51 = vadd.f32 %v3903_v5, %v3792_v61  ;;  %v10456_v22 = vld [vmem:[#allocation35_spill] sm:$0xff]  ;;  %v3904_v37 = vsel %vm677_vm7, %v9435_v50, %v9438_v3 }
 0x9a0   : > { %v5005_v0 = vadd.f32 %v10451_v43, %v4963_v62  ;;  %v5040_v7 = vmin.f32 %v5022_v41, 6.0  ;;  %v3935_v36 = vadd.f32 %v9429_v45, %v3791_v34  ;;  %v3934_v56 = vadd.f32 %v3902_v32, %v3790_v57 }
 0x9a1   : > { %v5024_v59 = vmax.f32 %v5006_v18, 0.0  ;;  %v4456_v1 = vpop.permute.xlu0 %4455  ;;  %v3901_v43 = vsel %vm677_vm7, %v10456_v22, %v9404_v15  ;;  %v3789_v62 = vmul.f32 %v9490_v9, %v10452_v19  ;;  %v3794_v45 = vmul.f32 %v5933_v33, %v10454_v16 }
 0x9a2   : > { %v5023_v40 = vmax.f32 %v5005_v0, 0.0  ;;  %v5057_v55 = vpack.c.bf16 %v5040_v7, %v5037_v46  ;;  %v4097_v44 = vadd.f32 %v4064_v47, %v3935_v36  ;;  %v4096_v24 = vadd.f32 %v4063_v49, %v3934_v56 }
 0x9a3   : > { %v5042_v10 = vmin.f32 %v5024_v59, 6.0  ;;  %v3933_v0 = vadd.f32 %v3901_v43, %v3789_v62  ;;  %v5934_v59 = vld [vmem:[#allocation2 + $0x68] sm:$0xff] }
 0x9a4   : > { %v5041_v60 = vmin.f32 %v5023_v40, 6.0  ;;  %v3793_v41 = vmul.f32 %v5934_v59, %v10454_v16  ;;  %v10457_v40 = vld [vmem:[#allocation27_spill] sm:$0xff]  ;;  %v4114_v46 = vmul.f32 %v4096_v24, %v10448_v42 }
 0x9a5   : > { %v5059_v21 = vpack.c.bf16 %v5042_v10, %v5039_v14  ;;  %v4098_v15 = vadd.f32 %v10457_v40, %v3936_v51  ;;  %v10458_v14 = vld [vmem:[#allocation36_spill] sm:$0xff]  ;;  %v10459_v10 = vld [vmem:[#allocation50_spill] sm:$0xff]  ;;  %v4095_v7 = vadd.f32 %v9425_v54, %v3933_v0 }
 0x9a6   : > { %v5058_v39 = vpack.c.bf16 %v5041_v60, %v5038_v25  ;;  %v4458_v4 = vpop.permute.xlu0 %4457  ;;  %v4460_v8 = vpop.permute.xlu1 %4459  ;;  %v4066_v12 = vsel %vm840_vm6, %v10459_v10, %v10458_v14  ;;  %v3938_v25 = vadd.f32 %v9438_v3, %v3794_v45  ;;  %v4065_v60 = vsel %vm840_vm6, %v10457_v40, %v10459_v10 }
 0x9a7   : > { %5084 = vrot.lane.b32.xlu1 %v5059_v21, %s5965_s21  ;;  %v4115_v21 = vmul.f32 %v10447_v26, %v4097_v44  ;;  %v4484_v50 = vsel %vm1272_vm9, %v4458_v4, %v4460_v8  ;;  %v4116_v16 = vmul.f32 %v10449_v52, %v4098_v15  ;;  %v4483_v61 = vsel %vm1272_vm9, %v4456_v1, %v4458_v4  ;;  %v10460_v4 = vld [vmem:[#allocation46_spill] sm:$0xff] }
 0x9a8   : > { %5082 = vrot.lane.b32.xlu0 %v5058_v39, %s5965_s21  ;;  %v3937_v39 = vadd.f32 %v3904_v37, %v3793_v41  ;;  %v4100_v19 = vadd.f32 %v4066_v12, %v3938_v25  ;;  %v4516_v5 = vadd.f32 %v4484_v50, %v4114_v46  ;;  %v4113_v54 = vmul.f32 %v10449_v52, %v4095_v7 }
 0x9a9   : > { %v4517_v34 = vadd.f32 %v4460_v8, %v4115_v21 }
 0x9aa   : > { %v4906_v13 = vpop.permute.xlu0 %4905  ;;  %v4099_v6 = vadd.f32 %v4065_v60, %v3937_v39  ;;  %v4118_v49 = vmul.f32 %v10447_v26, %v4100_v19  ;;  %v4515_v51 = vadd.f32 %v4483_v61, %v4113_v54  ;;  %v3906_v61 = vsel %vm677_vm7, %v9461_v17, %v9507_v29 }
 0x9ac   : > { %5080 = vrot.lane.b32.xlu0 %v5057_v55, %s5965_s21  ;;  %v4117_v22 = vmul.f32 %v4099_v6, %v10448_v42  ;;  %v5935_v6 = vld [vmem:[#allocation2 + $0x90] sm:$0xff] }
 0x9b7   : > { %v4462_v2 = vpop.permute.xlu1 %4461 }
 0x9c6   : > { %v4464_v18 = vpop.permute.xlu0 %4463  ;;  %v4466_v23 = vpop.permute.xlu1 %4465 }
 0x9c7   : > { %v4485_v32 = vsel %vm1272_vm9, %v4462_v2, %v4464_v18  ;;  %v4486_v8 = vsel %vm1272_vm9, %v4464_v18, %v4466_v23  ;;  %v4520_v1 = vadd.f32 %v4466_v23, %v4118_v49  ;;  %v10461_v18 = vld [vmem:[#allocation48_spill] sm:$0xff]  ;;  %v5937_v49 = vld [vmem:[#allocation2 + $0xb0] sm:$0xff] }
 0x9c8   : > { %v4518_v57 = vadd.f32 %v4485_v32, %v4116_v16  ;;  %v4519_v62 = vadd.f32 %v4486_v8, %v4117_v22  ;;  %v10464_v8 = vld [vmem:[#allocation28_spill] sm:$0xff] }
 0x9c9   : > { %v5938_v22 = vld [vmem:[#allocation2 + $0xa8] sm:$0xff] }
 0x9ca   : > { %v4908_v55 = vpop.permute.xlu0 %4907  ;;  %v4910_v38 = vpop.permute.xlu1 %4909 }
 0x9cb   : > { %v4934_v3 = vsel %vm1734_vm11, %v4908_v55, %v4910_v38  ;;  %v4967_v53 = vadd.f32 %v4910_v38, %v4517_v34  ;;  %v4933_v2 = vsel %vm1734_vm11, %v4906_v13, %v4908_v55 }
 0x9cc   : > { %v4966_v30 = vadd.f32 %v4934_v3, %v4516_v5  ;;  %v4965_v24 = vadd.f32 %v4933_v2, %v4515_v51  ;;  %v10462_v5 = vld [vmem:[#allocation7_spill] sm:$0xff]  ;;  %v3800_v2 = vmul.f32 %v5937_v49, %v10464_v8 }
 0x9cd   : > { %v5009_v44 = vadd.f32 %v10460_v4, %v4967_v53  ;;  %v3797_v16 = vmul.f32 %v5935_v6, %v10462_v5  ;;  %v5936_v53 = vld [vmem:[#allocation2 + $0x88] sm:$0xff]  ;;  %v10468_v6 = vld [vmem:[#allocation51_spill] sm:$0xff] }
 0x9ce   : > { %v4914_v47 = vpop.permute.xlu0 %4913  ;;  %v4912_v36 = vpop.permute.xlu1 %4911  ;;  %v5008_v33 = vadd.f32 %v10460_v4, %v4966_v30  ;;  %v5007_v15 = vadd.f32 %v10460_v4, %v4965_v24  ;;  %v3796_v54 = vmul.f32 %v5936_v53, %v10462_v5 }
 0x9cf   : > { %v4935_v56 = vsel %vm1734_vm11, %v4912_v36, %v4914_v47  ;;  %v5027_v41 = vmax.f32 %v5009_v44, 0.0  ;;  %v4067_v36 = vsel %vm840_vm6, %v9469_v27, %v9509_v20 }
 0x9d0   : > { %v4968_v43 = vadd.f32 %v4935_v56, %v4518_v57  ;;  %v5026_v14 = vmax.f32 %v5008_v33, 0.0  ;;  %v5025_v50 = vmax.f32 %v5007_v15, 0.0  ;;  %v10463_v57 = vld [vmem:[#allocation8_spill] sm:$0xff]  ;;  %v3908_v56 = vsel %vm677_vm7, %v9513_v11, %v9562_v63 }
 0x9d1   : > { %v5045_v60 = vmin.f32 %v5027_v41, 6.0  ;;  %v4068_v30 = vsel %vm840_vm6, %v9509_v20, %v10463_v57  ;;  %v3940_v51 = vadd.f32 %v3906_v61, %v3796_v54  ;;  %v10465_v20 = vld [vmem:[#allocation37_spill] sm:$0xff] }
 0x9d2   : > { %v4916_v45 = vpop.permute.xlu1 %4915  ;;  %v5010_v59 = vadd.f32 %v10461_v18, %v4968_v43  ;;  %v5044_v7 = vmin.f32 %v5026_v14, 6.0  ;;  %v5043_v19 = vmin.f32 %v5025_v50, 6.0  ;;  %v3799_v43 = vmul.f32 %v5938_v22, %v10464_v8 }
 0x9d3   : > { %v4936_v37 = vsel %vm1734_vm11, %v4914_v47, %v4916_v45  ;;  %v4970_v0 = vadd.f32 %v4916_v45, %v4520_v1  ;;  %v3941_v47 = vadd.f32 %v9507_v29, %v3797_v16  ;;  %v3944_v29 = vadd.f32 %v9562_v63, %v3800_v2  ;;  %v10466_v45 = vld [vmem:[#allocation10_spill] sm:$0xff] }
 0x9d4   : > { %v4969_v13 = vadd.f32 %v4936_v37, %v4519_v62  ;;  %v5028_v12 = vmax.f32 %v5010_v59, 0.0  ;;  %v4102_v62 = vadd.f32 %v4067_v36, %v3940_v51  ;;  %v3943_v24 = vadd.f32 %v3908_v56, %v3799_v43  ;;  %v10467_v59 = vld [vmem:[#allocation30_spill] sm:$0xff] }
 0x9d5   : > { %v5012_v40 = vadd.f32 %v10461_v18, %v4970_v0  ;;  %v4468_v32 = vpop.permute.xlu0 %4467  ;;  %v4103_v44 = vadd.f32 %v4068_v30, %v3941_v47  ;;  %v3905_v33 = vsel %vm677_vm7, %v10465_v20, %v9461_v17  ;;  %v3907_v37 = vsel %vm677_vm7, %v10466_v45, %v9513_v11 }
 0x9d6   : > { %v5011_v23 = vadd.f32 %v10461_v18, %v4969_v13  ;;  %v5046_v55 = vmin.f32 %v5028_v12, 6.0  ;;  %v4472_v3 = vpop.permute.xlu1 %4471  ;;  %v3795_v0 = vmul.f32 %v9490_v9, %v10462_v5  ;;  %v3798_v18 = vmul.f32 %v9490_v9, %v10464_v8  ;;  %v10469_v8 = vld [vmem:[#allocation38_spill] sm:$0xff] }
 0x9d7   : > { %v5030_v10 = vmax.f32 %v5012_v40, 0.0  ;;  %v4070_v63 = vsel %vm840_vm6, %v9538_v58, %v10467_v59  ;;  %v4069_v17 = vsel %vm840_vm6, %v9515_v35, %v9538_v58  ;;  %v4121_v15 = vmul.f32 %v10447_v26, %v4103_v44 }
 0x9d8   : > { %v5029_v25 = vmax.f32 %v5011_v23, 0.0  ;;  %v5060_v34 = vpack.c.bf16 %v5046_v55, %v5043_v19  ;;  %v4106_v40 = vadd.f32 %v4070_v63, %v3944_v29  ;;  %v3939_v14 = vadd.f32 %v3905_v33, %v3795_v0 }
 0x9d9   : > { %v5048_v21 = vmin.f32 %v5030_v10, 6.0  ;;  %v4470_v1 = vpop.permute.xlu0 %4469  ;;  %v3942_v23 = vadd.f32 %v3907_v37, %v3798_v18  ;;  %v4105_v10 = vadd.f32 %v4069_v17, %v3943_v24  ;;  %v4120_v9 = vmul.f32 %v4102_v62, %v10448_v42 }
 0x9da   : > { %v5047_v39 = vmin.f32 %v5029_v25, 6.0  ;;  %v4488_v11 = vsel %vm1272_vm9, %v4470_v1, %v4472_v3  ;;  %v4523_v12 = vadd.f32 %v4472_v3, %v4121_v15  ;;  %v4124_v50 = vmul.f32 %v10447_v26, %v4106_v40 }
 0x9db   : > { %v5062_v46 = vpack.c.bf16 %v5048_v21, %v5045_v60  ;;  %v4522_v25 = vadd.f32 %v4488_v11, %v4120_v9  ;;  %v4104_v55 = vadd.f32 %v9515_v35, %v3942_v23  ;;  %v4487_v54 = vsel %vm1272_vm9, %v4468_v32, %v4470_v1  ;;  %v5154_v11 = vld [vmem:[%s10014_s4 + $0x10] sm:$0xf]  ;;  %v9759_v23 = vld [vmem:[%s10015_s5] sm:$0xf] }
 0x9dc   : > { %v5061_v38 = vpack.c.bf16 %v5047_v39, %v5044_v7  ;;  %v10471_v9 = vmov 9  }
 0x9dd   : > { %5090 = vrot.lane.b32.xlu0 %v5062_v46, %s5965_s21  ;;  %v4101_v46 = vadd.f32 %v9469_v27, %v3939_v14  ;;  %v4122_v47 = vmul.f32 %v10449_v52, %v4104_v55  ;;  %v10477_v55 = vmov 4  }
 0x9de   : > { %5088 = vrot.lane.b32.xlu1 %v5061_v38, %s5965_s21  ;;  %v4123_v38 = vmul.f32 %v4105_v10, %v10448_v42  ;;  %v10470_v10 = vmov 5  }
 0x9df   : > { %v4119_v35 = vmul.f32 %v10449_v52, %v4101_v46 }
 0x9e1   : > { %v4521_v56 = vadd.f32 %v4487_v54, %v4119_v35 }
 0x9e2   : > { %5086 = vrot.lane.b32.xlu1 %v5060_v34, %s5965_s21 }
 0x9e7   : > { %v4474_v4 = vpop.permute.xlu1 %4473 }
 0x9f2   : > { %v4476_v13 = vpop.permute.xlu0 %4475  ;;  %v4478_v41 = vpop.permute.xlu1 %4477 }
 0x9f3   : > { %v4490_v7 = vsel %vm1272_vm9, %v4476_v13, %v4478_v41  ;;  %v4526_v34 = vadd.f32 %v4478_v41, %v4124_v50  ;;  %v4489_v57 = vsel %vm1272_vm9, %v4474_v4, %v4476_v13 }
 0x9f4   : > { %v4525_v5 = vadd.f32 %v4490_v7, %v4123_v38  ;;  %v4524_v51 = vadd.f32 %v4489_v57, %v4122_v47 }
 0x9f6   : > { %v4920_v60 = vpop.permute.xlu0 %4919  ;;  %v4922_v21 = vpop.permute.xlu1 %4921 }
 0x9f7   : > { %v4938_v58 = vsel %vm1734_vm11, %v4920_v60, %v4922_v21  ;;  %v4973_v39 = vadd.f32 %v4922_v21, %v4523_v12  ;;  %v10472_v12 = vmov 2  }
 0x9f8   : > { %v4972_v19 = vadd.f32 %v4938_v58, %v4522_v25  ;;  %v10473_v25 = vmov 6   ;;  %v10475_v58 = vmov 10  }
 0x9f9   : > { %v5015_v3 = vadd.f32 %v10468_v6, %v4973_v39  ;;  %v10476_v39 = vld [vmem:[#allocation24_spill] sm:$0xff] }
 0x9fa   : > { %v5014_v16 = vadd.f32 %v10468_v6, %v4972_v19  ;;  %v4926_v61 = vpop.permute.xlu0 %4925  ;;  %v4928_v53 = vpop.permute.xlu1 %4927  ;;  %v10478_v19 = vmov 7  }
 0x9fb   : > { %v4940_v30 = vsel %vm1734_vm11, %v4926_v61, %v4928_v53  ;;  %v4976_v27 = vadd.f32 %v4928_v53, %v4526_v34  ;;  %v5033_v49 = vmax.f32 %v5015_v3, 0.0  ;;  %v10479_v34 = vld [vmem:[#allocation3_spill] sm:$0xff]  ;;  %v5968_v3 = vmov 14  }
 0x9fc   : > { %v4975_v36 = vadd.f32 %v4940_v30, %v4525_v5  ;;  %v5032_v22 = vmax.f32 %v5014_v16, 0.0  ;;  %v10480_v5 = vmov 0   ;;  %v10481_v16 = vmov 8  }
 0x9fd   : > { %v5018_v2 = vadd.f32 %v10469_v8, %v4976_v27  ;;  %v5051_v33 = vmin.f32 %v5033_v49, 6.0  ;;  %v5971_v53 = vmov 15  }
 0x9fe   : > { %v5017_v43 = vadd.f32 %v10469_v8, %v4975_v36  ;;  %v4918_v44 = vpop.permute.xlu0 %4917  ;;  %v4924_v32 = vpop.permute.xlu1 %4923  ;;  %v5050_v37 = vmin.f32 %v5032_v22, 6.0  ;;  %v9802_v22 = vld [vmem:[#allocation2] sm:$0xf] }
 0x9ff   : > { %v5036_v1 = vmax.f32 %v5018_v2, 0.0  ;;  %v4937_v4 = vsel %vm1734_vm11, %v4918_v44, %v4920_v60  ;;  %v4939_v29 = vsel %vm1734_vm11, %v4924_v32, %v4926_v61  ;;  %v10474_v60 = vmov 3  }
 0xa00   : > { %v5035_v62 = vmax.f32 %v5017_v43, 0.0  ;;  %v4971_v24 = vadd.f32 %v4937_v4, %v4521_v56  ;;  %v4974_v20 = vadd.f32 %v4939_v29, %v4524_v51  ;;  %v5970_v61 = vmov 13   ;;  %v5917_v56 = vld [vmem:[%s10012_s2 + $0x10] sm:$0xff]  }
 0xa01   : > { %v5054_v45 = vmin.f32 %v5036_v1, 6.0  ;;  %v5176_v43 = vmul.f32 %v10319_v28, %v9802_v22 }
 0xa02   : > { %v5053_v0 = vmin.f32 %v5035_v62, 6.0  ;;  %v5013_v18 = vadd.f32 %v10468_v6, %v4971_v24  ;;  %v5016_v59 = vadd.f32 %v10469_v8, %v4974_v20  ;;  %v5967_v6 = vmov 11  }
 0xa03   : > { %v5065_v63 = vpack.c.bf16 %v5054_v45, %v5051_v33 }
 0xa04   : > { %v5031_v13 = vmax.f32 %v5013_v18, 0.0  ;;  %v5034_v41 = vmax.f32 %v5016_v59, 0.0  ;;  %v5064_v17 = vpack.c.bf16 %v5053_v0, %v5050_v37 }
 0xa05   : > { %5096 = vrot.lane.b32.xlu1 %v5065_v63, %s5965_s21 }
 0xa06   : > { %v5049_v40 = vmin.f32 %v5031_v13, 6.0  ;;  %v5052_v15 = vmin.f32 %v5034_v41, 6.0  ;;  %5094 = vrot.lane.b32.xlu0 %v5064_v17, %s5965_s21  ;;  %v9835_v41 = vld [vmem:[#allocation2 + $0x18] sm:$0xf] }
 0xa08   : > { %v5063_v14 = vpack.c.bf16 %v5052_v15, %v5049_v40 }
 0xa09   : > { %5157 = vperm.xlu1 %5868, %v5154_v11  }
 0xa0a   : > { %5092 = vrot.lane.b32.xlu0 %v5063_v14, %s5965_s21 }
 0xa0d   : > { %5870 = vset.pattern.permute.xlu1 %v10470_v10 }
 0xa0e   : > { %5324 = vperm.xlu1 %5870, %v9759_v23   ;;  %5236 = vperm.xlu0 %5869, %v9759_v23  }
 0xa12   : > { %5871 = vset.pattern.permute.xlu1 %v10471_v9  ;;  %5872 = vset.pattern.permute.xlu0 %v10472_v12  ;;  %v5972_v9 = vmov 12  }
 0xa13   : > { %5414 = vperm.xlu1 %5871, %v9759_v23   ;;  %5260 = vperm.xlu0 %5872, %v9759_v23  }
 0xa17   : > { %5873 = vset.pattern.permute.xlu1 %v10473_v25  ;;  %5875 = vset.pattern.permute.xlu0 %v10474_v60 }
 0xa18   : > { %5348 = vperm.xlu1 %5873, %v9759_v23   ;;  %5284 = vperm.xlu0 %5875, %v9759_v23  }
 0xa19   : > { %v5085_v21 = vpop.permute.xlu1 %5084 }
 0xa1a   : > { %v5083_v50 = vpop.permute.xlu0 %5082 }
 0xa1b   : > { %v5099_v7 = vsel %vm1904_vm12, %v5083_v50, %v5085_v21 }
 0xa1c   : > { %5874 = vset.pattern.permute.xlu1 %v10475_v58  ;;  %5113 = vmatprep.subr.bf16.mxu1 %v5099_v7 }
 0xa1d   : > { %5433 = vperm.xlu1 %5874, %v9759_v23   ;;  %5879 = vrot.lane.b32.xlu0 %v10476_v39, %s5963_s8 }
 0xa1e   : > { %v5081_v46 = vpop.permute.xlu0 %5080  ;;  %5894 = vset.pattern.permute.xlu0 %v10477_v55 }
 0xa1f   : > { %v5098_v38 = vsel %vm1904_vm12, %v5081_v46, %v5083_v50 }
 0xa20   : > { %5114 = vmatpush1.bf16.msra.mxu1 %v5098_v38 }
 0xa21   : > { %5876 = vset.pattern.permute.xlu1 %v10478_v19  ;;  %5889 = vrot.lane.b32.xlu0 %v10479_v34, %s5966_s26 }
 0xa22   : > { %5367 = vperm.xlu1 %5876, %v9759_v23  }
 0xa25   : > { %5317 = vperm.xlu0 %5894, %v9759_v23  }
 0xa26   : > { %5877 = vset.pattern.permute.xlu1 %v5967_v6 }
 0xa27   : > { %5457 = vperm.xlu1 %5877, %v9759_v23  }
 0xa29   : > { %5897 = vset.pattern.permute.xlu0 %v5968_v3 }
 0xa2a   : > { %5524 = vperm.xlu0 %5897, %v9759_v23  }
 0xa2b   : > { %5884 = vrot.lane.b32.xlu1 %v10476_v39, %s5969_s29 }
 0xa2c   : > { %5893 = vset.pattern.permute.xlu1 %v10480_v5 }
 0xa2e   : > { %5904 = vset.pattern.permute.xlu0 %v5972_v9 }
 0xa2f   : > { %5229 = vperm.xlu1 %5893, %v9759_v23  }
 0xa33   : > { %5895 = vset.pattern.permute.xlu1 %v10481_v16 }
 0xa34   : > { %5407 = vperm.xlu1 %5895, %v9759_v23  }
 0xa38   : > { %5896 = vset.pattern.permute.xlu1 %v5970_v61 }
 0xa39   : > { %5502 = vperm.xlu1 %5896, %v9759_v23  }
 0xa3d   : > { %5898 = vset.pattern.permute.xlu1 %v5971_v53 }
 0xa3e   : > { %5546 = vperm.xlu1 %5898, %v9759_v23  }
 0xa4f   : > { %v5091_v54 = vpop.permute.xlu0 %5090 }
 0xa50   : > { %v5089_v57 = vpop.permute.xlu1 %5088 }
 0xa51   : > { %v5101_v30 = vsel %vm1904_vm12, %v5089_v57, %v5091_v54 }
 0xa52   : > { %5115 = vmatprep.subr.bf16.mxu1 %v5101_v30 }
 0xa54   : > { %v5087_v27 = vpop.permute.xlu1 %5086 }
 0xa55   : > { %v5100_v35 = vsel %vm1904_vm12, %v5087_v27, %v5089_v57 }
 0xa56   : > { %5116 = vmatpush1.bf16.msra.mxu1 %v5100_v35 }
 0xa77   : > { %v5097_v47 = vpop.permute.xlu1 %5096 }
 0xa78   : > { %v5095_v36 = vpop.permute.xlu0 %5094 }
 0xa79   : > { %v5103_v49 = vsel %vm1904_vm12, %v5095_v36, %v5097_v47 }
 0xa7a   : > { %5117 = vmatprep.subr.bf16.mxu1 %v5103_v49 }
 0xa7c   : > { %v5093_v8 = vpop.permute.xlu0 %5092 }
 0xa7d   : > { %v5102_v2 = vsel %vm1904_vm12, %v5093_v8, %v5095_v36 }
 0xa7e   : > { %5118 = vmatpush1.bf16.msra.mxu1 %v5102_v2 }
 0xa81   : > { %5702 = vmatmul.mubr.msk.bf16.vlgmr.msra.gmra.mrb[20].mxu1 %vm1917_vm13, %v5917_v56 }
 0xa88   : > { %v5158_v51 = vpop.permute.xlu1 %5157 }
 0xa8d   : > { %v9806_v44 = vpop.permute.xlu1 %5324  ;;  %v5237_v32 = vpop.permute.xlu0 %5236 }
 0xa8e   : > { %v5327_v1 = vmul.f32 %v9806_v44, %v5176_v43  ;;  %v5239_v4 = vmul.f32 %v5237_v32, %v9802_v22 }
 0xa90   : > { %5333 = vrot.lane.b32.xlu0 %v5327_v1, %s5963_s8  ;;  %5245 = vrot.lane.b32.xlu1 %v5239_v4, %s5963_s8 }
 0xa92   : > { %v5415_v29 = vpop.permute.xlu1 %5414  ;;  %v9812_v62 = vpop.permute.xlu0 %5260 }
 0xa94   : > { %5900 = vrot.lane.b32.xlu0 %v10479_v34, %s5965_s21 }
 0xa97   : > { %v5349_v24 = vpop.permute.xlu1 %5348  ;;  %v5285_v20 = vpop.permute.xlu0 %5284 }
 0xa9b   : > { %v9816_v28 = vpop.permute.xlu0 %5879 }
 0xa9c   : > { %v9818_v33 = vpop.permute.xlu1 %5433  ;;  %v5882_v45 = vunpack.i.h.bf16 %v9816_v28  ;;  %v5881_v37 = vunpack.i.l.bf16 %v9816_v28 }
 0xa9e   : > { %v5183_v0 = vsel %vm1272_vm9, %v5881_v37, %v5882_v45  ;;  %v9826_v18 = vmul.f32 %v5881_v37, %v9802_v22 }
 0xa9f   : > { %v5890_v61 = vpop.permute.xlu0 %5889 }
 0xaa0   : > { %v5263_v59 = vmul.f32 %v9812_v62, %v9826_v18  ;;  %v5891_v30 = vunpack.i.l.bf16 %v5890_v61  ;;  %v5892_v2 = vunpack.i.h.bf16 %v5890_v61 }
 0xaa1   : > { %v9830_v63 = vpop.permute.xlu1 %5367 }
 0xaa2   : > { %5269 = vrot.lane.b32.xlu1 %v5263_v59, %s5958_s27 }
 0xaa4   : > { %v9886_v43 = vpop.permute.xlu0 %5317 }
 0xaa6   : > { %v9833_v13 = vpop.permute.xlu1 %5457 }
 0xaa7   : > { %v5462_v59 = vmul.f32 %v9833_v13, %v9835_v41 }
 0xaaa   : > { %v5885_v17 = vpop.permute.xlu1 %5884 }
 0xaab   : > { %v5887_v40 = vunpack.i.h.bf16 %v5885_v17  ;;  %v5886_v15 = vunpack.i.l.bf16 %v5885_v17 }
 0xaad   : > { %v5214_v11 = vmul.f32 %v5887_v40, %v9835_v41  ;;  %v5208_v14 = vsel %vm5207_vm14, %v5886_v15, %v5887_v40 }
 0xaae   : > { %v9903_v28 = vpop.permute.xlu1 %5229 }
 0xaaf   : > { %v5438_v10 = vmul.f32 %v9818_v33, %v5214_v11 }
 0xab1   : > { %5446 = vrot.lane.b32.xlu1 %v5438_v10, %s5958_s27 }
 0xb54   : > { %v5147_v12 = vpop.f32.mrb[20].mxu1 }
 0xb55   : > { %v5160_v25 = vadd.f32 %v5158_v51, %v5147_v12  ;;  %v5149_v60 = vpop.f32.mrb[21].mxu1 }
 0xb56   : > { %v5161_v21 = vadd.f32 %v5158_v51, %v5149_v60  ;;  %v5151_v50 = vpop.f32.mrb[22].mxu1  ;;  %v5196_v51 = vsel %vm5195_vm15, %v5891_v30, %v5892_v2 }
 0xb57   : > { %5168 = vst [vmem:[#allocation2 + $0x8] sm:$0xf] %v5160_v25  ;;  %v5152_v7 = vpop.f32.mrb[23].mxu1 }
 0xb58   : > { %v5164_v58 = vcombine.low %v5160_v25, %v5161_v21  ;;  %5169 = vst [vmem:[#allocation2 + $0x10] sm:$0xf] %v5161_v21 }
 0xb5a   : > { %5166 = vst [vmem:[%s286_s15] sm:$0xff] %v5164_v58 }
 0xb5e   : > { %v9844_v39 = vld [vmem:[#allocation2 + $0x8] sm:$0xf] }
 0xb5f   : > { %v5240_v46 = vmul.f32 %v5237_v32, %v9844_v39  ;;  %v5417_v55 = vmul.f32 %v5415_v29, %v9844_v39  ;;  %v5351_v38 = vmul.f32 %v5349_v24, %v9844_v39  ;;  %v5287_v19 = vmul.f32 %v5285_v20, %v9844_v39  ;;  %v9852_v34 = vld [vmem:[#allocation2 + $0x10] sm:$0xf] }
 0xb60   : > { %v5460_v6 = vmul.f32 %v9833_v13, %v9844_v39  ;;  %v5241_v3 = vmul.f32 %v5237_v32, %v9852_v34  ;;  %v5418_v5 = vmul.f32 %v5415_v29, %v9852_v34  ;;  %v5352_v16 = vmul.f32 %v5349_v24, %v9852_v34 }
 0xb61   : > { %5247 = vrot.lane.b32.xlu0 %v5240_v46, %s5963_s8  ;;  %5421 = vrot.lane.b32.xlu1 %v5417_v55, %s5963_s8  ;;  %v9866_v54 = vmul.f32 %v5183_v0, %v9844_v39  ;;  %v5288_v57 = vmul.f32 %v5285_v20, %v9852_v34  ;;  %v5461_v27 = vmul.f32 %v9833_v13, %v9852_v34  ;;  %v5525_v20 = vpop.permute.xlu0 %5524 }
 0xb62   : > { %v5177_v35 = vmul.f32 %v9844_v39, %v10430_v48  ;;  %v5212_v36 = vmul.f32 %v5886_v15, %v9844_v39  ;;  %v5200_v49 = vmul.f32 %v5891_v30, %v9844_v39  ;;  %v5178_v56 = vmul.f32 %v10431_v31, %v9852_v34 }
 0xb63   : > { %v5264_v47 = vmul.f32 %v9812_v62, %v9866_v54  ;;  %v9891_v32 = vmul.f32 %v5882_v45, %v9852_v34  ;;  %v5201_v4 = vmul.f32 %v5196_v51, %v9852_v34  ;;  %v5213_v24 = vmul.f32 %v5208_v14, %v9852_v34 }
 0xb64   : > { %v5328_v8 = vmul.f32 %v9806_v44, %v5177_v35  ;;  %v5436_v48 = vmul.f32 %v9818_v33, %v5212_v36  ;;  %v5370_v1 = vmul.f32 %v9830_v63, %v5200_v49  ;;  %v5329_v29 = vmul.f32 %v9806_v44, %v5178_v56 }
 0xb65   : > { %5355 = vrot.lane.b32.xlu0 %v5351_v38, %s5958_s27  ;;  %5291 = vrot.lane.b32.xlu1 %v5287_v19, %s5962_s30  ;;  %v5265_v31 = vmul.f32 %v9812_v62, %v9891_v32  ;;  %v5202_v45 = vmul.f32 %v5892_v2, %v9835_v41  ;;  %v5371_v37 = vmul.f32 %v9830_v63, %v5201_v4  ;;  %v9911_v62 = vpop.permute.xlu1 %5407  ;;  %v5334_v17 = vpop.permute.xlu0 %5333 }
 0xb66   : > { %v5437_v0 = vmul.f32 %v9818_v33, %v5213_v24  ;;  %v5529_v13 = vmul.f32 %v5525_v20, %v9835_v41  ;;  %v5528_v12 = vmul.f32 %v5525_v20, %v9852_v34  ;;  %v5175_v36 = vmul.f32 %v10447_v26, %v9852_v34 }
 0xb67   : > { %v5372_v44 = vmul.f32 %v9830_v63, %v5202_v45  ;;  %v5527_v63 = vmul.f32 %v5525_v20, %v9844_v39  ;;  %v5411_v24 = vmul.f32 %v9911_v62, %v9866_v54  ;;  %v5322_v54 = vmul.f32 %v9886_v43, %v9852_v34 }
 0xb69   : > { %5466 = vrot.lane.b32.xlu0 %v5460_v6, %s5962_s30  ;;  %5249 = vrot.lane.b32.xlu1 %v5241_v3, %s5963_s8  ;;  %v5503_v40 = vpop.permute.xlu1 %5502  ;;  %v5901_v15 = vpop.permute.xlu0 %5900 }
 0xb6a   : > { %v5505_v11 = vmul.f32 %v5503_v40, %v5200_v49  ;;  %v5902_v33 = vunpack.i.l.bf16 %v5901_v15  ;;  %v5507_v14 = vmul.f32 %v5503_v40, %v5202_v45  ;;  %v5903_v10 = vunpack.i.h.bf16 %v5901_v15 }
 0xb6b   : > { %v5506_v50 = vmul.f32 %v5503_v40, %v5201_v4  ;;  %v5173_v49 = vmul.f32 %v10449_v52, %v9802_v22  ;;  %v5320_v52 = vmul.f32 %v9886_v43, %v9802_v22 }
 0xb6c   : > { %v5224_v9 = vmul.f32 %v5902_v33, %v9844_v39  ;;  %v5226_v25 = vmul.f32 %v5903_v10, %v9835_v41  ;;  %v5220_v60 = vsel %vm1904_vm12, %v5902_v33, %v5903_v10  ;;  %v5410_v33 = vmul.f32 %v9911_v62, %v9826_v18 }
 0xb6d   : > { %5423 = vrot.lane.b32.xlu0 %v5418_v5, %s5963_s8  ;;  %5357 = vrot.lane.b32.xlu1 %v5352_v16, %s5958_s27  ;;  %v5225_v7 = vmul.f32 %v5220_v60, %v9852_v34  ;;  %v5232_v56 = vmul.f32 %v9903_v28, %v5173_v49 }
 0xb71   : > { %5293 = vrot.lane.b32.xlu0 %v5288_v57, %s5962_s30  ;;  %5468 = vrot.lane.b32.xlu1 %v5461_v27, %s5962_s30 }
 0xb75   : > { %5271 = vrot.lane.b32.xlu0 %v5264_v47, %s5958_s27  ;;  %5335 = vrot.lane.b32.xlu1 %v5328_v8, %s5963_s8  ;;  %v5174_v8 = vmul.f32 %v9844_v39, %v10448_v42 }
 0xb77   : > { %v5233_v42 = vmul.f32 %v9903_v28, %v5174_v8 }
 0xb79   : > { %5442 = vrot.lane.b32.xlu0 %v5436_v48, %s5958_s27  ;;  %5376 = vrot.lane.b32.xlu1 %v5370_v1, %s5962_s30  ;;  %v5234_v1 = vmul.f32 %v9903_v28, %v5175_v36 }
 0xb7d   : > { %5337 = vrot.lane.b32.xlu0 %v5329_v29, %s5963_s8  ;;  %5273 = vrot.lane.b32.xlu1 %v5265_v31, %s5958_s27 }
 0xb81   : > { %5378 = vrot.lane.b32.xlu0 %v5371_v37, %s5962_s30  ;;  %5444 = vrot.lane.b32.xlu1 %v5437_v0, %s5958_s27  ;;  %v5321_v37 = vmul.f32 %v9886_v43, %v9844_v39 }
 0xb85   : > { %5380 = vrot.lane.b32.xlu0 %v5372_v44, %s5962_s30  ;;  %5470 = vrot.lane.b32.xlu1 %v5462_v59, %s5962_s30 }
 0xb89   : > { %5496 = vperm.xlu0 %5904, %v9759_v23   ;;  %5511 = vrot.lane.b32.xlu1 %v5505_v11, %s5963_s8  ;;  %v5547_v23 = vpop.permute.xlu1 %5546 }
 0xb8a   : > { %v5549_v21 = vmul.f32 %v5547_v23, %v5224_v9  ;;  %v5551_v58 = vmul.f32 %v5547_v23, %v5226_v25 }
 0xb8d   : > { %5515 = vrot.lane.b32.xlu0 %v5507_v14, %s5963_s8  ;;  %5533 = vrot.lane.b32.xlu1 %v5527_v63, %s5958_s27  ;;  %v5246_v41 = vpop.permute.xlu1 %5245 }
 0xb8e   : > { %5905 = vset.pattern.permute.xlu0 %v5971_v53  ;;  %v5550_v53 = vmul.f32 %v5547_v23, %v5225_v7 }
 0xb91   : > { %5535 = vrot.lane.b32.xlu0 %v5528_v12, %s5958_s27  ;;  %5537 = vrot.lane.b32.xlu1 %v5529_v13, %s5958_s27  ;;  %v5270_v46 = vpop.permute.xlu1 %5269  ;;  %s5973_s27 = smov 16  }
 0xb95   : > { %5555 = vrot.lane.b32.xlu0 %v5549_v21, %s5962_s30  ;;  %5513 = vrot.lane.b32.xlu1 %v5506_v50, %s5963_s8  ;;  %v9935_v55 = vpop.permute.xlu1 %5446 }
 0xb99   : > { %5559 = vrot.lane.b32.xlu0 %v5551_v58, %s5962_s30  ;;  %5557 = vrot.lane.b32.xlu1 %v5550_v53, %s5962_s30  ;;  %s5710_s30 = sshll.u32 %s10483_s25, 5 }
 0xb9a   : > { %s291_s16 = scalar_lea.vmem %s10017_s7, %s5710_s30 }
 0xbd3   : > { %v5248_v38 = vpop.permute.xlu0 %5247  ;;  %v5422_v19 = vpop.permute.xlu1 %5421 }
 0xbd4   : > { %v5251_v2 = vsel %vm1272_vm9, %v5246_v41, %v5248_v38  ;;  %v5429_v18 = vadd.f32 %v5422_v19, %v5410_v33 }
 0xbd5   : > { %v5256_v31 = vadd.f32 %v5251_v2, %v5232_v56 }
 0xbd7   : > { %v5356_v6 = vpop.permute.xlu0 %5355  ;;  %v5292_v3 = vpop.permute.xlu1 %5291 }
 0xbdb   : > { %v9937_v5 = vpop.permute.xlu0 %5466  ;;  %v5250_v16 = vpop.permute.xlu1 %5249 }
 0xbdc   : > { %v5252_v4 = vsel %vm1272_vm9, %v5248_v38, %v5250_v16  ;;  %v5258_v20 = vadd.f32 %v5250_v16, %v5234_v1  ;;  %v5412_v38 = vmul.f32 %v9911_v62, %v9891_v32 }
 0xbdd   : > { %v5257_v44 = vadd.f32 %v5252_v4, %v5233_v42 }
 0xbdf   : > { %v9939_v61 = vpop.permute.xlu0 %5423  ;;  %v5358_v57 = vpop.permute.xlu1 %5357 }
 0xbe0   : > { %v5425_v45 = vsel %vm1272_vm9, %v5422_v19, %v9939_v61  ;;  %v5359_v63 = vsel %vm677_vm7, %v5356_v6, %v5358_v57  ;;  %v5431_v19 = vadd.f32 %v9939_v61, %v5412_v38 }
 0xbe1   : > { %v5430_v14 = vadd.f32 %v5425_v45, %v5411_v24 }
 0xbe3   : > { %v5294_v30 = vpop.permute.xlu0 %5293  ;;  %v9941_v27 = vpop.permute.xlu1 %5468 }
 0xbe4   : > { %v5295_v13 = vsel %vm895_vm10, %v5292_v3, %v5294_v30  ;;  %v5472_v49 = vsel %vm895_vm10, %v9937_v5, %v9941_v27 }
 0xbe7   : > { %v5272_v35 = vpop.permute.xlu0 %5271  ;;  %v5336_v47 = vpop.permute.xlu1 %5335 }
 0xbe8   : > { %v5275_v29 = vsel %vm677_vm7, %v5270_v46, %v5272_v35  ;;  %v5339_v26 = vsel %vm1272_vm9, %v5334_v17, %v5336_v47 }
 0xbe9   : > { %v5280_v59 = vadd.f32 %v5275_v29, %v5256_v31  ;;  %v5344_v17 = vadd.f32 %v5339_v26, %v5320_v52 }
 0xbeb   : > { %v5443_v48 = vpop.permute.xlu0 %5442  ;;  %v5377_v51 = vpop.permute.xlu1 %5376  ;;  %v5299_v60 = vadd.f32 %v5292_v3, %v5280_v59  ;;  %v5363_v21 = vadd.f32 %v5356_v6, %v5344_v17 }
 0xbec   : > { %v5453_v3 = vadd.f32 %v5443_v48, %v5429_v18 }
 0xbef   : > { %v5338_v0 = vpop.permute.xlu0 %5337  ;;  %v5274_v40 = vpop.permute.xlu1 %5273 }
 0xbf0   : > { %v5340_v22 = vsel %vm1272_vm9, %v5336_v47, %v5338_v0  ;;  %v5276_v15 = vsel %vm677_vm7, %v5272_v35, %v5274_v40  ;;  %v5282_v28 = vadd.f32 %v5274_v40, %v5258_v20  ;;  %v5346_v12 = vadd.f32 %v5338_v0, %v5322_v54 }
 0xbf1   : > { %v5345_v11 = vadd.f32 %v5340_v22, %v5321_v37  ;;  %v5281_v10 = vadd.f32 %v5276_v15, %v5257_v44  ;;  %v5387_v35 = vadd.f32 %v5377_v51, %v5363_v21 }
 0xbf2   : > { %v5301_v9 = vadd.f32 %v5294_v30, %v5282_v28  ;;  %v5365_v16 = vadd.f32 %v5358_v57, %v5346_v12 }
 0xbf3   : > { %v5364_v23 = vadd.f32 %v5359_v63, %v5345_v11  ;;  %v5379_v25 = vpop.permute.xlu0 %5378  ;;  %v5300_v50 = vadd.f32 %v5295_v13, %v5281_v10  ;;  %v5445_v43 = vpop.permute.xlu1 %5444 }
 0xbf4   : > { %v5382_v7 = vsel %vm895_vm10, %v5377_v51, %v5379_v25  ;;  %v5448_v58 = vsel %vm677_vm7, %v5443_v48, %v5445_v43  ;;  %5308 = vrot.lane.b32.xlu0 %v5301_v9, %s5965_s21  ;;  %v5449_v6 = vsel %vm677_vm7, %v5445_v43, %v9935_v55  ;;  %v5477_v55 = vadd.f32 %v9937_v5, %v5453_v3 }
 0xbf5   : > { %v5305_v53 = vcombine.low %v5299_v60, %v5300_v50  ;;  %v5388_v41 = vadd.f32 %v5382_v7, %v5364_v23  ;;  %v5454_v46 = vadd.f32 %v5448_v58, %v5430_v14  ;;  %v5455_v2 = vadd.f32 %v5449_v6, %v5431_v19 }
 0xbf7   : > { %v5381_v30 = vpop.permute.xlu0 %5380  ;;  %5306 = vrot.lane.b32.xlu1 %v5305_v53, %s5965_s21  ;;  %v5471_v36 = vpop.permute.xlu1 %5470  ;;  %v5393_v32 = vcombine.low %v5387_v35, %v5388_v41  ;;  %v5478_v62 = vadd.f32 %v5472_v49, %v5454_v46 }
 0xbf8   : > { %v5383_v47 = vsel %vm895_vm10, %v5379_v25, %v5381_v30  ;;  %v5473_v57 = vsel %vm895_vm10, %v9941_v27, %v5471_v36 }
 0xbf9   : > { %v5389_v8 = vadd.f32 %v5383_v47, %v5365_v16  ;;  %v5479_v48 = vadd.f32 %v5473_v57, %v5455_v2  ;;  %v5483_v56 = vcombine.low %v5477_v55, %v5478_v62 }
 0xbfb   : > { %5396 = vrot.lane.b32.xlu0 %v5389_v8, %s5973_s27  ;;  %5394 = vrot.lane.b32.xlu1 %v5393_v32, %s5973_s27  ;;  %v5512_v51 = vpop.permute.xlu1 %5511 }
 0xbff   : > { %5486 = vrot.lane.b32.xlu0 %v5479_v48, %s5966_s26  ;;  %5484 = vrot.lane.b32.xlu1 %v5483_v56, %s5966_s26  ;;  %v5534_v61 = vpop.permute.xlu1 %5533 }
 0xc03   : > { %v5538_v4 = vpop.permute.xlu1 %5537 }
 0xc07   : > { %v5514_v26 = vpop.permute.xlu1 %5513 }
 0xc08   : > { %v5497_v1 = vpop.permute.xlu0 %5496  ;;  %v5517_v24 = vsel %vm1272_vm9, %v5512_v51, %v5514_v26 }
 0xc09   : > { %v5499_v52 = vmul.f32 %v5497_v1, %v9844_v39  ;;  %v5500_v5 = vmul.f32 %v5497_v1, %v9852_v34 }
 0xc0b   : > { %v5521_v37 = vadd.f32 %v5517_v24, %v5499_v52  ;;  %v5558_v0 = vpop.permute.xlu1 %5557 }
 0xc0c   : > { %v5516_v29 = vpop.permute.xlu0 %5515 }
 0xc0d   : > { %v5518_v31 = vsel %vm1272_vm9, %v5514_v26, %v5516_v29 }
 0xc0e   : > { %v5522_v44 = vadd.f32 %v5518_v31, %v5500_v5 }
 0xc10   : > { %v5536_v27 = vpop.permute.xlu0 %5535 }
 0xc11   : > { %v5539_v20 = vsel %vm677_vm7, %v5534_v61, %v5536_v27  ;;  %v5540_v45 = vsel %vm677_vm7, %v5536_v27, %v5538_v4 }
 0xc12   : > { %v5543_v17 = vadd.f32 %v5539_v20, %v5521_v37  ;;  %v5544_v40 = vadd.f32 %v5540_v45, %v5522_v44 }
 0xc14   : > { %v5556_v42 = vpop.permute.xlu0 %5555 }
 0xc15   : > { %v5561_v59 = vsel %vm895_vm10, %v5556_v42, %v5558_v0 }
 0xc16   : > { %v5565_v15 = vadd.f32 %v5561_v59, %v5543_v17 }
 0xc18   : > { %v5560_v39 = vpop.permute.xlu0 %5559 }
 0xc19   : > { %v5562_v22 = vsel %vm895_vm10, %v5558_v0, %v5560_v39 }
 0xc1a   : > { %v5566_v34 = vadd.f32 %v5562_v22, %v5544_v40 }
 0xc1c   : > { %v5569_v28 = vcombine.low %v5565_v15, %v5566_v34 }
 0xc1e   : > { %5705 = vst [vmem:[%s291_s16 + $0x18] sm:$0xff] %v5569_v28 }
 0xc66   : > { %v5309_v54 = vpop.permute.xlu0 %5308 }
 0xc67   : > { %v5311_v33 = vrot.slane %v5309_v54, 4 }
 0xc69   : > { %v5307_v11 = vpop.permute.xlu1 %5306 }
 0xc6a   : > { %v5310_v14 = vrot.slane %v5307_v11, 4 }
 0xc6c   : > { %v5312_v63 = vsel %vm415_vm0, %v5310_v14, %v5311_v33 }
 0xc6d   : > { %v5397_v10 = vpop.permute.xlu0 %5396  ;;  %v5313_v13 = vsel %vm1904_vm12, %v5307_v11, %v5312_v63  ;;  %v5395_v12 = vpop.permute.xlu1 %5394 }
 0xc6e   : > { %v5399_v9 = vrot.slane %v5397_v10, 4  ;;  %5315 = vst [vmem:[%s291_s16] sm:$0xff] %v5313_v13  ;;  %v5398_v23 = vrot.slane %v5395_v12, 4 }
 0xc70   : > { %v5400_v25 = vsel %vm415_vm0, %v5398_v23, %v5399_v9 }
 0xc71   : > { %v5487_v60 = vpop.permute.xlu0 %5486  ;;  %v5402_v21 = vsel %vm5401_vm1, %v5395_v12, %v5400_v25  ;;  %v5485_v7 = vpop.permute.xlu1 %5484 }
 0xc72   : > { %v5489_v50 = vrot.slane %v5487_v60, 4  ;;  %5703 = vst [vmem:[%s291_s16 + $0x8] sm:$0xff] %v5402_v21  ;;  %v5488_v43 = vrot.slane %v5485_v7, 4 }
 0xc74   : > { %v5490_v58 = vsel %vm415_vm0, %v5488_v43, %v5489_v50 }
 0xc75   : > { %v5491_v18 = vsel %vm5195_vm15, %v5485_v7, %v5490_v58 }
 0xc76   : > { %5704 = vst [vmem:[%s291_s16 + $0x10] sm:$0xff] %v5491_v18 }
 0xc77 PF: > { %s18_s24 = sadd.s32 1, %s5945_s24  }
 0xc78   : > { %p15_p4 = scmp.ge.s32.totalorder %s18_s24, 4  }
 0xc7a   :  { %17 = sbr.rel (!%p15_p4) target bundleno = 1 (0x1), region = 89 }

</bundles_post_ra>
